<compile_context>
chip_gen: v6e
topology: v6e:2x2x1
jax: 0.10.0
libtpu: 0.0.40
codegen_flags: <defaults>
</compile_context>

<pallas_src>
import functools

import jax
import jax.numpy as jnp
from jax import lax
from jax.experimental import pallas as pl
from jax.experimental.pallas import tpu as pltpu


_VMEM_LIMIT = 32 * 1024 * 1024       # safe on v5e / v6e / v7x
_MAT_TM = 512                        # M tile for the resident-B matmul
_IN_FAST_BYTES = 2 * 1024 * 1024     # per-image slab threshold for fused IN
_IN_CHUNK_BYTES = 2 * 1024 * 1024    # chunk target for the two-pass IN


def _round_up(x, m):
    return (x + m - 1) // m * m


# ---------------------------------------------------------------------------
# Pallas kernel: resident-weight matmul, bf16 operands, f32 math, fused
# bias / ReLU / tanh, optional multi-tap accumulation (for conv-transpose).
# ---------------------------------------------------------------------------

def _fused_matmul_kernel(*refs, n_taps, activation):
    a_refs = refs[:n_taps]
    b_refs = refs[n_taps:2 * n_taps]
    bias_ref, o_ref = refs[2 * n_taps], refs[2 * n_taps + 1]

    acc = bias_ref[...]                                   # (1, Np) f32
    for t in range(n_taps):
        acc = acc + jnp.dot(a_refs[t][...], b_refs[t][...],
                            preferred_element_type=jnp.float32)
    if activation == "tanh":
        acc = jnp.tanh(acc)
    elif activation == "relu":
        acc = jnp.maximum(acc, 0.0)
    o_ref[...] = acc.astype(o_ref.dtype)


def _choose_tm(m):
    if m <= _MAT_TM:
        return _round_up(m, 8)
    for t in (_MAT_TM, 256, 128, 64, 32, 16, 8):
        if m % t == 0:
            return t
    return _MAT_TM                    # falls back to padding M


def pallas_matmul_taps(a_list, b_list, bias_raw, activation=None,
                       out_dtype=jnp.bfloat16):
    """sum_t(a_t @ b_t) + bias, with fused activation.

    a_t: [M, K_t] bf16; b_t: [K_t, Np] bf16 (Np multiple of 128, pre-padded);
    bias_raw: [cout] f32.  Returns [M, cout] out_dtype.
    """
    M = a_list[0].shape[0]
    Np = b_list[0].shape[1]
    cout = bias_raw.shape[0]
    bias = jnp.pad(bias_raw.astype(jnp.float32), (0, Np - cout)).reshape(1, Np)

    TM = _choose_tm(M)
    Mp = _round_up(M, TM)
    if Mp != M:
        a_list = [jnp.pad(a, ((0, Mp - M), (0, 0))) for a in a_list]

    n = len(a_list)
    in_specs = []
    for a in a_list:                  # A tiles march along M
        k = a.shape[1]
        in_specs.append(pl.BlockSpec((TM, k), lambda i: (i, 0)))
    for b in b_list:                  # weights: constant index -> resident
        k = b.shape[0]
        in_specs.append(pl.BlockSpec((k, Np), lambda i: (0, 0)))
    in_specs.append(pl.BlockSpec((1, Np), lambda i: (0, 0)))

    out = pl.pallas_call(
        functools.partial(_fused_matmul_kernel, n_taps=n, activation=activation),
        out_shape=jax.ShapeDtypeStruct((Mp, Np), out_dtype),
        grid=(Mp // TM,),
        in_specs=in_specs,
        out_specs=pl.BlockSpec((TM, Np), lambda i: (i, 0)),
        compiler_params=pltpu.CompilerParams(
            dimension_semantics=("parallel",),
            vmem_limit_bytes=_VMEM_LIMIT),
    )(*a_list, *b_list, bias)
    return out[:M, :cout]


# ---------------------------------------------------------------------------
# Pallas kernels: InstanceNorm (fused single-pass, plus chunked two-pass)
# ---------------------------------------------------------------------------

def _in_fused_kernel(*refs, relu, has_skip, eps):
    if has_skip:
        x_ref, skip_ref, o_ref = refs
    else:
        x_ref, o_ref = refs
    x = x_ref[...].astype(jnp.float32)                     # (1, HW, C)
    mean = jnp.mean(x, axis=1, keepdims=True)
    var = jnp.maximum(jnp.mean(x * x, axis=1, keepdims=True) - mean * mean, 0.0)
    y = (x - mean) * lax.rsqrt(var + eps)
    if relu:
        y = jnp.maximum(y, 0.0)
    if has_skip:
        y = y + skip_ref[...].astype(jnp.float32)
    o_ref[...] = y.astype(o_ref.dtype)


def _in_stats_kernel(x_ref, sum_ref, sq_ref):
    @pl.when(pl.program_id(1) == 0)
    def _init():
        sum_ref[...] = jnp.zeros_like(sum_ref)
        sq_ref[...] = jnp.zeros_like(sq_ref)

    x = x_ref[...].astype(jnp.float32)                     # (1, CH, C)
    sum_ref[...] += jnp.sum(x, axis=1, keepdims=True)
    sq_ref[...] += jnp.sum(x * x, axis=1, keepdims=True)


def _in_norm_kernel(*refs, relu, has_skip, hw, eps):
    if has_skip:
        x_ref, sum_ref, sq_ref, skip_ref, o_ref = refs
    else:
        x_ref, sum_ref, sq_ref, o_ref = refs
    x = x_ref[...].astype(jnp.float32)
    inv_hw = 1.0 / hw
    mean = sum_ref[...] * inv_hw
    var = jnp.maximum(sq_ref[...] * inv_hw - mean * mean, 0.0)
    y = (x - mean) * lax.rsqrt(var + eps)
    if relu:
        y = jnp.maximum(y, 0.0)
    if has_skip:
        y = y + skip_ref[...].astype(jnp.float32)
    o_ref[...] = y.astype(o_ref.dtype)


def _choose_in_chunk(hw, c, itemsize):
    target = max(8, (_IN_CHUNK_BYTES // (itemsize * max(c, 1))) // 8 * 8)
    if hw <= target:
        return hw
    for cand in range(target, 7, -8):    # largest mult-of-8 divisor of hw
        if hw % cand == 0:
            return cand
    return target                          # fallback: padding required


def instance_norm(x, relu=False, skip=None, eps=1e-5, out_dtype=jnp.bfloat16):
    """x: NHWC.  Per-(n, c) normalization over H*W (affine=False, biased var),
    with optional fused ReLU and residual skip-add.  In-kernel math is f32."""
    N, H, W, C = x.shape
    HW = H * W
    xr = x.reshape(N, HW, C)
    sr = skip.reshape(N, HW, C) if skip is not None else None
    slab_bytes = HW * C * x.dtype.itemsize

    if slab_bytes <= _IN_FAST_BYTES:
        # Single fused pass per image: stats + normalize (+ relu / skip).
        spec = pl.BlockSpec((1, HW, C), lambda n: (n, 0, 0))
        inputs, specs = [xr], [spec]
        if sr is not None:
            inputs.append(sr)
            specs.append(spec)
        out = pl.pallas_call(
            functools.partial(_in_fused_kernel, relu=relu,
                              has_skip=sr is not None, eps=eps),
            out_shape=jax.ShapeDtypeStruct((N, HW, C), out_dtype),
            grid=(N,),
            in_specs=specs,
            out_specs=spec,
            compiler_params=pltpu.CompilerParams(
                dimension_semantics=("parallel",),
                vmem_limit_bytes=_VMEM_LIMIT),
        )(*inputs)
        return out.reshape(N, H, W, C)

    # Chunked two-pass path for large spatial slabs.
    CH = _choose_in_chunk(HW, C, x.dtype.itemsize)
    HWp = _round_up(HW, CH)
    if HWp != HW:
        # Zero padding is safe: padded rows contribute 0 to sum / sum-of-sq.
        xr = jnp.pad(xr, ((0, 0), (0, HWp - HW), (0, 0)))
        if sr is not None:
            sr = jnp.pad(sr, ((0, 0), (0, HWp - HW), (0, 0)))
    n_chunks = HWp // CH
    chunk_spec = pl.BlockSpec((1, CH, C), lambda n, j: (n, j, 0))
    stat_spec = pl.BlockSpec((1, 1, C), lambda n, j: (n, 0, 0))

    sums, sqs = pl.pallas_call(
        _in_stats_kernel,
        out_shape=(jax.ShapeDtypeStruct((N, 1, C), jnp.float32),
                   jax.ShapeDtypeStruct((N, 1, C), jnp.float32)),
        grid=(N, n_chunks),
        in_specs=[chunk_spec],
        out_specs=(stat_spec, stat_spec),
        compiler_params=pltpu.CompilerParams(
            dimension_semantics=("parallel", "arbitrary"),
            vmem_limit_bytes=_VMEM_LIMIT),
    )(xr)

    inputs = [xr, sums, sqs]
    in_specs = [chunk_spec, stat_spec, stat_spec]
    if sr is not None:
        inputs.append(sr)
        in_specs.append(chunk_spec)
    out = pl.pallas_call(
        functools.partial(_in_norm_kernel, relu=relu, has_skip=sr is not None,
                          hw=HW, eps=eps),
        out_shape=jax.ShapeDtypeStruct((N, HWp, C), out_dtype),
        grid=(N, n_chunks),
        in_specs=in_specs,
        out_specs=chunk_spec,
        compiler_params=pltpu.CompilerParams(
            dimension_semantics=("parallel", "parallel"),
            vmem_limit_bytes=_VMEM_LIMIT),
    )(*inputs)
    return out[:, :HW, :].reshape(N, H, W, C)


# ---------------------------------------------------------------------------
# Conv wrappers (im2col / phase glue in JAX, matmuls in Pallas)
# ---------------------------------------------------------------------------

def _im2col(x, k, stride, k_pad):
    """x: NHWC (already spatially padded) -> ([N*Ho*Wo, k_pad], Ho, Wo).
    Trailing (k_pad - k*k*C) columns are zeros, folded into the concat."""
    N, H, W, C = x.shape
    Ho = (H - k) // stride + 1
    Wo = (W - k) // stride + 1
    patches = []
    for i in range(k):
        for j in range(k):
            patches.append(x[:, i:i + stride * Ho:stride,
                              j:j + stride * Wo:stride, :])
    extra = k_pad - k * k * C
    if extra:
        patches.append(jnp.zeros((N, Ho, Wo, extra), x.dtype))
    cols = jnp.concatenate(patches, axis=-1)
    return cols.reshape(N * Ho * Wo, k_pad), Ho, Wo


def conv2d(x, packed, k, stride=1, pad=0, pad_mode="zero", activation=None,
           out_dtype=jnp.bfloat16):
    """x: NHWC; packed weights from _pack_conv.  bf16 operands, f32 accum."""
    xb = x.astype(jnp.bfloat16)
    if pad:
        mode = "reflect" if pad_mode == "reflect" else "constant"
        xb = jnp.pad(xb, ((0, 0), (pad, pad), (pad, pad), (0, 0)), mode=mode)
    # TODO(synk): fuse this patch gather into the matmul index_map instead of
    # materializing the im2col matrix in HBM.
    A, Ho, Wo = _im2col(xb, k, stride, packed["B"].shape[0])
    out = pallas_matmul_taps([A], [packed["B"]], packed["bias"],
                             activation=activation, out_dtype=out_dtype)
    N = x.shape[0]
    return out.reshape(N, Ho, Wo, packed["bias"].shape[0])


def conv_transpose2d(x, packed):
    """ConvTranspose2d(k=3, s=2, p=1, output_padding=1) via a sub-pixel
    (4-phase) decomposition; per-tap dots are accumulated in-kernel."""
    N, H, W, C = x.shape
    Cp = packed["B_phases"][0][0].shape[0]
    xb = x.astype(jnp.bfloat16)
    if Cp != C:
        xb = jnp.pad(xb, ((0, 0), (0, 0), (0, 0), (0, Cp - C)))
    xh = jnp.pad(xb, ((0, 0), (0, 1), (0, 1), (0, 0)))     # bottom/right halo
    M = N * H * W
    x00 = xb.reshape(M, Cp)                                 # x[i,   j  ]
    x01 = xh[:, :H, 1:W + 1, :].reshape(M, Cp)              # x[i,   j+1]
    x10 = xh[:, 1:H + 1, :W, :].reshape(M, Cp)              # x[i+1, j  ]
    x11 = xh[:, 1:H + 1, 1:W + 1, :].reshape(M, Cp)         # x[i+1, j+1]
    taps_inputs = ((x00,), (x00, x01), (x00, x10), (x00, x01, x10, x11))

    cout = packed["bias"].shape[0]
    phases = []
    for a_list, b_list in zip(taps_inputs, packed["B_phases"]):
        p = pallas_matmul_taps(list(a_list), list(b_list), packed["bias"])
        phases.append(p.reshape(N, H, W, cout))
    p00, p01, p10, p11 = phases

    # Pixel shuffle: interleave the four phases.
    # TODO(synk): write phases directly into the interleaved output via
    # per-phase out BlockSpecs on a (N,H,2,W,2,C) view to skip these copies.
    row_e = jnp.stack([p00, p01], axis=3).reshape(N, H, 2 * W, cout)
    row_o = jnp.stack([p10, p11], axis=3).reshape(N, H, 2 * W, cout)
    return jnp.stack([row_e, row_o], axis=2).reshape(N, 2 * H, 2 * W, cout)


# ---------------------------------------------------------------------------
# Parameters: PyTorch-layout init + one-time packing (transpose/pad/bf16)
# ---------------------------------------------------------------------------

def init_params(key, in_channels, out_channels, base_channels,
                front_blocks, res_blocks):
    params = {}

    def conv_p(k_, cout, cin, ksz):
        k1, k2 = jax.random.split(k_)
        w = jax.random.normal(k1, (cout, cin, ksz, ksz), jnp.float32) * 0.05
        b = jax.random.normal(k2, (cout,), jnp.float32) * 0.05
        return w, b

    def convT_p(k_, cin, cout, ksz):
        k1, k2 = jax.random.split(k_)
        w = jax.random.normal(k1, (cin, cout, ksz, ksz), jnp.float32) * 0.05
        b = jax.random.normal(k2, (cout,), jnp.float32) * 0.05
        return w, b

    keys = iter(jax.random.split(key, 4 + 2 * front_blocks + 2 * res_blocks))
    params["conv0"] = conv_p(next(keys), base_channels, in_channels, 7)
    ch = base_channels
    for i in range(front_blocks):
        params[f"down{i}"] = conv_p(next(keys), ch * 2, ch, 3)
        ch *= 2
    for i in range(res_blocks):
        params[f"res{i}"] = (conv_p(next(keys), ch, ch, 3),
                             conv_p(next(keys), ch, ch, 3))
    for i in range(front_blocks):
        params[f"up{i}"] = convT_p(next(keys), ch, ch // 2, 3)
        ch //= 2
    params["out"] = conv_p(next(keys), out_channels, base_channels, 7)
    return params


def _pack_conv(w, b):
    """w: [Cout, Cin, k, k] (PyTorch Conv2d) -> B [Kp, Np] bf16 (K padded to
    128n, Cout padded to 128n), bias kept raw f32."""
    cout, cin, k, _ = w.shape
    K = k * k * cin
    Kp = _round_up(K, 128)
    Np = _round_up(cout, 128)
    Bm = jnp.transpose(w, (2, 3, 1, 0)).reshape(K, cout)   # (kh,kw,cin) rows
    Bm = jnp.pad(Bm, ((0, Kp - K), (0, Np - cout))).astype(jnp.bfloat16)
    return {"B": Bm, "bias": b.astype(jnp.float32)}


# (di, dj) taps of the equivalent forward weight for output phases
# (even,even), (even,odd), (odd,even), (odd,odd); tap order matches the
# (x00, x01, x10, x11) input order used in conv_transpose2d.
_CONVT_PHASE_TAPS = (
    ((1, 1),),
    ((1, 0), (1, 2)),
    ((0, 1), (2, 1)),
    ((0, 0), (0, 2), (2, 0), (2, 2)),
)


def _pack_convT(w, b):
    """w: [Cin, Cout, 3, 3] (PyTorch ConvTranspose2d layout)."""
    cin, cout = w.shape[0], w.shape[1]
    cin_p = _round_up(cin, 128)
    Np = _round_up(cout, 128)
    # equivalent forward weight: w_eq[co, ci, a, b] = w[ci, co, 2-a, 2-b]
    w_eq = jnp.transpose(w[:, :, ::-1, ::-1], (1, 0, 2, 3))
    phases = []
    for taps in _CONVT_PHASE_TAPS:
        per_tap = []
        for (di, dj) in taps:
            Bm = jnp.transpose(w_eq[:, :, di, dj], (1, 0))   # [cin, cout]
            Bm = jnp.pad(Bm, ((0, cin_p - cin), (0, Np - cout)))
            per_tap.append(Bm.astype(jnp.bfloat16))
        phases.append(per_tap)
    return {"B_phases": phases, "bias": b.astype(jnp.float32)}


def pack_params(params, front_blocks, res_blocks):
    packed = {"conv0": _pack_conv(*params["conv0"]),
              "out": _pack_conv(*params["out"])}
    for i in range(front_blocks):
        packed[f"down{i}"] = _pack_conv(*params[f"down{i}"])
        packed[f"up{i}"] = _pack_convT(*params[f"up{i}"])
    for i in range(res_blocks):
        (w1, b1), (w2, b2) = params[f"res{i}"]
        packed[f"res{i}"] = (_pack_conv(w1, b1), _pack_conv(w2, b2))
    return packed


# ---------------------------------------------------------------------------
# GlobalGenerator forward (Pallas path)
# ---------------------------------------------------------------------------

def global_generator_forward(x_nchw, packed, front_blocks, res_blocks):
    x = jnp.transpose(x_nchw, (0, 2, 3, 1))                 # NCHW -> NHWC

    # ReflectionPad(3) + Conv7x7 + IN + ReLU
    x = conv2d(x, packed["conv0"], k=7, stride=1, pad=3, pad_mode="reflect")
    x = instance_norm(x, relu=True)

    # downsampling: Conv3x3 s2 p1 + IN + ReLU
    for i in range(front_blocks):
        x = conv2d(x, packed[f"down{i}"], k=3, stride=2, pad=1)
        x = instance_norm(x, relu=True)

    # residual blocks (pix2pixHD style)
    for i in range(res_blocks):
        pk1, pk2 = packed[f"res{i}"]
        y = conv2d(x, pk1, k=3, stride=1, pad=1, pad_mode="reflect")
        y = instance_norm(y, relu=True)
        y = conv2d(y, pk2, k=3, stride=1, pad=1, pad_mode="reflect")
        x = instance_norm(y, relu=False, skip=x)             # IN + fused skip

    # upsampling: ConvTranspose3x3 s2 p1 op1 + IN + ReLU
    for i in range(front_blocks):
        x = conv_transpose2d(x, packed[f"up{i}"])
        x = instance_norm(x, relu=True)

    # ReflectionPad(3) + Conv7x7 + Tanh (tanh fused into the matmul epilogue)
    x = conv2d(x, packed["out"], k=7, stride=1, pad=3, pad_mode="reflect",
               activation="tanh", out_dtype=jnp.float32)
    return jnp.transpose(x, (0, 3, 1, 2))                    # NHWC -> NCHW


# ---------------------------------------------------------------------------
# Pure-JAX f32 reference (PyTorch semantics) for wiring / tolerance checks
# ---------------------------------------------------------------------------

def reference_forward(x_nchw, params, front_blocks, res_blocks):
    x = jnp.transpose(x_nchw, (0, 2, 3, 1)).astype(jnp.float32)

    def conv(x, wb, stride=1, pad=0, mode="constant"):
        w, b = wb
        if pad:
            x = jnp.pad(x, ((0, 0), (pad, pad), (pad, pad), (0, 0)), mode=mode)
        y = lax.conv_general_dilated(
            x, jnp.transpose(w, (2, 3, 1, 0)), (stride, stride), "VALID",
            dimension_numbers=("NHWC", "HWIO", "NHWC"))
        return y + b

    def convT(x, wb):
        w, b = wb
        w_hwio = jnp.transpose(w[:, :, ::-1, ::-1], (2, 3, 0, 1))
        y = lax.conv_general_dilated(
            x, w_hwio, (1, 1), ((1, 2), (1, 2)), lhs_dilation=(2, 2),
            dimension_numbers=("NHWC", "HWIO", "NHWC"))
        return y + b

    def inorm(x, relu=False, skip=None, eps=1e-5):
        mean = jnp.mean(x, axis=(1, 2), keepdims=True)
        var = jnp.mean(jnp.square(x - mean), axis=(1, 2), keepdims=True)
        y = (x - mean) * lax.rsqrt(var + eps)
        if relu:
            y = jnp.maximum(y, 0.0)
        if skip is not None:
            y = y + skip
        return y

    x = inorm(conv(x, params["conv0"], pad=3, mode="reflect"), relu=True)
    for i in range(front_blocks):
        x = inorm(conv(x, params[f"down{i}"], stride=2, pad=1), relu=True)
    for i in range(res_blocks):
        wb1, wb2 = params[f"res{i}"]
        y = inorm(conv(x, wb1, pad=1, mode="reflect"), relu=True)
        y = conv(y, wb2, pad=1, mode="reflect")
        x = inorm(y, skip=x)
    for i in range(front_blocks):
        x = inorm(convT(x, params[f"up{i}"]), relu=True)
    x = jnp.tanh(conv(x, params["out"], pad=3, mode="reflect"))
    return jnp.transpose(x, (0, 3, 1, 2))


# ---------------------------------------------------------------------------

if __name__ == "__main__":
    IN_CH, OUT_CH = 4, 3
    BASE = 16
    FRONT_BLOCKS = 2
    RES_BLOCKS = 2
    N, H, W = 2, 16, 16

    key = jax.random.PRNGKey(0)
    k_param, k_x = jax.random.split(key)
    params = init_params(k_param, IN_CH, OUT_CH, BASE, FRONT_BLOCKS, RES_BLOCKS)
    packed = pack_params(params, FRONT_BLOCKS, RES_BLOCKS)   # packed ONCE
    x = jax.random.normal(k_x, (N, IN_CH, H, W), jnp.float32)

    fwd = jax.jit(functools.partial(global_generator_forward,
                                    front_blocks=FRONT_BLOCKS,
                                    res_blocks=RES_BLOCKS))
    out = jax.block_until_ready(fwd(x, packed))

    assert out.shape == (N, OUT_CH, H, W), out.shape
    assert bool(jnp.all(jnp.isfinite(out)))
    assert bool(jnp.all(jnp.abs(out) <= 1.0))                # tanh range

    # Numerical check against the f32 lax reference (kernel path stores
    # activations / weights as bf16, so a loose tolerance is expected; a
    # wiring error would produce O(1) differences).
    ref = reference_forward(x, params, FRONT_BLOCKS, RES_BLOCKS)
    max_err = float(jnp.max(jnp.abs(out - ref)))
    mean_err = float(jnp.mean(jnp.abs(out - ref)))
    assert max_err < 0.2 and mean_err < 0.05, (max_err, mean_err)

    print("KERNEL_OK")
</pallas_src>

<mosaic_0001>
module attributes {stable_mosaic.version = 11 : i64} {
  func.func @_fused_matmul_kernel(%arg0: i32, %arg1: memref<512x256xbf16, #tpu.memory_space<vmem>>, %arg2: memref<256x128xbf16, #tpu.memory_space<vmem>>, %arg3: memref<1x128xf32, #tpu.memory_space<vmem>>, %arg4: memref<512x128xbf16, #tpu.memory_space<vmem>>) attributes {dimension_semantics = [#tpu.dimension_semantics<parallel>], iteration_bounds = array<i64: 1>, scalar_prefetch = 0 : i64, scratch_operands = 0 : i64, tpu.core_type = #tpu.core_type<tc>, window_params = [{transform_indices = @transform_0, window_bounds = array<i64: 512, 256>}, {pipeline_mode = #tpu.pipeline_mode<synchronous>, transform_indices = @transform_1, window_bounds = array<i64: 256, 128>}, {pipeline_mode = #tpu.pipeline_mode<synchronous>, transform_indices = @transform_2, window_bounds = array<i64: 1, 128>}, {transform_indices = @transform_3, window_bounds = array<i64: 512, 128>}]} {
    %c0 = arith.constant 0 : index
    %c0_0 = arith.constant 0 : index
    %0 = vector.load %arg3[%c0, %c0_0] : memref<1x128xf32, #tpu.memory_space<vmem>>, vector<1x128xf32>
    %c0_1 = arith.constant 0 : index
    %c0_2 = arith.constant 0 : index
    %1 = vector.load %arg1[%c0_1, %c0_2] : memref<512x256xbf16, #tpu.memory_space<vmem>>, vector<512x256xbf16>
    %c0_3 = arith.constant 0 : index
    %c0_4 = arith.constant 0 : index
    %2 = vector.load %arg2[%c0_3, %c0_4] : memref<256x128xbf16, #tpu.memory_space<vmem>>, vector<256x128xbf16>
    %cst = arith.constant dense<0.000000e+00> : vector<512x128xf32>
    %3 = tpu.matmul %1, %2, %cst {dimension_numbers = #tpu.dot_dimension_numbers<[1], [0], [0], [1], [0, 0, 1, 1], [], []>} : vector<512x256xbf16>, vector<256x128xbf16>, vector<512x128xf32> -> vector<512x128xf32>
    %4 = vector.broadcast %0 : vector<1x128xf32> to vector<512x128xf32>
    %5 = arith.addf %4, %3 : vector<512x128xf32>
    %6 = arith.truncf %5 : vector<512x128xf32> to vector<512x128xbf16>
    %c0_5 = arith.constant 0 : index
    %c0_6 = arith.constant 0 : index
    %7 = vector.load %arg4[%c0_5, %c0_6] : memref<512x128xbf16, #tpu.memory_space<vmem>>, vector<512x128xbf16>
    tpu.vector_store %arg4[%c0_5, %c0_6], %6 {strides = array<i32>} : memref<512x128xbf16, #tpu.memory_space<vmem>>, vector<512x128xbf16>,
    return
  }
  func.func @transform_0(%arg0: i32) -> (i32, i32) {
    %c0_i32 = arith.constant 0 : i32
    %c0_i32_0 = arith.constant 0 : i32
    return %arg0, %c0_i32 : i32, i32
  }
  func.func @transform_1(%arg0: i32) -> (i32, i32) {
    %c0_i32 = arith.constant 0 : i32
    %c0_i32_0 = arith.constant 0 : i32
    %c0_i32_1 = arith.constant 0 : i32
    return %c0_i32, %c0_i32_0 : i32, i32
  }
  func.func @transform_2(%arg0: i32) -> (i32, i32) {
    %c0_i32 = arith.constant 0 : i32
    %c0_i32_0 = arith.constant 0 : i32
    %c0_i32_1 = arith.constant 0 : i32
    return %c0_i32, %c0_i32_0 : i32, i32
  }
  func.func @transform_3(%arg0: i32) -> (i32, i32) {
    %c0_i32 = arith.constant 0 : i32
    %c0_i32_0 = arith.constant 0 : i32
    return %arg0, %c0_i32 : i32, i32
  }
}

module attributes {stable_mosaic.version = 11 : i64} {
  func.func @_in_fused_kernel(%arg0: i32, %arg1: memref<1x256x16xbf16, #tpu.memory_space<vmem>>, %arg2: memref<1x256x16xbf16, #tpu.memory_space<vmem>>) attributes {dimension_semantics = [#tpu.dimension_semantics<parallel>], iteration_bounds = array<i64: 2>, scalar_prefetch = 0 : i64, scratch_operands = 0 : i64, tpu.core_type = #tpu.core_type<tc>, window_params = [{transform_indices = @transform_0, window_bounds = array<i64: 1, 256, 16>}, {transform_indices = @transform_1, window_bounds = array<i64: 1, 256, 16>}]} {
    %c0 = arith.constant 0 : index
    %c0_0 = arith.constant 0 : index
    %c0_1 = arith.constant 0 : index
    %0 = vector.load %arg1[%c0, %c0_0, %c0_1] : memref<1x256x16xbf16, #tpu.memory_space<vmem>>, vector<1x256x16xbf16>
    %1 = arith.extf %0 : vector<1x256x16xbf16> to vector<1x256x16xf32>
    %cst = arith.constant dense<0.000000e+00> : vector<1x16xf32>
    %2 = vector.multi_reduction <add>, %1, %cst [1] : vector<1x256x16xf32> to vector<1x16xf32>
    %3 = vector.shape_cast %2 : vector<1x16xf32> to vector<1x1x16xf32>
    %cst_2 = arith.constant 2.560000e+02 : f32
    %4 = vector.broadcast %cst_2 : f32 to vector<1x1x16xf32>
    %5 = arith.divf %3, %4 : vector<1x1x16xf32>
    %6 = arith.mulf %1, %1 : vector<1x256x16xf32>
    %cst_3 = arith.constant dense<0.000000e+00> : vector<1x16xf32>
    %7 = vector.multi_reduction <add>, %6, %cst_3 [1] : vector<1x256x16xf32> to vector<1x16xf32>
    %8 = vector.shape_cast %7 : vector<1x16xf32> to vector<1x1x16xf32>
    %cst_4 = arith.constant 2.560000e+02 : f32
    %9 = vector.broadcast %cst_4 : f32 to vector<1x1x16xf32>
    %10 = arith.divf %8, %9 : vector<1x1x16xf32>
    %11 = arith.mulf %5, %5 : vector<1x1x16xf32>
    %12 = arith.subf %10, %11 : vector<1x1x16xf32>
    %cst_5 = arith.constant 0.000000e+00 : f32
    %13 = vector.broadcast %cst_5 : f32 to vector<1x1x16xf32>
    %14 = arith.maximumf %12, %13 : vector<1x1x16xf32>
    %15 = vector.broadcast %5 : vector<1x1x16xf32> to vector<1x256x16xf32>
    %16 = arith.subf %1, %15 : vector<1x256x16xf32>
    %cst_6 = arith.constant 9.99999974E-6 : f32
    %17 = vector.broadcast %cst_6 : f32 to vector<1x1x16xf32>
    %18 = arith.addf %14, %17 : vector<1x1x16xf32>
    %19 = math.rsqrt %18 : vector<1x1x16xf32>
    %20 = vector.broadcast %19 : vector<1x1x16xf32> to vector<1x256x16xf32>
    %21 = arith.mulf %16, %20 : vector<1x256x16xf32>
    %cst_7 = arith.constant 0.000000e+00 : f32
    %22 = vector.broadcast %cst_7 : f32 to vector<1x256x16xf32>
    %23 = arith.maximumf %21, %22 : vector<1x256x16xf32>
    %24 = arith.truncf %23 : vector<1x256x16xf32> to vector<1x256x16xbf16>
    %c0_8 = arith.constant 0 : index
    %c0_9 = arith.constant 0 : index
    %c0_10 = arith.constant 0 : index
    %25 = vector.load %arg2[%c0_8, %c0_9, %c0_10] : memref<1x256x16xbf16, #tpu.memory_space<vmem>>, vector<1x256x16xbf16>
    tpu.vector_store %arg2[%c0_8, %c0_9, %c0_10], %24 {strides = array<i32>} : memref<1x256x16xbf16, #tpu.memory_space<vmem>>, vector<1x256x16xbf16>,
    return
  }
  func.func @transform_0(%arg0: i32) -> (i32, i32, i32) {
    %c0_i32 = arith.constant 0 : i32
    %c0_i32_0 = arith.constant 0 : i32
    %c0_i32_1 = arith.constant 0 : i32
    return %arg0, %c0_i32, %c0_i32_0 : i32, i32, i32
  }
  func.func @transform_1(%arg0: i32) -> (i32, i32, i32) {
    %c0_i32 = arith.constant 0 : i32
    %c0_i32_0 = arith.constant 0 : i32
    %c0_i32_1 = arith.constant 0 : i32
    return %arg0, %c0_i32, %c0_i32_0 : i32, i32, i32
  }
}

module attributes {stable_mosaic.version = 11 : i64} {
  func.func @_in_fused_kernel(%arg0: i32, %arg1: memref<1x64x32xbf16, #tpu.memory_space<vmem>>, %arg2: memref<1x64x32xbf16, #tpu.memory_space<vmem>>) attributes {dimension_semantics = [#tpu.dimension_semantics<parallel>], iteration_bounds = array<i64: 2>, scalar_prefetch = 0 : i64, scratch_operands = 0 : i64, tpu.core_type = #tpu.core_type<tc>, window_params = [{transform_indices = @transform_0, window_bounds = array<i64: 1, 64, 32>}, {transform_indices = @transform_1, window_bounds = array<i64: 1, 64, 32>}]} {
    %c0 = arith.constant 0 : index
    %c0_0 = arith.constant 0 : index
    %c0_1 = arith.constant 0 : index
    %0 = vector.load %arg1[%c0, %c0_0, %c0_1] : memref<1x64x32xbf16, #tpu.memory_space<vmem>>, vector<1x64x32xbf16>
    %1 = arith.extf %0 : vector<1x64x32xbf16> to vector<1x64x32xf32>
    %cst = arith.constant dense<0.000000e+00> : vector<1x32xf32>
    %2 = vector.multi_reduction <add>, %1, %cst [1] : vector<1x64x32xf32> to vector<1x32xf32>
    %3 = vector.shape_cast %2 : vector<1x32xf32> to vector<1x1x32xf32>
    %cst_2 = arith.constant 6.400000e+01 : f32
    %4 = vector.broadcast %cst_2 : f32 to vector<1x1x32xf32>
    %5 = arith.divf %3, %4 : vector<1x1x32xf32>
    %6 = arith.mulf %1, %1 : vector<1x64x32xf32>
    %cst_3 = arith.constant dense<0.000000e+00> : vector<1x32xf32>
    %7 = vector.multi_reduction <add>, %6, %cst_3 [1] : vector<1x64x32xf32> to vector<1x32xf32>
    %8 = vector.shape_cast %7 : vector<1x32xf32> to vector<1x1x32xf32>
    %cst_4 = arith.constant 6.400000e+01 : f32
    %9 = vector.broadcast %cst_4 : f32 to vector<1x1x32xf32>
    %10 = arith.divf %8, %9 : vector<1x1x32xf32>
    %11 = arith.mulf %5, %5 : vector<1x1x32xf32>
    %12 = arith.subf %10, %11 : vector<1x1x32xf32>
    %cst_5 = arith.constant 0.000000e+00 : f32
    %13 = vector.broadcast %cst_5 : f32 to vector<1x1x32xf32>
    %14 = arith.maximumf %12, %13 : vector<1x1x32xf32>
    %15 = vector.broadcast %5 : vector<1x1x32xf32> to vector<1x64x32xf32>
    %16 = arith.subf %1, %15 : vector<1x64x32xf32>
    %cst_6 = arith.constant 9.99999974E-6 : f32
    %17 = vector.broadcast %cst_6 : f32 to vector<1x1x32xf32>
    %18 = arith.addf %14, %17 : vector<1x1x32xf32>
    %19 = math.rsqrt %18 : vector<1x1x32xf32>
    %20 = vector.broadcast %19 : vector<1x1x32xf32> to vector<1x64x32xf32>
    %21 = arith.mulf %16, %20 : vector<1x64x32xf32>
    %cst_7 = arith.constant 0.000000e+00 : f32
    %22 = vector.broadcast %cst_7 : f32 to vector<1x64x32xf32>
    %23 = arith.maximumf %21, %22 : vector<1x64x32xf32>
    %24 = arith.truncf %23 : vector<1x64x32xf32> to vector<1x64x32xbf16>
    %c0_8 = arith.constant 0 : index
    %c0_9 = arith.constant 0 : index
    %c0_10 = arith.constant 0 : index
    %25 = vector.load %arg2[%c0_8, %c0_9, %c0_10] : memref<1x64x32xbf16, #tpu.memory_space<vmem>>, vector<1x64x32xbf16>
    tpu.vector_store %arg2[%c0_8, %c0_9, %c0_10], %24 {strides = array<i32>} : memref<1x64x32xbf16, #tpu.memory_space<vmem>>, vector<1x64x32xbf16>,
    return
  }
  func.func @transform_0(%arg0: i32) -> (i32, i32, i32) {
    %c0_i32 = arith.constant 0 : i32
    %c0_i32_0 = arith.constant 0 : i32
    %c0_i32_1 = arith.constant 0 : i32
    return %arg0, %c0_i32, %c0_i32_0 : i32, i32, i32
  }
  func.func @transform_1(%arg0: i32) -> (i32, i32, i32) {
    %c0_i32 = arith.constant 0 : i32
    %c0_i32_0 = arith.constant 0 : i32
    %c0_i32_1 = arith.constant 0 : i32
    return %arg0, %c0_i32, %c0_i32_0 : i32, i32, i32
  }
}

module attributes {stable_mosaic.version = 11 : i64} {
  func.func @_fused_matmul_kernel(%arg0: i32, %arg1: memref<128x256xbf16, #tpu.memory_space<vmem>>, %arg2: memref<256x128xbf16, #tpu.memory_space<vmem>>, %arg3: memref<1x128xf32, #tpu.memory_space<vmem>>, %arg4: memref<128x128xbf16, #tpu.memory_space<vmem>>) attributes {dimension_semantics = [#tpu.dimension_semantics<parallel>], iteration_bounds = array<i64: 1>, scalar_prefetch = 0 : i64, scratch_operands = 0 : i64, tpu.core_type = #tpu.core_type<tc>, window_params = [{transform_indices = @transform_0, window_bounds = array<i64: 128, 256>}, {pipeline_mode = #tpu.pipeline_mode<synchronous>, transform_indices = @transform_1, window_bounds = array<i64: 256, 128>}, {pipeline_mode = #tpu.pipeline_mode<synchronous>, transform_indices = @transform_2, window_bounds = array<i64: 1, 128>}, {transform_indices = @transform_3, window_bounds = array<i64: 128, 128>}]} {
    %c0 = arith.constant 0 : index
    %c0_0 = arith.constant 0 : index
    %0 = vector.load %arg3[%c0, %c0_0] : memref<1x128xf32, #tpu.memory_space<vmem>>, vector<1x128xf32>
    %c0_1 = arith.constant 0 : index
    %c0_2 = arith.constant 0 : index
    %1 = vector.load %arg1[%c0_1, %c0_2] : memref<128x256xbf16, #tpu.memory_space<vmem>>, vector<128x256xbf16>
    %c0_3 = arith.constant 0 : index
    %c0_4 = arith.constant 0 : index
    %2 = vector.load %arg2[%c0_3, %c0_4] : memref<256x128xbf16, #tpu.memory_space<vmem>>, vector<256x128xbf16>
    %cst = arith.constant dense<0.000000e+00> : vector<128x128xf32>
    %3 = tpu.matmul %1, %2, %cst {dimension_numbers = #tpu.dot_dimension_numbers<[1], [0], [0], [1], [0, 0, 1, 1], [], []>} : vector<128x256xbf16>, vector<256x128xbf16>, vector<128x128xf32> -> vector<128x128xf32>
    %4 = vector.broadcast %0 : vector<1x128xf32> to vector<128x128xf32>
    %5 = arith.addf %4, %3 : vector<128x128xf32>
    %6 = arith.truncf %5 : vector<128x128xf32> to vector<128x128xbf16>
    %c0_5 = arith.constant 0 : index
    %c0_6 = arith.constant 0 : index
    %7 = vector.load %arg4[%c0_5, %c0_6] : memref<128x128xbf16, #tpu.memory_space<vmem>>, vector<128x128xbf16>
    tpu.vector_store %arg4[%c0_5, %c0_6], %6 {strides = array<i32>} : memref<128x128xbf16, #tpu.memory_space<vmem>>, vector<128x128xbf16>,
    return
  }
  func.func @transform_0(%arg0: i32) -> (i32, i32) {
    %c0_i32 = arith.constant 0 : i32
    %c0_i32_0 = arith.constant 0 : i32
    return %arg0, %c0_i32 : i32, i32
  }
  func.func @transform_1(%arg0: i32) -> (i32, i32) {
    %c0_i32 = arith.constant 0 : i32
    %c0_i32_0 = arith.constant 0 : i32
    %c0_i32_1 = arith.constant 0 : i32
    return %c0_i32, %c0_i32_0 : i32, i32
  }
  func.func @transform_2(%arg0: i32) -> (i32, i32) {
    %c0_i32 = arith.constant 0 : i32
    %c0_i32_0 = arith.constant 0 : i32
    %c0_i32_1 = arith.constant 0 : i32
    return %c0_i32, %c0_i32_0 : i32, i32
  }
  func.func @transform_3(%arg0: i32) -> (i32, i32) {
    %c0_i32 = arith.constant 0 : i32
    %c0_i32_0 = arith.constant 0 : i32
    return %arg0, %c0_i32 : i32, i32
  }
}

module attributes {stable_mosaic.version = 11 : i64} {
  func.func @_fused_matmul_kernel(%arg0: i32, %arg1: memref<32x384xbf16, #tpu.memory_space<vmem>>, %arg2: memref<384x128xbf16, #tpu.memory_space<vmem>>, %arg3: memref<1x128xf32, #tpu.memory_space<vmem>>, %arg4: memref<32x128xbf16, #tpu.memory_space<vmem>>) attributes {dimension_semantics = [#tpu.dimension_semantics<parallel>], iteration_bounds = array<i64: 1>, scalar_prefetch = 0 : i64, scratch_operands = 0 : i64, tpu.core_type = #tpu.core_type<tc>, window_params = [{transform_indices = @transform_0, window_bounds = array<i64: 32, 384>}, {pipeline_mode = #tpu.pipeline_mode<synchronous>, transform_indices = @transform_1, window_bounds = array<i64: 384, 128>}, {pipeline_mode = #tpu.pipeline_mode<synchronous>, transform_indices = @transform_2, window_bounds = array<i64: 1, 128>}, {transform_indices = @transform_3, window_bounds = array<i64: 32, 128>}]} {
    %c0 = arith.constant 0 : index
    %c0_0 = arith.constant 0 : index
    %0 = vector.load %arg3[%c0, %c0_0] : memref<1x128xf32, #tpu.memory_space<vmem>>, vector<1x128xf32>
    %c0_1 = arith.constant 0 : index
    %c0_2 = arith.constant 0 : index
    %1 = vector.load %arg1[%c0_1, %c0_2] : memref<32x384xbf16, #tpu.memory_space<vmem>>, vector<32x384xbf16>
    %c0_3 = arith.constant 0 : index
    %c0_4 = arith.constant 0 : index
    %2 = vector.load %arg2[%c0_3, %c0_4] : memref<384x128xbf16, #tpu.memory_space<vmem>>, vector<384x128xbf16>
    %cst = arith.constant dense<0.000000e+00> : vector<32x128xf32>
    %3 = tpu.matmul %1, %2, %cst {dimension_numbers = #tpu.dot_dimension_numbers<[1], [0], [0], [1], [0, 0, 1, 1], [], []>} : vector<32x384xbf16>, vector<384x128xbf16>, vector<32x128xf32> -> vector<32x128xf32>
    %4 = vector.broadcast %0 : vector<1x128xf32> to vector<32x128xf32>
    %5 = arith.addf %4, %3 : vector<32x128xf32>
    %6 = arith.truncf %5 : vector<32x128xf32> to vector<32x128xbf16>
    %c0_5 = arith.constant 0 : index
    %c0_6 = arith.constant 0 : index
    %7 = vector.load %arg4[%c0_5, %c0_6] : memref<32x128xbf16, #tpu.memory_space<vmem>>, vector<32x128xbf16>
    tpu.vector_store %arg4[%c0_5, %c0_6], %6 {strides = array<i32>} : memref<32x128xbf16, #tpu.memory_space<vmem>>, vector<32x128xbf16>,
    return
  }
  func.func @transform_0(%arg0: i32) -> (i32, i32) {
    %c0_i32 = arith.constant 0 : i32
    %c0_i32_0 = arith.constant 0 : i32
    return %arg0, %c0_i32 : i32, i32
  }
  func.func @transform_1(%arg0: i32) -> (i32, i32) {
    %c0_i32 = arith.constant 0 : i32
    %c0_i32_0 = arith.constant 0 : i32
    %c0_i32_1 = arith.constant 0 : i32
    return %c0_i32, %c0_i32_0 : i32, i32
  }
  func.func @transform_2(%arg0: i32) -> (i32, i32) {
    %c0_i32 = arith.constant 0 : i32
    %c0_i32_0 = arith.constant 0 : i32
    %c0_i32_1 = arith.constant 0 : i32
    return %c0_i32, %c0_i32_0 : i32, i32
  }
  func.func @transform_3(%arg0: i32) -> (i32, i32) {
    %c0_i32 = arith.constant 0 : i32
    %c0_i32_0 = arith.constant 0 : i32
    return %arg0, %c0_i32 : i32, i32
  }
}

module attributes {stable_mosaic.version = 11 : i64} {
  func.func @_in_fused_kernel(%arg0: i32, %arg1: memref<1x16x64xbf16, #tpu.memory_space<vmem>>, %arg2: memref<1x16x64xbf16, #tpu.memory_space<vmem>>) attributes {dimension_semantics = [#tpu.dimension_semantics<parallel>], iteration_bounds = array<i64: 2>, scalar_prefetch = 0 : i64, scratch_operands = 0 : i64, tpu.core_type = #tpu.core_type<tc>, window_params = [{transform_indices = @transform_0, window_bounds = array<i64: 1, 16, 64>}, {transform_indices = @transform_1, window_bounds = array<i64: 1, 16, 64>}]} {
    %c0 = arith.constant 0 : index
    %c0_0 = arith.constant 0 : index
    %c0_1 = arith.constant 0 : index
    %0 = vector.load %arg1[%c0, %c0_0, %c0_1] : memref<1x16x64xbf16, #tpu.memory_space<vmem>>, vector<1x16x64xbf16>
    %1 = arith.extf %0 : vector<1x16x64xbf16> to vector<1x16x64xf32>
    %cst = arith.constant dense<0.000000e+00> : vector<1x64xf32>
    %2 = vector.multi_reduction <add>, %1, %cst [1] : vector<1x16x64xf32> to vector<1x64xf32>
    %3 = vector.shape_cast %2 : vector<1x64xf32> to vector<1x1x64xf32>
    %cst_2 = arith.constant 1.600000e+01 : f32
    %4 = vector.broadcast %cst_2 : f32 to vector<1x1x64xf32>
    %5 = arith.divf %3, %4 : vector<1x1x64xf32>
    %6 = arith.mulf %1, %1 : vector<1x16x64xf32>
    %cst_3 = arith.constant dense<0.000000e+00> : vector<1x64xf32>
    %7 = vector.multi_reduction <add>, %6, %cst_3 [1] : vector<1x16x64xf32> to vector<1x64xf32>
    %8 = vector.shape_cast %7 : vector<1x64xf32> to vector<1x1x64xf32>
    %cst_4 = arith.constant 1.600000e+01 : f32
    %9 = vector.broadcast %cst_4 : f32 to vector<1x1x64xf32>
    %10 = arith.divf %8, %9 : vector<1x1x64xf32>
    %11 = arith.mulf %5, %5 : vector<1x1x64xf32>
    %12 = arith.subf %10, %11 : vector<1x1x64xf32>
    %cst_5 = arith.constant 0.000000e+00 : f32
    %13 = vector.broadcast %cst_5 : f32 to vector<1x1x64xf32>
    %14 = arith.maximumf %12, %13 : vector<1x1x64xf32>
    %15 = vector.broadcast %5 : vector<1x1x64xf32> to vector<1x16x64xf32>
    %16 = arith.subf %1, %15 : vector<1x16x64xf32>
    %cst_6 = arith.constant 9.99999974E-6 : f32
    %17 = vector.broadcast %cst_6 : f32 to vector<1x1x64xf32>
    %18 = arith.addf %14, %17 : vector<1x1x64xf32>
    %19 = math.rsqrt %18 : vector<1x1x64xf32>
    %20 = vector.broadcast %19 : vector<1x1x64xf32> to vector<1x16x64xf32>
    %21 = arith.mulf %16, %20 : vector<1x16x64xf32>
    %cst_7 = arith.constant 0.000000e+00 : f32
    %22 = vector.broadcast %cst_7 : f32 to vector<1x16x64xf32>
    %23 = arith.maximumf %21, %22 : vector<1x16x64xf32>
    %24 = arith.truncf %23 : vector<1x16x64xf32> to vector<1x16x64xbf16>
    %c0_8 = arith.constant 0 : index
    %c0_9 = arith.constant 0 : index
    %c0_10 = arith.constant 0 : index
    %25 = vector.load %arg2[%c0_8, %c0_9, %c0_10] : memref<1x16x64xbf16, #tpu.memory_space<vmem>>, vector<1x16x64xbf16>
    tpu.vector_store %arg2[%c0_8, %c0_9, %c0_10], %24 {strides = array<i32>} : memref<1x16x64xbf16, #tpu.memory_space<vmem>>, vector<1x16x64xbf16>,
    return
  }
  func.func @transform_0(%arg0: i32) -> (i32, i32, i32) {
    %c0_i32 = arith.constant 0 : i32
    %c0_i32_0 = arith.constant 0 : i32
    %c0_i32_1 = arith.constant 0 : i32
    return %arg0, %c0_i32, %c0_i32_0 : i32, i32, i32
  }
  func.func @transform_1(%arg0: i32) -> (i32, i32, i32) {
    %c0_i32 = arith.constant 0 : i32
    %c0_i32_0 = arith.constant 0 : i32
    %c0_i32_1 = arith.constant 0 : i32
    return %arg0, %c0_i32, %c0_i32_0 : i32, i32, i32
  }
}

module attributes {stable_mosaic.version = 11 : i64} {
  func.func @_in_fused_kernel(%arg0: i32, %arg1: memref<1x16x64xbf16, #tpu.memory_space<vmem>>, %arg2: memref<1x16x64xbf16, #tpu.memory_space<vmem>>, %arg3: memref<1x16x64xbf16, #tpu.memory_space<vmem>>) attributes {dimension_semantics = [#tpu.dimension_semantics<parallel>], iteration_bounds = array<i64: 2>, scalar_prefetch = 0 : i64, scratch_operands = 0 : i64, tpu.core_type = #tpu.core_type<tc>, window_params = [{transform_indices = @transform_0, window_bounds = array<i64: 1, 16, 64>}, {transform_indices = @transform_1, window_bounds = array<i64: 1, 16, 64>}, {transform_indices = @transform_2, window_bounds = array<i64: 1, 16, 64>}]} {
    %c0 = arith.constant 0 : index
    %c0_0 = arith.constant 0 : index
    %c0_1 = arith.constant 0 : index
    %0 = vector.load %arg1[%c0, %c0_0, %c0_1] : memref<1x16x64xbf16, #tpu.memory_space<vmem>>, vector<1x16x64xbf16>
    %1 = arith.extf %0 : vector<1x16x64xbf16> to vector<1x16x64xf32>
    %cst = arith.constant dense<0.000000e+00> : vector<1x64xf32>
    %2 = vector.multi_reduction <add>, %1, %cst [1] : vector<1x16x64xf32> to vector<1x64xf32>
    %3 = vector.shape_cast %2 : vector<1x64xf32> to vector<1x1x64xf32>
    %cst_2 = arith.constant 1.600000e+01 : f32
    %4 = vector.broadcast %cst_2 : f32 to vector<1x1x64xf32>
    %5 = arith.divf %3, %4 : vector<1x1x64xf32>
    %6 = arith.mulf %1, %1 : vector<1x16x64xf32>
    %cst_3 = arith.constant dense<0.000000e+00> : vector<1x64xf32>
    %7 = vector.multi_reduction <add>, %6, %cst_3 [1] : vector<1x16x64xf32> to vector<1x64xf32>
    %8 = vector.shape_cast %7 : vector<1x64xf32> to vector<1x1x64xf32>
    %cst_4 = arith.constant 1.600000e+01 : f32
    %9 = vector.broadcast %cst_4 : f32 to vector<1x1x64xf32>
    %10 = arith.divf %8, %9 : vector<1x1x64xf32>
    %11 = arith.mulf %5, %5 : vector<1x1x64xf32>
    %12 = arith.subf %10, %11 : vector<1x1x64xf32>
    %cst_5 = arith.constant 0.000000e+00 : f32
    %13 = vector.broadcast %cst_5 : f32 to vector<1x1x64xf32>
    %14 = arith.maximumf %12, %13 : vector<1x1x64xf32>
    %15 = vector.broadcast %5 : vector<1x1x64xf32> to vector<1x16x64xf32>
    %16 = arith.subf %1, %15 : vector<1x16x64xf32>
    %cst_6 = arith.constant 9.99999974E-6 : f32
    %17 = vector.broadcast %cst_6 : f32 to vector<1x1x64xf32>
    %18 = arith.addf %14, %17 : vector<1x1x64xf32>
    %19 = math.rsqrt %18 : vector<1x1x64xf32>
    %20 = vector.broadcast %19 : vector<1x1x64xf32> to vector<1x16x64xf32>
    %21 = arith.mulf %16, %20 : vector<1x16x64xf32>
    %c0_7 = arith.constant 0 : index
    %c0_8 = arith.constant 0 : index
    %c0_9 = arith.constant 0 : index
    %22 = vector.load %arg2[%c0_7, %c0_8, %c0_9] : memref<1x16x64xbf16, #tpu.memory_space<vmem>>, vector<1x16x64xbf16>
    %23 = arith.extf %22 : vector<1x16x64xbf16> to vector<1x16x64xf32>
    %24 = arith.addf %21, %23 : vector<1x16x64xf32>
    %25 = arith.truncf %24 : vector<1x16x64xf32> to vector<1x16x64xbf16>
    %c0_10 = arith.constant 0 : index
    %c0_11 = arith.constant 0 : index
    %c0_12 = arith.constant 0 : index
    %26 = vector.load %arg3[%c0_10, %c0_11, %c0_12] : memref<1x16x64xbf16, #tpu.memory_space<vmem>>, vector<1x16x64xbf16>
    tpu.vector_store %arg3[%c0_10, %c0_11, %c0_12], %25 {strides = array<i32>} : memref<1x16x64xbf16, #tpu.memory_space<vmem>>, vector<1x16x64xbf16>,
    return
  }
  func.func @transform_0(%arg0: i32) -> (i32, i32, i32) {
    %c0_i32 = arith.constant 0 : i32
    %c0_i32_0 = arith.constant 0 : i32
    %c0_i32_1 = arith.constant 0 : i32
    return %arg0, %c0_i32, %c0_i32_0 : i32, i32, i32
  }
  func.func @transform_1(%arg0: i32) -> (i32, i32, i32) {
    %c0_i32 = arith.constant 0 : i32
    %c0_i32_0 = arith.constant 0 : i32
    %c0_i32_1 = arith.constant 0 : i32
    return %arg0, %c0_i32, %c0_i32_0 : i32, i32, i32
  }
  func.func @transform_2(%arg0: i32) -> (i32, i32, i32) {
    %c0_i32 = arith.constant 0 : i32
    %c0_i32_0 = arith.constant 0 : i32
    %c0_i32_1 = arith.constant 0 : i32
    return %arg0, %c0_i32, %c0_i32_0 : i32, i32, i32
  }
}

module attributes {stable_mosaic.version = 11 : i64} {
  func.func @_fused_matmul_kernel(%arg0: i32, %arg1: memref<32x640xbf16, #tpu.memory_space<vmem>>, %arg2: memref<640x128xbf16, #tpu.memory_space<vmem>>, %arg3: memref<1x128xf32, #tpu.memory_space<vmem>>, %arg4: memref<32x128xbf16, #tpu.memory_space<vmem>>) attributes {dimension_semantics = [#tpu.dimension_semantics<parallel>], iteration_bounds = array<i64: 1>, scalar_prefetch = 0 : i64, scratch_operands = 0 : i64, tpu.core_type = #tpu.core_type<tc>, window_params = [{transform_indices = @transform_0, window_bounds = array<i64: 32, 640>}, {pipeline_mode = #tpu.pipeline_mode<synchronous>, transform_indices = @transform_1, window_bounds = array<i64: 640, 128>}, {pipeline_mode = #tpu.pipeline_mode<synchronous>, transform_indices = @transform_2, window_bounds = array<i64: 1, 128>}, {transform_indices = @transform_3, window_bounds = array<i64: 32, 128>}]} {
    %c0 = arith.constant 0 : index
    %c0_0 = arith.constant 0 : index
    %0 = vector.load %arg3[%c0, %c0_0] : memref<1x128xf32, #tpu.memory_space<vmem>>, vector<1x128xf32>
    %c0_1 = arith.constant 0 : index
    %c0_2 = arith.constant 0 : index
    %1 = vector.load %arg1[%c0_1, %c0_2] : memref<32x640xbf16, #tpu.memory_space<vmem>>, vector<32x640xbf16>
    %c0_3 = arith.constant 0 : index
    %c0_4 = arith.constant 0 : index
    %2 = vector.load %arg2[%c0_3, %c0_4] : memref<640x128xbf16, #tpu.memory_space<vmem>>, vector<640x128xbf16>
    %cst = arith.constant dense<0.000000e+00> : vector<32x128xf32>
    %3 = tpu.matmul %1, %2, %cst {dimension_numbers = #tpu.dot_dimension_numbers<[1], [0], [0], [1], [0, 0, 1, 1], [], []>} : vector<32x640xbf16>, vector<640x128xbf16>, vector<32x128xf32> -> vector<32x128xf32>
    %4 = vector.broadcast %0 : vector<1x128xf32> to vector<32x128xf32>
    %5 = arith.addf %4, %3 : vector<32x128xf32>
    %6 = arith.truncf %5 : vector<32x128xf32> to vector<32x128xbf16>
    %c0_5 = arith.constant 0 : index
    %c0_6 = arith.constant 0 : index
    %7 = vector.load %arg4[%c0_5, %c0_6] : memref<32x128xbf16, #tpu.memory_space<vmem>>, vector<32x128xbf16>
    tpu.vector_store %arg4[%c0_5, %c0_6], %6 {strides = array<i32>} : memref<32x128xbf16, #tpu.memory_space<vmem>>, vector<32x128xbf16>,
    return
  }
  func.func @transform_0(%arg0: i32) -> (i32, i32) {
    %c0_i32 = arith.constant 0 : i32
    %c0_i32_0 = arith.constant 0 : i32
    return %arg0, %c0_i32 : i32, i32
  }
  func.func @transform_1(%arg0: i32) -> (i32, i32) {
    %c0_i32 = arith.constant 0 : i32
    %c0_i32_0 = arith.constant 0 : i32
    %c0_i32_1 = arith.constant 0 : i32
    return %c0_i32, %c0_i32_0 : i32, i32
  }
  func.func @transform_2(%arg0: i32) -> (i32, i32) {
    %c0_i32 = arith.constant 0 : i32
    %c0_i32_0 = arith.constant 0 : i32
    %c0_i32_1 = arith.constant 0 : i32
    return %c0_i32, %c0_i32_0 : i32, i32
  }
  func.func @transform_3(%arg0: i32) -> (i32, i32) {
    %c0_i32 = arith.constant 0 : i32
    %c0_i32_0 = arith.constant 0 : i32
    return %arg0, %c0_i32 : i32, i32
  }
}

module attributes {stable_mosaic.version = 11 : i64} {
  func.func @_fused_matmul_kernel(%arg0: i32, %arg1: memref<32x128xbf16, #tpu.memory_space<vmem>>, %arg2: memref<128x128xbf16, #tpu.memory_space<vmem>>, %arg3: memref<1x128xf32, #tpu.memory_space<vmem>>, %arg4: memref<32x128xbf16, #tpu.memory_space<vmem>>) attributes {dimension_semantics = [#tpu.dimension_semantics<parallel>], iteration_bounds = array<i64: 1>, scalar_prefetch = 0 : i64, scratch_operands = 0 : i64, tpu.core_type = #tpu.core_type<tc>, window_params = [{transform_indices = @transform_0, window_bounds = array<i64: 32, 128>}, {pipeline_mode = #tpu.pipeline_mode<synchronous>, transform_indices = @transform_1, window_bounds = array<i64: 128, 128>}, {pipeline_mode = #tpu.pipeline_mode<synchronous>, transform_indices = @transform_2, window_bounds = array<i64: 1, 128>}, {transform_indices = @transform_3, window_bounds = array<i64: 32, 128>}]} {
    %c0 = arith.constant 0 : index
    %c0_0 = arith.constant 0 : index
    %0 = vector.load %arg3[%c0, %c0_0] : memref<1x128xf32, #tpu.memory_space<vmem>>, vector<1x128xf32>
    %c0_1 = arith.constant 0 : index
    %c0_2 = arith.constant 0 : index
    %1 = vector.load %arg1[%c0_1, %c0_2] : memref<32x128xbf16, #tpu.memory_space<vmem>>, vector<32x128xbf16>
    %c0_3 = arith.constant 0 : index
    %c0_4 = arith.constant 0 : index
    %2 = vector.load %arg2[%c0_3, %c0_4] : memref<128x128xbf16, #tpu.memory_space<vmem>>, vector<128x128xbf16>
    %cst = arith.constant dense<0.000000e+00> : vector<32x128xf32>
    %3 = tpu.matmul %1, %2, %cst {dimension_numbers = #tpu.dot_dimension_numbers<[1], [0], [0], [1], [0, 0, 1, 1], [], []>} : vector<32x128xbf16>, vector<128x128xbf16>, vector<32x128xf32> -> vector<32x128xf32>
    %4 = vector.broadcast %0 : vector<1x128xf32> to vector<32x128xf32>
    %5 = arith.addf %4, %3 : vector<32x128xf32>
    %6 = arith.truncf %5 : vector<32x128xf32> to vector<32x128xbf16>
    %c0_5 = arith.constant 0 : index
    %c0_6 = arith.constant 0 : index
    %7 = vector.load %arg4[%c0_5, %c0_6] : memref<32x128xbf16, #tpu.memory_space<vmem>>, vector<32x128xbf16>
    tpu.vector_store %arg4[%c0_5, %c0_6], %6 {strides = array<i32>} : memref<32x128xbf16, #tpu.memory_space<vmem>>, vector<32x128xbf16>,
    return
  }
  func.func @transform_0(%arg0: i32) -> (i32, i32) {
    %c0_i32 = arith.constant 0 : i32
    %c0_i32_0 = arith.constant 0 : i32
    return %arg0, %c0_i32 : i32, i32
  }
  func.func @transform_1(%arg0: i32) -> (i32, i32) {
    %c0_i32 = arith.constant 0 : i32
    %c0_i32_0 = arith.constant 0 : i32
    %c0_i32_1 = arith.constant 0 : i32
    return %c0_i32, %c0_i32_0 : i32, i32
  }
  func.func @transform_2(%arg0: i32) -> (i32, i32) {
    %c0_i32 = arith.constant 0 : i32
    %c0_i32_0 = arith.constant 0 : i32
    %c0_i32_1 = arith.constant 0 : i32
    return %c0_i32, %c0_i32_0 : i32, i32
  }
  func.func @transform_3(%arg0: i32) -> (i32, i32) {
    %c0_i32 = arith.constant 0 : i32
    %c0_i32_0 = arith.constant 0 : i32
    return %arg0, %c0_i32 : i32, i32
  }
}

module attributes {stable_mosaic.version = 11 : i64} {
  func.func @_fused_matmul_kernel(%arg0: i32, %arg1: memref<32x128xbf16, #tpu.memory_space<vmem>>, %arg2: memref<32x128xbf16, #tpu.memory_space<vmem>>, %arg3: memref<128x128xbf16, #tpu.memory_space<vmem>>, %arg4: memref<128x128xbf16, #tpu.memory_space<vmem>>, %arg5: memref<1x128xf32, #tpu.memory_space<vmem>>, %arg6: memref<32x128xbf16, #tpu.memory_space<vmem>>) attributes {dimension_semantics = [#tpu.dimension_semantics<parallel>], iteration_bounds = array<i64: 1>, scalar_prefetch = 0 : i64, scratch_operands = 0 : i64, tpu.core_type = #tpu.core_type<tc>, window_params = [{transform_indices = @transform_0, window_bounds = array<i64: 32, 128>}, {transform_indices = @transform_1, window_bounds = array<i64: 32, 128>}, {pipeline_mode = #tpu.pipeline_mode<synchronous>, transform_indices = @transform_2, window_bounds = array<i64: 128, 128>}, {pipeline_mode = #tpu.pipeline_mode<synchronous>, transform_indices = @transform_3, window_bounds = array<i64: 128, 128>}, {pipeline_mode = #tpu.pipeline_mode<synchronous>, transform_indices = @transform_4, window_bounds = array<i64: 1, 128>}, {transform_indices = @transform_5, window_bounds = array<i64: 32, 128>}]} {
    %c0 = arith.constant 0 : index
    %c0_0 = arith.constant 0 : index
    %0 = vector.load %arg5[%c0, %c0_0] : memref<1x128xf32, #tpu.memory_space<vmem>>, vector<1x128xf32>
    %c0_1 = arith.constant 0 : index
    %c0_2 = arith.constant 0 : index
    %1 = vector.load %arg1[%c0_1, %c0_2] : memref<32x128xbf16, #tpu.memory_space<vmem>>, vector<32x128xbf16>
    %c0_3 = arith.constant 0 : index
    %c0_4 = arith.constant 0 : index
    %2 = vector.load %arg3[%c0_3, %c0_4] : memref<128x128xbf16, #tpu.memory_space<vmem>>, vector<128x128xbf16>
    %cst = arith.constant dense<0.000000e+00> : vector<32x128xf32>
    %3 = tpu.matmul %1, %2, %cst {dimension_numbers = #tpu.dot_dimension_numbers<[1], [0], [0], [1], [0, 0, 1, 1], [], []>} : vector<32x128xbf16>, vector<128x128xbf16>, vector<32x128xf32> -> vector<32x128xf32>
    %4 = vector.broadcast %0 : vector<1x128xf32> to vector<32x128xf32>
    %5 = arith.addf %4, %3 : vector<32x128xf32>
    %c0_5 = arith.constant 0 : index
    %c0_6 = arith.constant 0 : index
    %6 = vector.load %arg2[%c0_5, %c0_6] : memref<32x128xbf16, #tpu.memory_space<vmem>>, vector<32x128xbf16>
    %c0_7 = arith.constant 0 : index
    %c0_8 = arith.constant 0 : index
    %7 = vector.load %arg4[%c0_7, %c0_8] : memref<128x128xbf16, #tpu.memory_space<vmem>>, vector<128x128xbf16>
    %cst_9 = arith.constant dense<0.000000e+00> : vector<32x128xf32>
    %8 = tpu.matmul %6, %7, %cst_9 {dimension_numbers = #tpu.dot_dimension_numbers<[1], [0], [0], [1], [0, 0, 1, 1], [], []>} : vector<32x128xbf16>, vector<128x128xbf16>, vector<32x128xf32> -> vector<32x128xf32>
    %9 = arith.addf %5, %8 : vector<32x128xf32>
    %10 = arith.truncf %9 : vector<32x128xf32> to vector<32x128xbf16>
    %c0_10 = arith.constant 0 : index
    %c0_11 = arith.constant 0 : index
    %11 = vector.load %arg6[%c0_10, %c0_11] : memref<32x128xbf16, #tpu.memory_space<vmem>>, vector<32x128xbf16>
    tpu.vector_store %arg6[%c0_10, %c0_11], %10 {strides = array<i32>} : memref<32x128xbf16, #tpu.memory_space<vmem>>, vector<32x128xbf16>,
    return
  }
  func.func @transform_0(%arg0: i32) -> (i32, i32) {
    %c0_i32 = arith.constant 0 : i32
    %c0_i32_0 = arith.constant 0 : i32
    return %arg0, %c0_i32 : i32, i32
  }
  func.func @transform_1(%arg0: i32) -> (i32, i32) {
    %c0_i32 = arith.constant 0 : i32
    %c0_i32_0 = arith.constant 0 : i32
    return %arg0, %c0_i32 : i32, i32
  }
  func.func @transform_2(%arg0: i32) -> (i32, i32) {
    %c0_i32 = arith.constant 0 : i32
    %c0_i32_0 = arith.constant 0 : i32
    %c0_i32_1 = arith.constant 0 : i32
    return %c0_i32, %c0_i32_0 : i32, i32
  }
  func.func @transform_3(%arg0: i32) -> (i32, i32) {
    %c0_i32 = arith.constant 0 : i32
    %c0_i32_0 = arith.constant 0 : i32
    %c0_i32_1 = arith.constant 0 : i32
    return %c0_i32, %c0_i32_0 : i32, i32
  }
  func.func @transform_4(%arg0: i32) -> (i32, i32) {
    %c0_i32 = arith.constant 0 : i32
    %c0_i32_0 = arith.constant 0 : i32
    %c0_i32_1 = arith.constant 0 : i32
    return %c0_i32, %c0_i32_0 : i32, i32
  }
  func.func @transform_5(%arg0: i32) -> (i32, i32) {
    %c0_i32 = arith.constant 0 : i32
    %c0_i32_0 = arith.constant 0 : i32
    return %arg0, %c0_i32 : i32, i32
  }
}

module attributes {stable_mosaic.version = 11 : i64} {
  func.func @_fused_matmul_kernel(%arg0: i32, %arg1: memref<32x128xbf16, #tpu.memory_space<vmem>>, %arg2: memref<32x128xbf16, #tpu.memory_space<vmem>>, %arg3: memref<32x128xbf16, #tpu.memory_space<vmem>>, %arg4: memref<32x128xbf16, #tpu.memory_space<vmem>>, %arg5: memref<128x128xbf16, #tpu.memory_space<vmem>>, %arg6: memref<128x128xbf16, #tpu.memory_space<vmem>>, %arg7: memref<128x128xbf16, #tpu.memory_space<vmem>>, %arg8: memref<128x128xbf16, #tpu.memory_space<vmem>>, %arg9: memref<1x128xf32, #tpu.memory_space<vmem>>, %arg10: memref<32x128xbf16, #tpu.memory_space<vmem>>) attributes {dimension_semantics = [#tpu.dimension_semantics<parallel>], iteration_bounds = array<i64: 1>, scalar_prefetch = 0 : i64, scratch_operands = 0 : i64, tpu.core_type = #tpu.core_type<tc>, window_params = [{transform_indices = @transform_0, window_bounds = array<i64: 32, 128>}, {transform_indices = @transform_1, window_bounds = array<i64: 32, 128>}, {transform_indices = @transform_2, window_bounds = array<i64: 32, 128>}, {transform_indices = @transform_3, window_bounds = array<i64: 32, 128>}, {pipeline_mode = #tpu.pipeline_mode<synchronous>, transform_indices = @transform_4, window_bounds = array<i64: 128, 128>}, {pipeline_mode = #tpu.pipeline_mode<synchronous>, transform_indices = @transform_5, window_bounds = array<i64: 128, 128>}, {pipeline_mode = #tpu.pipeline_mode<synchronous>, transform_indices = @transform_6, window_bounds = array<i64: 128, 128>}, {pipeline_mode = #tpu.pipeline_mode<synchronous>, transform_indices = @transform_7, window_bounds = array<i64: 128, 128>}, {pipeline_mode = #tpu.pipeline_mode<synchronous>, transform_indices = @transform_8, window_bounds = array<i64: 1, 128>}, {transform_indices = @transform_9, window_bounds = array<i64: 32, 128>}]} {
    %c0 = arith.constant 0 : index
    %c0_0 = arith.constant 0 : index
    %0 = vector.load %arg9[%c0, %c0_0] : memref<1x128xf32, #tpu.memory_space<vmem>>, vector<1x128xf32>
    %c0_1 = arith.constant 0 : index
    %c0_2 = arith.constant 0 : index
    %1 = vector.load %arg1[%c0_1, %c0_2] : memref<32x128xbf16, #tpu.memory_space<vmem>>, vector<32x128xbf16>
    %c0_3 = arith.constant 0 : index
    %c0_4 = arith.constant 0 : index
    %2 = vector.load %arg5[%c0_3, %c0_4] : memref<128x128xbf16, #tpu.memory_space<vmem>>, vector<128x128xbf16>
    %cst = arith.constant dense<0.000000e+00> : vector<32x128xf32>
    %3 = tpu.matmul %1, %2, %cst {dimension_numbers = #tpu.dot_dimension_numbers<[1], [0], [0], [1], [0, 0, 1, 1], [], []>} : vector<32x128xbf16>, vector<128x128xbf16>, vector<32x128xf32> -> vector<32x128xf32>
    %4 = vector.broadcast %0 : vector<1x128xf32> to vector<32x128xf32>
    %5 = arith.addf %4, %3 : vector<32x128xf32>
    %c0_5 = arith.constant 0 : index
    %c0_6 = arith.constant 0 : index
    %6 = vector.load %arg2[%c0_5, %c0_6] : memref<32x128xbf16, #tpu.memory_space<vmem>>, vector<32x128xbf16>
    %c0_7 = arith.constant 0 : index
    %c0_8 = arith.constant 0 : index
    %7 = vector.load %arg6[%c0_7, %c0_8] : memref<128x128xbf16, #tpu.memory_space<vmem>>, vector<128x128xbf16>
    %cst_9 = arith.constant dense<0.000000e+00> : vector<32x128xf32>
    %8 = tpu.matmul %6, %7, %cst_9 {dimension_numbers = #tpu.dot_dimension_numbers<[1], [0], [0], [1], [0, 0, 1, 1], [], []>} : vector<32x128xbf16>, vector<128x128xbf16>, vector<32x128xf32> -> vector<32x128xf32>
    %9 = arith.addf %5, %8 : vector<32x128xf32>
    %c0_10 = arith.constant 0 : index
    %c0_11 = arith.constant 0 : index
    %10 = vector.load %arg3[%c0_10, %c0_11] : memref<32x128xbf16, #tpu.memory_space<vmem>>, vector<32x128xbf16>
    %c0_12 = arith.constant 0 : index
    %c0_13 = arith.constant 0 : index
    %11 = vector.load %arg7[%c0_12, %c0_13] : memref<128x128xbf16, #tpu.memory_space<vmem>>, vector<128x128xbf16>
    %cst_14 = arith.constant dense<0.000000e+00> : vector<32x128xf32>
    %12 = tpu.matmul %10, %11, %cst_14 {dimension_numbers = #tpu.dot_dimension_numbers<[1], [0], [0], [1], [0, 0, 1, 1], [], []>} : vector<32x128xbf16>, vector<128x128xbf16>, vector<32x128xf32> -> vector<32x128xf32>
    %13 = arith.addf %9, %12 : vector<32x128xf32>
    %c0_15 = arith.constant 0 : index
    %c0_16 = arith.constant 0 : index
    %14 = vector.load %arg4[%c0_15, %c0_16] : memref<32x128xbf16, #tpu.memory_space<vmem>>, vector<32x128xbf16>
    %c0_17 = arith.constant 0 : index
    %c0_18 = arith.constant 0 : index
    %15 = vector.load %arg8[%c0_17, %c0_18] : memref<128x128xbf16, #tpu.memory_space<vmem>>, vector<128x128xbf16>
    %cst_19 = arith.constant dense<0.000000e+00> : vector<32x128xf32>
    %16 = tpu.matmul %14, %15, %cst_19 {dimension_numbers = #tpu.dot_dimension_numbers<[1], [0], [0], [1], [0, 0, 1, 1], [], []>} : vector<32x128xbf16>, vector<128x128xbf16>, vector<32x128xf32> -> vector<32x128xf32>
    %17 = arith.addf %13, %16 : vector<32x128xf32>
    %18 = arith.truncf %17 : vector<32x128xf32> to vector<32x128xbf16>
    %c0_20 = arith.constant 0 : index
    %c0_21 = arith.constant 0 : index
    %19 = vector.load %arg10[%c0_20, %c0_21] : memref<32x128xbf16, #tpu.memory_space<vmem>>, vector<32x128xbf16>
    tpu.vector_store %arg10[%c0_20, %c0_21], %18 {strides = array<i32>} : memref<32x128xbf16, #tpu.memory_space<vmem>>, vector<32x128xbf16>,
    return
  }
  func.func @transform_0(%arg0: i32) -> (i32, i32) {
    %c0_i32 = arith.constant 0 : i32
    %c0_i32_0 = arith.constant 0 : i32
    return %arg0, %c0_i32 : i32, i32
  }
  func.func @transform_1(%arg0: i32) -> (i32, i32) {
    %c0_i32 = arith.constant 0 : i32
    %c0_i32_0 = arith.constant 0 : i32
    return %arg0, %c0_i32 : i32, i32
  }
  func.func @transform_2(%arg0: i32) -> (i32, i32) {
    %c0_i32 = arith.constant 0 : i32
    %c0_i32_0 = arith.constant 0 : i32
    return %arg0, %c0_i32 : i32, i32
  }
  func.func @transform_3(%arg0: i32) -> (i32, i32) {
    %c0_i32 = arith.constant 0 : i32
    %c0_i32_0 = arith.constant 0 : i32
    return %arg0, %c0_i32 : i32, i32
  }
  func.func @transform_4(%arg0: i32) -> (i32, i32) {
    %c0_i32 = arith.constant 0 : i32
    %c0_i32_0 = arith.constant 0 : i32
    %c0_i32_1 = arith.constant 0 : i32
    return %c0_i32, %c0_i32_0 : i32, i32
  }
  func.func @transform_5(%arg0: i32) -> (i32, i32) {
    %c0_i32 = arith.constant 0 : i32
    %c0_i32_0 = arith.constant 0 : i32
    %c0_i32_1 = arith.constant 0 : i32
    return %c0_i32, %c0_i32_0 : i32, i32
  }
  func.func @transform_6(%arg0: i32) -> (i32, i32) {
    %c0_i32 = arith.constant 0 : i32
    %c0_i32_0 = arith.constant 0 : i32
    %c0_i32_1 = arith.constant 0 : i32
    return %c0_i32, %c0_i32_0 : i32, i32
  }
  func.func @transform_7(%arg0: i32) -> (i32, i32) {
    %c0_i32 = arith.constant 0 : i32
    %c0_i32_0 = arith.constant 0 : i32
    %c0_i32_1 = arith.constant 0 : i32
    return %c0_i32, %c0_i32_0 : i32, i32
  }
  func.func @transform_8(%arg0: i32) -> (i32, i32) {
    %c0_i32 = arith.constant 0 : i32
    %c0_i32_0 = arith.constant 0 : i32
    %c0_i32_1 = arith.constant 0 : i32
    return %c0_i32, %c0_i32_0 : i32, i32
  }
  func.func @transform_9(%arg0: i32) -> (i32, i32) {
    %c0_i32 = arith.constant 0 : i32
    %c0_i32_0 = arith.constant 0 : i32
    return %arg0, %c0_i32 : i32, i32
  }
}

module attributes {stable_mosaic.version = 11 : i64} {
  func.func @_fused_matmul_kernel(%arg0: i32, %arg1: memref<128x128xbf16, #tpu.memory_space<vmem>>, %arg2: memref<128x128xbf16, #tpu.memory_space<vmem>>, %arg3: memref<128x128xbf16, #tpu.memory_space<vmem>>, %arg4: memref<128x128xbf16, #tpu.memory_space<vmem>>, %arg5: memref<1x128xf32, #tpu.memory_space<vmem>>, %arg6: memref<128x128xbf16, #tpu.memory_space<vmem>>) attributes {dimension_semantics = [#tpu.dimension_semantics<parallel>], iteration_bounds = array<i64: 1>, scalar_prefetch = 0 : i64, scratch_operands = 0 : i64, tpu.core_type = #tpu.core_type<tc>, window_params = [{transform_indices = @transform_0, window_bounds = array<i64: 128, 128>}, {transform_indices = @transform_1, window_bounds = array<i64: 128, 128>}, {pipeline_mode = #tpu.pipeline_mode<synchronous>, transform_indices = @transform_2, window_bounds = array<i64: 128, 128>}, {pipeline_mode = #tpu.pipeline_mode<synchronous>, transform_indices = @transform_3, window_bounds = array<i64: 128, 128>}, {pipeline_mode = #tpu.pipeline_mode<synchronous>, transform_indices = @transform_4, window_bounds = array<i64: 1, 128>}, {transform_indices = @transform_5, window_bounds = array<i64: 128, 128>}]} {
    %c0 = arith.constant 0 : index
    %c0_0 = arith.constant 0 : index
    %0 = vector.load %arg5[%c0, %c0_0] : memref<1x128xf32, #tpu.memory_space<vmem>>, vector<1x128xf32>
    %c0_1 = arith.constant 0 : index
    %c0_2 = arith.constant 0 : index
    %1 = vector.load %arg1[%c0_1, %c0_2] : memref<128x128xbf16, #tpu.memory_space<vmem>>, vector<128x128xbf16>
    %c0_3 = arith.constant 0 : index
    %c0_4 = arith.constant 0 : index
    %2 = vector.load %arg3[%c0_3, %c0_4] : memref<128x128xbf16, #tpu.memory_space<vmem>>, vector<128x128xbf16>
    %cst = arith.constant dense<0.000000e+00> : vector<128x128xf32>
    %3 = tpu.matmul %1, %2, %cst {dimension_numbers = #tpu.dot_dimension_numbers<[1], [0], [0], [1], [0, 0, 1, 1], [], []>} : vector<128x128xbf16>, vector<128x128xbf16>, vector<128x128xf32> -> vector<128x128xf32>
    %4 = vector.broadcast %0 : vector<1x128xf32> to vector<128x128xf32>
    %5 = arith.addf %4, %3 : vector<128x128xf32>
    %c0_5 = arith.constant 0 : index
    %c0_6 = arith.constant 0 : index
    %6 = vector.load %arg2[%c0_5, %c0_6] : memref<128x128xbf16, #tpu.memory_space<vmem>>, vector<128x128xbf16>
    %c0_7 = arith.constant 0 : index
    %c0_8 = arith.constant 0 : index
    %7 = vector.load %arg4[%c0_7, %c0_8] : memref<128x128xbf16, #tpu.memory_space<vmem>>, vector<128x128xbf16>
    %cst_9 = arith.constant dense<0.000000e+00> : vector<128x128xf32>
    %8 = tpu.matmul %6, %7, %cst_9 {dimension_numbers = #tpu.dot_dimension_numbers<[1], [0], [0], [1], [0, 0, 1, 1], [], []>} : vector<128x128xbf16>, vector<128x128xbf16>, vector<128x128xf32> -> vector<128x128xf32>
    %9 = arith.addf %5, %8 : vector<128x128xf32>
    %10 = arith.truncf %9 : vector<128x128xf32> to vector<128x128xbf16>
    %c0_10 = arith.constant 0 : index
    %c0_11 = arith.constant 0 : index
    %11 = vector.load %arg6[%c0_10, %c0_11] : memref<128x128xbf16, #tpu.memory_space<vmem>>, vector<128x128xbf16>
    tpu.vector_store %arg6[%c0_10, %c0_11], %10 {strides = array<i32>} : memref<128x128xbf16, #tpu.memory_space<vmem>>, vector<128x128xbf16>,
    return
  }
  func.func @transform_0(%arg0: i32) -> (i32, i32) {
    %c0_i32 = arith.constant 0 : i32
    %c0_i32_0 = arith.constant 0 : i32
    return %arg0, %c0_i32 : i32, i32
  }
  func.func @transform_1(%arg0: i32) -> (i32, i32) {
    %c0_i32 = arith.constant 0 : i32
    %c0_i32_0 = arith.constant 0 : i32
    return %arg0, %c0_i32 : i32, i32
  }
  func.func @transform_2(%arg0: i32) -> (i32, i32) {
    %c0_i32 = arith.constant 0 : i32
    %c0_i32_0 = arith.constant 0 : i32
    %c0_i32_1 = arith.constant 0 : i32
    return %c0_i32, %c0_i32_0 : i32, i32
  }
  func.func @transform_3(%arg0: i32) -> (i32, i32) {
    %c0_i32 = arith.constant 0 : i32
    %c0_i32_0 = arith.constant 0 : i32
    %c0_i32_1 = arith.constant 0 : i32
    return %c0_i32, %c0_i32_0 : i32, i32
  }
  func.func @transform_4(%arg0: i32) -> (i32, i32) {
    %c0_i32 = arith.constant 0 : i32
    %c0_i32_0 = arith.constant 0 : i32
    %c0_i32_1 = arith.constant 0 : i32
    return %c0_i32, %c0_i32_0 : i32, i32
  }
  func.func @transform_5(%arg0: i32) -> (i32, i32) {
    %c0_i32 = arith.constant 0 : i32
    %c0_i32_0 = arith.constant 0 : i32
    return %arg0, %c0_i32 : i32, i32
  }
}

module attributes {stable_mosaic.version = 11 : i64} {
  func.func @_fused_matmul_kernel(%arg0: i32, %arg1: memref<128x128xbf16, #tpu.memory_space<vmem>>, %arg2: memref<128x128xbf16, #tpu.memory_space<vmem>>, %arg3: memref<1x128xf32, #tpu.memory_space<vmem>>, %arg4: memref<128x128xbf16, #tpu.memory_space<vmem>>) attributes {dimension_semantics = [#tpu.dimension_semantics<parallel>], iteration_bounds = array<i64: 1>, scalar_prefetch = 0 : i64, scratch_operands = 0 : i64, tpu.core_type = #tpu.core_type<tc>, window_params = [{transform_indices = @transform_0, window_bounds = array<i64: 128, 128>}, {pipeline_mode = #tpu.pipeline_mode<synchronous>, transform_indices = @transform_1, window_bounds = array<i64: 128, 128>}, {pipeline_mode = #tpu.pipeline_mode<synchronous>, transform_indices = @transform_2, window_bounds = array<i64: 1, 128>}, {transform_indices = @transform_3, window_bounds = array<i64: 128, 128>}]} {
    %c0 = arith.constant 0 : index
    %c0_0 = arith.constant 0 : index
    %0 = vector.load %arg3[%c0, %c0_0] : memref<1x128xf32, #tpu.memory_space<vmem>>, vector<1x128xf32>
    %c0_1 = arith.constant 0 : index
    %c0_2 = arith.constant 0 : index
    %1 = vector.load %arg1[%c0_1, %c0_2] : memref<128x128xbf16, #tpu.memory_space<vmem>>, vector<128x128xbf16>
    %c0_3 = arith.constant 0 : index
    %c0_4 = arith.constant 0 : index
    %2 = vector.load %arg2[%c0_3, %c0_4] : memref<128x128xbf16, #tpu.memory_space<vmem>>, vector<128x128xbf16>
    %cst = arith.constant dense<0.000000e+00> : vector<128x128xf32>
    %3 = tpu.matmul %1, %2, %cst {dimension_numbers = #tpu.dot_dimension_numbers<[1], [0], [0], [1], [0, 0, 1, 1], [], []>} : vector<128x128xbf16>, vector<128x128xbf16>, vector<128x128xf32> -> vector<128x128xf32>
    %4 = vector.broadcast %0 : vector<1x128xf32> to vector<128x128xf32>
    %5 = arith.addf %4, %3 : vector<128x128xf32>
    %6 = arith.truncf %5 : vector<128x128xf32> to vector<128x128xbf16>
    %c0_5 = arith.constant 0 : index
    %c0_6 = arith.constant 0 : index
    %7 = vector.load %arg4[%c0_5, %c0_6] : memref<128x128xbf16, #tpu.memory_space<vmem>>, vector<128x128xbf16>
    tpu.vector_store %arg4[%c0_5, %c0_6], %6 {strides = array<i32>} : memref<128x128xbf16, #tpu.memory_space<vmem>>, vector<128x128xbf16>,
    return
  }
  func.func @transform_0(%arg0: i32) -> (i32, i32) {
    %c0_i32 = arith.constant 0 : i32
    %c0_i32_0 = arith.constant 0 : i32
    return %arg0, %c0_i32 : i32, i32
  }
  func.func @transform_1(%arg0: i32) -> (i32, i32) {
    %c0_i32 = arith.constant 0 : i32
    %c0_i32_0 = arith.constant 0 : i32
    %c0_i32_1 = arith.constant 0 : i32
    return %c0_i32, %c0_i32_0 : i32, i32
  }
  func.func @transform_2(%arg0: i32) -> (i32, i32) {
    %c0_i32 = arith.constant 0 : i32
    %c0_i32_0 = arith.constant 0 : i32
    %c0_i32_1 = arith.constant 0 : i32
    return %c0_i32, %c0_i32_0 : i32, i32
  }
  func.func @transform_3(%arg0: i32) -> (i32, i32) {
    %c0_i32 = arith.constant 0 : i32
    %c0_i32_0 = arith.constant 0 : i32
    return %arg0, %c0_i32 : i32, i32
  }
}

module attributes {stable_mosaic.version = 11 : i64} {
  func.func @_fused_matmul_kernel(%arg0: i32, %arg1: memref<128x128xbf16, #tpu.memory_space<vmem>>, %arg2: memref<128x128xbf16, #tpu.memory_space<vmem>>, %arg3: memref<128x128xbf16, #tpu.memory_space<vmem>>, %arg4: memref<128x128xbf16, #tpu.memory_space<vmem>>, %arg5: memref<128x128xbf16, #tpu.memory_space<vmem>>, %arg6: memref<128x128xbf16, #tpu.memory_space<vmem>>, %arg7: memref<128x128xbf16, #tpu.memory_space<vmem>>, %arg8: memref<128x128xbf16, #tpu.memory_space<vmem>>, %arg9: memref<1x128xf32, #tpu.memory_space<vmem>>, %arg10: memref<128x128xbf16, #tpu.memory_space<vmem>>) attributes {dimension_semantics = [#tpu.dimension_semantics<parallel>], iteration_bounds = array<i64: 1>, scalar_prefetch = 0 : i64, scratch_operands = 0 : i64, tpu.core_type = #tpu.core_type<tc>, window_params = [{transform_indices = @transform_0, window_bounds = array<i64: 128, 128>}, {transform_indices = @transform_1, window_bounds = array<i64: 128, 128>}, {transform_indices = @transform_2, window_bounds = array<i64: 128, 128>}, {transform_indices = @transform_3, window_bounds = array<i64: 128, 128>}, {pipeline_mode = #tpu.pipeline_mode<synchronous>, transform_indices = @transform_4, window_bounds = array<i64: 128, 128>}, {pipeline_mode = #tpu.pipeline_mode<synchronous>, transform_indices = @transform_5, window_bounds = array<i64: 128, 128>}, {pipeline_mode = #tpu.pipeline_mode<synchronous>, transform_indices = @transform_6, window_bounds = array<i64: 128, 128>}, {pipeline_mode = #tpu.pipeline_mode<synchronous>, transform_indices = @transform_7, window_bounds = array<i64: 128, 128>}, {pipeline_mode = #tpu.pipeline_mode<synchronous>, transform_indices = @transform_8, window_bounds = array<i64: 1, 128>}, {transform_indices = @transform_9, window_bounds = array<i64: 128, 128>}]} {
    %c0 = arith.constant 0 : index
    %c0_0 = arith.constant 0 : index
    %0 = vector.load %arg9[%c0, %c0_0] : memref<1x128xf32, #tpu.memory_space<vmem>>, vector<1x128xf32>
    %c0_1 = arith.constant 0 : index
    %c0_2 = arith.constant 0 : index
    %1 = vector.load %arg1[%c0_1, %c0_2] : memref<128x128xbf16, #tpu.memory_space<vmem>>, vector<128x128xbf16>
    %c0_3 = arith.constant 0 : index
    %c0_4 = arith.constant 0 : index
    %2 = vector.load %arg5[%c0_3, %c0_4] : memref<128x128xbf16, #tpu.memory_space<vmem>>, vector<128x128xbf16>
    %cst = arith.constant dense<0.000000e+00> : vector<128x128xf32>
    %3 = tpu.matmul %1, %2, %cst {dimension_numbers = #tpu.dot_dimension_numbers<[1], [0], [0], [1], [0, 0, 1, 1], [], []>} : vector<128x128xbf16>, vector<128x128xbf16>, vector<128x128xf32> -> vector<128x128xf32>
    %4 = vector.broadcast %0 : vector<1x128xf32> to vector<128x128xf32>
    %5 = arith.addf %4, %3 : vector<128x128xf32>
    %c0_5 = arith.constant 0 : index
    %c0_6 = arith.constant 0 : index
    %6 = vector.load %arg2[%c0_5, %c0_6] : memref<128x128xbf16, #tpu.memory_space<vmem>>, vector<128x128xbf16>
    %c0_7 = arith.constant 0 : index
    %c0_8 = arith.constant 0 : index
    %7 = vector.load %arg6[%c0_7, %c0_8] : memref<128x128xbf16, #tpu.memory_space<vmem>>, vector<128x128xbf16>
    %cst_9 = arith.constant dense<0.000000e+00> : vector<128x128xf32>
    %8 = tpu.matmul %6, %7, %cst_9 {dimension_numbers = #tpu.dot_dimension_numbers<[1], [0], [0], [1], [0, 0, 1, 1], [], []>} : vector<128x128xbf16>, vector<128x128xbf16>, vector<128x128xf32> -> vector<128x128xf32>
    %9 = arith.addf %5, %8 : vector<128x128xf32>
    %c0_10 = arith.constant 0 : index
    %c0_11 = arith.constant 0 : index
    %10 = vector.load %arg3[%c0_10, %c0_11] : memref<128x128xbf16, #tpu.memory_space<vmem>>, vector<128x128xbf16>
    %c0_12 = arith.constant 0 : index
    %c0_13 = arith.constant 0 : index
    %11 = vector.load %arg7[%c0_12, %c0_13] : memref<128x128xbf16, #tpu.memory_space<vmem>>, vector<128x128xbf16>
    %cst_14 = arith.constant dense<0.000000e+00> : vector<128x128xf32>
    %12 = tpu.matmul %10, %11, %cst_14 {dimension_numbers = #tpu.dot_dimension_numbers<[1], [0], [0], [1], [0, 0, 1, 1], [], []>} : vector<128x128xbf16>, vector<128x128xbf16>, vector<128x128xf32> -> vector<128x128xf32>
    %13 = arith.addf %9, %12 : vector<128x128xf32>
    %c0_15 = arith.constant 0 : index
    %c0_16 = arith.constant 0 : index
    %14 = vector.load %arg4[%c0_15, %c0_16] : memref<128x128xbf16, #tpu.memory_space<vmem>>, vector<128x128xbf16>
    %c0_17 = arith.constant 0 : index
    %c0_18 = arith.constant 0 : index
    %15 = vector.load %arg8[%c0_17, %c0_18] : memref<128x128xbf16, #tpu.memory_space<vmem>>, vector<128x128xbf16>
    %cst_19 = arith.constant dense<0.000000e+00> : vector<128x128xf32>
    %16 = tpu.matmul %14, %15, %cst_19 {dimension_numbers = #tpu.dot_dimension_numbers<[1], [0], [0], [1], [0, 0, 1, 1], [], []>} : vector<128x128xbf16>, vector<128x128xbf16>, vector<128x128xf32> -> vector<128x128xf32>
    %17 = arith.addf %13, %16 : vector<128x128xf32>
    %18 = arith.truncf %17 : vector<128x128xf32> to vector<128x128xbf16>
    %c0_20 = arith.constant 0 : index
    %c0_21 = arith.constant 0 : index
    %19 = vector.load %arg10[%c0_20, %c0_21] : memref<128x128xbf16, #tpu.memory_space<vmem>>, vector<128x128xbf16>
    tpu.vector_store %arg10[%c0_20, %c0_21], %18 {strides = array<i32>} : memref<128x128xbf16, #tpu.memory_space<vmem>>, vector<128x128xbf16>,
    return
  }
  func.func @transform_0(%arg0: i32) -> (i32, i32) {
    %c0_i32 = arith.constant 0 : i32
    %c0_i32_0 = arith.constant 0 : i32
    return %arg0, %c0_i32 : i32, i32
  }
  func.func @transform_1(%arg0: i32) -> (i32, i32) {
    %c0_i32 = arith.constant 0 : i32
    %c0_i32_0 = arith.constant 0 : i32
    return %arg0, %c0_i32 : i32, i32
  }
  func.func @transform_2(%arg0: i32) -> (i32, i32) {
    %c0_i32 = arith.constant 0 : i32
    %c0_i32_0 = arith.constant 0 : i32
    return %arg0, %c0_i32 : i32, i32
  }
  func.func @transform_3(%arg0: i32) -> (i32, i32) {
    %c0_i32 = arith.constant 0 : i32
    %c0_i32_0 = arith.constant 0 : i32
    return %arg0, %c0_i32 : i32, i32
  }
  func.func @transform_4(%arg0: i32) -> (i32, i32) {
    %c0_i32 = arith.constant 0 : i32
    %c0_i32_0 = arith.constant 0 : i32
    %c0_i32_1 = arith.constant 0 : i32
    return %c0_i32, %c0_i32_0 : i32, i32
  }
  func.func @transform_5(%arg0: i32) -> (i32, i32) {
    %c0_i32 = arith.constant 0 : i32
    %c0_i32_0 = arith.constant 0 : i32
    %c0_i32_1 = arith.constant 0 : i32
    return %c0_i32, %c0_i32_0 : i32, i32
  }
  func.func @transform_6(%arg0: i32) -> (i32, i32) {
    %c0_i32 = arith.constant 0 : i32
    %c0_i32_0 = arith.constant 0 : i32
    %c0_i32_1 = arith.constant 0 : i32
    return %c0_i32, %c0_i32_0 : i32, i32
  }
  func.func @transform_7(%arg0: i32) -> (i32, i32) {
    %c0_i32 = arith.constant 0 : i32
    %c0_i32_0 = arith.constant 0 : i32
    %c0_i32_1 = arith.constant 0 : i32
    return %c0_i32, %c0_i32_0 : i32, i32
  }
  func.func @transform_8(%arg0: i32) -> (i32, i32) {
    %c0_i32 = arith.constant 0 : i32
    %c0_i32_0 = arith.constant 0 : i32
    %c0_i32_1 = arith.constant 0 : i32
    return %c0_i32, %c0_i32_0 : i32, i32
  }
  func.func @transform_9(%arg0: i32) -> (i32, i32) {
    %c0_i32 = arith.constant 0 : i32
    %c0_i32_0 = arith.constant 0 : i32
    return %arg0, %c0_i32 : i32, i32
  }
}

module attributes {stable_mosaic.version = 11 : i64} {
  func.func @_fused_matmul_kernel(%arg0: i32, %arg1: memref<512x896xbf16, #tpu.memory_space<vmem>>, %arg2: memref<896x128xbf16, #tpu.memory_space<vmem>>, %arg3: memref<1x128xf32, #tpu.memory_space<vmem>>, %arg4: memref<512x128xf32, #tpu.memory_space<vmem>>) attributes {dimension_semantics = [#tpu.dimension_semantics<parallel>], iteration_bounds = array<i64: 1>, scalar_prefetch = 0 : i64, scratch_operands = 0 : i64, tpu.core_type = #tpu.core_type<tc>, window_params = [{transform_indices = @transform_0, window_bounds = array<i64: 512, 896>}, {pipeline_mode = #tpu.pipeline_mode<synchronous>, transform_indices = @transform_1, window_bounds = array<i64: 896, 128>}, {pipeline_mode = #tpu.pipeline_mode<synchronous>, transform_indices = @transform_2, window_bounds = array<i64: 1, 128>}, {transform_indices = @transform_3, window_bounds = array<i64: 512, 128>}]} {
    %c0 = arith.constant 0 : index
    %c0_0 = arith.constant 0 : index
    %0 = vector.load %arg3[%c0, %c0_0] : memref<1x128xf32, #tpu.memory_space<vmem>>, vector<1x128xf32>
    %c0_1 = arith.constant 0 : index
    %c0_2 = arith.constant 0 : index
    %1 = vector.load %arg1[%c0_1, %c0_2] : memref<512x896xbf16, #tpu.memory_space<vmem>>, vector<512x896xbf16>
    %c0_3 = arith.constant 0 : index
    %c0_4 = arith.constant 0 : index
    %2 = vector.load %arg2[%c0_3, %c0_4] : memref<896x128xbf16, #tpu.memory_space<vmem>>, vector<896x128xbf16>
    %cst = arith.constant dense<0.000000e+00> : vector<512x128xf32>
    %3 = tpu.matmul %1, %2, %cst {dimension_numbers = #tpu.dot_dimension_numbers<[1], [0], [0], [1], [0, 0, 1, 1], [], []>} : vector<512x896xbf16>, vector<896x128xbf16>, vector<512x128xf32> -> vector<512x128xf32>
    %4 = vector.broadcast %0 : vector<1x128xf32> to vector<512x128xf32>
    %5 = arith.addf %4, %3 : vector<512x128xf32>
    %6 = math.tanh %5 : vector<512x128xf32>
    %c0_5 = arith.constant 0 : index
    %c0_6 = arith.constant 0 : index
    %7 = vector.load %arg4[%c0_5, %c0_6] : memref<512x128xf32, #tpu.memory_space<vmem>>, vector<512x128xf32>
    tpu.vector_store %arg4[%c0_5, %c0_6], %6 {strides = array<i32>} : memref<512x128xf32, #tpu.memory_space<vmem>>, vector<512x128xf32>,
    return
  }
  func.func @transform_0(%arg0: i32) -> (i32, i32) {
    %c0_i32 = arith.constant 0 : i32
    %c0_i32_0 = arith.constant 0 : i32
    return %arg0, %c0_i32 : i32, i32
  }
  func.func @transform_1(%arg0: i32) -> (i32, i32) {
    %c0_i32 = arith.constant 0 : i32
    %c0_i32_0 = arith.constant 0 : i32
    %c0_i32_1 = arith.constant 0 : i32
    return %c0_i32, %c0_i32_0 : i32, i32
  }
  func.func @transform_2(%arg0: i32) -> (i32, i32) {
    %c0_i32 = arith.constant 0 : i32
    %c0_i32_0 = arith.constant 0 : i32
    %c0_i32_1 = arith.constant 0 : i32
    return %c0_i32, %c0_i32_0 : i32, i32
  }
  func.func @transform_3(%arg0: i32) -> (i32, i32) {
    %c0_i32 = arith.constant 0 : i32
    %c0_i32_0 = arith.constant 0 : i32
    return %arg0, %c0_i32 : i32, i32
  }
}

</mosaic_0001>

<bundles_post_ra>
// kernel: global_generator_forward.26
= control target key start
LH: loop header
LB: loop body
LE: loop exit
PB: predicated region body
PF: predicated region fallthrough
CT: control target
= control target key end

     0   :  { %s856_s6 = smov 0   ;;  %s1338_s0 = inlined_call_operand.vmem [shape: bf16[2,256,16], index: 0, kind: input, shape index: {}]   ;;  %s1339_s1 = inlined_call_operand.vmem [shape: bf16[2,256,16], index: 1, kind: output, shape index: {}]  }
   0x1 LB: > { %s672_s7 = sadd.s32 4294967295, %s844_s6   ;;  %p676_p0 = scmp.ge.s32.totalorder %s844_s6, 1  ;;  %s844_s6 = sphi %s856_s6, %s11_s6  }
   0x2   : > { %p87_p1 = scmp.lt.s32.totalorder %s844_s6, 3 }
   0x4   : > { %p88_p2 = pnand %p676_p0, %p87_p1 }
   0x5   : > { %p107_p3 = scmp.lt.s32.totalorder (!%p88_p2), %s672_s7, 1 }
   0x6   : > { %91 = sbr.rel (%p88_p2) target bundleno = 151 (0x97), region = 24 }
   0xb   : > { %s1341_s7 = smov (!%p107_p3, %s672_s7), 1  ;;  %vm181_vm0 = vcmask 130048   ;;  %vm584_vm1 = vcmask 125952  }
   0xc   : > { %s715_s8 = sshll.u32 %s1341_s7, 7 }
   0xd   : > { %s872_s11 = scalar_lea.vmem %s1338_s0, %s715_s8  ;;  %s1197_s14 = scalar_lea.vmem %s1339_s1, %s715_s8 }
   0xe   : > { %v750_v0 = vld [vmem:[%s872_s11] sm:$0xff]   ;;  %v813_v1 = vld [vmem:[%s872_s11 + $0x8] sm:$0xff]   ;;  %v814_v5 = vld [vmem:[%s872_s11 + $0x10] sm:$0xff]  }
   0xf   : > { %v876_v2 = vunpack.c.l.bf16 %v750_v0  ;;  %v878_v3 = vunpack.c.h.bf16 %v750_v0  ;;  %v880_v4 = vunpack.c.l.bf16 %v813_v1  ;;  %v883_v6 = vunpack.c.h.bf16 %v813_v1  ;;  %v815_v11 = vld [vmem:[%s872_s11 + $0x18] sm:$0xff]   ;;  %v816_v18 = vld [vmem:[%s872_s11 + $0x20] sm:$0xff]   ;;  %v817_v25 = vld [vmem:[%s872_s11 + $0x28] sm:$0xff]  }
  0x10   : > { %v885_v7 = vunpack.c.l.bf16 %v814_v5  ;;  %v894_v13 = vunpack.c.h.bf16 %v814_v5  ;;  %v898_v16 = vunpack.c.l.bf16 %v815_v11  ;;  %v903_v20 = vunpack.c.h.bf16 %v815_v11  ;;  %v818_v33 = vld [vmem:[%s872_s11 + $0x30] sm:$0xff]   ;;  %v819_v44 = vld [vmem:[%s872_s11 + $0x38] sm:$0xff]   ;;  %v820_v57 = vld [vmem:[%s872_s11 + $0x40] sm:$0xff]  }
  0x11   : > { %v182_v8 = vsel %vm181_vm0, %v876_v2, 0.0  ;;  %v183_v9 = vsel %vm181_vm0, %v878_v3, 0.0  ;;  %v185_v10 = vsel %vm181_vm0, %v880_v4, 0.0  ;;  %v187_v14 = vsel %vm181_vm0, %v883_v6, 0.0  ;;  %v821_v11 = vld [vmem:[%s872_s11 + $0x48] sm:$0xff]  }
  0x12   : > { %v184_v12 = vadd.f32 %v183_v9, %v182_v8  ;;  %v189_v17 = vsel %vm181_vm0, %v885_v7, 0.0  ;;  %v191_v21 = vsel %vm181_vm0, %v894_v13, 0.0  ;;  %v907_v23 = vunpack.c.l.bf16 %v816_v18 }
  0x13   : > { %v193_v24 = vsel %vm181_vm0, %v898_v16, 0.0  ;;  %v912_v27 = vunpack.c.h.bf16 %v816_v18  ;;  %v195_v28 = vsel %vm181_vm0, %v903_v20, 0.0  ;;  %v916_v30 = vunpack.c.l.bf16 %v817_v25 }
  0x14   : > { %v186_v15 = vadd.f32 %v185_v10, %v184_v12  ;;  %v197_v31 = vsel %vm181_vm0, %v907_v23, 0.0  ;;  %v920_v32 = vunpack.c.h.bf16 %v817_v25  ;;  %v253_v36 = vmul.f32 %v876_v2, %v876_v2 }
  0x15   : > { %v199_v35 = vsel %vm181_vm0, %v912_v27, 0.0  ;;  %v254_v37 = vmul.f32 %v878_v3, %v878_v3  ;;  %v255_v38 = vmul.f32 %v880_v4, %v880_v4  ;;  %v931_v40 = vunpack.c.l.bf16 %v818_v33 }
  0x16   : > { %v188_v19 = vadd.f32 %v187_v14, %v186_v15  ;;  %v201_v41 = vsel %vm181_vm0, %v916_v30, 0.0  ;;  %v256_v42 = vmul.f32 %v883_v6, %v883_v6  ;;  %v937_v43 = vunpack.c.h.bf16 %v818_v33 }
  0x17   : > { %v203_v46 = vsel %vm181_vm0, %v920_v32, 0.0  ;;  %v257_v47 = vmul.f32 %v885_v7, %v885_v7  ;;  %v285_v48 = vsel %vm181_vm0, %v253_v36, 0.0  ;;  %v286_v49 = vsel %vm181_vm0, %v254_v37, 0.0 }
  0x18   : > { %v190_v22 = vadd.f32 %v189_v17, %v188_v19  ;;  %v288_v50 = vsel %vm181_vm0, %v255_v38, 0.0  ;;  %v287_v52 = vadd.f32 %v286_v49, %v285_v48  ;;  %v947_v53 = vunpack.c.l.bf16 %v819_v44 }
  0x19   : > { %v205_v54 = vsel %vm181_vm0, %v931_v40, 0.0  ;;  %v258_v55 = vmul.f32 %v894_v13, %v894_v13  ;;  %v290_v56 = vsel %vm181_vm0, %v256_v42, 0.0  ;;  %v955_v60 = vunpack.c.h.bf16 %v819_v44 }
  0x1a   : > { %v192_v26 = vadd.f32 %v191_v21, %v190_v22  ;;  %v289_v59 = vadd.f32 %v288_v50, %v287_v52  ;;  %v207_v61 = vsel %vm181_vm0, %v937_v43, 0.0  ;;  %v259_v62 = vmul.f32 %v898_v16, %v898_v16 }
  0x1b   : > { %v292_v63 = vsel %vm181_vm0, %v257_v47, 0.0  ;;  %v962_v5 = vunpack.c.l.bf16 %v820_v57  ;;  %v209_v8 = vsel %vm181_vm0, %v947_v53, 0.0  ;;  %v260_v9 = vmul.f32 %v903_v20, %v903_v20 }
  0x1c   : > { %v194_v29 = vadd.f32 %v193_v24, %v192_v26  ;;  %v291_v1 = vadd.f32 %v290_v56, %v289_v59  ;;  %v294_v10 = vsel %vm181_vm0, %v258_v55, 0.0  ;;  %v970_v15 = vunpack.c.h.bf16 %v820_v57 }
  0x1d   : > { %v211_v17 = vsel %vm181_vm0, %v955_v60, 0.0  ;;  %v261_v18 = vmul.f32 %v907_v23, %v907_v23  ;;  %v296_v19 = vsel %vm181_vm0, %v259_v62, 0.0  ;;  %v977_v24 = vunpack.c.l.bf16 %v821_v11 }
  0x1e   : > { %v196_v34 = vadd.f32 %v195_v28, %v194_v29  ;;  %v293_v14 = vadd.f32 %v292_v63, %v291_v1  ;;  %v213_v25 = vsel %vm181_vm0, %v962_v5, 0.0  ;;  %v262_v26 = vmul.f32 %v912_v27, %v912_v27  ;;  %v822_v29 = vld [vmem:[%s872_s11 + $0x50] sm:$0xff]  }
  0x1f   : > { %v298_v28 = vsel %vm181_vm0, %v260_v9, 0.0  ;;  %v263_v36 = vmul.f32 %v916_v30, %v916_v30  ;;  %v300_v37 = vsel %vm181_vm0, %v261_v18, 0.0  ;;  %v217_v42 = vsel %vm181_vm0, %v977_v24, 0.0 }
  0x20   : > { %v198_v39 = vadd.f32 %v197_v31, %v196_v34  ;;  %v295_v22 = vadd.f32 %v294_v10, %v293_v14  ;;  %v985_v34 = vunpack.c.h.bf16 %v821_v11  ;;  %v264_v44 = vmul.f32 %v920_v32, %v920_v32 }
  0x21   : > { %v1000_v49 = vunpack.c.h.bf16 %v822_v29  ;;  %v304_v52 = vsel %vm181_vm0, %v263_v36, 0.0 }
  0x22   : > { %v200_v45 = vadd.f32 %v199_v35, %v198_v39  ;;  %v297_v33 = vadd.f32 %v296_v19, %v295_v22  ;;  %v215_v35 = vsel %vm181_vm0, %v970_v15, 0.0  ;;  %v219_v50 = vsel %vm181_vm0, %v985_v34, 0.0  ;;  %v825_v19 = vld [vmem:[%s872_s11 + $0x68] sm:$0xff]  }
  0x23   : > { %v306_v59 = vsel %vm181_vm0, %v264_v44, 0.0  ;;  %v223_v1 = vsel %vm181_vm0, %v1000_v49, 0.0 }
  0x24   : > { %v202_v51 = vadd.f32 %v201_v41, %v200_v45  ;;  %v299_v39 = vadd.f32 %v298_v28, %v297_v33  ;;  %v992_v41 = vunpack.c.l.bf16 %v822_v29  ;;  %v302_v45 = vsel %vm181_vm0, %v262_v26, 0.0 }
  0x25   : > { %v269_v28 = vmul.f32 %v962_v5, %v962_v5 }
  0x26   : > { %v204_v58 = vadd.f32 %v203_v46, %v202_v51  ;;  %v823_v46 = vld [vmem:[%s872_s11 + $0x58] sm:$0xff]   ;;  %v301_v48 = vadd.f32 %v300_v37, %v299_v39  ;;  %v265_v51 = vmul.f32 %v931_v40, %v931_v40  ;;  %v221_v57 = vsel %vm181_vm0, %v992_v41, 0.0  ;;  %v826_v39 = vld [vmem:[%s872_s11 + $0x70] sm:$0xff]  }
  0x27   : > { %v1007_v56 = vunpack.c.l.bf16 %v823_v46  ;;  %v270_v37 = vmul.f32 %v970_v15, %v970_v15 }
  0x28   : > { %v206_v0 = vadd.f32 %v205_v54, %v204_v58  ;;  %v303_v55 = vadd.f32 %v302_v45, %v301_v48  ;;  %v266_v58 = vmul.f32 %v937_v43, %v937_v43  ;;  %v308_v9 = vsel %vm181_vm0, %v265_v51, 0.0 }
  0x29   : > { %v225_v14 = vsel %vm181_vm0, %v1007_v56, 0.0  ;;  %v1045_v45 = vunpack.c.h.bf16 %v825_v19  ;;  %v316_v48 = vsel %vm181_vm0, %v269_v28, 0.0  ;;  %v275_v28 = vmul.f32 %v1007_v56, %v1007_v56 }
  0x2a   : > { %v208_v12 = vadd.f32 %v207_v61, %v206_v0  ;;  %v824_v61 = vld [vmem:[%s872_s11 + $0x60] sm:$0xff]   ;;  %v305_v63 = vadd.f32 %v304_v52, %v303_v55  ;;  %v1015_v0 = vunpack.c.h.bf16 %v823_v46  ;;  %v310_v18 = vsel %vm181_vm0, %v266_v58, 0.0  ;;  %v827_v58 = vld [vmem:[%s872_s11 + $0x78] sm:$0xff]  }
  0x2b   : > { %v1052_v52 = vunpack.c.l.bf16 %v826_v39  ;;  %v272_v55 = vmul.f32 %v985_v34, %v985_v34 }
  0x2c   : > { %v210_v21 = vadd.f32 %v209_v8, %v208_v12  ;;  %v267_v8 = vmul.f32 %v947_v53, %v947_v53  ;;  %v307_v11 = vadd.f32 %v306_v59, %v305_v63  ;;  %v1022_v12 = vunpack.c.l.bf16 %v824_v61 }
  0x2d   : > { %v227_v26 = vsel %vm181_vm0, %v1015_v0, 0.0  ;;  %v235_v63 = vsel %vm181_vm0, %v1045_v45, 0.0 }
  0x2e   : > { %v212_v31 = vadd.f32 %v211_v17, %v210_v21  ;;  %v268_v17 = vmul.f32 %v955_v60, %v955_v60  ;;  %v309_v22 = vadd.f32 %v308_v9, %v307_v11  ;;  %v312_v29 = vsel %vm181_vm0, %v267_v8, 0.0 }
  0x2f   : > { %v229_v36 = vsel %vm181_vm0, %v1022_v12, 0.0  ;;  %v1067_v11 = vunpack.c.l.bf16 %v827_v58 }
  0x30   : > { %v214_v38 = vadd.f32 %v213_v25, %v212_v31  ;;  %v1030_v25 = vunpack.c.h.bf16 %v824_v61  ;;  %v311_v33 = vadd.f32 %v310_v18, %v309_v22  ;;  %v322_v18 = vsel %vm181_vm0, %v272_v55, 0.0 }
  0x31   : > { %v1074_v22 = vunpack.c.h.bf16 %v827_v58 }
  0x32   : > { %v216_v47 = vadd.f32 %v215_v35, %v214_v38  ;;  %v1037_v35 = vunpack.c.l.bf16 %v825_v19  ;;  %v314_v38 = vsel %vm181_vm0, %v268_v17, 0.0  ;;  %v313_v44 = vadd.f32 %v312_v29, %v311_v33 }
  0x33   : > { %v231_v46 = vsel %vm181_vm0, %v1030_v25, 0.0  ;;  %v274_v17 = vmul.f32 %v1000_v49, %v1000_v49 }
  0x34   : > { %v218_v54 = vadd.f32 %v217_v42, %v216_v47  ;;  %v271_v47 = vmul.f32 %v977_v24, %v977_v24  ;;  %v315_v51 = vadd.f32 %v314_v38, %v313_v44  ;;  %v243_v44 = vsel %vm181_vm0, %v1074_v22, 0.0 }
  0x35   : > { %v326_v38 = vsel %vm181_vm0, %v274_v17, 0.0  ;;  %v279_v58 = vmul.f32 %v1037_v35, %v1037_v35 }
  0x36   : > { %v220_v62 = vadd.f32 %v219_v50, %v218_v54  ;;  %v233_v54 = vsel %vm181_vm0, %v1037_v35, 0.0  ;;  %v317_v61 = vadd.f32 %v316_v48, %v315_v51  ;;  %v320_v8 = vsel %vm181_vm0, %v271_v47, 0.0 }
  0x37   : > { %v328_v47 = vsel %vm181_vm0, %v275_v28, 0.0  ;;  %v278_v51 = vmul.f32 %v1030_v25, %v1030_v25  ;;  %v283_v28 = vmul.f32 %v1067_v11, %v1067_v11 }
  0x38   : > { %v222_v10 = vadd.f32 %v221_v57, %v220_v62  ;;  %v318_v57 = vsel %vm181_vm0, %v270_v37, 0.0  ;;  %v1060_v62 = vunpack.c.h.bf16 %v826_v39  ;;  %v276_v37 = vmul.f32 %v1015_v0, %v1015_v0 }
  0x3a   : > { %v224_v21 = vadd.f32 %v223_v1, %v222_v10  ;;  %v273_v1 = vmul.f32 %v992_v41, %v992_v41  ;;  %v319_v10 = vadd.f32 %v318_v57, %v317_v61 }
  0x3c   : > { %v226_v31 = vadd.f32 %v225_v14, %v224_v21  ;;  %v237_v14 = vsel %vm181_vm0, %v1052_v52, 0.0  ;;  %v321_v21 = vadd.f32 %v320_v8, %v319_v10  ;;  %v324_v29 = vsel %vm181_vm0, %v273_v1, 0.0 }
  0x3d   : > { %v280_v1 = vmul.f32 %v1045_v45, %v1045_v45  ;;  %v334_v8 = vsel %vm181_vm0, %v278_v51, 0.0  ;;  %v281_v10 = vmul.f32 %v1052_v52, %v1052_v52 }
  0x3e   : > { %v228_v42 = vadd.f32 %v227_v26, %v226_v31  ;;  %v239_v26 = vsel %vm181_vm0, %v1060_v62, 0.0  ;;  %v323_v33 = vadd.f32 %v322_v18, %v321_v21 }
  0x3f   : > { %v338_v21 = vsel %vm181_vm0, %v280_v1, 0.0 }
  0x40   : > { %v230_v50 = vadd.f32 %v229_v36, %v228_v42  ;;  %v241_v36 = vsel %vm181_vm0, %v1067_v11, 0.0  ;;  %v325_v42 = vadd.f32 %v324_v29, %v323_v33  ;;  %v340_v29 = vsel %vm181_vm0, %v281_v10, 0.0 }
  0x42   : > { %v232_v59 = vadd.f32 %v231_v46, %v230_v50  ;;  %v277_v46 = vmul.f32 %v1022_v12, %v1022_v12  ;;  %v327_v50 = vadd.f32 %v326_v38, %v325_v42 }
  0x44   : > { %v234_v9 = vadd.f32 %v233_v54, %v232_v59  ;;  %v330_v54 = vsel %vm181_vm0, %v276_v37, 0.0  ;;  %v329_v57 = vadd.f32 %v328_v47, %v327_v50  ;;  %v332_v59 = vsel %vm181_vm0, %v277_v46, 0.0 }
  0x46   : > { %v236_v19 = vadd.f32 %v235_v63, %v234_v9  ;;  %v331_v63 = vadd.f32 %v330_v54, %v329_v57 }
  0x48   : > { %v238_v31 = vadd.f32 %v237_v14, %v236_v19  ;;  %v333_v9 = vadd.f32 %v332_v59, %v331_v63  ;;  %v336_v14 = vsel %vm181_vm0, %v279_v58, 0.0  ;;  %v282_v19 = vmul.f32 %v1060_v62, %v1060_v62 }
  0x4a   : > { %v240_v39 = vadd.f32 %v239_v26, %v238_v31  ;;  %v335_v18 = vadd.f32 %v334_v8, %v333_v9  ;;  %v342_v37 = vsel %vm181_vm0, %v282_v19, 0.0 }
  0x4c   : > { %v242_v48 = vadd.f32 %v241_v36, %v240_v39  ;;  %v337_v26 = vadd.f32 %v336_v14, %v335_v18  ;;  %v284_v36 = vmul.f32 %v1074_v22, %v1074_v22  ;;  %v344_v39 = vsel %vm181_vm0, %v283_v28, 0.0 }
  0x4e   : > { %v244_v55 = vadd.f32 %v243_v44, %v242_v48  ;;  %v339_v33 = vadd.f32 %v338_v21, %v337_v26  ;;  %v346_v46 = vsel %vm181_vm0, %v284_v36, 0.0 }
  0x50   : > { %v245_v61 = vrot.slane %v244_v55, 4  ;;  %v341_v38 = vadd.f32 %v340_v29, %v339_v33 }
  0x52   : > { %v246_v17 = vadd.f32 %v245_v61, %v244_v55  ;;  %v343_v44 = vadd.f32 %v342_v37, %v341_v38 }
  0x54   : > { %v247_v31 = vrot.slane %v246_v17, 2  ;;  %v345_v47 = vadd.f32 %v344_v39, %v343_v44 }
  0x56   : > { %v248_v42 = vadd.f32 %v247_v31, %v246_v17  ;;  %v347_v50 = vadd.f32 %v346_v46, %v345_v47 }
  0x58   : > { %v249_v48 = vrot.slane %v248_v42, 1  ;;  %v348_v51 = vrot.slane %v347_v50, 4 }
  0x5a   : > { %v250_v54 = vadd.f32 %v249_v48, %v248_v42  ;;  %v349_v55 = vadd.f32 %v348_v51, %v347_v50 }
  0x5c   : > { %v350_v57 = vrot.slane %v349_v55, 2  ;;  %v1114_v58 = vmul.f32 0.00390625, %v250_v54 }
  0x5e   : > { %v351_v59 = vadd.f32 %v350_v57, %v349_v55  ;;  %v355_v1 = vmul.f32 %v1114_v58, %v1114_v58  ;;  %v358_v17 = vsub.f32 %v876_v2, %v1114_v58  ;;  %v359_v18 = vsub.f32 %v878_v3, %v1114_v58 }
  0x5f   : > { %v360_v19 = vsub.f32 %v880_v4, %v1114_v58  ;;  %v361_v21 = vsub.f32 %v883_v6, %v1114_v58  ;;  %v362_v26 = vsub.f32 %v885_v7, %v1114_v58  ;;  %v363_v28 = vsub.f32 %v894_v13, %v1114_v58 }
  0x60   : > { %v352_v61 = vrot.slane %v351_v59, 1  ;;  %v364_v29 = vsub.f32 %v898_v16, %v1114_v58  ;;  %v365_v2 = vsub.f32 %v903_v20, %v1114_v58  ;;  %v366_v3 = vsub.f32 %v907_v23, %v1114_v58 }
  0x61   : > { %v367_v4 = vsub.f32 %v912_v27, %v1114_v58  ;;  %v368_v6 = vsub.f32 %v916_v30, %v1114_v58  ;;  %v369_v7 = vsub.f32 %v920_v32, %v1114_v58  ;;  %v370_v13 = vsub.f32 %v931_v40, %v1114_v58 }
  0x62   : > { %v353_v63 = vadd.f32 %v352_v61, %v351_v59  ;;  %v371_v16 = vsub.f32 %v937_v43, %v1114_v58  ;;  %v372_v20 = vsub.f32 %v947_v53, %v1114_v58  ;;  %v373_v23 = vsub.f32 %v955_v60, %v1114_v58 }
  0x63   : > { %v374_v27 = vsub.f32 %v962_v5, %v1114_v58  ;;  %v375_v30 = vsub.f32 %v970_v15, %v1114_v58  ;;  %v376_v32 = vsub.f32 %v977_v24, %v1114_v58  ;;  %v377_v40 = vsub.f32 %v985_v34, %v1114_v58 }
  0x64   : > { %v354_v8 = vmul.f32 0.00390625, %v353_v63  ;;  %v378_v43 = vsub.f32 %v992_v41, %v1114_v58  ;;  %v379_v53 = vsub.f32 %v1000_v49, %v1114_v58  ;;  %v380_v60 = vsub.f32 %v1007_v56, %v1114_v58 }
  0x65   : > { %v381_v31 = vsub.f32 %v1015_v0, %v1114_v58  ;;  %v382_v33 = vsub.f32 %v1022_v12, %v1114_v58  ;;  %v383_v36 = vsub.f32 %v1030_v25, %v1114_v58  ;;  %v384_v37 = vsub.f32 %v1037_v35, %v1114_v58 }
  0x66   : > { %v356_v9 = vsub.f32 %v354_v8, %v355_v1  ;;  %v385_v38 = vsub.f32 %v1045_v45, %v1114_v58  ;;  %v386_v42 = vsub.f32 %v1052_v52, %v1114_v58  ;;  %v387_v44 = vsub.f32 %v1060_v62, %v1114_v58 }
  0x67   : > { %v388_v46 = vsub.f32 %v1067_v11, %v1114_v58  ;;  %v389_v47 = vsub.f32 %v1074_v22, %v1114_v58 }
  0x68   : > { %v357_v10 = vmax.f32 %v356_v9, 0.0 }
  0x6a   : > { %v390_v14 = vadd.f32 1e-05, %v357_v10 }
  0x6c   : > { %836 = vrsqrt.f32 %v390_v14 }
  0x79   : > { %v1174_v39 = vpop.eup %836 }
  0x7a   : > { %v392_v48 = vmul.f32 %v1174_v39, %v358_v17  ;;  %v393_v50 = vmul.f32 %v1174_v39, %v359_v18  ;;  %v394_v51 = vmul.f32 %v1174_v39, %v360_v19  ;;  %v395_v54 = vmul.f32 %v1174_v39, %v361_v21 }
  0x7b   : > { %v396_v55 = vmul.f32 %v1174_v39, %v362_v26  ;;  %v397_v57 = vmul.f32 %v1174_v39, %v363_v28  ;;  %v398_v59 = vmul.f32 %v1174_v39, %v364_v29  ;;  %v399_v61 = vmul.f32 %v1174_v39, %v365_v2 }
  0x7c   : > { %v424_v63 = vmax.f32 %v392_v48, 0.0  ;;  %v425_v1 = vmax.f32 %v393_v50, 0.0  ;;  %v426_v8 = vmax.f32 %v394_v51, 0.0  ;;  %v427_v9 = vmax.f32 %v395_v54, 0.0 }
  0x7d   : > { %v428_v10 = vmax.f32 %v396_v55, 0.0  ;;  %v429_v14 = vmax.f32 %v397_v57, 0.0  ;;  %v430_v17 = vmax.f32 %v398_v59, 0.0  ;;  %v431_v18 = vmax.f32 %v399_v61, 0.0 }
  0x7e   : > { %v717_v19 = vpack.c.bf16 %v424_v63, %v424_v63  ;;  %v718_v21 = vpack.c.bf16 %v425_v1, %v425_v1  ;;  %v719_v26 = vpack.c.bf16 %v426_v8, %v426_v8  ;;  %v720_v28 = vpack.c.bf16 %v427_v9, %v427_v9 }
  0x7f   : > { %v721_v29 = vpack.c.bf16 %v428_v10, %v428_v10  ;;  %v722_v2 = vpack.c.bf16 %v429_v14, %v429_v14  ;;  %v723_v48 = vpack.c.bf16 %v430_v17, %v430_v17  ;;  %v724_v50 = vpack.c.bf16 %v431_v18, %v431_v18 }
  0x80   : > { %585 = vst.msk [vmem:[%s1197_s14] sm:$0xf] %vm584_vm1, %v717_v19  ;;  %586 = vst.msk [vmem:[%s1197_s14 + $0x4] sm:$0xf] %vm584_vm1, %v718_v21  ;;  %v400_v51 = vmul.f32 %v1174_v39, %v366_v3  ;;  %v401_v54 = vmul.f32 %v1174_v39, %v367_v4  ;;  %v402_v55 = vmul.f32 %v1174_v39, %v368_v6 }
  0x81   : > { %587 = vst.msk [vmem:[%s1197_s14 + $0x8] sm:$0xf] %vm584_vm1, %v719_v26  ;;  %588 = vst.msk [vmem:[%s1197_s14 + $0xc] sm:$0xf] %vm584_vm1, %v720_v28  ;;  %v403_v57 = vmul.f32 %v1174_v39, %v369_v7  ;;  %v404_v59 = vmul.f32 %v1174_v39, %v370_v13  ;;  %v405_v61 = vmul.f32 %v1174_v39, %v371_v16 }
  0x82   : > { %589 = vst.msk [vmem:[%s1197_s14 + $0x10] sm:$0xf] %vm584_vm1, %v721_v29  ;;  %590 = vst.msk [vmem:[%s1197_s14 + $0x14] sm:$0xf] %vm584_vm1, %v722_v2  ;;  %v406_v3 = vmul.f32 %v1174_v39, %v372_v20  ;;  %v407_v4 = vmul.f32 %v1174_v39, %v373_v23  ;;  %v432_v63 = vmax.f32 %v400_v51, 0.0  ;;  %v433_v6 = vmax.f32 %v401_v54, 0.0 }
  0x83   : > { %591 = vst.msk [vmem:[%s1197_s14 + $0x18] sm:$0xf] %vm584_vm1, %v723_v48  ;;  %592 = vst.msk [vmem:[%s1197_s14 + $0x1c] sm:$0xf] %vm584_vm1, %v724_v50  ;;  %v434_v7 = vmax.f32 %v402_v55, 0.0  ;;  %v435_v1 = vmax.f32 %v403_v57, 0.0  ;;  %v408_v26 = vmul.f32 %v1174_v39, %v374_v27  ;;  %v409_v28 = vmul.f32 %v1174_v39, %v375_v30 }
  0x84   : > { %v436_v8 = vmax.f32 %v404_v59, 0.0  ;;  %v437_v9 = vmax.f32 %v405_v61, 0.0  ;;  %v438_v10 = vmax.f32 %v406_v3, 0.0  ;;  %v439_v14 = vmax.f32 %v407_v4, 0.0 }
  0x85   : > { %v725_v17 = vpack.c.bf16 %v432_v63, %v432_v63  ;;  %v726_v13 = vpack.c.bf16 %v433_v6, %v433_v6  ;;  %v727_v16 = vpack.c.bf16 %v434_v7, %v434_v7  ;;  %v728_v20 = vpack.c.bf16 %v435_v1, %v435_v1 }
  0x86   : > { %v729_v23 = vpack.c.bf16 %v436_v8, %v436_v8  ;;  %v730_v18 = vpack.c.bf16 %v437_v9, %v437_v9  ;;  %v731_v19 = vpack.c.bf16 %v438_v10, %v438_v10  ;;  %v732_v21 = vpack.c.bf16 %v439_v14, %v439_v14 }
  0x87   : > { %593 = vst.msk [vmem:[%s1197_s14 + $0x20] sm:$0xf] %vm584_vm1, %v725_v17  ;;  %594 = vst.msk [vmem:[%s1197_s14 + $0x24] sm:$0xf] %vm584_vm1, %v726_v13  ;;  %v410_v29 = vmul.f32 %v1174_v39, %v376_v32  ;;  %v411_v2 = vmul.f32 %v1174_v39, %v377_v40  ;;  %v412_v5 = vmul.f32 %v1174_v39, %v378_v43  ;;  %v440_v27 = vmax.f32 %v408_v26, 0.0 }
  0x88   : > { %595 = vst.msk [vmem:[%s1197_s14 + $0x28] sm:$0xf] %vm584_vm1, %v727_v16  ;;  %596 = vst.msk [vmem:[%s1197_s14 + $0x2c] sm:$0xf] %vm584_vm1, %v728_v20  ;;  %v413_v15 = vmul.f32 %v1174_v39, %v379_v53  ;;  %v414_v24 = vmul.f32 %v1174_v39, %v380_v60  ;;  %v415_v34 = vmul.f32 %v1174_v39, %v381_v31  ;;  %v441_v41 = vmax.f32 %v409_v28, 0.0 }
  0x89   : > { %597 = vst.msk [vmem:[%s1197_s14 + $0x30] sm:$0xf] %vm584_vm1, %v729_v23  ;;  %598 = vst.msk [vmem:[%s1197_s14 + $0x34] sm:$0xf] %vm584_vm1, %v730_v18  ;;  %v442_v30 = vmax.f32 %v410_v29, 0.0  ;;  %v443_v32 = vmax.f32 %v411_v2, 0.0  ;;  %v733_v56 = vpack.c.bf16 %v440_v27, %v440_v27  ;;  %v416_v55 = vmul.f32 %v1174_v39, %v382_v33 }
  0x8a   : > { %599 = vst.msk [vmem:[%s1197_s14 + $0x38] sm:$0xf] %vm584_vm1, %v731_v19  ;;  %600 = vst.msk [vmem:[%s1197_s14 + $0x3c] sm:$0xf] %vm584_vm1, %v732_v21  ;;  %v444_v49 = vmax.f32 %v412_v5, 0.0  ;;  %v445_v40 = vmax.f32 %v413_v15, 0.0  ;;  %v734_v60 = vpack.c.bf16 %v441_v41, %v441_v41  ;;  %v417_v57 = vmul.f32 %v1174_v39, %v383_v36 }
  0x8b   : > { %v446_v43 = vmax.f32 %v414_v24, 0.0  ;;  %v447_v53 = vmax.f32 %v415_v34, 0.0  ;;  %v735_v48 = vpack.c.bf16 %v442_v30, %v442_v30  ;;  %v736_v0 = vpack.c.bf16 %v443_v32, %v443_v32  ;;  %601 = vst.msk [vmem:[%s1197_s14 + $0x40] sm:$0xf] %vm584_vm1, %v733_v56 }
  0x8c   : > { %v737_v31 = vpack.c.bf16 %v444_v49, %v444_v49  ;;  %v738_v50 = vpack.c.bf16 %v445_v40, %v445_v40  ;;  %602 = vst.msk [vmem:[%s1197_s14 + $0x44] sm:$0xf] %vm584_vm1, %v734_v60  ;;  %v418_v59 = vmul.f32 %v1174_v39, %v384_v37  ;;  %v419_v61 = vmul.f32 %v1174_v39, %v385_v38 }
  0x8d   : > { %v739_v51 = vpack.c.bf16 %v446_v43, %v446_v43  ;;  %v740_v54 = vpack.c.bf16 %v447_v53, %v447_v53  ;;  %603 = vst.msk [vmem:[%s1197_s14 + $0x48] sm:$0xf] %vm584_vm1, %v735_v48  ;;  %604 = vst.msk [vmem:[%s1197_s14 + $0x4c] sm:$0xf] %vm584_vm1, %v736_v0  ;;  %v420_v12 = vmul.f32 %v1174_v39, %v386_v42  ;;  %v448_v33 = vmax.f32 %v416_v55, 0.0 }
  0x8e   : > { %605 = vst.msk [vmem:[%s1197_s14 + $0x50] sm:$0xf] %vm584_vm1, %v737_v31  ;;  %606 = vst.msk [vmem:[%s1197_s14 + $0x54] sm:$0xf] %vm584_vm1, %v738_v50  ;;  %v421_v25 = vmul.f32 %v1174_v39, %v387_v44  ;;  %v422_v35 = vmul.f32 %v1174_v39, %v388_v46  ;;  %v423_v45 = vmul.f32 %v1174_v39, %v389_v47  ;;  %v449_v52 = vmax.f32 %v417_v57, 0.0 }
  0x8f   : > { %607 = vst.msk [vmem:[%s1197_s14 + $0x58] sm:$0xf] %vm584_vm1, %v739_v51  ;;  %608 = vst.msk [vmem:[%s1197_s14 + $0x5c] sm:$0xf] %vm584_vm1, %v740_v54  ;;  %v450_v36 = vmax.f32 %v418_v59, 0.0  ;;  %v451_v37 = vmax.f32 %v419_v61, 0.0  ;;  %v741_v44 = vpack.c.bf16 %v448_v33, %v448_v33 }
  0x90   : > { %v452_v62 = vmax.f32 %v420_v12, 0.0  ;;  %v453_v38 = vmax.f32 %v421_v25, 0.0  ;;  %v454_v11 = vmax.f32 %v422_v35, 0.0  ;;  %v455_v42 = vmax.f32 %v423_v45, 0.0 }
  0x91   : > { %v742_v22 = vpack.c.bf16 %v449_v52, %v449_v52  ;;  %v743_v58 = vpack.c.bf16 %v450_v36, %v450_v36  ;;  %v744_v39 = vpack.c.bf16 %v451_v37, %v451_v37  ;;  %609 = vst.msk [vmem:[%s1197_s14 + $0x60] sm:$0xf] %vm584_vm1, %v741_v44 }
  0x92   : > { %v745_v46 = vpack.c.bf16 %v452_v62, %v452_v62  ;;  %v746_v47 = vpack.c.bf16 %v453_v38, %v453_v38  ;;  %v747_v3 = vpack.c.bf16 %v454_v11, %v454_v11  ;;  %v748_v4 = vpack.c.bf16 %v455_v42, %v455_v42 }
  0x93   : > { %610 = vst.msk [vmem:[%s1197_s14 + $0x64] sm:$0xf] %vm584_vm1, %v742_v22  ;;  %611 = vst.msk [vmem:[%s1197_s14 + $0x68] sm:$0xf] %vm584_vm1, %v743_v58 }
  0x94   : > { %612 = vst.msk [vmem:[%s1197_s14 + $0x6c] sm:$0xf] %vm584_vm1, %v744_v39  ;;  %613 = vst.msk [vmem:[%s1197_s14 + $0x70] sm:$0xf] %vm584_vm1, %v745_v46 }
  0x95   : > { %614 = vst.msk [vmem:[%s1197_s14 + $0x74] sm:$0xf] %vm584_vm1, %v746_v47  ;;  %615 = vst.msk [vmem:[%s1197_s14 + $0x78] sm:$0xf] %vm584_vm1, %v747_v3 }
  0x96   : > { %616 = vst.msk [vmem:[%s1197_s14 + $0x7c] sm:$0xf] %vm584_vm1, %v748_v4 }
  0x97 PF: > { %s11_s6 = sadd.s32 1, %s844_s6  }
  0x98   : > { %p8_p4 = scmp.ge.s32.totalorder %s11_s6, 4  }
  0x9a   :  { %10 = sbr.rel (!%p8_p4) target bundleno = 1 (0x1), region = 54 }

// kernel: global_generator_forward.25
= control target key start
LH: loop header
LB: loop body
LE: loop exit
PB: predicated region body
PF: predicated region fallthrough
CT: control target
= control target key end

     0   :  { %v1756_v0 = vmov 0   ;;  %s2214_s1 = inlined_call_operand.vmem [shape: bf16[256,128], index: 1, kind: input, shape index: {}]   ;;  %s2215_s0 = inlined_call_operand.vmem [shape: bf16[512,256], index: 0, kind: input, shape index: {}]   ;;  %s2216_s2 = inlined_call_operand.vmem [shape: f32[1,128], index: 2, kind: input, shape index: {}]   ;;  %s2217_s3 = inlined_call_operand.vmem [shape: bf16[512,128], index: 3, kind: output, shape index: {}]  }
   0x1   :  { %528 = vmatprep.subr.bf16.mxu0 %v1756_v0  ;;  %1611 = vmatprep.subr.bf16.mxu1 %v1756_v0  ;;  %v1644_v1 = vld [vmem:[%s2214_s1 + $0x38] sm:$0xff]   ;;  %v1645_v2 = vld [vmem:[%s2214_s1 + $0x30] sm:$0xff]   ;;  %v1646_v3 = vld [vmem:[%s2214_s1 + $0x28] sm:$0xff]  }
   0x2   :  { %529 = vmatpush1.bf16.msra.mxu0 %v1644_v1  ;;  %1627 = vmatpush1.bf16.msra.mxu1 %v1644_v1  ;;  %v1647_v4 = vld [vmem:[%s2214_s1 + $0x20] sm:$0xff]   ;;  %v1648_v5 = vld [vmem:[%s2214_s1 + $0x18] sm:$0xff]   ;;  %v1649_v7 = vld [vmem:[%s2214_s1 + $0x10] sm:$0xff]  }
   0x3   :  { %530 = vmatprep.subr.bf16.mxu0 %v1756_v0  ;;  %1612 = vmatprep.subr.bf16.mxu1 %v1756_v0  ;;  %v1662_v6 = vld [vmem:[%s2215_s0 + $0x4] ss:$8 sps:$4 sm:$0xff]   ;;  %v1652_v11 = vld [vmem:[%s2214_s1 + $0x78] sm:$0xff]   ;;  %v1653_v12 = vld [vmem:[%s2214_s1 + $0x70] sm:$0xff]  }
   0x4   :  { %v1665_v8 = vld [vmem:[%s2215_s0 + $0x104] ss:$8 sps:$4 sm:$0xff]   ;;  %560 = vmatprep.mubr.bf16.mxu0 %v1662_v6  ;;  %v1656_v15 = vld [vmem:[%s2214_s1 + $0x58] sm:$0xff]   ;;  %v1657_v16 = vld [vmem:[%s2214_s1 + $0x50] sm:$0xff]  }
   0x5   :  { %688 = vmatprep.mubr.bf16.mxu1 %v1665_v8  ;;  %v1650_v9 = vld [vmem:[%s2214_s1 + $0x8] sm:$0xff]   ;;  %v1651_v10 = vld [vmem:[%s2214_s1] sm:$0xff]   ;;  %v1666_v21 = vld [vmem:[%s2215_s0 + $0x14] ss:$8 sps:$4 sm:$0xff]  }
   0x6   :  { %531 = vmatpush1.bf16.msra.mxu0 %v1645_v2  ;;  %1628 = vmatpush1.bf16.msra.mxu1 %v1645_v2  ;;  %v1654_v13 = vld [vmem:[%s2214_s1 + $0x68] sm:$0xff]   ;;  %v1655_v14 = vld [vmem:[%s2214_s1 + $0x60] sm:$0xff]   ;;  %v1668_v22 = vld [vmem:[%s2215_s0 + $0x114] ss:$8 sps:$4 sm:$0xff]  }
   0x7   :  { %532 = vmatprep.subr.bf16.mxu0 %v1756_v0  ;;  %1613 = vmatprep.subr.bf16.mxu1 %v1756_v0  ;;  %v1658_v17 = vld [vmem:[%s2214_s1 + $0x48] sm:$0xff]   ;;  %v1659_v18 = vld [vmem:[%s2214_s1 + $0x40] sm:$0xff]   ;;  %v1670_v23 = vld [vmem:[%s2215_s0 + $0x10] ss:$8 sps:$4 sm:$0xff]  }
   0x8   :  { %v1660_v19 = vld [vmem:[%s2215_s0] ss:$8 sps:$4 sm:$0xff]   ;;  %v1671_v24 = vld [vmem:[%s2215_s0 + $0x110] ss:$8 sps:$4 sm:$0xff]   ;;  %v1672_v25 = vld [vmem:[%s2215_s0 + $0x24] ss:$8 sps:$4 sm:$0xff]  }
   0x9   :  { %v1663_v20 = vld [vmem:[%s2215_s0 + $0x100] ss:$8 sps:$4 sm:$0xff]   ;;  %v1674_v26 = vld [vmem:[%s2215_s0 + $0x124] ss:$8 sps:$4 sm:$0xff]   ;;  %v1678_v29 = vld [vmem:[%s2215_s0 + $0x34] ss:$8 sps:$4 sm:$0xff]  }
   0xa   :  { %533 = vmatpush1.bf16.msra.mxu0 %v1646_v3  ;;  %1629 = vmatpush1.bf16.msra.mxu1 %v1646_v3  ;;  %v1676_v27 = vld [vmem:[%s2215_s0 + $0x20] ss:$8 sps:$4 sm:$0xff]   ;;  %v1680_v30 = vld [vmem:[%s2215_s0 + $0x134] ss:$8 sps:$4 sm:$0xff]   ;;  %v1682_v31 = vld [vmem:[%s2215_s0 + $0x30] ss:$8 sps:$4 sm:$0xff]  }
   0xb   :  { %534 = vmatprep.subr.bf16.mxu0 %v1756_v0  ;;  %1614 = vmatprep.subr.bf16.mxu1 %v1756_v0  ;;  %v1677_v28 = vld [vmem:[%s2215_s0 + $0x120] ss:$8 sps:$4 sm:$0xff]   ;;  %v1683_v32 = vld [vmem:[%s2215_s0 + $0x130] ss:$8 sps:$4 sm:$0xff]   ;;  %v1684_v33 = vld [vmem:[%s2215_s0 + $0x44] ss:$8 sps:$4 sm:$0xff]  }
   0xc   :  { %v1686_v34 = vld [vmem:[%s2215_s0 + $0x144] ss:$8 sps:$4 sm:$0xff]   ;;  %v1688_v35 = vld [vmem:[%s2215_s0 + $0x40] ss:$8 sps:$4 sm:$0xff]   ;;  %v1690_v37 = vld [vmem:[%s2215_s0 + $0x54] ss:$8 sps:$4 sm:$0xff]  }
   0xd   :  { %v1689_v36 = vld [vmem:[%s2215_s0 + $0x140] ss:$8 sps:$4 sm:$0xff]   ;;  %v1692_v38 = vld [vmem:[%s2215_s0 + $0x154] ss:$8 sps:$4 sm:$0xff]   ;;  %v1694_v39 = vld [vmem:[%s2215_s0 + $0x50] ss:$8 sps:$4 sm:$0xff]  }
   0xe   :  { %535 = vmatpush1.bf16.msra.mxu0 %v1647_v4  ;;  %1630 = vmatpush1.bf16.msra.mxu1 %v1647_v4  ;;  %v1695_v40 = vld [vmem:[%s2215_s0 + $0x150] ss:$8 sps:$4 sm:$0xff]   ;;  %v1696_v41 = vld [vmem:[%s2215_s0 + $0x64] ss:$8 sps:$4 sm:$0xff]   ;;  %v1700_v43 = vld [vmem:[%s2215_s0 + $0x60] ss:$8 sps:$4 sm:$0xff]  }
   0xf   :  { %536 = vmatprep.subr.bf16.mxu0 %v1756_v0  ;;  %1615 = vmatprep.subr.bf16.mxu1 %v1756_v0  ;;  %v1698_v42 = vld [vmem:[%s2215_s0 + $0x164] ss:$8 sps:$4 sm:$0xff]   ;;  %v1701_v44 = vld [vmem:[%s2215_s0 + $0x160] ss:$8 sps:$4 sm:$0xff]   ;;  %v1702_v45 = vld [vmem:[%s2215_s0 + $0x74] ss:$8 sps:$4 sm:$0xff]  }
  0x10   :  { %v1704_v46 = vld [vmem:[%s2215_s0 + $0x174] ss:$8 sps:$4 sm:$0xff]   ;;  %v1706_v47 = vld [vmem:[%s2215_s0 + $0x70] ss:$8 sps:$4 sm:$0xff]   ;;  %v1708_v49 = vld [vmem:[%s2215_s0 + $0x84] ss:$8 sps:$4 sm:$0xff]  }
  0x11   :  { %v1707_v48 = vld [vmem:[%s2215_s0 + $0x170] ss:$8 sps:$4 sm:$0xff]   ;;  %v1710_v50 = vld [vmem:[%s2215_s0 + $0x184] ss:$8 sps:$4 sm:$0xff]   ;;  %v1712_v51 = vld [vmem:[%s2215_s0 + $0x80] ss:$8 sps:$4 sm:$0xff]  }
  0x12   :  { %537 = vmatpush1.bf16.msra.mxu0 %v1648_v5  ;;  %1631 = vmatpush1.bf16.msra.mxu1 %v1648_v5  ;;  %v1713_v52 = vld [vmem:[%s2215_s0 + $0x180] ss:$8 sps:$4 sm:$0xff]   ;;  %v1714_v53 = vld [vmem:[%s2215_s0 + $0x94] ss:$8 sps:$4 sm:$0xff]   ;;  %v1718_v55 = vld [vmem:[%s2215_s0 + $0x90] ss:$8 sps:$4 sm:$0xff]  }
  0x13   :  { %538 = vmatprep.subr.bf16.mxu0 %v1756_v0  ;;  %1616 = vmatprep.subr.bf16.mxu1 %v1756_v0  ;;  %v1716_v54 = vld [vmem:[%s2215_s0 + $0x194] ss:$8 sps:$4 sm:$0xff]   ;;  %v1719_v56 = vld [vmem:[%s2215_s0 + $0x190] ss:$8 sps:$4 sm:$0xff]   ;;  %v1720_v57 = vld [vmem:[%s2215_s0 + $0xa4] ss:$8 sps:$4 sm:$0xff]  }
  0x14   :  { %v1722_v58 = vld [vmem:[%s2215_s0 + $0x1a4] ss:$8 sps:$4 sm:$0xff]   ;;  %v1724_v59 = vld [vmem:[%s2215_s0 + $0xa0] ss:$8 sps:$4 sm:$0xff]   ;;  %v1726_v61 = vld [vmem:[%s2215_s0 + $0xb4] ss:$8 sps:$4 sm:$0xff]  }
  0x15   :  { %v1725_v60 = vld [vmem:[%s2215_s0 + $0x1a0] ss:$8 sps:$4 sm:$0xff]   ;;  %v1728_v62 = vld [vmem:[%s2215_s0 + $0x1b4] ss:$8 sps:$4 sm:$0xff]   ;;  %v1730_v63 = vld [vmem:[%s2215_s0 + $0xb0] ss:$8 sps:$4 sm:$0xff]  }
  0x16   :  { %539 = vmatpush1.bf16.msra.mxu0 %v1649_v7  ;;  %1632 = vmatpush1.bf16.msra.mxu1 %v1649_v7  ;;  %v1732_v1 = vld [vmem:[%s2215_s0 + $0xc4] ss:$8 sps:$4 sm:$0xff]   ;;  %v1736_v3 = vld [vmem:[%s2215_s0 + $0xc0] ss:$8 sps:$4 sm:$0xff]   ;;  %v1738_v5 = vld [vmem:[%s2215_s0 + $0xd4] ss:$8 sps:$4 sm:$0xff]  }
  0x17   :  { %540 = vmatprep.subr.bf16.mxu0 %v1756_v0  ;;  %1617 = vmatprep.subr.bf16.mxu1 %v1756_v0  ;;  %v1734_v2 = vld [vmem:[%s2215_s0 + $0x1c4] ss:$8 sps:$4 sm:$0xff]   ;;  %v1737_v4 = vld [vmem:[%s2215_s0 + $0x1c0] ss:$8 sps:$4 sm:$0xff]   ;;  %v1740_v6 = vld [vmem:[%s2215_s0 + $0x1d4] ss:$8 sps:$4 sm:$0xff]  }
  0x18   :  { %v1742_v7 = vld [vmem:[%s2215_s0 + $0xd0] ss:$8 sps:$4 sm:$0xff]  }
  0x19   :  { %v1743_v8 = vld [vmem:[%s2215_s0 + $0x1d0] ss:$8 sps:$4 sm:$0xff]  }
  0x1a   :  { %541 = vmatpush1.bf16.msra.mxu0 %v1650_v9  ;;  %1633 = vmatpush1.bf16.msra.mxu1 %v1650_v9  ;;  %v1744_v9 = vld [vmem:[%s2215_s0 + $0xe4] ss:$8 sps:$4 sm:$0xff]  }
  0x1b   :  { %542 = vmatprep.subr.bf16.mxu0 %v1756_v0  ;;  %1618 = vmatprep.subr.bf16.mxu1 %v1756_v0 }
  0x1e   :  { %543 = vmatpush1.bf16.msra.mxu0 %v1651_v10  ;;  %1634 = vmatpush1.bf16.msra.mxu1 %v1651_v10  ;;  %v1746_v10 = vld [vmem:[%s2215_s0 + $0x1e4] ss:$8 sps:$4 sm:$0xff]  }
  0x1f   :  { %544 = vmatprep.subr.bf16.mxu0 %v1756_v0  ;;  %1619 = vmatprep.subr.bf16.mxu1 %v1756_v0 }
  0x22   :  { %545 = vmatpush2.bf16.msra.mxu0 %v1652_v11  ;;  %1635 = vmatpush2.bf16.msra.mxu1 %v1652_v11  ;;  %v1748_v11 = vld [vmem:[%s2215_s0 + $0xe0] ss:$8 sps:$4 sm:$0xff]  }
  0x23   :  { %546 = vmatprep.subr.bf16.mxu0 %v1756_v0  ;;  %1620 = vmatprep.subr.bf16.mxu1 %v1756_v0 }
  0x26   :  { %547 = vmatpush2.bf16.msra.mxu0 %v1653_v12  ;;  %1636 = vmatpush2.bf16.msra.mxu1 %v1653_v12  ;;  %v1749_v12 = vld [vmem:[%s2215_s0 + $0x1e0] ss:$8 sps:$4 sm:$0xff]  }
  0x27   :  { %548 = vmatprep.subr.bf16.mxu0 %v1756_v0  ;;  %1621 = vmatprep.subr.bf16.mxu1 %v1756_v0 }
  0x2a   :  { %549 = vmatpush2.bf16.msra.mxu0 %v1654_v13  ;;  %1637 = vmatpush2.bf16.msra.mxu1 %v1654_v13  ;;  %v1750_v13 = vld [vmem:[%s2215_s0 + $0xf4] ss:$8 sps:$4 sm:$0xff]  }
  0x2b   :  { %550 = vmatprep.subr.bf16.mxu0 %v1756_v0  ;;  %1622 = vmatprep.subr.bf16.mxu1 %v1756_v0 }
  0x2e   :  { %551 = vmatpush2.bf16.msra.mxu0 %v1655_v14  ;;  %1638 = vmatpush2.bf16.msra.mxu1 %v1655_v14  ;;  %v1752_v14 = vld [vmem:[%s2215_s0 + $0x1f4] ss:$8 sps:$4 sm:$0xff]  }
  0x2f   :  { %552 = vmatprep.subr.bf16.mxu0 %v1756_v0  ;;  %1623 = vmatprep.subr.bf16.mxu1 %v1756_v0 }
  0x32   :  { %553 = vmatpush2.bf16.msra.mxu0 %v1656_v15  ;;  %1639 = vmatpush2.bf16.msra.mxu1 %v1656_v15  ;;  %v1754_v15 = vld [vmem:[%s2215_s0 + $0xf0] ss:$8 sps:$4 sm:$0xff]  }
  0x33   :  { %554 = vmatprep.subr.bf16.mxu0 %v1756_v0  ;;  %1624 = vmatprep.subr.bf16.mxu1 %v1756_v0 }
  0x36   :  { %555 = vmatpush2.bf16.msra.mxu0 %v1657_v16  ;;  %1640 = vmatpush2.bf16.msra.mxu1 %v1657_v16  ;;  %v1755_v16 = vld [vmem:[%s2215_s0 + $0x1f0] ss:$8 sps:$4 sm:$0xff]  }
  0x37   :  { %556 = vmatprep.subr.bf16.mxu0 %v1756_v0  ;;  %1625 = vmatprep.subr.bf16.mxu1 %v1756_v0 }
  0x3a   :  { %557 = vmatpush2.bf16.msra.mxu0 %v1658_v17  ;;  %1641 = vmatpush2.bf16.msra.mxu1 %v1658_v17 }
  0x3b   :  { %558 = vmatprep.subr.bf16.mxu0 %v1756_v0  ;;  %1626 = vmatprep.subr.bf16.mxu1 %v1756_v0  ;;  %v1731_v0 = vld [vmem:[%s2215_s0 + $0x1b0] ss:$8 sps:$4 sm:$0xff]  }
  0x3e   :  { %559 = vmatpush2.bf16.msra.mxu0 %v1659_v18  ;;  %1642 = vmatpush2.bf16.msra.mxu1 %v1659_v18 }
  0x41   :  { %561 = vmatmul.mubr.bf16.vlgmr.msra.gmra.mxu0 %v1660_v19  ;;  %689 = vmatmul.mubr.bf16.vlgmr.msra.gmra.mxu1 %v1663_v20  ;;  %v2052_v19 = vld [vmem:[%s2216_s2] ss:$0 sm:$0xff] }
  0x42   :  { %568 = vmatprep.mubr.bf16.mxu0 %v1666_v21  ;;  %696 = vmatprep.mubr.bf16.mxu1 %v1668_v22 }
  0x49   :  { %569 = vmatmul.mubr.bf16.gmra.mxu0 %v1670_v23  ;;  %697 = vmatmul.mubr.bf16.gmra.mxu1 %v1671_v24 }
  0x4a   :  { %576 = vmatprep.mubr.bf16.mxu0 %v1672_v25  ;;  %704 = vmatprep.mubr.bf16.mxu1 %v1674_v26 }
  0x51   :  { %577 = vmatmul.mubr.bf16.gmra.mxu0 %v1676_v27  ;;  %705 = vmatmul.mubr.bf16.gmra.mxu1 %v1677_v28 }
  0x52   :  { %584 = vmatprep.mubr.bf16.mxu0 %v1678_v29  ;;  %712 = vmatprep.mubr.bf16.mxu1 %v1680_v30 }
  0x59   :  { %585 = vmatmul.mubr.bf16.gmra.mxu0 %v1682_v31  ;;  %713 = vmatmul.mubr.bf16.gmra.mxu1 %v1683_v32 }
  0x5a   :  { %592 = vmatprep.mubr.bf16.mxu0 %v1684_v33  ;;  %720 = vmatprep.mubr.bf16.mxu1 %v1686_v34 }
  0x61   :  { %593 = vmatmul.mubr.bf16.gmra.mxu0 %v1688_v35  ;;  %721 = vmatmul.mubr.bf16.gmra.mxu1 %v1689_v36 }
  0x62   :  { %600 = vmatprep.mubr.bf16.mxu0 %v1690_v37  ;;  %728 = vmatprep.mubr.bf16.mxu1 %v1692_v38 }
  0x69   :  { %601 = vmatmul.mubr.bf16.gmra.mxu0 %v1694_v39  ;;  %729 = vmatmul.mubr.bf16.gmra.mxu1 %v1695_v40 }
  0x6a   :  { %608 = vmatprep.mubr.bf16.mxu0 %v1696_v41  ;;  %736 = vmatprep.mubr.bf16.mxu1 %v1698_v42 }
  0x71   :  { %609 = vmatmul.mubr.bf16.gmra.mxu0 %v1700_v43  ;;  %737 = vmatmul.mubr.bf16.gmra.mxu1 %v1701_v44 }
  0x72   :  { %616 = vmatprep.mubr.bf16.mxu0 %v1702_v45  ;;  %744 = vmatprep.mubr.bf16.mxu1 %v1704_v46 }
  0x79   :  { %617 = vmatmul.mubr.bf16.gmra.mxu0 %v1706_v47  ;;  %745 = vmatmul.mubr.bf16.gmra.mxu1 %v1707_v48 }
  0x7a   :  { %624 = vmatprep.mubr.bf16.mxu0 %v1708_v49  ;;  %752 = vmatprep.mubr.bf16.mxu1 %v1710_v50 }
  0x81   :  { %625 = vmatmul.mubr.bf16.gmra.mxu0 %v1712_v51  ;;  %753 = vmatmul.mubr.bf16.gmra.mxu1 %v1713_v52 }
  0x82   :  { %632 = vmatprep.mubr.bf16.mxu0 %v1714_v53  ;;  %760 = vmatprep.mubr.bf16.mxu1 %v1716_v54 }
  0x89   :  { %633 = vmatmul.mubr.bf16.gmra.mxu0 %v1718_v55  ;;  %761 = vmatmul.mubr.bf16.gmra.mxu1 %v1719_v56 }
  0x8a   :  { %640 = vmatprep.mubr.bf16.mxu0 %v1720_v57  ;;  %768 = vmatprep.mubr.bf16.mxu1 %v1722_v58 }
  0x91   :  { %641 = vmatmul.mubr.bf16.gmra.mxu0 %v1724_v59  ;;  %769 = vmatmul.mubr.bf16.gmra.mxu1 %v1725_v60 }
  0x92   :  { %648 = vmatprep.mubr.bf16.mxu0 %v1726_v61  ;;  %776 = vmatprep.mubr.bf16.mxu1 %v1728_v62 }
  0x99   :  { %649 = vmatmul.mubr.bf16.gmra.mxu0 %v1730_v63  ;;  %777 = vmatmul.mubr.bf16.gmra.mxu1 %v1731_v0 }
  0x9a   :  { %656 = vmatprep.mubr.bf16.mxu0 %v1732_v1  ;;  %784 = vmatprep.mubr.bf16.mxu1 %v1734_v2 }
  0xa1   :  { %657 = vmatmul.mubr.bf16.gmra.mxu0 %v1736_v3  ;;  %785 = vmatmul.mubr.bf16.gmra.mxu1 %v1737_v4 }
  0xa2   :  { %664 = vmatprep.mubr.bf16.mxu0 %v1738_v5  ;;  %792 = vmatprep.mubr.bf16.mxu1 %v1740_v6 }
  0xa9   :  { %665 = vmatmul.mubr.bf16.gmra.mxu0 %v1742_v7  ;;  %793 = vmatmul.mubr.bf16.gmra.mxu1 %v1743_v8 }
  0xaa   :  { %672 = vmatprep.mubr.bf16.mxu0 %v1744_v9  ;;  %800 = vmatprep.mubr.bf16.mxu1 %v1746_v10 }
  0xb1   :  { %673 = vmatmul.mubr.bf16.gmra.mxu0 %v1748_v11  ;;  %801 = vmatmul.mubr.bf16.gmra.mxu1 %v1749_v12 }
  0xb2   :  { %680 = vmatprep.mubr.bf16.mxu0 %v1750_v13  ;;  %808 = vmatprep.mubr.bf16.mxu1 %v1752_v14 }
  0xb9   :  { %681 = vmatmul.mubr.bf16.gmra.mxu0 %v1754_v15  ;;  %809 = vmatmul.mubr.bf16.gmra.mxu1 %v1755_v16 }
 0x101   :  { %v562_v17 = vpop.f32.mrf.mxu0  ;;  %v690_v18 = vpop.f32.mrf.mxu1 }
 0x102   :  { %v823_v24 = vadd.f32 %v2052_v19, %v562_v17  ;;  %v855_v25 = vadd.f32 %v2052_v19, %v690_v18 }
 0x103   :  { %v564_v20 = vpop.f32.mrf.mxu0  ;;  %v692_v21 = vpop.f32.mrf.mxu1 }
 0x105   :  { %v565_v22 = vpop.f32.mrf.mxu0  ;;  %v693_v23 = vpop.f32.mrf.mxu1 }
 0x106   :  { %v824_v26 = vadd.f32 %v2052_v19, %v565_v22  ;;  %v856_v27 = vadd.f32 %v2052_v19, %v693_v23 }
 0x107   :  { %v567_v28 = vpop.f32.mrf.mxu0  ;;  %v695_v29 = vpop.f32.mrf.mxu1 }
 0x108   :  { %v1423_v30 = vpack.c.bf16 %v824_v26, %v823_v24  ;;  %v1503_v31 = vpack.c.bf16 %v856_v27, %v855_v25 }
 0x109   :  { %v570_v32 = vpop.f32.mrf.mxu0  ;;  %v698_v33 = vpop.f32.mrf.mxu1 }
 0x10a   :  { %1424 = vst [vmem:[%s2217_s3] sm:$0xff] %v1423_v30   ;;  %1595 = vst [vmem:[%s2217_s3 + $0x80] sm:$0xff] %v1503_v31   ;;  %v825_v38 = vadd.f32 %v2052_v19, %v570_v32  ;;  %v857_v39 = vadd.f32 %v2052_v19, %v698_v33 }
 0x10b   :  { %v572_v34 = vpop.f32.mrf.mxu0  ;;  %v700_v35 = vpop.f32.mrf.mxu1 }
 0x10d   :  { %v573_v36 = vpop.f32.mrf.mxu0  ;;  %v701_v37 = vpop.f32.mrf.mxu1 }
 0x10e   :  { %v826_v40 = vadd.f32 %v2052_v19, %v573_v36  ;;  %v858_v41 = vadd.f32 %v2052_v19, %v701_v37 }
 0x10f   :  { %v575_v42 = vpop.f32.mrf.mxu0  ;;  %v703_v43 = vpop.f32.mrf.mxu1 }
 0x110   :  { %v1428_v44 = vpack.c.bf16 %v826_v40, %v825_v38  ;;  %v1508_v45 = vpack.c.bf16 %v858_v41, %v857_v39 }
 0x111   :  { %v578_v46 = vpop.f32.mrf.mxu0  ;;  %v706_v47 = vpop.f32.mrf.mxu1 }
 0x112   :  { %1580 = vst [vmem:[%s2217_s3 + $0x8] sm:$0xff] %v1428_v44   ;;  %1596 = vst [vmem:[%s2217_s3 + $0x88] sm:$0xff] %v1508_v45   ;;  %v827_v52 = vadd.f32 %v2052_v19, %v578_v46  ;;  %v859_v53 = vadd.f32 %v2052_v19, %v706_v47 }
 0x113   :  { %v580_v48 = vpop.f32.mrf.mxu0  ;;  %v708_v49 = vpop.f32.mrf.mxu1 }
 0x115   :  { %v581_v50 = vpop.f32.mrf.mxu0  ;;  %v709_v51 = vpop.f32.mrf.mxu1 }
 0x116   :  { %v828_v54 = vadd.f32 %v2052_v19, %v581_v50  ;;  %v860_v55 = vadd.f32 %v2052_v19, %v709_v51 }
 0x117   :  { %v583_v56 = vpop.f32.mrf.mxu0  ;;  %v711_v57 = vpop.f32.mrf.mxu1 }
 0x118   :  { %v1433_v58 = vpack.c.bf16 %v828_v54, %v827_v52  ;;  %v1513_v59 = vpack.c.bf16 %v860_v55, %v859_v53 }
 0x119   :  { %v586_v60 = vpop.f32.mrf.mxu0  ;;  %v714_v61 = vpop.f32.mrf.mxu1 }
 0x11a   :  { %1581 = vst [vmem:[%s2217_s3 + $0x10] sm:$0xff] %v1433_v58   ;;  %1597 = vst [vmem:[%s2217_s3 + $0x90] sm:$0xff] %v1513_v59   ;;  %v829_v2 = vadd.f32 %v2052_v19, %v586_v60  ;;  %v861_v3 = vadd.f32 %v2052_v19, %v714_v61 }
 0x11b   :  { %v588_v62 = vpop.f32.mrf.mxu0  ;;  %v716_v63 = vpop.f32.mrf.mxu1 }
 0x11d   :  { %v589_v0 = vpop.f32.mrf.mxu0  ;;  %v717_v1 = vpop.f32.mrf.mxu1 }
 0x11e   :  { %v830_v4 = vadd.f32 %v2052_v19, %v589_v0  ;;  %v862_v5 = vadd.f32 %v2052_v19, %v717_v1 }
 0x11f   :  { %v591_v6 = vpop.f32.mrf.mxu0  ;;  %v719_v7 = vpop.f32.mrf.mxu1 }
 0x120   :  { %v1438_v8 = vpack.c.bf16 %v830_v4, %v829_v2  ;;  %v1518_v9 = vpack.c.bf16 %v862_v5, %v861_v3 }
 0x121   :  { %v594_v10 = vpop.f32.mrf.mxu0  ;;  %v722_v11 = vpop.f32.mrf.mxu1 }
 0x122   :  { %1582 = vst [vmem:[%s2217_s3 + $0x18] sm:$0xff] %v1438_v8   ;;  %1598 = vst [vmem:[%s2217_s3 + $0x98] sm:$0xff] %v1518_v9   ;;  %v831_v16 = vadd.f32 %v2052_v19, %v594_v10  ;;  %v863_v17 = vadd.f32 %v2052_v19, %v722_v11 }
 0x123   :  { %v596_v12 = vpop.f32.mrf.mxu0  ;;  %v724_v13 = vpop.f32.mrf.mxu1 }
 0x125   :  { %v597_v14 = vpop.f32.mrf.mxu0  ;;  %v725_v15 = vpop.f32.mrf.mxu1 }
 0x126   :  { %v832_v18 = vadd.f32 %v2052_v19, %v597_v14  ;;  %v864_v20 = vadd.f32 %v2052_v19, %v725_v15 }
 0x127   :  { %v599_v21 = vpop.f32.mrf.mxu0  ;;  %v727_v22 = vpop.f32.mrf.mxu1 }
 0x128   :  { %v1443_v23 = vpack.c.bf16 %v832_v18, %v831_v16  ;;  %v1523_v24 = vpack.c.bf16 %v864_v20, %v863_v17 }
 0x129   :  { %v602_v25 = vpop.f32.mrf.mxu0  ;;  %v730_v26 = vpop.f32.mrf.mxu1 }
 0x12a   :  { %1583 = vst [vmem:[%s2217_s3 + $0x20] sm:$0xff] %v1443_v23   ;;  %1599 = vst [vmem:[%s2217_s3 + $0xa0] sm:$0xff] %v1523_v24   ;;  %v833_v31 = vadd.f32 %v2052_v19, %v602_v25  ;;  %v865_v32 = vadd.f32 %v2052_v19, %v730_v26 }
 0x12b   :  { %v604_v27 = vpop.f32.mrf.mxu0  ;;  %v732_v28 = vpop.f32.mrf.mxu1 }
 0x12d   :  { %v605_v29 = vpop.f32.mrf.mxu0  ;;  %v733_v30 = vpop.f32.mrf.mxu1 }
 0x12e   :  { %v834_v33 = vadd.f32 %v2052_v19, %v605_v29  ;;  %v866_v34 = vadd.f32 %v2052_v19, %v733_v30 }
 0x12f   :  { %v607_v35 = vpop.f32.mrf.mxu0  ;;  %v735_v36 = vpop.f32.mrf.mxu1 }
 0x130   :  { %v1448_v37 = vpack.c.bf16 %v834_v33, %v833_v31  ;;  %v1528_v38 = vpack.c.bf16 %v866_v34, %v865_v32 }
 0x131   :  { %v610_v39 = vpop.f32.mrf.mxu0  ;;  %v738_v40 = vpop.f32.mrf.mxu1 }
 0x132   :  { %1584 = vst [vmem:[%s2217_s3 + $0x28] sm:$0xff] %v1448_v37   ;;  %1600 = vst [vmem:[%s2217_s3 + $0xa8] sm:$0xff] %v1528_v38   ;;  %v835_v45 = vadd.f32 %v2052_v19, %v610_v39  ;;  %v867_v46 = vadd.f32 %v2052_v19, %v738_v40 }
 0x133   :  { %v612_v41 = vpop.f32.mrf.mxu0  ;;  %v740_v42 = vpop.f32.mrf.mxu1 }
 0x135   :  { %v613_v43 = vpop.f32.mrf.mxu0  ;;  %v741_v44 = vpop.f32.mrf.mxu1 }
 0x136   :  { %v836_v47 = vadd.f32 %v2052_v19, %v613_v43  ;;  %v868_v48 = vadd.f32 %v2052_v19, %v741_v44 }
 0x137   :  { %v615_v49 = vpop.f32.mrf.mxu0  ;;  %v743_v50 = vpop.f32.mrf.mxu1 }
 0x138   :  { %v1453_v51 = vpack.c.bf16 %v836_v47, %v835_v45  ;;  %v1533_v52 = vpack.c.bf16 %v868_v48, %v867_v46 }
 0x139   :  { %v618_v53 = vpop.f32.mrf.mxu0  ;;  %v746_v54 = vpop.f32.mrf.mxu1 }
 0x13a   :  { %1585 = vst [vmem:[%s2217_s3 + $0x30] sm:$0xff] %v1453_v51   ;;  %1601 = vst [vmem:[%s2217_s3 + $0xb0] sm:$0xff] %v1533_v52   ;;  %v837_v59 = vadd.f32 %v2052_v19, %v618_v53  ;;  %v869_v60 = vadd.f32 %v2052_v19, %v746_v54 }
 0x13b   :  { %v620_v55 = vpop.f32.mrf.mxu0  ;;  %v748_v56 = vpop.f32.mrf.mxu1 }
 0x13d   :  { %v621_v57 = vpop.f32.mrf.mxu0  ;;  %v749_v58 = vpop.f32.mrf.mxu1 }
 0x13e   :  { %v838_v61 = vadd.f32 %v2052_v19, %v621_v57  ;;  %v870_v62 = vadd.f32 %v2052_v19, %v749_v58 }
 0x13f   :  { %v623_v63 = vpop.f32.mrf.mxu0  ;;  %v751_v0 = vpop.f32.mrf.mxu1 }
 0x140   :  { %v1458_v1 = vpack.c.bf16 %v838_v61, %v837_v59  ;;  %v1538_v2 = vpack.c.bf16 %v870_v62, %v869_v60 }
 0x141   :  { %v626_v3 = vpop.f32.mrf.mxu0  ;;  %v754_v4 = vpop.f32.mrf.mxu1 }
 0x142   :  { %1586 = vst [vmem:[%s2217_s3 + $0x38] sm:$0xff] %v1458_v1   ;;  %1602 = vst [vmem:[%s2217_s3 + $0xb8] sm:$0xff] %v1538_v2   ;;  %v839_v9 = vadd.f32 %v2052_v19, %v626_v3  ;;  %v871_v10 = vadd.f32 %v2052_v19, %v754_v4 }
 0x143   :  { %v628_v5 = vpop.f32.mrf.mxu0  ;;  %v756_v6 = vpop.f32.mrf.mxu1 }
 0x145   :  { %v629_v7 = vpop.f32.mrf.mxu0  ;;  %v757_v8 = vpop.f32.mrf.mxu1 }
 0x146   :  { %v840_v11 = vadd.f32 %v2052_v19, %v629_v7  ;;  %v872_v12 = vadd.f32 %v2052_v19, %v757_v8 }
 0x147   :  { %v631_v13 = vpop.f32.mrf.mxu0  ;;  %v759_v14 = vpop.f32.mrf.mxu1 }
 0x148   :  { %v1463_v15 = vpack.c.bf16 %v840_v11, %v839_v9  ;;  %v1543_v16 = vpack.c.bf16 %v872_v12, %v871_v10 }
 0x149   :  { %v634_v17 = vpop.f32.mrf.mxu0  ;;  %v762_v18 = vpop.f32.mrf.mxu1 }
 0x14a   :  { %1587 = vst [vmem:[%s2217_s3 + $0x40] sm:$0xff] %v1463_v15   ;;  %1603 = vst [vmem:[%s2217_s3 + $0xc0] sm:$0xff] %v1543_v16   ;;  %v841_v24 = vadd.f32 %v2052_v19, %v634_v17  ;;  %v873_v25 = vadd.f32 %v2052_v19, %v762_v18 }
 0x14b   :  { %v636_v20 = vpop.f32.mrf.mxu0  ;;  %v764_v21 = vpop.f32.mrf.mxu1 }
 0x14d   :  { %v637_v22 = vpop.f32.mrf.mxu0  ;;  %v765_v23 = vpop.f32.mrf.mxu1 }
 0x14e   :  { %v842_v26 = vadd.f32 %v2052_v19, %v637_v22  ;;  %v874_v27 = vadd.f32 %v2052_v19, %v765_v23 }
 0x14f   :  { %v639_v28 = vpop.f32.mrf.mxu0  ;;  %v767_v29 = vpop.f32.mrf.mxu1 }
 0x150   :  { %v1468_v30 = vpack.c.bf16 %v842_v26, %v841_v24  ;;  %v1548_v31 = vpack.c.bf16 %v874_v27, %v873_v25 }
 0x151   :  { %v642_v32 = vpop.f32.mrf.mxu0  ;;  %v770_v33 = vpop.f32.mrf.mxu1 }
 0x152   :  { %1588 = vst [vmem:[%s2217_s3 + $0x48] sm:$0xff] %v1468_v30   ;;  %1604 = vst [vmem:[%s2217_s3 + $0xc8] sm:$0xff] %v1548_v31   ;;  %v843_v38 = vadd.f32 %v2052_v19, %v642_v32  ;;  %v875_v39 = vadd.f32 %v2052_v19, %v770_v33 }
 0x153   :  { %v644_v34 = vpop.f32.mrf.mxu0  ;;  %v772_v35 = vpop.f32.mrf.mxu1 }
 0x155   :  { %v645_v36 = vpop.f32.mrf.mxu0  ;;  %v773_v37 = vpop.f32.mrf.mxu1 }
 0x156   :  { %v844_v40 = vadd.f32 %v2052_v19, %v645_v36  ;;  %v876_v41 = vadd.f32 %v2052_v19, %v773_v37 }
 0x157   :  { %v647_v42 = vpop.f32.mrf.mxu0  ;;  %v775_v43 = vpop.f32.mrf.mxu1 }
 0x158   :  { %v1473_v44 = vpack.c.bf16 %v844_v40, %v843_v38  ;;  %v1553_v45 = vpack.c.bf16 %v876_v41, %v875_v39 }
 0x159   :  { %v650_v46 = vpop.f32.mrf.mxu0  ;;  %v778_v47 = vpop.f32.mrf.mxu1 }
 0x15a   :  { %1589 = vst [vmem:[%s2217_s3 + $0x50] sm:$0xff] %v1473_v44   ;;  %1605 = vst [vmem:[%s2217_s3 + $0xd0] sm:$0xff] %v1553_v45   ;;  %v845_v52 = vadd.f32 %v2052_v19, %v650_v46  ;;  %v877_v53 = vadd.f32 %v2052_v19, %v778_v47 }
 0x15b   :  { %v652_v48 = vpop.f32.mrf.mxu0  ;;  %v780_v49 = vpop.f32.mrf.mxu1 }
 0x15d   :  { %v653_v50 = vpop.f32.mrf.mxu0  ;;  %v781_v51 = vpop.f32.mrf.mxu1 }
 0x15e   :  { %v846_v54 = vadd.f32 %v2052_v19, %v653_v50  ;;  %v878_v55 = vadd.f32 %v2052_v19, %v781_v51 }
 0x15f   :  { %v655_v56 = vpop.f32.mrf.mxu0  ;;  %v783_v57 = vpop.f32.mrf.mxu1 }
 0x160   :  { %v1478_v58 = vpack.c.bf16 %v846_v54, %v845_v52  ;;  %v1558_v59 = vpack.c.bf16 %v878_v55, %v877_v53 }
 0x161   :  { %v658_v60 = vpop.f32.mrf.mxu0  ;;  %v786_v61 = vpop.f32.mrf.mxu1 }
 0x162   :  { %1590 = vst [vmem:[%s2217_s3 + $0x58] sm:$0xff] %v1478_v58   ;;  %1606 = vst [vmem:[%s2217_s3 + $0xd8] sm:$0xff] %v1558_v59   ;;  %v847_v2 = vadd.f32 %v2052_v19, %v658_v60  ;;  %v879_v3 = vadd.f32 %v2052_v19, %v786_v61 }
 0x163   :  { %v660_v62 = vpop.f32.mrf.mxu0  ;;  %v788_v63 = vpop.f32.mrf.mxu1 }
 0x165   :  { %v661_v0 = vpop.f32.mrf.mxu0  ;;  %v789_v1 = vpop.f32.mrf.mxu1 }
 0x166   :  { %v848_v4 = vadd.f32 %v2052_v19, %v661_v0  ;;  %v880_v5 = vadd.f32 %v2052_v19, %v789_v1 }
 0x167   :  { %v663_v6 = vpop.f32.mrf.mxu0  ;;  %v791_v7 = vpop.f32.mrf.mxu1 }
 0x168   :  { %v1483_v8 = vpack.c.bf16 %v848_v4, %v847_v2  ;;  %v1563_v9 = vpack.c.bf16 %v880_v5, %v879_v3 }
 0x169   :  { %v666_v10 = vpop.f32.mrf.mxu0  ;;  %v794_v11 = vpop.f32.mrf.mxu1 }
 0x16a   :  { %1591 = vst [vmem:[%s2217_s3 + $0x60] sm:$0xff] %v1483_v8   ;;  %1607 = vst [vmem:[%s2217_s3 + $0xe0] sm:$0xff] %v1563_v9   ;;  %v849_v16 = vadd.f32 %v2052_v19, %v666_v10  ;;  %v881_v17 = vadd.f32 %v2052_v19, %v794_v11 }
 0x16b   :  { %v668_v12 = vpop.f32.mrf.mxu0  ;;  %v796_v13 = vpop.f32.mrf.mxu1 }
 0x16d   :  { %v669_v14 = vpop.f32.mrf.mxu0  ;;  %v797_v15 = vpop.f32.mrf.mxu1 }
 0x16e   :  { %v850_v18 = vadd.f32 %v2052_v19, %v669_v14  ;;  %v882_v20 = vadd.f32 %v2052_v19, %v797_v15 }
 0x16f   :  { %v671_v21 = vpop.f32.mrf.mxu0  ;;  %v799_v22 = vpop.f32.mrf.mxu1 }
 0x170   :  { %v1488_v23 = vpack.c.bf16 %v850_v18, %v849_v16  ;;  %v1568_v24 = vpack.c.bf16 %v882_v20, %v881_v17 }
 0x171   :  { %v674_v25 = vpop.f32.mrf.mxu0  ;;  %v802_v26 = vpop.f32.mrf.mxu1 }
 0x172   :  { %1592 = vst [vmem:[%s2217_s3 + $0x68] sm:$0xff] %v1488_v23   ;;  %1608 = vst [vmem:[%s2217_s3 + $0xe8] sm:$0xff] %v1568_v24   ;;  %v851_v31 = vadd.f32 %v2052_v19, %v674_v25  ;;  %v883_v32 = vadd.f32 %v2052_v19, %v802_v26 }
 0x173   :  { %v676_v27 = vpop.f32.mrf.mxu0  ;;  %v804_v28 = vpop.f32.mrf.mxu1 }
 0x175   :  { %v677_v29 = vpop.f32.mrf.mxu0  ;;  %v805_v30 = vpop.f32.mrf.mxu1 }
 0x176   :  { %v852_v33 = vadd.f32 %v2052_v19, %v677_v29  ;;  %v884_v34 = vadd.f32 %v2052_v19, %v805_v30 }
 0x177   :  { %v679_v35 = vpop.f32.mrf.mxu0  ;;  %v807_v36 = vpop.f32.mrf.mxu1 }
 0x178   :  { %v1493_v37 = vpack.c.bf16 %v852_v33, %v851_v31  ;;  %v1573_v38 = vpack.c.bf16 %v884_v34, %v883_v32 }
 0x179   :  { %v682_v39 = vpop.f32.mrf.mxu0  ;;  %v810_v40 = vpop.f32.mrf.mxu1 }
 0x17a   :  { %1593 = vst [vmem:[%s2217_s3 + $0x70] sm:$0xff] %v1493_v37   ;;  %1609 = vst [vmem:[%s2217_s3 + $0xf0] sm:$0xff] %v1573_v38   ;;  %v853_v45 = vadd.f32 %v2052_v19, %v682_v39  ;;  %v885_v46 = vadd.f32 %v2052_v19, %v810_v40 }
 0x17b   :  { %v684_v41 = vpop.f32.mrf.mxu0  ;;  %v812_v42 = vpop.f32.mrf.mxu1 }
 0x17d   :  { %v685_v43 = vpop.f32.mrf.mxu0  ;;  %v813_v44 = vpop.f32.mrf.mxu1 }
 0x17e   :  { %v854_v47 = vadd.f32 %v2052_v19, %v685_v43  ;;  %v886_v48 = vadd.f32 %v2052_v19, %v813_v44 }
 0x17f   :  { %v687_v49 = vpop.f32.mrf.mxu0  ;;  %v815_v50 = vpop.f32.mrf.mxu1 }
 0x180   :  { %v1498_v51 = vpack.c.bf16 %v854_v47, %v853_v45  ;;  %v1578_v52 = vpack.c.bf16 %v886_v48, %v885_v46 }
 0x182   :  { %1594 = vst [vmem:[%s2217_s3 + $0x78] sm:$0xff] %v1498_v51   ;;  %1610 = vst [vmem:[%s2217_s3 + $0xf8] sm:$0xff] %v1578_v52  }

// kernel: global_generator_forward.28
= control target key start
LH: loop header
LB: loop body
LE: loop exit
PB: predicated region body
PF: predicated region fallthrough
CT: control target
= control target key end

     0   :  { %s388_s6 = smov 0   ;;  %s478_s0 = inlined_call_operand.vmem [shape: bf16[2,64,32], index: 0, kind: input, shape index: {}]   ;;  %s479_s1 = inlined_call_operand.vmem [shape: bf16[2,64,32], index: 1, kind: output, shape index: {}]  }
   0x1 LB: > { %s312_s7 = sadd.s32 4294967295, %s376_s6   ;;  %p316_p0 = scmp.ge.s32.totalorder %s376_s6, 1  ;;  %s376_s6 = sphi %s388_s6, %s11_s6  }
   0x2   : > { %p87_p1 = scmp.lt.s32.totalorder %s376_s6, 3 }
   0x4   : > { %p88_p2 = pnand %p316_p0, %p87_p1 }
   0x5   : > { %p107_p3 = scmp.lt.s32.totalorder (!%p88_p2), %s312_s7, 1 }
   0x6   : > { %91 = sbr.rel (%p88_p2) target bundleno = 79 (0x4f), region = 24 }
   0xb   : > { %s481_s7 = smov (!%p107_p3, %s312_s7), 1  ;;  %vm133_vm0 = vcmask 261120   ;;  %vm248_vm1 = vcmask 257024  }
   0xc   : > { %s331_s8 = sshll.u32 %s481_s7, 5 }
   0xd   : > { %s111_s11 = scalar_lea.vmem %s478_s0, %s331_s8  ;;  %s116_s14 = scalar_lea.vmem %s479_s1, %s331_s8 }
   0xe   : > { %v342_v0 = vld [vmem:[%s111_s11] sm:$0xff]   ;;  %v357_v1 = vld [vmem:[%s111_s11 + $0x8] sm:$0xff]   ;;  %v358_v2 = vld [vmem:[%s111_s11 + $0x10] sm:$0xff]  }
   0xf   : > { %v404_v3 = vunpack.c.l.bf16 %v342_v0  ;;  %v406_v4 = vunpack.c.h.bf16 %v342_v0  ;;  %v408_v5 = vunpack.c.l.bf16 %v357_v1  ;;  %v410_v6 = vunpack.c.h.bf16 %v357_v1  ;;  %v359_v8 = vld [vmem:[%s111_s11 + $0x18] sm:$0xff]  }
  0x10   : > { %v412_v7 = vunpack.c.l.bf16 %v358_v2  ;;  %v420_v12 = vunpack.c.h.bf16 %v358_v2  ;;  %v430_v18 = vunpack.c.l.bf16 %v359_v8  ;;  %v356_v28 = vunpack.c.h.bf16 %v359_v8 }
  0x11   : > { %v134_v9 = vsel %vm133_vm0, %v404_v3, 0.0  ;;  %v135_v10 = vsel %vm133_vm0, %v406_v4, 0.0  ;;  %v137_v11 = vsel %vm133_vm0, %v408_v5, 0.0  ;;  %v139_v14 = vsel %vm133_vm0, %v410_v6, 0.0 }
  0x12   : > { %v136_v13 = vadd.f32 %v135_v10, %v134_v9  ;;  %v157_v15 = vmul.f32 %v404_v3, %v404_v3  ;;  %v158_v16 = vmul.f32 %v406_v4, %v406_v4  ;;  %v159_v17 = vmul.f32 %v408_v5, %v408_v5 }
  0x13   : > { %v160_v20 = vmul.f32 %v410_v6, %v410_v6  ;;  %v141_v21 = vsel %vm133_vm0, %v412_v7, 0.0  ;;  %v161_v22 = vmul.f32 %v412_v7, %v412_v7  ;;  %v143_v29 = vsel %vm133_vm0, %v420_v12, 0.0 }
  0x14   : > { %v138_v19 = vadd.f32 %v137_v11, %v136_v13  ;;  %v165_v23 = vsel %vm133_vm0, %v157_v15, 0.0  ;;  %v166_v24 = vsel %vm133_vm0, %v158_v16, 0.0  ;;  %v168_v27 = vsel %vm133_vm0, %v159_v17, 0.0 }
  0x15   : > { %v167_v26 = vadd.f32 %v166_v24, %v165_v23  ;;  %v162_v30 = vmul.f32 %v420_v12, %v420_v12  ;;  %v170_v31 = vsel %vm133_vm0, %v160_v20, 0.0  ;;  %v145_v34 = vsel %vm133_vm0, %v430_v18, 0.0 }
  0x16   : > { %v140_v25 = vadd.f32 %v139_v14, %v138_v19  ;;  %v163_v35 = vmul.f32 %v430_v18, %v430_v18  ;;  %v172_v36 = vsel %vm133_vm0, %v161_v22, 0.0  ;;  %v147_v39 = vsel %vm133_vm0, %v356_v28, 0.0 }
  0x17   : > { %v169_v33 = vadd.f32 %v168_v27, %v167_v26  ;;  %v164_v40 = vmul.f32 %v356_v28, %v356_v28  ;;  %v174_v41 = vsel %vm133_vm0, %v162_v30, 0.0 }
  0x18   : > { %v142_v32 = vadd.f32 %v141_v21, %v140_v25  ;;  %v176_v44 = vsel %vm133_vm0, %v163_v35, 0.0 }
  0x19   : > { %v171_v38 = vadd.f32 %v170_v31, %v169_v33  ;;  %v178_v47 = vsel %vm133_vm0, %v164_v40, 0.0 }
  0x1a   : > { %v144_v37 = vadd.f32 %v143_v29, %v142_v32 }
  0x1b   : > { %v173_v43 = vadd.f32 %v172_v36, %v171_v38 }
  0x1c   : > { %v146_v42 = vadd.f32 %v145_v34, %v144_v37 }
  0x1d   : > { %v175_v46 = vadd.f32 %v174_v41, %v173_v43 }
  0x1e   : > { %v148_v45 = vadd.f32 %v147_v39, %v146_v42 }
  0x1f   : > { %v177_v49 = vadd.f32 %v176_v44, %v175_v46 }
  0x20   : > { %v149_v48 = vrot.slane %v148_v45, 4 }
  0x21   : > { %v179_v51 = vadd.f32 %v178_v47, %v177_v49 }
  0x22   : > { %v150_v50 = vadd.f32 %v149_v48, %v148_v45 }
  0x23   : > { %v180_v53 = vrot.slane %v179_v51, 4 }
  0x24   : > { %v151_v52 = vrot.slane %v150_v50, 2 }
  0x25   : > { %v181_v55 = vadd.f32 %v180_v53, %v179_v51 }
  0x26   : > { %v152_v54 = vadd.f32 %v151_v52, %v150_v50 }
  0x27   : > { %v182_v57 = vrot.slane %v181_v55, 2 }
  0x28   : > { %v153_v56 = vrot.slane %v152_v54, 1 }
  0x29   : > { %v183_v59 = vadd.f32 %v182_v57, %v181_v55 }
  0x2a   : > { %v154_v58 = vadd.f32 %v153_v56, %v152_v54 }
  0x2b   : > { %v184_v61 = vrot.slane %v183_v59, 1 }
  0x2c   : > { %v156_v60 = vmul.f32 0.015625, %v154_v58 }
  0x2d   : > { %v185_v62 = vadd.f32 %v184_v61, %v183_v59 }
  0x2e   : > { %v187_v63 = vmul.f32 %v156_v60, %v156_v60  ;;  %v190_v9 = vsub.f32 %v404_v3, %v156_v60  ;;  %v191_v10 = vsub.f32 %v406_v4, %v156_v60  ;;  %v192_v11 = vsub.f32 %v408_v5, %v156_v60 }
  0x2f   : > { %v186_v0 = vmul.f32 0.015625, %v185_v62  ;;  %v193_v13 = vsub.f32 %v410_v6, %v156_v60  ;;  %v194_v14 = vsub.f32 %v412_v7, %v156_v60  ;;  %v195_v15 = vsub.f32 %v420_v12, %v156_v60 }
  0x30   : > { %v196_v16 = vsub.f32 %v430_v18, %v156_v60  ;;  %v197_v17 = vsub.f32 %v356_v28, %v156_v60 }
  0x31   : > { %v188_v1 = vsub.f32 %v186_v0, %v187_v63 }
  0x33   : > { %v189_v2 = vmax.f32 %v188_v1, 0.0 }
  0x35   : > { %v198_v8 = vadd.f32 1e-05, %v189_v2 }
  0x37   : > { %368 = vrsqrt.f32 %v198_v8 }
  0x44   : > { %v369_v19 = vpop.eup %368 }
  0x45   : > { %v200_v20 = vmul.f32 %v369_v19, %v190_v9  ;;  %v201_v21 = vmul.f32 %v369_v19, %v191_v10  ;;  %v202_v22 = vmul.f32 %v369_v19, %v192_v11  ;;  %v203_v3 = vmul.f32 %v369_v19, %v193_v13 }
  0x46   : > { %v204_v23 = vmul.f32 %v369_v19, %v194_v14  ;;  %v205_v4 = vmul.f32 %v369_v19, %v195_v15  ;;  %v206_v24 = vmul.f32 %v369_v19, %v196_v16  ;;  %v207_v5 = vmul.f32 %v369_v19, %v197_v17 }
  0x47   : > { %v208_v25 = vmax.f32 %v200_v20, 0.0  ;;  %v209_v6 = vmax.f32 %v201_v21, 0.0  ;;  %v210_v26 = vmax.f32 %v202_v22, 0.0  ;;  %v211_v7 = vmax.f32 %v203_v3, 0.0 }
  0x48   : > { %v212_v12 = vmax.f32 %v204_v23, 0.0  ;;  %v213_v18 = vmax.f32 %v205_v4, 0.0  ;;  %v214_v27 = vmax.f32 %v206_v24, 0.0  ;;  %v215_v28 = vmax.f32 %v207_v5, 0.0 }
  0x49   : > { %v333_v29 = vpack.c.bf16 %v208_v25, %v208_v25  ;;  %v334_v30 = vpack.c.bf16 %v209_v6, %v209_v6  ;;  %v335_v31 = vpack.c.bf16 %v210_v26, %v210_v26  ;;  %v336_v32 = vpack.c.bf16 %v211_v7, %v211_v7 }
  0x4a   : > { %v337_v33 = vpack.c.bf16 %v212_v12, %v212_v12  ;;  %v338_v34 = vpack.c.bf16 %v213_v18, %v213_v18  ;;  %v339_v35 = vpack.c.bf16 %v214_v27, %v214_v27  ;;  %v340_v36 = vpack.c.bf16 %v215_v28, %v215_v28 }
  0x4b   : > { %249 = vst.msk [vmem:[%s116_s14] sm:$0xf] %vm248_vm1, %v333_v29  ;;  %250 = vst.msk [vmem:[%s116_s14 + $0x4] sm:$0xf] %vm248_vm1, %v334_v30 }
  0x4c   : > { %251 = vst.msk [vmem:[%s116_s14 + $0x8] sm:$0xf] %vm248_vm1, %v335_v31  ;;  %252 = vst.msk [vmem:[%s116_s14 + $0xc] sm:$0xf] %vm248_vm1, %v336_v32 }
  0x4d   : > { %253 = vst.msk [vmem:[%s116_s14 + $0x10] sm:$0xf] %vm248_vm1, %v337_v33  ;;  %254 = vst.msk [vmem:[%s116_s14 + $0x14] sm:$0xf] %vm248_vm1, %v338_v34 }
  0x4e   : > { %255 = vst.msk [vmem:[%s116_s14 + $0x18] sm:$0xf] %vm248_vm1, %v339_v35  ;;  %256 = vst.msk [vmem:[%s116_s14 + $0x1c] sm:$0xf] %vm248_vm1, %v340_v36 }
  0x4f PF: > { %s11_s6 = sadd.s32 1, %s376_s6  }
  0x50   : > { %p8_p4 = scmp.ge.s32.totalorder %s11_s6, 4  }
  0x52   :  { %10 = sbr.rel (!%p8_p4) target bundleno = 1 (0x1), region = 54 }

// kernel: global_generator_forward.27
= control target key start
LH: loop header
LB: loop body
LE: loop exit
PB: predicated region body
PF: predicated region fallthrough
CT: control target
= control target key end

     0   :  { %s836_s1 = inlined_call_operand.vmem [shape: bf16[256,128], index: 1, kind: input, shape index: {}]   ;;  %s837_s0 = inlined_call_operand.vmem [shape: bf16[128,256], index: 0, kind: input, shape index: {}]   ;;  %s838_s2 = inlined_call_operand.vmem [shape: f32[1,128], index: 2, kind: input, shape index: {}]   ;;  %s839_s3 = inlined_call_operand.vmem [shape: bf16[128,128], index: 3, kind: output, shape index: {}]  }
   0x1   :  { %v635_v0 = vld [vmem:[%s836_s1 + $0x78] sm:$0xff]   ;;  %v637_v2 = vld [vmem:[%s836_s1 + $0x70] sm:$0xff]   ;;  %v639_v4 = vld [vmem:[%s836_s1 + $0x68] sm:$0xff]  }
   0x2   :  { %v636_v1 = vld [vmem:[%s836_s1 + $0x38] sm:$0xff]   ;;  %555 = vmatprep.subr.bf16.mxu0 %v635_v0  ;;  %619 = vmatprep.subr.bf16.mxu1 %v635_v0  ;;  %v638_v3 = vld [vmem:[%s836_s1 + $0x30] sm:$0xff]   ;;  %v640_v5 = vld [vmem:[%s836_s1 + $0x28] sm:$0xff]  }
   0x3   :  { %556 = vmatpush3.bf16.msra.mxu0 %v636_v1  ;;  %627 = vmatpush3.bf16.msra.mxu1 %v636_v1  ;;  %v641_v6 = vld [vmem:[%s836_s1 + $0x60] sm:$0xff]   ;;  %v643_v8 = vld [vmem:[%s836_s1 + $0x58] sm:$0xff]   ;;  %v645_v10 = vld [vmem:[%s836_s1 + $0x50] sm:$0xff]  }
   0x4   :  { %557 = vmatprep.subr.bf16.mxu0 %v637_v2  ;;  %620 = vmatprep.subr.bf16.mxu1 %v637_v2  ;;  %v642_v7 = vld [vmem:[%s836_s1 + $0x20] sm:$0xff]   ;;  %v644_v9 = vld [vmem:[%s836_s1 + $0x18] sm:$0xff]   ;;  %v646_v13 = vld [vmem:[%s836_s1 + $0x10] sm:$0xff]  }
   0x5   :  { %v653_v11 = vld [vmem:[%s837_s0 + $0x4] ss:$8 sps:$4 sm:$0xff]   ;;  %v651_v18 = vld [vmem:[%s837_s0] ss:$8 sps:$4 sm:$0xff]   ;;  %v657_v20 = vld [vmem:[%s837_s0 + $0x14] ss:$8 sps:$4 sm:$0xff]  }
   0x6   :  { %v656_v12 = vld [vmem:[%s837_s0 + $0x44] ss:$8 sps:$4 sm:$0xff]   ;;  %272 = vmatprep.mubr.bf16.mxu0 %v653_v11  ;;  %v654_v19 = vld [vmem:[%s837_s0 + $0x40] ss:$8 sps:$4 sm:$0xff]   ;;  %v659_v21 = vld [vmem:[%s837_s0 + $0x54] ss:$8 sps:$4 sm:$0xff]  }
   0x7   :  { %558 = vmatpush3.bf16.msra.mxu0 %v638_v3  ;;  %628 = vmatpush3.bf16.msra.mxu1 %v638_v3  ;;  %v647_v14 = vld [vmem:[%s836_s1 + $0x48] sm:$0xff]   ;;  %v649_v16 = vld [vmem:[%s836_s1 + $0x40] sm:$0xff]   ;;  %v661_v22 = vld [vmem:[%s837_s0 + $0x10] ss:$8 sps:$4 sm:$0xff]  }
   0x8   :  { %559 = vmatprep.subr.bf16.mxu0 %v639_v4  ;;  %621 = vmatprep.subr.bf16.mxu1 %v639_v4  ;;  %v648_v15 = vld [vmem:[%s836_s1 + $0x8] sm:$0xff]   ;;  %v650_v17 = vld [vmem:[%s836_s1] sm:$0xff]   ;;  %v662_v23 = vld [vmem:[%s837_s0 + $0x50] ss:$8 sps:$4 sm:$0xff]  }
   0x9   :  { %304 = vmatprep.mubr.bf16.mxu1 %v656_v12  ;;  %v663_v24 = vld [vmem:[%s837_s0 + $0x24] ss:$8 sps:$4 sm:$0xff]   ;;  %v667_v26 = vld [vmem:[%s837_s0 + $0x20] ss:$8 sps:$4 sm:$0xff]   ;;  %v669_v28 = vld [vmem:[%s837_s0 + $0x34] ss:$8 sps:$4 sm:$0xff]  }
   0xa   :  { %v665_v25 = vld [vmem:[%s837_s0 + $0x64] ss:$8 sps:$4 sm:$0xff]   ;;  %v668_v27 = vld [vmem:[%s837_s0 + $0x60] ss:$8 sps:$4 sm:$0xff]   ;;  %v671_v29 = vld [vmem:[%s837_s0 + $0x74] ss:$8 sps:$4 sm:$0xff]  }
   0xb   :  { %560 = vmatpush3.bf16.msra.mxu0 %v640_v5  ;;  %629 = vmatpush3.bf16.msra.mxu1 %v640_v5  ;;  %v673_v30 = vld [vmem:[%s837_s0 + $0x30] ss:$8 sps:$4 sm:$0xff]   ;;  %v794_v40 = vld [vmem:[%s838_s2] ss:$0 sm:$0xff] }
   0xc   :  { %561 = vmatprep.subr.bf16.mxu0 %v641_v6  ;;  %622 = vmatprep.subr.bf16.mxu1 %v641_v6  ;;  %v674_v31 = vld [vmem:[%s837_s0 + $0x70] ss:$8 sps:$4 sm:$0xff]  }
   0xf   :  { %562 = vmatpush3.bf16.msra.mxu0 %v642_v7  ;;  %630 = vmatpush3.bf16.msra.mxu1 %v642_v7 }
  0x10   :  { %563 = vmatprep.subr.bf16.mxu0 %v643_v8  ;;  %623 = vmatprep.subr.bf16.mxu1 %v643_v8 }
  0x13   :  { %564 = vmatpush3.bf16.msra.mxu0 %v644_v9  ;;  %631 = vmatpush3.bf16.msra.mxu1 %v644_v9 }
  0x14   :  { %565 = vmatprep.subr.bf16.mxu0 %v645_v10  ;;  %624 = vmatprep.subr.bf16.mxu1 %v645_v10 }
  0x17   :  { %566 = vmatpush3.bf16.msra.mxu0 %v646_v13  ;;  %632 = vmatpush3.bf16.msra.mxu1 %v646_v13 }
  0x18   :  { %567 = vmatprep.subr.bf16.mxu0 %v647_v14  ;;  %625 = vmatprep.subr.bf16.mxu1 %v647_v14 }
  0x1b   :  { %568 = vmatpush3.bf16.msra.mxu0 %v648_v15  ;;  %633 = vmatpush3.bf16.msra.mxu1 %v648_v15 }
  0x1c   :  { %569 = vmatprep.subr.bf16.mxu0 %v649_v16  ;;  %626 = vmatprep.subr.bf16.mxu1 %v649_v16 }
  0x1f   :  { %570 = vmatpush3.bf16.msra.mxu0 %v650_v17  ;;  %634 = vmatpush3.bf16.msra.mxu1 %v650_v17 }
  0x22   :  { %273 = vmatmul.mubr.bf16.vlgmr.msra.gmra.mxu0 %v651_v18  ;;  %305 = vmatmul.mubr.bf16.vlgmr.msra.gmra.mxu1 %v654_v19 }
  0x23   :  { %280 = vmatprep.mubr.bf16.mxu0 %v657_v20  ;;  %312 = vmatprep.mubr.bf16.mxu1 %v659_v21 }
  0x2a   :  { %281 = vmatmul.mubr.bf16.gmra.mxu0 %v661_v22  ;;  %313 = vmatmul.mubr.bf16.gmra.mxu1 %v662_v23 }
  0x2b   :  { %288 = vmatprep.mubr.bf16.mxu0 %v663_v24  ;;  %320 = vmatprep.mubr.bf16.mxu1 %v665_v25 }
  0x32   :  { %289 = vmatmul.mubr.bf16.gmra.mxu0 %v667_v26  ;;  %321 = vmatmul.mubr.bf16.gmra.mxu1 %v668_v27 }
  0x33   :  { %296 = vmatprep.mubr.bf16.mxu0 %v669_v28  ;;  %328 = vmatprep.mubr.bf16.mxu1 %v671_v29 }
  0x3a   :  { %297 = vmatmul.mubr.bf16.gmra.mxu0 %v673_v30  ;;  %329 = vmatmul.mubr.bf16.gmra.mxu1 %v674_v31 }
  0xe2   :  { %v571_v32 = vpop.f32.mrf.mxu0  ;;  %v595_v33 = vpop.f32.mrf.mxu1 }
  0xe4   :  { %v572_v34 = vpop.f32.mrf.mxu0  ;;  %v596_v35 = vpop.f32.mrf.mxu1 }
  0xe5   :  { %v573_v38 = vadd.f32 %v572_v34, %v571_v32  ;;  %v597_v39 = vadd.f32 %v596_v35, %v595_v33 }
  0xe6   :  { %v574_v36 = vpop.f32.mrf.mxu0  ;;  %v598_v37 = vpop.f32.mrf.mxu1 }
  0xe7   :  { %v343_v47 = vadd.f32 %v573_v38, %v794_v40  ;;  %v351_v48 = vadd.f32 %v597_v39, %v794_v40 }
  0xe8   :  { %v575_v41 = vpop.f32.mrf.mxu0  ;;  %v599_v42 = vpop.f32.mrf.mxu1 }
  0xe9   :  { %v576_v43 = vadd.f32 %v575_v41, %v574_v36  ;;  %v600_v44 = vadd.f32 %v599_v42, %v598_v37 }
  0xea   :  { %v577_v45 = vpop.f32.mrf.mxu0  ;;  %v601_v46 = vpop.f32.mrf.mxu1 }
  0xeb   :  { %v344_v49 = vadd.f32 %v576_v43, %v794_v40  ;;  %v352_v50 = vadd.f32 %v600_v44, %v794_v40 }
  0xec   :  { %v578_v51 = vpop.f32.mrf.mxu0  ;;  %v602_v52 = vpop.f32.mrf.mxu1 }
  0xed   :  { %v511_v53 = vpack.c.bf16 %v344_v49, %v343_v47  ;;  %v531_v54 = vpack.c.bf16 %v352_v50, %v351_v48  ;;  %v579_v57 = vadd.f32 %v578_v51, %v577_v45  ;;  %v603_v58 = vadd.f32 %v602_v52, %v601_v46 }
  0xee   :  { %v580_v55 = vpop.f32.mrf.mxu0  ;;  %v604_v56 = vpop.f32.mrf.mxu1 }
  0xef   :  { %512 = vst [vmem:[%s839_s3] sm:$0xff] %v511_v53   ;;  %551 = vst [vmem:[%s839_s3 + $0x20] sm:$0xff] %v531_v54   ;;  %v345_v1 = vadd.f32 %v579_v57, %v794_v40  ;;  %v353_v2 = vadd.f32 %v603_v58, %v794_v40 }
  0xf0   :  { %v581_v59 = vpop.f32.mrf.mxu0  ;;  %v605_v60 = vpop.f32.mrf.mxu1 }
  0xf1   :  { %v582_v61 = vadd.f32 %v581_v59, %v580_v55  ;;  %v606_v62 = vadd.f32 %v605_v60, %v604_v56 }
  0xf2   :  { %v583_v63 = vpop.f32.mrf.mxu0  ;;  %v607_v0 = vpop.f32.mrf.mxu1 }
  0xf3   :  { %v346_v3 = vadd.f32 %v582_v61, %v794_v40  ;;  %v354_v4 = vadd.f32 %v606_v62, %v794_v40 }
  0xf4   :  { %v584_v5 = vpop.f32.mrf.mxu0  ;;  %v608_v6 = vpop.f32.mrf.mxu1 }
  0xf5   :  { %v516_v7 = vpack.c.bf16 %v346_v3, %v345_v1  ;;  %v536_v8 = vpack.c.bf16 %v354_v4, %v353_v2  ;;  %v585_v11 = vadd.f32 %v584_v5, %v583_v63  ;;  %v609_v12 = vadd.f32 %v608_v6, %v607_v0 }
  0xf6   :  { %v586_v9 = vpop.f32.mrf.mxu0  ;;  %v610_v10 = vpop.f32.mrf.mxu1 }
  0xf7   :  { %548 = vst [vmem:[%s839_s3 + $0x8] sm:$0xff] %v516_v7   ;;  %552 = vst [vmem:[%s839_s3 + $0x28] sm:$0xff] %v536_v8   ;;  %v347_v19 = vadd.f32 %v585_v11, %v794_v40  ;;  %v355_v20 = vadd.f32 %v609_v12, %v794_v40 }
  0xf8   :  { %v587_v13 = vpop.f32.mrf.mxu0  ;;  %v611_v14 = vpop.f32.mrf.mxu1 }
  0xf9   :  { %v588_v15 = vadd.f32 %v587_v13, %v586_v9  ;;  %v612_v16 = vadd.f32 %v611_v14, %v610_v10 }
  0xfa   :  { %v589_v17 = vpop.f32.mrf.mxu0  ;;  %v613_v18 = vpop.f32.mrf.mxu1 }
  0xfb   :  { %v348_v21 = vadd.f32 %v588_v15, %v794_v40  ;;  %v356_v22 = vadd.f32 %v612_v16, %v794_v40 }
  0xfc   :  { %v590_v23 = vpop.f32.mrf.mxu0  ;;  %v614_v24 = vpop.f32.mrf.mxu1 }
  0xfd   :  { %v521_v25 = vpack.c.bf16 %v348_v21, %v347_v19  ;;  %v541_v26 = vpack.c.bf16 %v356_v22, %v355_v20  ;;  %v591_v29 = vadd.f32 %v590_v23, %v589_v17  ;;  %v615_v30 = vadd.f32 %v614_v24, %v613_v18 }
  0xfe   :  { %v592_v27 = vpop.f32.mrf.mxu0  ;;  %v616_v28 = vpop.f32.mrf.mxu1 }
  0xff   :  { %549 = vst [vmem:[%s839_s3 + $0x10] sm:$0xff] %v521_v25   ;;  %553 = vst [vmem:[%s839_s3 + $0x30] sm:$0xff] %v541_v26   ;;  %v349_v35 = vadd.f32 %v591_v29, %v794_v40  ;;  %v357_v36 = vadd.f32 %v615_v30, %v794_v40 }
 0x100   :  { %v593_v31 = vpop.f32.mrf.mxu0  ;;  %v617_v32 = vpop.f32.mrf.mxu1 }
 0x101   :  { %v594_v33 = vadd.f32 %v593_v31, %v592_v27  ;;  %v618_v34 = vadd.f32 %v617_v32, %v616_v28 }
 0x103   :  { %v350_v37 = vadd.f32 %v594_v33, %v794_v40  ;;  %v358_v38 = vadd.f32 %v618_v34, %v794_v40 }
 0x105   :  { %v526_v39 = vpack.c.bf16 %v350_v37, %v349_v35  ;;  %v546_v41 = vpack.c.bf16 %v358_v38, %v357_v36 }
 0x107   :  { %550 = vst [vmem:[%s839_s3 + $0x18] sm:$0xff] %v526_v39   ;;  %554 = vst [vmem:[%s839_s3 + $0x38] sm:$0xff] %v546_v41  }

// kernel: global_generator_forward.30
= control target key start
LH: loop header
LB: loop body
LE: loop exit
PB: predicated region body
PF: predicated region fallthrough
CT: control target
= control target key end

     0   :  { %s271_s6 = smov 0   ;;  %s295_s0 = inlined_call_operand.vmem [shape: bf16[2,16,64], index: 0, kind: input, shape index: {}]   ;;  %s296_s1 = inlined_call_operand.vmem [shape: bf16[2,16,64], index: 1, kind: output, shape index: {}]  }
   0x1 LB: > { %s222_s7 = sadd.s32 4294967295, %s259_s6   ;;  %p226_p0 = scmp.ge.s32.totalorder %s259_s6, 1  ;;  %s259_s6 = sphi %s271_s6, %s11_s6  }
   0x2   : > { %p87_p1 = scmp.lt.s32.totalorder %s259_s6, 3 }
   0x4   : > { %p88_p2 = pnand %p226_p0, %p87_p1 }
   0x5   : > { %p107_p3 = scmp.lt.s32.totalorder (!%p88_p2), %s222_s7, 1 }
   0x6   : > { %91 = sbr.rel (%p88_p2) target bundleno = 63 (0x3f), region = 24 }
   0xb   : > { %s298_s7 = smov (!%p107_p3, %s222_s7), 1  ;;  %vm121_vm0 = vcmask 523264   ;;  %vm164_vm1 = vcmask 519168  }
   0xc   : > { %s235_s8 = sshll.u32 %s298_s7, 3 }
   0xd   : > { %s111_s11 = scalar_lea.vmem %s295_s0, %s235_s8  ;;  %s116_s14 = scalar_lea.vmem %s296_s1, %s235_s8 }
   0xe   : > { %v240_v0 = vld [vmem:[%s111_s11] sm:$0xff]  }
   0xf   : > { %v241_v1 = vunpack.c.l.bf16 %v240_v0  ;;  %v242_v2 = vunpack.c.h.bf16 %v240_v0 }
  0x11   : > { %v122_v3 = vsel %vm121_vm0, %v241_v1, 0.0  ;;  %v123_v4 = vsel %vm121_vm0, %v242_v2, 0.0  ;;  %v133_v5 = vmul.f32 %v241_v1, %v241_v1  ;;  %v134_v6 = vmul.f32 %v242_v2, %v242_v2 }
  0x12   : > { %v124_v7 = vadd.f32 %v123_v4, %v122_v3 }
  0x13   : > { %v135_v8 = vsel %vm121_vm0, %v133_v5, 0.0  ;;  %v136_v9 = vsel %vm121_vm0, %v134_v6, 0.0 }
  0x14   : > { %v125_v10 = vrot.slane %v124_v7, 4  ;;  %v137_v11 = vadd.f32 %v136_v9, %v135_v8 }
  0x16   : > { %v126_v12 = vadd.f32 %v125_v10, %v124_v7  ;;  %v138_v13 = vrot.slane %v137_v11, 4 }
  0x18   : > { %v127_v14 = vrot.slane %v126_v12, 2  ;;  %v139_v15 = vadd.f32 %v138_v13, %v137_v11 }
  0x1a   : > { %v128_v16 = vadd.f32 %v127_v14, %v126_v12  ;;  %v140_v17 = vrot.slane %v139_v15, 2 }
  0x1c   : > { %v129_v18 = vrot.slane %v128_v16, 1  ;;  %v141_v19 = vadd.f32 %v140_v17, %v139_v15 }
  0x1e   : > { %v130_v20 = vadd.f32 %v129_v18, %v128_v16  ;;  %v142_v21 = vrot.slane %v141_v19, 1 }
  0x20   : > { %v132_v22 = vmul.f32 0.0625, %v130_v20  ;;  %v143_v23 = vadd.f32 %v142_v21, %v141_v19 }
  0x22   : > { %v144_v24 = vmul.f32 0.0625, %v143_v23  ;;  %v145_v25 = vmul.f32 %v132_v22, %v132_v22  ;;  %v148_v29 = vsub.f32 %v241_v1, %v132_v22  ;;  %v149_v30 = vsub.f32 %v242_v2, %v132_v22 }
  0x24   : > { %v146_v26 = vsub.f32 %v144_v24, %v145_v25 }
  0x26   : > { %v147_v27 = vmax.f32 %v146_v26, 0.0 }
  0x28   : > { %v150_v28 = vadd.f32 1e-05, %v147_v27 }
  0x2a   : > { %251 = vrsqrt.f32 %v150_v28 }
  0x37   : > { %v252_v31 = vpop.eup %251 }
  0x38   : > { %v152_v32 = vmul.f32 %v252_v31, %v148_v29  ;;  %v153_v33 = vmul.f32 %v252_v31, %v149_v30 }
  0x3a   : > { %v154_v34 = vmax.f32 %v152_v32, 0.0  ;;  %v155_v35 = vmax.f32 %v153_v33, 0.0 }
  0x3c   : > { %v237_v36 = vpack.c.bf16 %v154_v34, %v154_v34  ;;  %v238_v37 = vpack.c.bf16 %v155_v35, %v155_v35 }
  0x3e   : > { %165 = vst.msk [vmem:[%s116_s14] sm:$0xf] %vm164_vm1, %v237_v36  ;;  %166 = vst.msk [vmem:[%s116_s14 + $0x4] sm:$0xf] %vm164_vm1, %v238_v37 }
  0x3f PF: > { %s11_s6 = sadd.s32 1, %s259_s6  }
  0x40   : > { %p8_p4 = scmp.ge.s32.totalorder %s11_s6, 4  }
  0x42   :  { %10 = sbr.rel (!%p8_p4) target bundleno = 1 (0x1), region = 54 }

// kernel: global_generator_forward.29
= control target key start
LH: loop header
LB: loop body
LE: loop exit
PB: predicated region body
PF: predicated region fallthrough
CT: control target
= control target key end

     0   :  { %s639_s1 = inlined_call_operand.vmem [shape: bf16[384,128], index: 1, kind: input, shape index: {}]   ;;  %s640_s0 = inlined_call_operand.vmem [shape: bf16[32,384], index: 0, kind: input, shape index: {}]   ;;  %s641_s2 = inlined_call_operand.vmem [shape: f32[1,128], index: 2, kind: input, shape index: {}]   ;;  %s642_s3 = inlined_call_operand.vmem [shape: bf16[32,128], index: 3, kind: output, shape index: {}]  }
   0x1   :  { %v488_v0 = vld [vmem:[%s639_s1 + $0x78] sm:$0xff]   ;;  %v491_v3 = vld [vmem:[%s639_s1 + $0x70] sm:$0xff]   ;;  %v494_v6 = vld [vmem:[%s639_s1 + $0x68] sm:$0xff]  }
   0x2   :  { %v489_v1 = vld [vmem:[%s639_s1 + $0x38] sm:$0xff]   ;;  %430 = vmatprep.subr.bf16.mxu0 %v488_v0  ;;  %v492_v4 = vld [vmem:[%s639_s1 + $0x30] sm:$0xff]   ;;  %v495_v7 = vld [vmem:[%s639_s1 + $0x28] sm:$0xff]  }
   0x3   :  { %v490_v2 = vld [vmem:[%s639_s1 + $0xb8] sm:$0xff]   ;;  %431 = vmatpush3.bf16.msra.mxu0 %v489_v1  ;;  %v493_v5 = vld [vmem:[%s639_s1 + $0xb0] sm:$0xff]   ;;  %v496_v8 = vld [vmem:[%s639_s1 + $0xa8] sm:$0xff]  }
   0x4   :  { %468 = vmatprep.subr.bf16.mxu1 %v490_v2  ;;  %432 = vmatprep.subr.bf16.mxu0 %v491_v3  ;;  %v497_v9 = vld [vmem:[%s639_s1 + $0x60] sm:$0xff]   ;;  %v500_v12 = vld [vmem:[%s639_s1 + $0x58] sm:$0xff]   ;;  %v503_v15 = vld [vmem:[%s639_s1 + $0x50] sm:$0xff]  }
   0x5   :  { %469 = vmatpush3.bf16.msra.mxu1 %v490_v2  ;;  %v498_v10 = vld [vmem:[%s639_s1 + $0x20] sm:$0xff]   ;;  %v502_v13 = vld [vmem:[%s639_s1 + $0x98] sm:$0xff]   ;;  %v505_v16 = vld [vmem:[%s639_s1 + $0x90] sm:$0xff]  }
   0x6   :  { %470 = vmatprep.subr.bf16.mxu1 %v493_v5  ;;  %v499_v11 = vld [vmem:[%s639_s1 + $0xa0] sm:$0xff]   ;;  %v501_v14 = vld [vmem:[%s639_s1 + $0x18] sm:$0xff]   ;;  %v504_v17 = vld [vmem:[%s639_s1 + $0x10] sm:$0xff]  }
   0x7   :  { %433 = vmatpush3.bf16.msra.mxu0 %v492_v4  ;;  %v506_v18 = vld [vmem:[%s639_s1 + $0x48] sm:$0xff]   ;;  %v509_v21 = vld [vmem:[%s639_s1 + $0x40] sm:$0xff]  }
   0x8   :  { %434 = vmatprep.subr.bf16.mxu0 %v494_v6  ;;  %v507_v19 = vld [vmem:[%s639_s1 + $0x8] sm:$0xff]   ;;  %v511_v22 = vld [vmem:[%s639_s1 + $0x80] sm:$0xff]  }
   0x9   :  { %471 = vmatpush3.bf16.msra.mxu1 %v493_v5  ;;  %v508_v20 = vld [vmem:[%s639_s1 + $0x88] sm:$0xff]   ;;  %v514_v23 = vld [vmem:[%s640_s0 + $0x4] ss:$12 sps:$4 sm:$0xff]   ;;  %v410_v40 = vld [vmem:[%s641_s2] ss:$0 sm:$0xff] }
   0xa   :  { %472 = vmatprep.subr.bf16.mxu1 %v496_v8  ;;  %v515_v24 = vld [vmem:[%s640_s0 + $0x8] ss:$12 sps:$4 sm:$0xff]   ;;  %v510_v25 = vld [vmem:[%s639_s1] sm:$0xff]   ;;  %280 = vmatprep.mubr.bf16.mxu0 %v514_v23 }
   0xb   :  { %435 = vmatpush3.bf16.msra.mxu0 %v495_v7  ;;  %484 = vmatprep.mubr.bf16.mxu1 %v515_v24  ;;  %v512_v26 = vld [vmem:[%s640_s0] ss:$12 sps:$4 sm:$0xff]   ;;  %v517_v27 = vld [vmem:[%s640_s0 + $0x1c] ss:$12 sps:$4 sm:$0xff]   ;;  %v519_v29 = vld [vmem:[%s640_s0 + $0x18] ss:$12 sps:$4 sm:$0xff]  }
   0xc   :  { %436 = vmatprep.subr.bf16.mxu0 %v497_v9  ;;  %v516_v28 = vld [vmem:[%s640_s0 + $0x20] ss:$12 sps:$4 sm:$0xff]  }
   0xd   :  { %473 = vmatpush3.bf16.msra.mxu1 %v496_v8 }
   0xe   :  { %474 = vmatprep.subr.bf16.mxu1 %v499_v11 }
   0xf   :  { %437 = vmatpush3.bf16.msra.mxu0 %v498_v10 }
  0x10   :  { %438 = vmatprep.subr.bf16.mxu0 %v500_v12 }
  0x11   :  { %475 = vmatpush3.bf16.msra.mxu1 %v499_v11 }
  0x12   :  { %476 = vmatprep.subr.bf16.mxu1 %v502_v13 }
  0x13   :  { %439 = vmatpush3.bf16.msra.mxu0 %v501_v14 }
  0x14   :  { %440 = vmatprep.subr.bf16.mxu0 %v503_v15 }
  0x15   :  { %477 = vmatpush3.bf16.msra.mxu1 %v502_v13 }
  0x16   :  { %478 = vmatprep.subr.bf16.mxu1 %v505_v16 }
  0x17   :  { %441 = vmatpush3.bf16.msra.mxu0 %v504_v17 }
  0x18   :  { %442 = vmatprep.subr.bf16.mxu0 %v506_v18 }
  0x19   :  { %479 = vmatpush3.bf16.msra.mxu1 %v505_v16 }
  0x1a   :  { %480 = vmatprep.subr.bf16.mxu1 %v508_v20 }
  0x1b   :  { %443 = vmatpush3.bf16.msra.mxu0 %v507_v19 }
  0x1c   :  { %444 = vmatprep.subr.bf16.mxu0 %v509_v21 }
  0x1d   :  { %481 = vmatpush3.bf16.msra.mxu1 %v508_v20 }
  0x1e   :  { %482 = vmatprep.subr.bf16.mxu1 %v511_v22 }
  0x1f   :  { %445 = vmatpush3.bf16.msra.mxu0 %v510_v25 }
  0x21   :  { %483 = vmatpush3.bf16.msra.mxu1 %v511_v22 }
  0x22   :  { %281 = vmatmul.mubr.bf16.vlgmr.msra.gmra.mxu0 %v512_v26 }
  0x23   :  { %288 = vmatprep.mubr.bf16.mxu0 %v517_v27 }
  0x24   :  { %485 = vmatmul.mubr.bf16.vlgmr.msra.gmra.mxu1 %v516_v28 }
  0x2a   :  { %289 = vmatmul.mubr.bf16.gmra.mxu0 %v519_v29 }
  0xe2   :  { %v446_v30 = vpop.f32.mrf.mxu0 }
  0xe4   :  { %v447_v31 = vpop.f32.mrf.mxu0  ;;  %v486_v32 = vpop.f32.mrf.mxu1 }
  0xe5   :  { %v448_v33 = vadd.f32 %v447_v31, %v446_v30 }
  0xe6   :  { %v449_v34 = vpop.f32.mrf.mxu0  ;;  %v331_v35 = vpop.f32.mrf.mxu1 }
  0xe7   :  { %v332_v38 = vadd.f32 %v448_v33, %v331_v35 }
  0xe8   :  { %v450_v36 = vpop.f32.mrf.mxu0  ;;  %v487_v37 = vpop.f32.mrf.mxu1 }
  0xe9   :  { %v451_v39 = vadd.f32 %v450_v36, %v449_v34  ;;  %v352_v45 = vadd.f32 %v410_v40, %v332_v38 }
  0xea   :  { %v452_v41 = vpop.f32.mrf.mxu0  ;;  %v334_v42 = vpop.f32.mrf.mxu1 }
  0xeb   :  { %v335_v43 = vadd.f32 %v451_v39, %v334_v42 }
  0xec   :  { %v453_v44 = vpop.f32.mrf.mxu0 }
  0xed   :  { %v353_v46 = vadd.f32 %v410_v40, %v335_v43  ;;  %v454_v47 = vadd.f32 %v453_v44, %v452_v41 }
  0xee   :  { %v455_v48 = vpop.f32.mrf.mxu0 }
  0xef   :  { %v422_v49 = vpack.c.bf16 %v353_v46, %v352_v45  ;;  %v340_v51 = vadd.f32 %v486_v32, %v454_v47 }
  0xf0   :  { %v456_v50 = vpop.f32.mrf.mxu0 }
  0xf1   :  { %423 = vst [vmem:[%s642_s3] sm:$0xff] %v422_v49   ;;  %v457_v52 = vadd.f32 %v456_v50, %v455_v48  ;;  %v354_v54 = vadd.f32 %v410_v40, %v340_v51 }
  0xf3   :  { %v343_v53 = vadd.f32 %v487_v37, %v457_v52 }
  0xf5   :  { %v355_v55 = vadd.f32 %v410_v40, %v343_v53 }
  0xf7   :  { %v427_v56 = vpack.c.bf16 %v355_v55, %v354_v54 }
  0xf9   :  { %429 = vst [vmem:[%s642_s3 + $0x8] sm:$0xff] %v427_v56  }

// kernel: global_generator_forward.34
= control target key start
LH: loop header
LB: loop body
LE: loop exit
PB: predicated region body
PF: predicated region fallthrough
CT: control target
= control target key end

     0   :  { %s346_s9 = smov 0   ;;  %s371_s0 = inlined_call_operand.vmem [shape: bf16[2,16,64], index: 0, kind: input, shape index: {}]   ;;  %s372_s1 = inlined_call_operand.vmem [shape: bf16[2,16,64], index: 1, kind: input, shape index: {}]   ;;  %s373_s2 = inlined_call_operand.vmem [shape: bf16[2,16,64], index: 2, kind: output, shape index: {}]  }
   0x1 LB: > { %s285_s10 = sadd.s32 4294967295, %s329_s9   ;;  %p289_p0 = scmp.ge.s32.totalorder %s329_s9, 1  ;;  %s329_s9 = sphi %s346_s9, %s12_s9  }
   0x2   : > { %p122_p1 = scmp.lt.s32.totalorder %s329_s9, 3 }
   0x4   : > { %p123_p2 = pnand %p289_p0, %p122_p1 }
   0x5   : > { %p149_p3 = scmp.lt.s32.totalorder (!%p123_p2), %s285_s10, 1 }
   0x6   : > { %126 = sbr.rel (%p123_p2) target bundleno = 63 (0x3f), region = 28 }
   0xb   : > { %s375_s10 = smov (!%p149_p3, %s285_s10), 1  ;;  %vm168_vm0 = vcmask 523264   ;;  %vm215_vm1 = vcmask 519168  }
   0xc   : > { %s354_s11 = sshll.u32 %s375_s10, 3 }
   0xd   : > { %s153_s14 = scalar_lea.vmem %s371_s0, %s354_s11  ;;  %s158_s17 = scalar_lea.vmem %s372_s1, %s354_s11 }
   0xe   : > { %v306_v0 = vld [vmem:[%s153_s14] sm:$0xff]   ;;  %s163_s20 = scalar_lea.vmem %s373_s2, %s354_s11 }
   0xf   : > { %v307_v1 = vunpack.c.l.bf16 %v306_v0  ;;  %v308_v2 = vunpack.c.h.bf16 %v306_v0  ;;  %v310_v29 = vld [vmem:[%s158_s17] sm:$0xff]  }
  0x10   : > { %v311_v32 = vunpack.c.l.bf16 %v310_v29  ;;  %v312_v33 = vunpack.c.h.bf16 %v310_v29 }
  0x11   : > { %v169_v3 = vsel %vm168_vm0, %v307_v1, 0.0  ;;  %v170_v4 = vsel %vm168_vm0, %v308_v2, 0.0  ;;  %v180_v5 = vmul.f32 %v307_v1, %v307_v1  ;;  %v181_v6 = vmul.f32 %v308_v2, %v308_v2 }
  0x12   : > { %v171_v7 = vadd.f32 %v170_v4, %v169_v3 }
  0x13   : > { %v182_v8 = vsel %vm168_vm0, %v180_v5, 0.0  ;;  %v183_v9 = vsel %vm168_vm0, %v181_v6, 0.0 }
  0x14   : > { %v172_v10 = vrot.slane %v171_v7, 4  ;;  %v184_v11 = vadd.f32 %v183_v9, %v182_v8 }
  0x16   : > { %v173_v12 = vadd.f32 %v172_v10, %v171_v7  ;;  %v185_v13 = vrot.slane %v184_v11, 4 }
  0x18   : > { %v174_v14 = vrot.slane %v173_v12, 2  ;;  %v186_v15 = vadd.f32 %v185_v13, %v184_v11 }
  0x1a   : > { %v175_v16 = vadd.f32 %v174_v14, %v173_v12  ;;  %v187_v17 = vrot.slane %v186_v15, 2 }
  0x1c   : > { %v176_v18 = vrot.slane %v175_v16, 1  ;;  %v188_v19 = vadd.f32 %v187_v17, %v186_v15 }
  0x1e   : > { %v177_v20 = vadd.f32 %v176_v18, %v175_v16  ;;  %v189_v21 = vrot.slane %v188_v19, 1 }
  0x20   : > { %v179_v22 = vmul.f32 0.0625, %v177_v20  ;;  %v190_v23 = vadd.f32 %v189_v21, %v188_v19 }
  0x22   : > { %v191_v24 = vmul.f32 0.0625, %v190_v23  ;;  %v192_v25 = vmul.f32 %v179_v22, %v179_v22  ;;  %v195_v30 = vsub.f32 %v307_v1, %v179_v22  ;;  %v196_v31 = vsub.f32 %v308_v2, %v179_v22 }
  0x24   : > { %v193_v26 = vsub.f32 %v191_v24, %v192_v25 }
  0x26   : > { %v194_v27 = vmax.f32 %v193_v26, 0.0 }
  0x28   : > { %v197_v28 = vadd.f32 1e-05, %v194_v27 }
  0x2a   : > { %321 = vrsqrt.f32 %v197_v28 }
  0x37   : > { %v322_v34 = vpop.eup %321 }
  0x38   : > { %v199_v35 = vmul.f32 %v322_v34, %v195_v30  ;;  %v200_v36 = vmul.f32 %v322_v34, %v196_v31 }
  0x3a   : > { %v205_v37 = vadd.f32 %v311_v32, %v199_v35  ;;  %v206_v38 = vadd.f32 %v312_v33, %v200_v36 }
  0x3c   : > { %v303_v39 = vpack.c.bf16 %v205_v37, %v205_v37  ;;  %v304_v40 = vpack.c.bf16 %v206_v38, %v206_v38 }
  0x3e   : > { %216 = vst.msk [vmem:[%s163_s20] sm:$0xf] %vm215_vm1, %v303_v39  ;;  %217 = vst.msk [vmem:[%s163_s20 + $0x4] sm:$0xf] %vm215_vm1, %v304_v40 }
  0x3f PF: > { %s12_s9 = sadd.s32 1, %s329_s9  }
  0x40   : > { %p9_p4 = scmp.ge.s32.totalorder %s12_s9, 4  }
  0x42   :  { %11 = sbr.rel (!%p9_p4) target bundleno = 1 (0x1), region = 61 }

// kernel: global_generator_forward.39
= control target key start
LH: loop header
LB: loop body
LE: loop exit
PB: predicated region body
PF: predicated region fallthrough
CT: control target
= control target key end

     0   :  { %s308_s1 = inlined_call_operand.vmem [shape: bf16[128,128], index: 1, kind: input, shape index: {}]   ;;  %s309_s0 = inlined_call_operand.vmem [shape: bf16[32,128], index: 0, kind: input, shape index: {}]   ;;  %s310_s2 = inlined_call_operand.vmem [shape: f32[1,128], index: 2, kind: input, shape index: {}]   ;;  %s311_s3 = inlined_call_operand.vmem [shape: bf16[32,128], index: 3, kind: output, shape index: {}]  }
   0x1   :  { %v239_v0 = vld [vmem:[%s308_s1 + $0x38] sm:$0xff]   ;;  %v240_v1 = vld [vmem:[%s308_s1 + $0x30] sm:$0xff]   ;;  %v241_v2 = vld [vmem:[%s308_s1 + $0x28] sm:$0xff]  }
   0x2   :  { %219 = vmatprep.subr.bf16.mxu0 %v239_v0  ;;  %v242_v3 = vld [vmem:[%s308_s1 + $0x20] sm:$0xff]   ;;  %v243_v5 = vld [vmem:[%s308_s1 + $0x18] sm:$0xff]   ;;  %v244_v6 = vld [vmem:[%s308_s1 + $0x10] sm:$0xff]  }
   0x3   :  { %220 = vmatpush3.bf16.msra.mxu0 %v239_v0  ;;  %v247_v4 = vld [vmem:[%s309_s0] sm:$0xff]   ;;  %v245_v7 = vld [vmem:[%s308_s1 + $0x8] sm:$0xff]  }
   0x4   :  { %221 = vmatprep.subr.bf16.mxu0 %v240_v1  ;;  %235 = vmatprep.mubr.bf16.mxu0 %v247_v4  ;;  %v246_v8 = vld [vmem:[%s308_s1] sm:$0xff]   ;;  %v248_v9 = vld [vmem:[%s309_s0 + $0x8] sm:$0xff]  }
   0x5   :  { %v189_v11 = vld [vmem:[%s310_s2] ss:$0 sm:$0xff] }
   0x7   :  { %222 = vmatpush3.bf16.msra.mxu0 %v240_v1 }
   0x8   :  { %223 = vmatprep.subr.bf16.mxu0 %v241_v2 }
   0xb   :  { %224 = vmatpush3.bf16.msra.mxu0 %v241_v2 }
   0xc   :  { %225 = vmatprep.subr.bf16.mxu0 %v242_v3 }
   0xf   :  { %226 = vmatpush3.bf16.msra.mxu0 %v242_v3 }
  0x10   :  { %227 = vmatprep.subr.bf16.mxu0 %v243_v5 }
  0x13   :  { %228 = vmatpush3.bf16.msra.mxu0 %v243_v5 }
  0x14   :  { %229 = vmatprep.subr.bf16.mxu0 %v244_v6 }
  0x17   :  { %230 = vmatpush3.bf16.msra.mxu0 %v244_v6 }
  0x18   :  { %231 = vmatprep.subr.bf16.mxu0 %v245_v7 }
  0x1b   :  { %232 = vmatpush3.bf16.msra.mxu0 %v245_v7 }
  0x1c   :  { %233 = vmatprep.subr.bf16.mxu0 %v246_v8 }
  0x1f   :  { %234 = vmatpush3.bf16.msra.mxu0 %v246_v8 }
  0x22   :  { %236 = vmatmul.mubr.bf16.vlgmr.msra.gmra.mxu0 %v248_v9 }
  0xe2   :  { %v237_v10 = vpop.f32.mrf.mxu0 }
  0xe3   :  { %v153_v14 = vadd.f32 %v237_v10, %v189_v11 }
  0xe4   :  { %v130_v12 = vpop.f32.mrf.mxu0 }
  0xe5   :  { %v151_v17 = vadd.f32 %v189_v11, %v130_v12 }
  0xe6   :  { %v238_v13 = vpop.f32.mrf.mxu0 }
  0xe7   :  { %v154_v15 = vadd.f32 %v238_v13, %v189_v11 }
  0xe8   :  { %v133_v16 = vpop.f32.mrf.mxu0 }
  0xe9   :  { %v206_v18 = vpack.c.bf16 %v154_v15, %v153_v14  ;;  %v152_v19 = vadd.f32 %v189_v11, %v133_v16 }
  0xeb   :  { %208 = vst [vmem:[%s311_s3 + $0x8] sm:$0xff] %v206_v18   ;;  %v201_v20 = vpack.c.bf16 %v152_v19, %v151_v17 }
  0xed   :  { %202 = vst [vmem:[%s311_s3] sm:$0xff] %v201_v20  }

// kernel: global_generator_forward.31
= control target key start
LH: loop header
LB: loop body
LE: loop exit
PB: predicated region body
PF: predicated region fallthrough
CT: control target
= control target key end

     0   :  { %s970_s1 = inlined_call_operand.vmem [shape: bf16[640,128], index: 1, kind: input, shape index: {}]   ;;  %s971_s0 = inlined_call_operand.vmem [shape: bf16[32,640], index: 0, kind: input, shape index: {}]   ;;  %s972_s2 = inlined_call_operand.vmem [shape: f32[1,128], index: 2, kind: input, shape index: {}]   ;;  %s973_s3 = inlined_call_operand.vmem [shape: bf16[32,128], index: 3, kind: output, shape index: {}]  }
   0x1   :  { %v737_v0 = vld [vmem:[%s970_s1 + $0x78] sm:$0xff]   ;;  %v741_v4 = vld [vmem:[%s970_s1 + $0x70] sm:$0xff]   ;;  %v745_v8 = vld [vmem:[%s970_s1 + $0x68] sm:$0xff]  }
   0x2   :  { %v738_v1 = vld [vmem:[%s970_s1 + $0xf8] sm:$0xff]   ;;  %651 = vmatprep.subr.bf16.mxu0 %v737_v0  ;;  %v742_v5 = vld [vmem:[%s970_s1 + $0xf0] sm:$0xff]   ;;  %v746_v9 = vld [vmem:[%s970_s1 + $0xe8] sm:$0xff]  }
   0x3   :  { %v739_v2 = vld [vmem:[%s970_s1 + $0x38] sm:$0xff]   ;;  %679 = vmatprep.subr.bf16.mxu1 %v738_v1  ;;  %v743_v6 = vld [vmem:[%s970_s1 + $0x30] sm:$0xff]   ;;  %v747_v10 = vld [vmem:[%s970_s1 + $0x28] sm:$0xff]  }
   0x4   :  { %v740_v3 = vld [vmem:[%s970_s1 + $0xb8] sm:$0xff]   ;;  %652 = vmatpush3.bf16.msra.mxu0 %v739_v2  ;;  %v744_v7 = vld [vmem:[%s970_s1 + $0xb0] sm:$0xff]   ;;  %v748_v11 = vld [vmem:[%s970_s1 + $0xa8] sm:$0xff]  }
   0x5   :  { %680 = vmatpush3.bf16.msra.mxu1 %v740_v3  ;;  %653 = vmatprep.subr.bf16.mxu0 %v741_v4  ;;  %v749_v12 = vld [vmem:[%s970_s1 + $0x60] sm:$0xff]   ;;  %v753_v16 = vld [vmem:[%s970_s1 + $0x58] sm:$0xff]   ;;  %v757_v20 = vld [vmem:[%s970_s1 + $0x50] sm:$0xff]  }
   0x6   :  { %681 = vmatprep.subr.bf16.mxu1 %v742_v5  ;;  %v750_v13 = vld [vmem:[%s970_s1 + $0xe0] sm:$0xff]   ;;  %v754_v17 = vld [vmem:[%s970_s1 + $0xd8] sm:$0xff]   ;;  %v758_v21 = vld [vmem:[%s970_s1 + $0xd0] sm:$0xff]  }
   0x7   :  { %v751_v14 = vld [vmem:[%s970_s1 + $0x20] sm:$0xff]   ;;  %v755_v18 = vld [vmem:[%s970_s1 + $0x18] sm:$0xff]   ;;  %v759_v22 = vld [vmem:[%s970_s1 + $0x10] sm:$0xff]  }
   0x8   :  { %654 = vmatpush3.bf16.msra.mxu0 %v743_v6  ;;  %v752_v15 = vld [vmem:[%s970_s1 + $0xa0] sm:$0xff]   ;;  %v756_v19 = vld [vmem:[%s970_s1 + $0x98] sm:$0xff]   ;;  %v760_v23 = vld [vmem:[%s970_s1 + $0x90] sm:$0xff]  }
   0x9   :  { %682 = vmatpush3.bf16.msra.mxu1 %v744_v7  ;;  %655 = vmatprep.subr.bf16.mxu0 %v745_v8  ;;  %v761_v24 = vld [vmem:[%s970_s1 + $0x48] sm:$0xff]   ;;  %v765_v28 = vld [vmem:[%s970_s1 + $0x40] sm:$0xff]   ;;  %v775_v36 = vld [vmem:[%s970_s1 + $0x138] sm:$0xff]  }
   0xa   :  { %683 = vmatprep.subr.bf16.mxu1 %v746_v9  ;;  %v762_v25 = vld [vmem:[%s970_s1 + $0xc8] sm:$0xff]   ;;  %v766_v29 = vld [vmem:[%s970_s1 + $0xc0] sm:$0xff]   ;;  %v776_v37 = vld [vmem:[%s970_s1 + $0x130] sm:$0xff]  }
   0xb   :  { %v763_v26 = vld [vmem:[%s970_s1 + $0x8] sm:$0xff]   ;;  %v767_v30 = vld [vmem:[%s970_s1] sm:$0xff]   ;;  %v779_v45 = vld [vmem:[%s970_s1 + $0x118] sm:$0xff]  }
   0xc   :  { %656 = vmatpush3.bf16.msra.mxu0 %v747_v10  ;;  %v764_v27 = vld [vmem:[%s970_s1 + $0x88] sm:$0xff]   ;;  %v768_v31 = vld [vmem:[%s970_s1 + $0x80] sm:$0xff]   ;;  %v786_v46 = vld [vmem:[%s970_s1 + $0x110] sm:$0xff]  }
   0xd   :  { %684 = vmatpush3.bf16.msra.mxu1 %v748_v11  ;;  %657 = vmatprep.subr.bf16.mxu0 %v749_v12  ;;  %v769_v32 = vld [vmem:[%s971_s0] ss:$20 sps:$4 sm:$0xff]   ;;  %v771_v33 = vld [vmem:[%s971_s0 + $0x4] ss:$20 sps:$4 sm:$0xff]   ;;  %v772_v34 = vld [vmem:[%s971_s0 + $0x8] ss:$20 sps:$4 sm:$0xff]  }
   0xe   :  { %685 = vmatprep.subr.bf16.mxu1 %v750_v13  ;;  %v774_v35 = vld [vmem:[%s971_s0 + $0xc] ss:$20 sps:$4 sm:$0xff]   ;;  %432 = vmatprep.mubr.bf16.mxu0 %v771_v33  ;;  %v782_v40 = vld [vmem:[%s971_s0 + $0x34] ss:$20 sps:$4 sm:$0xff]   ;;  %v785_v42 = vld [vmem:[%s971_s0 + $0x30] ss:$20 sps:$4 sm:$0xff]  }
   0xf   :  { %481 = vmatprep.mubr.bf16.mxu1 %v774_v35  ;;  %v777_v38 = vld [vmem:[%s970_s1 + $0x128] sm:$0xff]   ;;  %v778_v43 = vld [vmem:[%s970_s1 + $0x120] sm:$0xff]  }
  0x10   :  { %658 = vmatpush3.bf16.msra.mxu0 %v751_v14  ;;  %v780_v39 = vld [vmem:[%s971_s0 + $0x2c] ss:$20 sps:$4 sm:$0xff]   ;;  %v784_v41 = vld [vmem:[%s971_s0 + $0x28] ss:$20 sps:$4 sm:$0xff]   ;;  %v789_v44 = vld [vmem:[%s971_s0 + $0x10] ss:$20 sps:$4 sm:$0xff]  }
  0x11   :  { %686 = vmatpush3.bf16.msra.mxu1 %v752_v15  ;;  %659 = vmatprep.subr.bf16.mxu0 %v753_v16  ;;  %v787_v47 = vld [vmem:[%s970_s1 + $0x108] sm:$0xff]   ;;  %v788_v48 = vld [vmem:[%s970_s1 + $0x100] sm:$0xff]  }
  0x12   :  { %687 = vmatprep.subr.bf16.mxu1 %v754_v17  ;;  %v790_v49 = vld [vmem:[%s971_s0 + $0x38] ss:$20 sps:$4 sm:$0xff]   ;;  %v631_v16 = vld [vmem:[%s972_s2] ss:$0 sm:$0xff] }
  0x14   :  { %660 = vmatpush3.bf16.msra.mxu0 %v755_v18 }
  0x15   :  { %688 = vmatpush3.bf16.msra.mxu1 %v756_v19  ;;  %661 = vmatprep.subr.bf16.mxu0 %v757_v20 }
  0x16   :  { %689 = vmatprep.subr.bf16.mxu1 %v758_v21 }
  0x18   :  { %662 = vmatpush3.bf16.msra.mxu0 %v759_v22 }
  0x19   :  { %690 = vmatpush3.bf16.msra.mxu1 %v760_v23  ;;  %663 = vmatprep.subr.bf16.mxu0 %v761_v24 }
  0x1a   :  { %691 = vmatprep.subr.bf16.mxu1 %v762_v25 }
  0x1c   :  { %664 = vmatpush3.bf16.msra.mxu0 %v763_v26 }
  0x1d   :  { %692 = vmatpush3.bf16.msra.mxu1 %v764_v27  ;;  %665 = vmatprep.subr.bf16.mxu0 %v765_v28 }
  0x1e   :  { %693 = vmatprep.subr.bf16.mxu1 %v766_v29 }
  0x20   :  { %666 = vmatpush3.bf16.msra.mxu0 %v767_v30 }
  0x21   :  { %694 = vmatpush3.bf16.msra.mxu1 %v768_v31  ;;  %717 = vmatprep.subr.bf16.mxu0 %v775_v36 }
  0x23   :  { %433 = vmatmul.mubr.bf16.vlgmr.msra.gmra.mxu0 %v769_v32 }
  0x24   :  { %482 = vmatmul.mubr.bf16.vlgmr.msra.gmra.mxu1 %v772_v34  ;;  %718 = vmatpush3.bf16.msra.mxu0 %v775_v36 }
  0x25   :  { %719 = vmatprep.subr.bf16.mxu0 %v776_v37  ;;  %440 = vmatprep.mubr.bf16.mxu0 %v780_v39 }
  0x26   :  { %489 = vmatprep.mubr.bf16.mxu1 %v782_v40 }
  0x28   :  { %720 = vmatpush3.bf16.msra.mxu0 %v776_v37 }
  0x29   :  { %721 = vmatprep.subr.bf16.mxu0 %v777_v38 }
  0x2b   :  { %441 = vmatmul.mubr.bf16.gmra.mxu0 %v784_v41 }
  0x2c   :  { %490 = vmatmul.mubr.bf16.gmra.mxu1 %v785_v42  ;;  %722 = vmatpush3.bf16.msra.mxu0 %v777_v38 }
  0x2d   :  { %723 = vmatprep.subr.bf16.mxu0 %v778_v43  ;;  %733 = vmatprep.mubr.bf16.mxu0 %v789_v44 }
  0x30   :  { %724 = vmatpush3.bf16.msra.mxu0 %v778_v43 }
  0x31   :  { %725 = vmatprep.subr.bf16.mxu0 %v779_v45 }
  0x34   :  { %726 = vmatpush3.bf16.msra.mxu0 %v779_v45 }
  0x35   :  { %727 = vmatprep.subr.bf16.mxu0 %v786_v46 }
  0x38   :  { %728 = vmatpush3.bf16.msra.mxu0 %v786_v46 }
  0x39   :  { %729 = vmatprep.subr.bf16.mxu0 %v787_v47 }
  0x3c   :  { %730 = vmatpush3.bf16.msra.mxu0 %v787_v47 }
  0x3d   :  { %731 = vmatprep.subr.bf16.mxu0 %v788_v48 }
  0x40   :  { %732 = vmatpush3.bf16.msra.mxu0 %v788_v48 }
  0x43   :  { %734 = vmatmul.mubr.bf16.vlgmr.msra.gmra.mxu0 %v790_v49 }
  0xe3   :  { %v667_v50 = vpop.f32.mrf.mxu0 }
  0xe4   :  { %v695_v51 = vpop.f32.mrf.mxu1 }
  0xe5   :  { %v668_v52 = vpop.f32.mrf.mxu0 }
  0xe6   :  { %v696_v53 = vpop.f32.mrf.mxu1  ;;  %v669_v4 = vadd.f32 %v668_v52, %v667_v50 }
  0xe7   :  { %v670_v54 = vpop.f32.mrf.mxu0  ;;  %v697_v5 = vadd.f32 %v696_v53, %v695_v51 }
  0xe8   :  { %v698_v55 = vpop.f32.mrf.mxu1 }
  0xe9   :  { %v671_v56 = vpop.f32.mrf.mxu0  ;;  %v484_v14 = vadd.f32 %v697_v5, %v669_v4 }
  0xea   :  { %v699_v57 = vpop.f32.mrf.mxu1  ;;  %v672_v9 = vadd.f32 %v671_v56, %v670_v54 }
  0xeb   :  { %v673_v58 = vpop.f32.mrf.mxu0  ;;  %v700_v10 = vadd.f32 %v699_v57, %v698_v55 }
  0xec   :  { %v701_v59 = vpop.f32.mrf.mxu1 }
  0xed   :  { %v674_v60 = vpop.f32.mrf.mxu0  ;;  %v487_v20 = vadd.f32 %v700_v10, %v672_v9 }
  0xee   :  { %v702_v61 = vpop.f32.mrf.mxu1  ;;  %v675_v2 = vadd.f32 %v674_v60, %v673_v58 }
  0xef   :  { %v676_v62 = vpop.f32.mrf.mxu0  ;;  %v703_v3 = vadd.f32 %v702_v61, %v701_v59 }
  0xf0   :  { %v704_v63 = vpop.f32.mrf.mxu1 }
  0xf1   :  { %v677_v0 = vpop.f32.mrf.mxu0  ;;  %v492_v11 = vadd.f32 %v703_v3, %v675_v2 }
  0xf2   :  { %v705_v1 = vpop.f32.mrf.mxu1  ;;  %v678_v6 = vadd.f32 %v677_v0, %v676_v62 }
  0xf3   :  { %v706_v7 = vadd.f32 %v705_v1, %v704_v63 }
  0xf5   :  { %v495_v15 = vadd.f32 %v706_v7, %v678_v6 }
 0x103   :  { %v735_v8 = vpop.f32.mrf.mxu0 }
 0x104   :  { %v541_v13 = vadd.f32 %v735_v8, %v492_v11 }
 0x105   :  { %v532_v12 = vpop.f32.mrf.mxu0 }
 0x106   :  { %v533_v18 = vadd.f32 %v532_v12, %v484_v14  ;;  %v555_v22 = vadd.f32 %v631_v16, %v541_v13 }
 0x107   :  { %v736_v17 = vpop.f32.mrf.mxu0 }
 0x108   :  { %v544_v19 = vadd.f32 %v736_v17, %v495_v15  ;;  %v553_v25 = vadd.f32 %v631_v16, %v533_v18 }
 0x109   :  { %v535_v21 = vpop.f32.mrf.mxu0 }
 0x10a   :  { %v556_v23 = vadd.f32 %v631_v16, %v544_v19  ;;  %v536_v24 = vadd.f32 %v535_v21, %v487_v20 }
 0x10c   :  { %v648_v26 = vpack.c.bf16 %v556_v23, %v555_v22  ;;  %v554_v27 = vadd.f32 %v631_v16, %v536_v24 }
 0x10e   :  { %650 = vst [vmem:[%s973_s3 + $0x8] sm:$0xff] %v648_v26   ;;  %v643_v28 = vpack.c.bf16 %v554_v27, %v553_v25 }
 0x110   :  { %644 = vst [vmem:[%s973_s3] sm:$0xff] %v643_v28  }

// kernel: global_generator_forward.40
= control target key start
LH: loop header
LB: loop body
LE: loop exit
PB: predicated region body
PF: predicated region fallthrough
CT: control target
= control target key end

     0   :  { %s537_s2 = inlined_call_operand.vmem [shape: bf16[128,128], index: 2, kind: input, shape index: {}]   ;;  %s538_s3 = inlined_call_operand.vmem [shape: bf16[128,128], index: 3, kind: input, shape index: {}]   ;;  %s539_s0 = inlined_call_operand.vmem [shape: bf16[32,128], index: 0, kind: input, shape index: {}]   ;;  %s540_s1 = inlined_call_operand.vmem [shape: bf16[32,128], index: 1, kind: input, shape index: {}]   ;;  %s541_s4 = inlined_call_operand.vmem [shape: f32[1,128], index: 4, kind: input, shape index: {}]   ;;  %s542_s5 = inlined_call_operand.vmem [shape: bf16[32,128], index: 5, kind: output, shape index: {}]  }
   0x1   :  { %v418_v0 = vld [vmem:[%s537_s2 + $0x38] sm:$0xff]   ;;  %v420_v2 = vld [vmem:[%s537_s2 + $0x30] sm:$0xff]   ;;  %v422_v4 = vld [vmem:[%s537_s2 + $0x28] sm:$0xff]  }
   0x2   :  { %v419_v1 = vld [vmem:[%s538_s3 + $0x38] sm:$0xff]   ;;  %378 = vmatprep.subr.bf16.mxu0 %v418_v0  ;;  %v421_v3 = vld [vmem:[%s538_s3 + $0x30] sm:$0xff]   ;;  %v423_v5 = vld [vmem:[%s538_s3 + $0x28] sm:$0xff]  }
   0x3   :  { %398 = vmatprep.subr.bf16.mxu1 %v419_v1  ;;  %379 = vmatpush3.bf16.msra.mxu0 %v418_v0  ;;  %v424_v6 = vld [vmem:[%s537_s2 + $0x20] sm:$0xff]   ;;  %v426_v8 = vld [vmem:[%s537_s2 + $0x18] sm:$0xff]   ;;  %v428_v10 = vld [vmem:[%s537_s2 + $0x10] sm:$0xff]  }
   0x4   :  { %399 = vmatpush3.bf16.msra.mxu1 %v419_v1  ;;  %380 = vmatprep.subr.bf16.mxu0 %v420_v2  ;;  %v425_v7 = vld [vmem:[%s538_s3 + $0x20] sm:$0xff]   ;;  %v427_v9 = vld [vmem:[%s538_s3 + $0x18] sm:$0xff]   ;;  %v429_v11 = vld [vmem:[%s538_s3 + $0x10] sm:$0xff]  }
   0x5   :  { %400 = vmatprep.subr.bf16.mxu1 %v421_v3  ;;  %v434_v12 = vld [vmem:[%s539_s0] sm:$0xff]   ;;  %v430_v14 = vld [vmem:[%s537_s2 + $0x8] sm:$0xff]  }
   0x6   :  { %v435_v13 = vld [vmem:[%s540_s1] sm:$0xff]   ;;  %394 = vmatprep.mubr.bf16.mxu0 %v434_v12  ;;  %v431_v15 = vld [vmem:[%s538_s3 + $0x8] sm:$0xff]  }
   0x7   :  { %381 = vmatpush3.bf16.msra.mxu0 %v420_v2  ;;  %414 = vmatprep.mubr.bf16.mxu1 %v435_v13  ;;  %v432_v16 = vld [vmem:[%s537_s2] sm:$0xff]   ;;  %v436_v18 = vld [vmem:[%s539_s0 + $0x8] sm:$0xff]  }
   0x8   :  { %401 = vmatpush3.bf16.msra.mxu1 %v421_v3  ;;  %382 = vmatprep.subr.bf16.mxu0 %v422_v4  ;;  %v433_v17 = vld [vmem:[%s538_s3] sm:$0xff]   ;;  %v437_v19 = vld [vmem:[%s540_s1 + $0x8] sm:$0xff]  }
   0x9   :  { %402 = vmatprep.subr.bf16.mxu1 %v423_v5  ;;  %v328_v20 = vld [vmem:[%s541_s4] ss:$0 sm:$0xff] }
   0xb   :  { %383 = vmatpush3.bf16.msra.mxu0 %v422_v4 }
   0xc   :  { %403 = vmatpush3.bf16.msra.mxu1 %v423_v5  ;;  %384 = vmatprep.subr.bf16.mxu0 %v424_v6 }
   0xd   :  { %404 = vmatprep.subr.bf16.mxu1 %v425_v7 }
   0xf   :  { %385 = vmatpush3.bf16.msra.mxu0 %v424_v6 }
  0x10   :  { %405 = vmatpush3.bf16.msra.mxu1 %v425_v7  ;;  %386 = vmatprep.subr.bf16.mxu0 %v426_v8 }
  0x11   :  { %406 = vmatprep.subr.bf16.mxu1 %v427_v9 }
  0x13   :  { %387 = vmatpush3.bf16.msra.mxu0 %v426_v8 }
  0x14   :  { %407 = vmatpush3.bf16.msra.mxu1 %v427_v9  ;;  %388 = vmatprep.subr.bf16.mxu0 %v428_v10 }
  0x15   :  { %408 = vmatprep.subr.bf16.mxu1 %v429_v11 }
  0x17   :  { %389 = vmatpush3.bf16.msra.mxu0 %v428_v10 }
  0x18   :  { %409 = vmatpush3.bf16.msra.mxu1 %v429_v11  ;;  %390 = vmatprep.subr.bf16.mxu0 %v430_v14 }
  0x19   :  { %410 = vmatprep.subr.bf16.mxu1 %v431_v15 }
  0x1b   :  { %391 = vmatpush3.bf16.msra.mxu0 %v430_v14 }
  0x1c   :  { %411 = vmatpush3.bf16.msra.mxu1 %v431_v15  ;;  %392 = vmatprep.subr.bf16.mxu0 %v432_v16 }
  0x1d   :  { %412 = vmatprep.subr.bf16.mxu1 %v433_v17 }
  0x1f   :  { %393 = vmatpush3.bf16.msra.mxu0 %v432_v16 }
  0x20   :  { %413 = vmatpush3.bf16.msra.mxu1 %v433_v17 }
  0x22   :  { %395 = vmatmul.mubr.bf16.vlgmr.msra.gmra.mxu0 %v436_v18 }
  0x23   :  { %415 = vmatmul.mubr.bf16.vlgmr.msra.gmra.mxu1 %v437_v19 }
  0xe2   :  { %v396_v21 = vpop.f32.mrf.mxu0 }
  0xe3   :  { %v416_v22 = vpop.f32.mrf.mxu1  ;;  %v159_v24 = vadd.f32 %v396_v21, %v328_v20 }
  0xe4   :  { %v136_v23 = vpop.f32.mrf.mxu0 }
  0xe5   :  { %v275_v25 = vpop.f32.mrf.mxu1  ;;  %v157_v27 = vadd.f32 %v328_v20, %v136_v23  ;;  %v292_v31 = vadd.f32 %v416_v22, %v159_v24 }
  0xe6   :  { %v397_v26 = vpop.f32.mrf.mxu0 }
  0xe7   :  { %v160_v28 = vadd.f32 %v397_v26, %v328_v20  ;;  %v417_v29 = vpop.f32.mrf.mxu1  ;;  %v290_v35 = vadd.f32 %v275_v25, %v157_v27 }
  0xe8   :  { %v139_v30 = vpop.f32.mrf.mxu0 }
  0xe9   :  { %v293_v32 = vadd.f32 %v417_v29, %v160_v28  ;;  %v158_v33 = vadd.f32 %v328_v20, %v139_v30  ;;  %v278_v34 = vpop.f32.mrf.mxu1 }
  0xeb   :  { %v355_v36 = vpack.c.bf16 %v293_v32, %v292_v31  ;;  %v291_v37 = vadd.f32 %v278_v34, %v158_v33 }
  0xed   :  { %357 = vst [vmem:[%s542_s5 + $0x8] sm:$0xff] %v355_v36   ;;  %v350_v38 = vpack.c.bf16 %v291_v37, %v290_v35 }
  0xef   :  { %351 = vst [vmem:[%s542_s5] sm:$0xff] %v350_v38  }

// kernel: global_generator_forward.44
= control target key start
LH: loop header
LB: loop body
LE: loop exit
PB: predicated region body
PF: predicated region fallthrough
CT: control target
= control target key end

     0   :  { %s618_s1 = inlined_call_operand.vmem [shape: bf16[128,128], index: 1, kind: input, shape index: {}]   ;;  %s619_s0 = inlined_call_operand.vmem [shape: bf16[128,128], index: 0, kind: input, shape index: {}]   ;;  %s620_s2 = inlined_call_operand.vmem [shape: f32[1,128], index: 2, kind: input, shape index: {}]   ;;  %s621_s3 = inlined_call_operand.vmem [shape: bf16[128,128], index: 3, kind: output, shape index: {}]  }
   0x1   :  { %v507_v0 = vld [vmem:[%s618_s1 + $0x38] sm:$0xff]   ;;  %v508_v1 = vld [vmem:[%s618_s1 + $0x30] sm:$0xff]   ;;  %v509_v2 = vld [vmem:[%s618_s1 + $0x28] sm:$0xff]  }
   0x2   :  { %459 = vmatprep.subr.bf16.mxu0 %v507_v0  ;;  %491 = vmatprep.subr.bf16.mxu1 %v507_v0  ;;  %v510_v3 = vld [vmem:[%s618_s1 + $0x20] sm:$0xff]   ;;  %v511_v6 = vld [vmem:[%s618_s1 + $0x18] sm:$0xff]   ;;  %v512_v7 = vld [vmem:[%s618_s1 + $0x10] sm:$0xff]  }
   0x3   :  { %460 = vmatpush3.bf16.msra.mxu0 %v507_v0  ;;  %499 = vmatpush3.bf16.msra.mxu1 %v507_v0  ;;  %v515_v4 = vld [vmem:[%s619_s0] sm:$0xff]   ;;  %v513_v8 = vld [vmem:[%s618_s1 + $0x8] sm:$0xff]   ;;  %v519_v12 = vld [vmem:[%s619_s0 + $0x10] sm:$0xff]  }
   0x4   :  { %461 = vmatprep.subr.bf16.mxu0 %v508_v1  ;;  %492 = vmatprep.subr.bf16.mxu1 %v508_v1  ;;  %v516_v5 = vld [vmem:[%s619_s0 + $0x20] sm:$0xff]   ;;  %v517_v10 = vld [vmem:[%s619_s0 + $0x8] sm:$0xff]   ;;  %v520_v13 = vld [vmem:[%s619_s0 + $0x30] sm:$0xff]  }
   0x5   :  { %475 = vmatprep.mubr.bf16.mxu0 %v515_v4  ;;  %483 = vmatprep.mubr.bf16.mxu1 %v516_v5  ;;  %v514_v9 = vld [vmem:[%s618_s1] sm:$0xff]   ;;  %v518_v11 = vld [vmem:[%s619_s0 + $0x28] sm:$0xff]   ;;  %v521_v14 = vld [vmem:[%s619_s0 + $0x18] sm:$0xff]  }
   0x6   :  { %v522_v15 = vld [vmem:[%s619_s0 + $0x38] sm:$0xff]   ;;  %v363_v18 = vld [vmem:[%s620_s2] ss:$0 sm:$0xff] }
   0x7   :  { %462 = vmatpush3.bf16.msra.mxu0 %v508_v1  ;;  %500 = vmatpush3.bf16.msra.mxu1 %v508_v1 }
   0x8   :  { %463 = vmatprep.subr.bf16.mxu0 %v509_v2  ;;  %493 = vmatprep.subr.bf16.mxu1 %v509_v2 }
   0xb   :  { %464 = vmatpush3.bf16.msra.mxu0 %v509_v2  ;;  %501 = vmatpush3.bf16.msra.mxu1 %v509_v2 }
   0xc   :  { %465 = vmatprep.subr.bf16.mxu0 %v510_v3  ;;  %494 = vmatprep.subr.bf16.mxu1 %v510_v3 }
   0xf   :  { %466 = vmatpush3.bf16.msra.mxu0 %v510_v3  ;;  %502 = vmatpush3.bf16.msra.mxu1 %v510_v3 }
  0x10   :  { %467 = vmatprep.subr.bf16.mxu0 %v511_v6  ;;  %495 = vmatprep.subr.bf16.mxu1 %v511_v6 }
  0x13   :  { %468 = vmatpush3.bf16.msra.mxu0 %v511_v6  ;;  %503 = vmatpush3.bf16.msra.mxu1 %v511_v6 }
  0x14   :  { %469 = vmatprep.subr.bf16.mxu0 %v512_v7  ;;  %496 = vmatprep.subr.bf16.mxu1 %v512_v7 }
  0x17   :  { %470 = vmatpush3.bf16.msra.mxu0 %v512_v7  ;;  %504 = vmatpush3.bf16.msra.mxu1 %v512_v7 }
  0x18   :  { %471 = vmatprep.subr.bf16.mxu0 %v513_v8  ;;  %497 = vmatprep.subr.bf16.mxu1 %v513_v8 }
  0x1b   :  { %472 = vmatpush3.bf16.msra.mxu0 %v513_v8  ;;  %505 = vmatpush3.bf16.msra.mxu1 %v513_v8 }
  0x1c   :  { %473 = vmatprep.subr.bf16.mxu0 %v514_v9  ;;  %498 = vmatprep.subr.bf16.mxu1 %v514_v9 }
  0x1f   :  { %474 = vmatpush3.bf16.msra.mxu0 %v514_v9  ;;  %506 = vmatpush3.bf16.msra.mxu1 %v514_v9 }
  0x22   :  { %476 = vmatmul.mubr.bf16.vlgmr.msra.gmra.mxu0 %v517_v10  ;;  %484 = vmatmul.mubr.bf16.vlgmr.msra.gmra.mxu1 %v518_v11 }
  0x23   :  { %479 = vmatprep.mubr.bf16.mxu0 %v519_v12  ;;  %487 = vmatprep.mubr.bf16.mxu1 %v520_v13 }
  0x2a   :  { %480 = vmatmul.mubr.bf16.gmra.mxu0 %v521_v14  ;;  %488 = vmatmul.mubr.bf16.gmra.mxu1 %v522_v15 }
  0xe2   :  { %v477_v16 = vpop.f32.mrf.mxu0  ;;  %v485_v17 = vpop.f32.mrf.mxu1 }
  0xe3   :  { %v249_v23 = vadd.f32 %v477_v16, %v363_v18  ;;  %v257_v24 = vadd.f32 %v485_v17, %v363_v18 }
  0xe4   :  { %v178_v19 = vpop.f32.mrf.mxu0  ;;  %v210_v20 = vpop.f32.mrf.mxu1 }
  0xe5   :  { %v247_v27 = vadd.f32 %v363_v18, %v178_v19  ;;  %v255_v28 = vadd.f32 %v363_v18, %v210_v20 }
  0xe6   :  { %v478_v21 = vpop.f32.mrf.mxu0  ;;  %v486_v22 = vpop.f32.mrf.mxu1 }
  0xe7   :  { %v250_v25 = vadd.f32 %v478_v21, %v363_v18  ;;  %v258_v26 = vadd.f32 %v486_v22, %v363_v18 }
  0xe8   :  { %v181_v29 = vpop.f32.mrf.mxu0  ;;  %v213_v30 = vpop.f32.mrf.mxu1 }
  0xe9   :  { %v404_v31 = vpack.c.bf16 %v250_v25, %v249_v23  ;;  %v424_v32 = vpack.c.bf16 %v258_v26, %v257_v24  ;;  %v248_v33 = vadd.f32 %v363_v18, %v181_v29  ;;  %v256_v34 = vadd.f32 %v363_v18, %v213_v30 }
  0xea   :  { %v481_v35 = vpop.f32.mrf.mxu0  ;;  %v489_v36 = vpop.f32.mrf.mxu1 }
  0xeb   :  { %436 = vst [vmem:[%s621_s3 + $0x8] sm:$0xff] %v404_v31   ;;  %440 = vst [vmem:[%s621_s3 + $0x28] sm:$0xff] %v424_v32   ;;  %v399_v37 = vpack.c.bf16 %v248_v33, %v247_v27  ;;  %v419_v38 = vpack.c.bf16 %v256_v34, %v255_v28  ;;  %v253_v43 = vadd.f32 %v481_v35, %v363_v18 }
  0xec   :  { %v194_v39 = vpop.f32.mrf.mxu0  ;;  %v226_v40 = vpop.f32.mrf.mxu1  ;;  %v261_v44 = vadd.f32 %v489_v36, %v363_v18 }
  0xed   :  { %400 = vst [vmem:[%s621_s3] sm:$0xff] %v399_v37   ;;  %439 = vst [vmem:[%s621_s3 + $0x20] sm:$0xff] %v419_v38   ;;  %v251_v47 = vadd.f32 %v363_v18, %v194_v39  ;;  %v259_v48 = vadd.f32 %v363_v18, %v226_v40 }
  0xee   :  { %v482_v41 = vpop.f32.mrf.mxu0  ;;  %v490_v42 = vpop.f32.mrf.mxu1 }
  0xef   :  { %v254_v45 = vadd.f32 %v482_v41, %v363_v18  ;;  %v262_v46 = vadd.f32 %v490_v42, %v363_v18 }
  0xf0   :  { %v197_v49 = vpop.f32.mrf.mxu0  ;;  %v229_v50 = vpop.f32.mrf.mxu1 }
  0xf1   :  { %v414_v51 = vpack.c.bf16 %v254_v45, %v253_v43  ;;  %v434_v52 = vpack.c.bf16 %v262_v46, %v261_v44  ;;  %v252_v53 = vadd.f32 %v363_v18, %v197_v49  ;;  %v260_v54 = vadd.f32 %v363_v18, %v229_v50 }
  0xf3   :  { %438 = vst [vmem:[%s621_s3 + $0x18] sm:$0xff] %v414_v51   ;;  %442 = vst [vmem:[%s621_s3 + $0x38] sm:$0xff] %v434_v52   ;;  %v409_v55 = vpack.c.bf16 %v252_v53, %v251_v47  ;;  %v429_v56 = vpack.c.bf16 %v260_v54, %v259_v48 }
  0xf5   :  { %437 = vst [vmem:[%s621_s3 + $0x10] sm:$0xff] %v409_v55   ;;  %441 = vst [vmem:[%s621_s3 + $0x30] sm:$0xff] %v429_v56  }

// kernel: global_generator_forward.42
= control target key start
LH: loop header
LB: loop body
LE: loop exit
PB: predicated region body
PF: predicated region fallthrough
CT: control target
= control target key end

     0   :  { %s995_s4 = inlined_call_operand.vmem [shape: bf16[128,128], index: 4, kind: input, shape index: {}]   ;;  %s996_s5 = inlined_call_operand.vmem [shape: bf16[128,128], index: 5, kind: input, shape index: {}]   ;;  %s997_s0 = inlined_call_operand.vmem [shape: bf16[32,128], index: 0, kind: input, shape index: {}]   ;;  %s998_s1 = inlined_call_operand.vmem [shape: bf16[32,128], index: 1, kind: input, shape index: {}]   ;;  %s999_s6 = inlined_call_operand.vmem [shape: bf16[128,128], index: 6, kind: input, shape index: {}]   ;;  %s1000_s7 = inlined_call_operand.vmem [shape: bf16[128,128], index: 7, kind: input, shape index: {}]   ;;  %s1001_s2 = inlined_call_operand.vmem [shape: bf16[32,128], index: 2, kind: input, shape index: {}]   ;;  %s1002_s3 = inlined_call_operand.vmem [shape: bf16[32,128], index: 3, kind: input, shape index: {}]   ;;  %s1003_s8 = inlined_call_operand.vmem [shape: f32[1,128], index: 8, kind: input, shape index: {}]   ;;  %s1004_s9 = inlined_call_operand.vmem [shape: bf16[32,128], index: 9, kind: output, shape index: {}]  }
   0x1   :  { %v776_v0 = vld [vmem:[%s995_s4 + $0x38] sm:$0xff]   ;;  %v778_v2 = vld [vmem:[%s995_s4 + $0x30] sm:$0xff]   ;;  %v780_v4 = vld [vmem:[%s995_s4 + $0x28] sm:$0xff]  }
   0x2   :  { %v777_v1 = vld [vmem:[%s996_s5 + $0x38] sm:$0xff]   ;;  %696 = vmatprep.subr.bf16.mxu0 %v776_v0  ;;  %v779_v3 = vld [vmem:[%s996_s5 + $0x30] sm:$0xff]   ;;  %v781_v5 = vld [vmem:[%s996_s5 + $0x28] sm:$0xff]  }
   0x3   :  { %716 = vmatprep.subr.bf16.mxu1 %v777_v1  ;;  %697 = vmatpush3.bf16.msra.mxu0 %v776_v0  ;;  %v782_v6 = vld [vmem:[%s995_s4 + $0x20] sm:$0xff]   ;;  %v784_v8 = vld [vmem:[%s995_s4 + $0x18] sm:$0xff]   ;;  %v786_v10 = vld [vmem:[%s995_s4 + $0x10] sm:$0xff]  }
   0x4   :  { %717 = vmatpush3.bf16.msra.mxu1 %v777_v1  ;;  %698 = vmatprep.subr.bf16.mxu0 %v778_v2  ;;  %v783_v7 = vld [vmem:[%s996_s5 + $0x20] sm:$0xff]   ;;  %v785_v9 = vld [vmem:[%s996_s5 + $0x18] sm:$0xff]   ;;  %v787_v11 = vld [vmem:[%s996_s5 + $0x10] sm:$0xff]  }
   0x5   :  { %718 = vmatprep.subr.bf16.mxu1 %v779_v3  ;;  %v792_v12 = vld [vmem:[%s997_s0] sm:$0xff]   ;;  %v788_v14 = vld [vmem:[%s995_s4 + $0x8] sm:$0xff]   ;;  %v796_v18 = vld [vmem:[%s999_s6 + $0x38] sm:$0xff]  }
   0x6   :  { %v793_v13 = vld [vmem:[%s998_s1] sm:$0xff]   ;;  %712 = vmatprep.mubr.bf16.mxu0 %v792_v12  ;;  %v789_v15 = vld [vmem:[%s996_s5 + $0x8] sm:$0xff]   ;;  %v797_v19 = vld [vmem:[%s1000_s7 + $0x38] sm:$0xff]  }
   0x7   :  { %699 = vmatpush3.bf16.msra.mxu0 %v778_v2  ;;  %732 = vmatprep.mubr.bf16.mxu1 %v793_v13  ;;  %v790_v16 = vld [vmem:[%s995_s4] sm:$0xff]   ;;  %v794_v20 = vld [vmem:[%s997_s0 + $0x8] sm:$0xff]   ;;  %v798_v22 = vld [vmem:[%s999_s6 + $0x30] sm:$0xff]  }
   0x8   :  { %719 = vmatpush3.bf16.msra.mxu1 %v779_v3  ;;  %700 = vmatprep.subr.bf16.mxu0 %v780_v4  ;;  %v791_v17 = vld [vmem:[%s996_s5] sm:$0xff]   ;;  %v795_v21 = vld [vmem:[%s998_s1 + $0x8] sm:$0xff]   ;;  %v799_v23 = vld [vmem:[%s1000_s7 + $0x30] sm:$0xff]  }
   0x9   :  { %720 = vmatprep.subr.bf16.mxu1 %v781_v5  ;;  %v800_v24 = vld [vmem:[%s999_s6 + $0x28] sm:$0xff]   ;;  %v812_v26 = vld [vmem:[%s1001_s2] sm:$0xff]   ;;  %v804_v30 = vld [vmem:[%s999_s6 + $0x18] sm:$0xff]  }
   0xa   :  { %v801_v25 = vld [vmem:[%s1000_s7 + $0x28] sm:$0xff]   ;;  %v813_v27 = vld [vmem:[%s1002_s3] sm:$0xff]   ;;  %v805_v31 = vld [vmem:[%s1000_s7 + $0x18] sm:$0xff]  }
   0xb   :  { %701 = vmatpush3.bf16.msra.mxu0 %v780_v4  ;;  %v802_v28 = vld [vmem:[%s999_s6 + $0x20] sm:$0xff]   ;;  %v806_v32 = vld [vmem:[%s999_s6 + $0x10] sm:$0xff]   ;;  %v808_v34 = vld [vmem:[%s999_s6 + $0x8] sm:$0xff]  }
   0xc   :  { %721 = vmatpush3.bf16.msra.mxu1 %v781_v5  ;;  %702 = vmatprep.subr.bf16.mxu0 %v782_v6  ;;  %v803_v29 = vld [vmem:[%s1000_s7 + $0x20] sm:$0xff]   ;;  %v807_v33 = vld [vmem:[%s1000_s7 + $0x10] sm:$0xff]   ;;  %v809_v35 = vld [vmem:[%s1000_s7 + $0x8] sm:$0xff]  }
   0xd   :  { %722 = vmatprep.subr.bf16.mxu1 %v783_v7  ;;  %v810_v36 = vld [vmem:[%s999_s6] sm:$0xff]   ;;  %v814_v38 = vld [vmem:[%s1001_s2 + $0x8] sm:$0xff]  }
   0xe   :  { %v811_v37 = vld [vmem:[%s1000_s7] sm:$0xff]   ;;  %v815_v39 = vld [vmem:[%s1002_s3 + $0x8] sm:$0xff]  }
   0xf   :  { %703 = vmatpush3.bf16.msra.mxu0 %v782_v6  ;;  %v606_v44 = vld [vmem:[%s1003_s8] ss:$0 sm:$0xff] }
  0x10   :  { %723 = vmatpush3.bf16.msra.mxu1 %v783_v7  ;;  %704 = vmatprep.subr.bf16.mxu0 %v784_v8 }
  0x11   :  { %724 = vmatprep.subr.bf16.mxu1 %v785_v9 }
  0x13   :  { %705 = vmatpush3.bf16.msra.mxu0 %v784_v8 }
  0x14   :  { %725 = vmatpush3.bf16.msra.mxu1 %v785_v9  ;;  %706 = vmatprep.subr.bf16.mxu0 %v786_v10 }
  0x15   :  { %726 = vmatprep.subr.bf16.mxu1 %v787_v11 }
  0x17   :  { %707 = vmatpush3.bf16.msra.mxu0 %v786_v10 }
  0x18   :  { %727 = vmatpush3.bf16.msra.mxu1 %v787_v11  ;;  %708 = vmatprep.subr.bf16.mxu0 %v788_v14 }
  0x19   :  { %728 = vmatprep.subr.bf16.mxu1 %v789_v15 }
  0x1b   :  { %709 = vmatpush3.bf16.msra.mxu0 %v788_v14 }
  0x1c   :  { %729 = vmatpush3.bf16.msra.mxu1 %v789_v15  ;;  %710 = vmatprep.subr.bf16.mxu0 %v790_v16 }
  0x1d   :  { %730 = vmatprep.subr.bf16.mxu1 %v791_v17 }
  0x1f   :  { %711 = vmatpush3.bf16.msra.mxu0 %v790_v16 }
  0x20   :  { %731 = vmatpush3.bf16.msra.mxu1 %v791_v17  ;;  %736 = vmatprep.subr.bf16.mxu0 %v796_v18 }
  0x21   :  { %756 = vmatprep.subr.bf16.mxu1 %v797_v19 }
  0x22   :  { %713 = vmatmul.mubr.bf16.vlgmr.msra.gmra.mxu0 %v794_v20 }
  0x23   :  { %733 = vmatmul.mubr.bf16.vlgmr.msra.gmra.mxu1 %v795_v21  ;;  %737 = vmatpush3.bf16.msra.mxu0 %v796_v18 }
  0x24   :  { %757 = vmatpush3.bf16.msra.mxu1 %v797_v19  ;;  %738 = vmatprep.subr.bf16.mxu0 %v798_v22 }
  0x25   :  { %758 = vmatprep.subr.bf16.mxu1 %v799_v23  ;;  %752 = vmatprep.mubr.bf16.mxu0 %v812_v26 }
  0x26   :  { %772 = vmatprep.mubr.bf16.mxu1 %v813_v27 }
  0x27   :  { %739 = vmatpush3.bf16.msra.mxu0 %v798_v22 }
  0x28   :  { %759 = vmatpush3.bf16.msra.mxu1 %v799_v23  ;;  %740 = vmatprep.subr.bf16.mxu0 %v800_v24 }
  0x29   :  { %760 = vmatprep.subr.bf16.mxu1 %v801_v25 }
  0x2b   :  { %741 = vmatpush3.bf16.msra.mxu0 %v800_v24 }
  0x2c   :  { %761 = vmatpush3.bf16.msra.mxu1 %v801_v25  ;;  %742 = vmatprep.subr.bf16.mxu0 %v802_v28 }
  0x2d   :  { %762 = vmatprep.subr.bf16.mxu1 %v803_v29 }
  0x2f   :  { %743 = vmatpush3.bf16.msra.mxu0 %v802_v28 }
  0x30   :  { %763 = vmatpush3.bf16.msra.mxu1 %v803_v29  ;;  %744 = vmatprep.subr.bf16.mxu0 %v804_v30 }
  0x31   :  { %764 = vmatprep.subr.bf16.mxu1 %v805_v31 }
  0x33   :  { %745 = vmatpush3.bf16.msra.mxu0 %v804_v30 }
  0x34   :  { %765 = vmatpush3.bf16.msra.mxu1 %v805_v31  ;;  %746 = vmatprep.subr.bf16.mxu0 %v806_v32 }
  0x35   :  { %766 = vmatprep.subr.bf16.mxu1 %v807_v33 }
  0x37   :  { %747 = vmatpush3.bf16.msra.mxu0 %v806_v32 }
  0x38   :  { %767 = vmatpush3.bf16.msra.mxu1 %v807_v33  ;;  %748 = vmatprep.subr.bf16.mxu0 %v808_v34 }
  0x39   :  { %768 = vmatprep.subr.bf16.mxu1 %v809_v35 }
  0x3b   :  { %749 = vmatpush3.bf16.msra.mxu0 %v808_v34 }
  0x3c   :  { %769 = vmatpush3.bf16.msra.mxu1 %v809_v35  ;;  %750 = vmatprep.subr.bf16.mxu0 %v810_v36 }
  0x3d   :  { %770 = vmatprep.subr.bf16.mxu1 %v811_v37 }
  0x3f   :  { %751 = vmatpush3.bf16.msra.mxu0 %v810_v36 }
  0x40   :  { %771 = vmatpush3.bf16.msra.mxu1 %v811_v37 }
  0x42   :  { %753 = vmatmul.mubr.bf16.vlgmr.msra.gmra.mxu0 %v814_v38 }
  0x43   :  { %773 = vmatmul.mubr.bf16.vlgmr.msra.gmra.mxu1 %v815_v39 }
  0xe2   :  { %v714_v40 = vpop.f32.mrf.mxu0 }
  0xe3   :  { %v734_v41 = vpop.f32.mrf.mxu1  ;;  %v171_v47 = vadd.f32 %v714_v40, %v606_v44 }
  0xe4   :  { %v148_v42 = vpop.f32.mrf.mxu0 }
  0xe5   :  { %v287_v43 = vpop.f32.mrf.mxu1  ;;  %v169_v49 = vadd.f32 %v606_v44, %v148_v42  ;;  %v304_v53 = vadd.f32 %v734_v41, %v171_v47 }
  0xe6   :  { %v715_v45 = vpop.f32.mrf.mxu0 }
  0xe7   :  { %v735_v46 = vpop.f32.mrf.mxu1  ;;  %v172_v50 = vadd.f32 %v715_v45, %v606_v44  ;;  %v302_v57 = vadd.f32 %v287_v43, %v169_v49 }
  0xe8   :  { %v151_v48 = vpop.f32.mrf.mxu0 }
  0xe9   :  { %v290_v51 = vpop.f32.mrf.mxu1  ;;  %v170_v54 = vadd.f32 %v606_v44, %v151_v48  ;;  %v305_v58 = vadd.f32 %v735_v46, %v172_v50 }
  0xeb   :  { %v303_v62 = vadd.f32 %v290_v51, %v170_v54 }
 0x102   :  { %v754_v52 = vpop.f32.mrf.mxu0 }
 0x103   :  { %v774_v55 = vpop.f32.mrf.mxu1  ;;  %v437_v59 = vadd.f32 %v754_v52, %v304_v53 }
 0x104   :  { %v420_v56 = vpop.f32.mrf.mxu0 }
 0x105   :  { %v553_v60 = vpop.f32.mrf.mxu1  ;;  %v435_v63 = vadd.f32 %v420_v56, %v302_v57  ;;  %v570_v3 = vadd.f32 %v774_v55, %v437_v59 }
 0x106   :  { %v755_v61 = vpop.f32.mrf.mxu0 }
 0x107   :  { %v438_v0 = vadd.f32 %v755_v61, %v305_v58  ;;  %v775_v1 = vpop.f32.mrf.mxu1  ;;  %v568_v7 = vadd.f32 %v553_v60, %v435_v63 }
 0x108   :  { %v423_v2 = vpop.f32.mrf.mxu0 }
 0x109   :  { %v571_v4 = vadd.f32 %v775_v1, %v438_v0  ;;  %v436_v5 = vadd.f32 %v423_v2, %v303_v62  ;;  %v556_v6 = vpop.f32.mrf.mxu1 }
 0x10b   :  { %v653_v8 = vpack.c.bf16 %v571_v4, %v570_v3  ;;  %v569_v9 = vadd.f32 %v556_v6, %v436_v5 }
 0x10d   :  { %655 = vst [vmem:[%s1004_s9 + $0x8] sm:$0xff] %v653_v8   ;;  %v648_v10 = vpack.c.bf16 %v569_v9, %v568_v7 }
 0x10f   :  { %649 = vst [vmem:[%s1004_s9] sm:$0xff] %v648_v10  }

// kernel: global_generator_forward.45
= control target key start
LH: loop header
LB: loop body
LE: loop exit
PB: predicated region body
PF: predicated region fallthrough
CT: control target
= control target key end

     0   :  { %s1005_s2 = inlined_call_operand.vmem [shape: bf16[128,128], index: 2, kind: input, shape index: {}]   ;;  %s1006_s3 = inlined_call_operand.vmem [shape: bf16[128,128], index: 3, kind: input, shape index: {}]   ;;  %s1007_s0 = inlined_call_operand.vmem [shape: bf16[128,128], index: 0, kind: input, shape index: {}]   ;;  %s1008_s1 = inlined_call_operand.vmem [shape: bf16[128,128], index: 1, kind: input, shape index: {}]   ;;  %s1009_s4 = inlined_call_operand.vmem [shape: f32[1,128], index: 4, kind: input, shape index: {}]   ;;  %s1010_s5 = inlined_call_operand.vmem [shape: bf16[128,128], index: 5, kind: output, shape index: {}]  }
   0x1   :  { %v802_v0 = vld [vmem:[%s1005_s2 + $0x38] sm:$0xff]   ;;  %v804_v2 = vld [vmem:[%s1005_s2 + $0x30] sm:$0xff]   ;;  %v806_v4 = vld [vmem:[%s1005_s2 + $0x28] sm:$0xff]  }
   0x2   :  { %v803_v1 = vld [vmem:[%s1006_s3 + $0x38] sm:$0xff]   ;;  %738 = vmatprep.subr.bf16.mxu0 %v802_v0  ;;  %v805_v3 = vld [vmem:[%s1006_s3 + $0x30] sm:$0xff]   ;;  %v807_v5 = vld [vmem:[%s1006_s3 + $0x28] sm:$0xff]  }
   0x3   :  { %770 = vmatprep.subr.bf16.mxu1 %v803_v1  ;;  %739 = vmatpush3.bf16.msra.mxu0 %v802_v0  ;;  %v808_v6 = vld [vmem:[%s1005_s2 + $0x20] sm:$0xff]   ;;  %v810_v8 = vld [vmem:[%s1005_s2 + $0x18] sm:$0xff]   ;;  %v812_v10 = vld [vmem:[%s1005_s2 + $0x10] sm:$0xff]  }
   0x4   :  { %771 = vmatpush3.bf16.msra.mxu1 %v803_v1  ;;  %740 = vmatprep.subr.bf16.mxu0 %v804_v2  ;;  %v809_v7 = vld [vmem:[%s1006_s3 + $0x20] sm:$0xff]   ;;  %v811_v9 = vld [vmem:[%s1006_s3 + $0x18] sm:$0xff]   ;;  %v813_v11 = vld [vmem:[%s1006_s3 + $0x10] sm:$0xff]  }
   0x5   :  { %772 = vmatprep.subr.bf16.mxu1 %v805_v3  ;;  %v818_v12 = vld [vmem:[%s1007_s0] sm:$0xff]   ;;  %v814_v14 = vld [vmem:[%s1005_s2 + $0x8] sm:$0xff]   ;;  %v822_v20 = vld [vmem:[%s1007_s0 + $0x10] sm:$0xff]  }
   0x6   :  { %v819_v13 = vld [vmem:[%s1008_s1] sm:$0xff]   ;;  %754 = vmatprep.mubr.bf16.mxu0 %v818_v12  ;;  %v815_v15 = vld [vmem:[%s1006_s3 + $0x8] sm:$0xff]   ;;  %v823_v21 = vld [vmem:[%s1008_s1 + $0x10] sm:$0xff]  }
   0x7   :  { %741 = vmatpush3.bf16.msra.mxu0 %v804_v2  ;;  %786 = vmatprep.mubr.bf16.mxu1 %v819_v13  ;;  %v816_v16 = vld [vmem:[%s1005_s2] sm:$0xff]   ;;  %v820_v18 = vld [vmem:[%s1007_s0 + $0x8] sm:$0xff]   ;;  %v824_v22 = vld [vmem:[%s1007_s0 + $0x18] sm:$0xff]  }
   0x8   :  { %773 = vmatpush3.bf16.msra.mxu1 %v805_v3  ;;  %742 = vmatprep.subr.bf16.mxu0 %v806_v4  ;;  %v817_v17 = vld [vmem:[%s1006_s3] sm:$0xff]   ;;  %v821_v19 = vld [vmem:[%s1008_s1 + $0x8] sm:$0xff]   ;;  %v825_v23 = vld [vmem:[%s1008_s1 + $0x18] sm:$0xff]  }
   0x9   :  { %774 = vmatprep.subr.bf16.mxu1 %v807_v5  ;;  %v826_v24 = vld [vmem:[%s1007_s0 + $0x20] sm:$0xff]   ;;  %v828_v26 = vld [vmem:[%s1007_s0 + $0x28] sm:$0xff]   ;;  %v830_v28 = vld [vmem:[%s1007_s0 + $0x30] sm:$0xff]  }
   0xa   :  { %v827_v25 = vld [vmem:[%s1008_s1 + $0x20] sm:$0xff]   ;;  %v829_v27 = vld [vmem:[%s1008_s1 + $0x28] sm:$0xff]   ;;  %v831_v29 = vld [vmem:[%s1008_s1 + $0x30] sm:$0xff]  }
   0xb   :  { %743 = vmatpush3.bf16.msra.mxu0 %v806_v4  ;;  %v832_v30 = vld [vmem:[%s1007_s0 + $0x38] sm:$0xff]   ;;  %v963_v32 = vld [vmem:[%s1009_s4] ss:$0 sm:$0xff] }
   0xc   :  { %775 = vmatpush3.bf16.msra.mxu1 %v807_v5  ;;  %744 = vmatprep.subr.bf16.mxu0 %v808_v6  ;;  %v833_v31 = vld [vmem:[%s1008_s1 + $0x38] sm:$0xff]  }
   0xd   :  { %776 = vmatprep.subr.bf16.mxu1 %v809_v7 }
   0xf   :  { %745 = vmatpush3.bf16.msra.mxu0 %v808_v6 }
  0x10   :  { %777 = vmatpush3.bf16.msra.mxu1 %v809_v7  ;;  %746 = vmatprep.subr.bf16.mxu0 %v810_v8 }
  0x11   :  { %778 = vmatprep.subr.bf16.mxu1 %v811_v9 }
  0x13   :  { %747 = vmatpush3.bf16.msra.mxu0 %v810_v8 }
  0x14   :  { %779 = vmatpush3.bf16.msra.mxu1 %v811_v9  ;;  %748 = vmatprep.subr.bf16.mxu0 %v812_v10 }
  0x15   :  { %780 = vmatprep.subr.bf16.mxu1 %v813_v11 }
  0x17   :  { %749 = vmatpush3.bf16.msra.mxu0 %v812_v10 }
  0x18   :  { %781 = vmatpush3.bf16.msra.mxu1 %v813_v11  ;;  %750 = vmatprep.subr.bf16.mxu0 %v814_v14 }
  0x19   :  { %782 = vmatprep.subr.bf16.mxu1 %v815_v15 }
  0x1b   :  { %751 = vmatpush3.bf16.msra.mxu0 %v814_v14 }
  0x1c   :  { %783 = vmatpush3.bf16.msra.mxu1 %v815_v15  ;;  %752 = vmatprep.subr.bf16.mxu0 %v816_v16 }
  0x1d   :  { %784 = vmatprep.subr.bf16.mxu1 %v817_v17 }
  0x1f   :  { %753 = vmatpush3.bf16.msra.mxu0 %v816_v16 }
  0x20   :  { %785 = vmatpush3.bf16.msra.mxu1 %v817_v17 }
  0x22   :  { %755 = vmatmul.mubr.bf16.vlgmr.msra.gmra.mxu0 %v820_v18 }
  0x23   :  { %787 = vmatmul.mubr.bf16.vlgmr.msra.gmra.mxu1 %v821_v19  ;;  %758 = vmatprep.mubr.bf16.mxu0 %v822_v20 }
  0x24   :  { %790 = vmatprep.mubr.bf16.mxu1 %v823_v21 }
  0x2a   :  { %759 = vmatmul.mubr.bf16.gmra.mxu0 %v824_v22 }
  0x2b   :  { %791 = vmatmul.mubr.bf16.gmra.mxu1 %v825_v23  ;;  %762 = vmatprep.mubr.bf16.mxu0 %v826_v24 }
  0x2c   :  { %794 = vmatprep.mubr.bf16.mxu1 %v827_v25 }
  0x32   :  { %763 = vmatmul.mubr.bf16.gmra.mxu0 %v828_v26 }
  0x33   :  { %795 = vmatmul.mubr.bf16.gmra.mxu1 %v829_v27  ;;  %766 = vmatprep.mubr.bf16.mxu0 %v830_v28 }
  0x34   :  { %798 = vmatprep.mubr.bf16.mxu1 %v831_v29 }
  0x3a   :  { %767 = vmatmul.mubr.bf16.gmra.mxu0 %v832_v30 }
  0x3b   :  { %799 = vmatmul.mubr.bf16.gmra.mxu1 %v833_v31 }
  0xe2   :  { %v756_v33 = vpop.f32.mrf.mxu0 }
  0xe3   :  { %v788_v34 = vpop.f32.mrf.mxu1  ;;  %v255_v36 = vadd.f32 %v756_v33, %v963_v32 }
  0xe4   :  { %v184_v35 = vpop.f32.mrf.mxu0 }
  0xe5   :  { %v431_v37 = vpop.f32.mrf.mxu1  ;;  %v253_v39 = vadd.f32 %v963_v32, %v184_v35  ;;  %v496_v43 = vadd.f32 %v788_v34, %v255_v36 }
  0xe6   :  { %v757_v38 = vpop.f32.mrf.mxu0 }
  0xe7   :  { %v256_v40 = vadd.f32 %v757_v38, %v963_v32  ;;  %v789_v41 = vpop.f32.mrf.mxu1  ;;  %v494_v48 = vadd.f32 %v431_v37, %v253_v39 }
  0xe8   :  { %v187_v42 = vpop.f32.mrf.mxu0 }
  0xe9   :  { %v497_v44 = vadd.f32 %v789_v41, %v256_v40  ;;  %v254_v45 = vadd.f32 %v963_v32, %v187_v42  ;;  %v434_v46 = vpop.f32.mrf.mxu1 }
  0xea   :  { %v760_v47 = vpop.f32.mrf.mxu0 }
  0xeb   :  { %v667_v49 = vpack.c.bf16 %v497_v44, %v496_v43  ;;  %v495_v50 = vadd.f32 %v434_v46, %v254_v45  ;;  %v792_v51 = vpop.f32.mrf.mxu1  ;;  %v259_v54 = vadd.f32 %v760_v47, %v963_v32 }
  0xec   :  { %v200_v52 = vpop.f32.mrf.mxu0 }
  0xed   :  { %699 = vst [vmem:[%s1010_s5 + $0x8] sm:$0xff] %v667_v49   ;;  %v662_v53 = vpack.c.bf16 %v495_v50, %v494_v48  ;;  %v447_v55 = vpop.f32.mrf.mxu1  ;;  %v257_v57 = vadd.f32 %v963_v32, %v200_v52  ;;  %v500_v61 = vadd.f32 %v792_v51, %v259_v54 }
  0xee   :  { %v761_v56 = vpop.f32.mrf.mxu0 }
  0xef   :  { %663 = vst [vmem:[%s1010_s5] sm:$0xff] %v662_v53   ;;  %v260_v58 = vadd.f32 %v761_v56, %v963_v32  ;;  %v793_v59 = vpop.f32.mrf.mxu1  ;;  %v498_v2 = vadd.f32 %v447_v55, %v257_v57 }
  0xf0   :  { %v203_v60 = vpop.f32.mrf.mxu0 }
  0xf1   :  { %v501_v62 = vadd.f32 %v793_v59, %v260_v58  ;;  %v258_v63 = vadd.f32 %v963_v32, %v203_v60  ;;  %v450_v0 = vpop.f32.mrf.mxu1 }
  0xf2   :  { %v764_v1 = vpop.f32.mrf.mxu0 }
  0xf3   :  { %v677_v3 = vpack.c.bf16 %v501_v62, %v500_v61  ;;  %v499_v4 = vadd.f32 %v450_v0, %v258_v63  ;;  %v796_v5 = vpop.f32.mrf.mxu1  ;;  %v263_v8 = vadd.f32 %v764_v1, %v963_v32 }
  0xf4   :  { %v216_v6 = vpop.f32.mrf.mxu0 }
  0xf5   :  { %701 = vst [vmem:[%s1010_s5 + $0x18] sm:$0xff] %v677_v3   ;;  %v672_v7 = vpack.c.bf16 %v499_v4, %v498_v2  ;;  %v463_v9 = vpop.f32.mrf.mxu1  ;;  %v261_v11 = vadd.f32 %v963_v32, %v216_v6  ;;  %v504_v15 = vadd.f32 %v796_v5, %v263_v8 }
  0xf6   :  { %v765_v10 = vpop.f32.mrf.mxu0 }
  0xf7   :  { %700 = vst [vmem:[%s1010_s5 + $0x10] sm:$0xff] %v672_v7   ;;  %v264_v12 = vadd.f32 %v765_v10, %v963_v32  ;;  %v797_v13 = vpop.f32.mrf.mxu1  ;;  %v502_v20 = vadd.f32 %v463_v9, %v261_v11 }
  0xf8   :  { %v219_v14 = vpop.f32.mrf.mxu0 }
  0xf9   :  { %v505_v16 = vadd.f32 %v797_v13, %v264_v12  ;;  %v262_v17 = vadd.f32 %v963_v32, %v219_v14  ;;  %v466_v18 = vpop.f32.mrf.mxu1 }
  0xfa   :  { %v768_v19 = vpop.f32.mrf.mxu0 }
  0xfb   :  { %v687_v21 = vpack.c.bf16 %v505_v16, %v504_v15  ;;  %v503_v22 = vadd.f32 %v466_v18, %v262_v17  ;;  %v800_v23 = vpop.f32.mrf.mxu1  ;;  %v267_v26 = vadd.f32 %v768_v19, %v963_v32 }
  0xfc   :  { %v232_v24 = vpop.f32.mrf.mxu0 }
  0xfd   :  { %703 = vst [vmem:[%s1010_s5 + $0x28] sm:$0xff] %v687_v21   ;;  %v682_v25 = vpack.c.bf16 %v503_v22, %v502_v20  ;;  %v479_v27 = vpop.f32.mrf.mxu1  ;;  %v265_v29 = vadd.f32 %v963_v32, %v232_v24  ;;  %v508_v34 = vadd.f32 %v800_v23, %v267_v26 }
  0xfe   :  { %v769_v28 = vpop.f32.mrf.mxu0 }
  0xff   :  { %702 = vst [vmem:[%s1010_s5 + $0x20] sm:$0xff] %v682_v25   ;;  %v268_v30 = vadd.f32 %v769_v28, %v963_v32  ;;  %v801_v31 = vpop.f32.mrf.mxu1  ;;  %v506_v38 = vadd.f32 %v479_v27, %v265_v29 }
 0x100   :  { %v235_v33 = vpop.f32.mrf.mxu0 }
 0x101   :  { %v509_v35 = vadd.f32 %v801_v31, %v268_v30  ;;  %v266_v36 = vadd.f32 %v963_v32, %v235_v33  ;;  %v482_v37 = vpop.f32.mrf.mxu1 }
 0x103   :  { %v697_v39 = vpack.c.bf16 %v509_v35, %v508_v34  ;;  %v507_v40 = vadd.f32 %v482_v37, %v266_v36 }
 0x105   :  { %705 = vst [vmem:[%s1010_s5 + $0x38] sm:$0xff] %v697_v39   ;;  %v692_v41 = vpack.c.bf16 %v507_v40, %v506_v38 }
 0x107   :  { %704 = vst [vmem:[%s1010_s5 + $0x30] sm:$0xff] %v692_v41  }

// kernel: global_generator_forward.47
= control target key start
LH: loop header
LB: loop body
LE: loop exit
PB: predicated region body
PF: predicated region fallthrough
CT: control target
= control target key end

     0   :  { %s1820_s4 = inlined_call_operand.vmem [shape: bf16[128,128], index: 4, kind: input, shape index: {}]   ;;  %s1821_s5 = inlined_call_operand.vmem [shape: bf16[128,128], index: 5, kind: input, shape index: {}]   ;;  %s1822_s0 = inlined_call_operand.vmem [shape: bf16[128,128], index: 0, kind: input, shape index: {}]   ;;  %s1823_s1 = inlined_call_operand.vmem [shape: bf16[128,128], index: 1, kind: input, shape index: {}]   ;;  %s1824_s6 = inlined_call_operand.vmem [shape: bf16[128,128], index: 6, kind: input, shape index: {}]   ;;  %s1825_s7 = inlined_call_operand.vmem [shape: bf16[128,128], index: 7, kind: input, shape index: {}]   ;;  %s1826_s2 = inlined_call_operand.vmem [shape: bf16[128,128], index: 2, kind: input, shape index: {}]   ;;  %s1827_s3 = inlined_call_operand.vmem [shape: bf16[128,128], index: 3, kind: input, shape index: {}]   ;;  %s1828_s8 = inlined_call_operand.vmem [shape: f32[1,128], index: 8, kind: input, shape index: {}]   ;;  %s1829_s9 = inlined_call_operand.vmem [shape: bf16[128,128], index: 9, kind: output, shape index: {}]  }
   0x1   :  { %v1424_v0 = vld [vmem:[%s1820_s4 + $0x38] sm:$0xff]   ;;  %v1426_v2 = vld [vmem:[%s1820_s4 + $0x30] sm:$0xff]   ;;  %v1428_v4 = vld [vmem:[%s1820_s4 + $0x28] sm:$0xff]  }
   0x2   :  { %v1425_v1 = vld [vmem:[%s1821_s5 + $0x38] sm:$0xff]   ;;  %1296 = vmatprep.subr.bf16.mxu0 %v1424_v0  ;;  %v1427_v3 = vld [vmem:[%s1821_s5 + $0x30] sm:$0xff]   ;;  %v1429_v5 = vld [vmem:[%s1821_s5 + $0x28] sm:$0xff]  }
   0x3   :  { %1328 = vmatprep.subr.bf16.mxu1 %v1425_v1  ;;  %1297 = vmatpush3.bf16.msra.mxu0 %v1424_v0  ;;  %v1430_v6 = vld [vmem:[%s1820_s4 + $0x20] sm:$0xff]   ;;  %v1432_v8 = vld [vmem:[%s1820_s4 + $0x18] sm:$0xff]   ;;  %v1434_v10 = vld [vmem:[%s1820_s4 + $0x10] sm:$0xff]  }
   0x4   :  { %1329 = vmatpush3.bf16.msra.mxu1 %v1425_v1  ;;  %1298 = vmatprep.subr.bf16.mxu0 %v1426_v2  ;;  %v1431_v7 = vld [vmem:[%s1821_s5 + $0x20] sm:$0xff]   ;;  %v1433_v9 = vld [vmem:[%s1821_s5 + $0x18] sm:$0xff]   ;;  %v1435_v11 = vld [vmem:[%s1821_s5 + $0x10] sm:$0xff]  }
   0x5   :  { %1330 = vmatprep.subr.bf16.mxu1 %v1427_v3  ;;  %v1440_v12 = vld [vmem:[%s1822_s0] sm:$0xff]   ;;  %v1436_v14 = vld [vmem:[%s1820_s4 + $0x8] sm:$0xff]   ;;  %v1444_v19 = vld [vmem:[%s1824_s6 + $0x38] sm:$0xff]  }
   0x6   :  { %v1441_v13 = vld [vmem:[%s1823_s1] sm:$0xff]   ;;  %1312 = vmatprep.mubr.bf16.mxu0 %v1440_v12  ;;  %v1437_v15 = vld [vmem:[%s1821_s5 + $0x8] sm:$0xff]   ;;  %v1445_v20 = vld [vmem:[%s1825_s7 + $0x38] sm:$0xff]  }
   0x7   :  { %1299 = vmatpush3.bf16.msra.mxu0 %v1426_v2  ;;  %1344 = vmatprep.mubr.bf16.mxu1 %v1441_v13  ;;  %v1438_v16 = vld [vmem:[%s1820_s4] sm:$0xff]   ;;  %v1442_v18 = vld [vmem:[%s1822_s0 + $0x8] sm:$0xff]   ;;  %v1446_v22 = vld [vmem:[%s1824_s6 + $0x30] sm:$0xff]  }
   0x8   :  { %1331 = vmatpush3.bf16.msra.mxu1 %v1427_v3  ;;  %1300 = vmatprep.subr.bf16.mxu0 %v1428_v4  ;;  %v1439_v17 = vld [vmem:[%s1821_s5] sm:$0xff]   ;;  %v1443_v21 = vld [vmem:[%s1823_s1 + $0x8] sm:$0xff]   ;;  %v1447_v23 = vld [vmem:[%s1825_s7 + $0x30] sm:$0xff]  }
   0x9   :  { %1332 = vmatprep.subr.bf16.mxu1 %v1429_v5  ;;  %v1448_v24 = vld [vmem:[%s1822_s0 + $0x10] sm:$0xff]   ;;  %v1450_v26 = vld [vmem:[%s1822_s0 + $0x18] sm:$0xff]   ;;  %v1452_v27 = vld [vmem:[%s1824_s6 + $0x28] sm:$0xff]  }
   0xa   :  { %v1449_v25 = vld [vmem:[%s1823_s1 + $0x10] sm:$0xff]   ;;  %v1453_v28 = vld [vmem:[%s1825_s7 + $0x28] sm:$0xff]   ;;  %v1451_v29 = vld [vmem:[%s1823_s1 + $0x18] sm:$0xff]  }
   0xb   :  { %1301 = vmatpush3.bf16.msra.mxu0 %v1428_v4  ;;  %v1454_v30 = vld [vmem:[%s1824_s6 + $0x20] sm:$0xff]   ;;  %v1458_v34 = vld [vmem:[%s1822_s0 + $0x28] sm:$0xff]   ;;  %v1460_v35 = vld [vmem:[%s1824_s6 + $0x18] sm:$0xff]  }
   0xc   :  { %1333 = vmatpush3.bf16.msra.mxu1 %v1429_v5  ;;  %1302 = vmatprep.subr.bf16.mxu0 %v1430_v6  ;;  %v1455_v31 = vld [vmem:[%s1825_s7 + $0x20] sm:$0xff]   ;;  %v1461_v36 = vld [vmem:[%s1825_s7 + $0x18] sm:$0xff]   ;;  %v1459_v37 = vld [vmem:[%s1823_s1 + $0x28] sm:$0xff]  }
   0xd   :  { %1334 = vmatprep.subr.bf16.mxu1 %v1431_v7  ;;  %v1456_v32 = vld [vmem:[%s1822_s0 + $0x20] sm:$0xff]   ;;  %v1462_v38 = vld [vmem:[%s1824_s6 + $0x10] sm:$0xff]   ;;  %v1466_v42 = vld [vmem:[%s1822_s0 + $0x38] sm:$0xff]  }
   0xe   :  { %v1457_v33 = vld [vmem:[%s1823_s1 + $0x20] sm:$0xff]   ;;  %v1463_v39 = vld [vmem:[%s1825_s7 + $0x10] sm:$0xff]   ;;  %v1468_v43 = vld [vmem:[%s1824_s6 + $0x8] sm:$0xff]  }
   0xf   :  { %1303 = vmatpush3.bf16.msra.mxu0 %v1430_v6  ;;  %v1464_v40 = vld [vmem:[%s1822_s0 + $0x30] sm:$0xff]   ;;  %v1469_v44 = vld [vmem:[%s1825_s7 + $0x8] sm:$0xff]   ;;  %v1467_v45 = vld [vmem:[%s1823_s1 + $0x38] sm:$0xff]  }
  0x10   :  { %1335 = vmatpush3.bf16.msra.mxu1 %v1431_v7  ;;  %1304 = vmatprep.subr.bf16.mxu0 %v1432_v8  ;;  %v1465_v41 = vld [vmem:[%s1823_s1 + $0x30] sm:$0xff]   ;;  %v1470_v46 = vld [vmem:[%s1824_s6] sm:$0xff]   ;;  %v1474_v50 = vld [vmem:[%s1826_s2 + $0x8] sm:$0xff]  }
  0x11   :  { %1336 = vmatprep.subr.bf16.mxu1 %v1433_v9  ;;  %v1471_v47 = vld [vmem:[%s1825_s7] sm:$0xff]   ;;  %v1475_v51 = vld [vmem:[%s1827_s3 + $0x8] sm:$0xff]   ;;  %v1476_v52 = vld [vmem:[%s1826_s2 + $0x10] sm:$0xff]  }
  0x12   :  { %v1472_v48 = vld [vmem:[%s1826_s2] sm:$0xff]   ;;  %v1477_v53 = vld [vmem:[%s1827_s3 + $0x10] sm:$0xff]   ;;  %v1478_v54 = vld [vmem:[%s1826_s2 + $0x18] sm:$0xff]  }
  0x13   :  { %1305 = vmatpush3.bf16.msra.mxu0 %v1432_v8  ;;  %v1473_v49 = vld [vmem:[%s1827_s3] sm:$0xff]   ;;  %v1479_v55 = vld [vmem:[%s1827_s3 + $0x18] sm:$0xff]   ;;  %v1482_v58 = vld [vmem:[%s1826_s2 + $0x28] sm:$0xff]  }
  0x14   :  { %1337 = vmatpush3.bf16.msra.mxu1 %v1433_v9  ;;  %1306 = vmatprep.subr.bf16.mxu0 %v1434_v10  ;;  %v1480_v56 = vld [vmem:[%s1826_s2 + $0x20] sm:$0xff]   ;;  %v1483_v59 = vld [vmem:[%s1827_s3 + $0x28] sm:$0xff]   ;;  %v1484_v60 = vld [vmem:[%s1826_s2 + $0x30] sm:$0xff]  }
  0x15   :  { %1338 = vmatprep.subr.bf16.mxu1 %v1435_v11  ;;  %v1481_v57 = vld [vmem:[%s1827_s3 + $0x20] sm:$0xff]   ;;  %v1485_v61 = vld [vmem:[%s1827_s3 + $0x30] sm:$0xff]   ;;  %v1486_v62 = vld [vmem:[%s1826_s2 + $0x38] sm:$0xff]  }
  0x16   :  { %v1487_v63 = vld [vmem:[%s1827_s3 + $0x38] sm:$0xff]  }
  0x17   :  { %1307 = vmatpush3.bf16.msra.mxu0 %v1434_v10 }
  0x18   :  { %1339 = vmatpush3.bf16.msra.mxu1 %v1435_v11  ;;  %1308 = vmatprep.subr.bf16.mxu0 %v1436_v14 }
  0x19   :  { %1340 = vmatprep.subr.bf16.mxu1 %v1437_v15 }
  0x1b   :  { %1309 = vmatpush3.bf16.msra.mxu0 %v1436_v14 }
  0x1c   :  { %1341 = vmatpush3.bf16.msra.mxu1 %v1437_v15  ;;  %1310 = vmatprep.subr.bf16.mxu0 %v1438_v16 }
  0x1d   :  { %1342 = vmatprep.subr.bf16.mxu1 %v1439_v17 }
  0x1f   :  { %1311 = vmatpush3.bf16.msra.mxu0 %v1438_v16 }
  0x20   :  { %1343 = vmatpush3.bf16.msra.mxu1 %v1439_v17  ;;  %1360 = vmatprep.subr.bf16.mxu0 %v1444_v19 }
  0x21   :  { %1392 = vmatprep.subr.bf16.mxu1 %v1445_v20 }
  0x22   :  { %1313 = vmatmul.mubr.bf16.vlgmr.msra.gmra.mxu0 %v1442_v18 }
  0x23   :  { %1345 = vmatmul.mubr.bf16.vlgmr.msra.gmra.mxu1 %v1443_v21  ;;  %1361 = vmatpush3.bf16.msra.mxu0 %v1444_v19 }
  0x24   :  { %1393 = vmatpush3.bf16.msra.mxu1 %v1445_v20  ;;  %1362 = vmatprep.subr.bf16.mxu0 %v1446_v22 }
  0x25   :  { %1394 = vmatprep.subr.bf16.mxu1 %v1447_v23  ;;  %1316 = vmatprep.mubr.bf16.mxu0 %v1448_v24 }
  0x26   :  { %1348 = vmatprep.mubr.bf16.mxu1 %v1449_v25 }
  0x27   :  { %1363 = vmatpush3.bf16.msra.mxu0 %v1446_v22 }
  0x28   :  { %1395 = vmatpush3.bf16.msra.mxu1 %v1447_v23  ;;  %1364 = vmatprep.subr.bf16.mxu0 %v1452_v27 }
  0x29   :  { %1396 = vmatprep.subr.bf16.mxu1 %v1453_v28 }
  0x2a   :  { %1317 = vmatmul.mubr.bf16.gmra.mxu0 %v1450_v26  ;;  %v1751_v26 = vld [vmem:[%s1828_s8] ss:$0 sm:$0xff] }
  0x2b   :  { %1349 = vmatmul.mubr.bf16.gmra.mxu1 %v1451_v29  ;;  %1365 = vmatpush3.bf16.msra.mxu0 %v1452_v27 }
  0x2c   :  { %1397 = vmatpush3.bf16.msra.mxu1 %v1453_v28  ;;  %1366 = vmatprep.subr.bf16.mxu0 %v1454_v30 }
  0x2d   :  { %1398 = vmatprep.subr.bf16.mxu1 %v1455_v31  ;;  %1320 = vmatprep.mubr.bf16.mxu0 %v1456_v32 }
  0x2e   :  { %1352 = vmatprep.mubr.bf16.mxu1 %v1457_v33 }
  0x2f   :  { %1367 = vmatpush3.bf16.msra.mxu0 %v1454_v30 }
  0x30   :  { %1399 = vmatpush3.bf16.msra.mxu1 %v1455_v31  ;;  %1368 = vmatprep.subr.bf16.mxu0 %v1460_v35 }
  0x31   :  { %1400 = vmatprep.subr.bf16.mxu1 %v1461_v36 }
  0x32   :  { %1321 = vmatmul.mubr.bf16.gmra.mxu0 %v1458_v34 }
  0x33   :  { %1353 = vmatmul.mubr.bf16.gmra.mxu1 %v1459_v37  ;;  %1369 = vmatpush3.bf16.msra.mxu0 %v1460_v35 }
  0x34   :  { %1401 = vmatpush3.bf16.msra.mxu1 %v1461_v36  ;;  %1370 = vmatprep.subr.bf16.mxu0 %v1462_v38 }
  0x35   :  { %1402 = vmatprep.subr.bf16.mxu1 %v1463_v39  ;;  %1324 = vmatprep.mubr.bf16.mxu0 %v1464_v40 }
  0x36   :  { %1356 = vmatprep.mubr.bf16.mxu1 %v1465_v41 }
  0x37   :  { %1371 = vmatpush3.bf16.msra.mxu0 %v1462_v38 }
  0x38   :  { %1403 = vmatpush3.bf16.msra.mxu1 %v1463_v39  ;;  %1372 = vmatprep.subr.bf16.mxu0 %v1468_v43 }
  0x39   :  { %1404 = vmatprep.subr.bf16.mxu1 %v1469_v44 }
  0x3a   :  { %1325 = vmatmul.mubr.bf16.gmra.mxu0 %v1466_v42 }
  0x3b   :  { %1357 = vmatmul.mubr.bf16.gmra.mxu1 %v1467_v45  ;;  %1373 = vmatpush3.bf16.msra.mxu0 %v1468_v43 }
  0x3c   :  { %1405 = vmatpush3.bf16.msra.mxu1 %v1469_v44  ;;  %1374 = vmatprep.subr.bf16.mxu0 %v1470_v46 }
  0x3d   :  { %1406 = vmatprep.subr.bf16.mxu1 %v1471_v47  ;;  %1376 = vmatprep.mubr.bf16.mxu0 %v1472_v48 }
  0x3e   :  { %1408 = vmatprep.mubr.bf16.mxu1 %v1473_v49 }
  0x3f   :  { %1375 = vmatpush3.bf16.msra.mxu0 %v1470_v46 }
  0x40   :  { %1407 = vmatpush3.bf16.msra.mxu1 %v1471_v47 }
  0x42   :  { %1377 = vmatmul.mubr.bf16.vlgmr.msra.gmra.mxu0 %v1474_v50 }
  0x43   :  { %1409 = vmatmul.mubr.bf16.vlgmr.msra.gmra.mxu1 %v1475_v51  ;;  %1380 = vmatprep.mubr.bf16.mxu0 %v1476_v52 }
  0x44   :  { %1412 = vmatprep.mubr.bf16.mxu1 %v1477_v53 }
  0x4a   :  { %1381 = vmatmul.mubr.bf16.gmra.mxu0 %v1478_v54 }
  0x4b   :  { %1413 = vmatmul.mubr.bf16.gmra.mxu1 %v1479_v55  ;;  %1384 = vmatprep.mubr.bf16.mxu0 %v1480_v56 }
  0x4c   :  { %1416 = vmatprep.mubr.bf16.mxu1 %v1481_v57 }
  0x52   :  { %1385 = vmatmul.mubr.bf16.gmra.mxu0 %v1482_v58 }
  0x53   :  { %1417 = vmatmul.mubr.bf16.gmra.mxu1 %v1483_v59  ;;  %1388 = vmatprep.mubr.bf16.mxu0 %v1484_v60 }
  0x54   :  { %1420 = vmatprep.mubr.bf16.mxu1 %v1485_v61 }
  0x5a   :  { %1389 = vmatmul.mubr.bf16.gmra.mxu0 %v1486_v62 }
  0x5b   :  { %1421 = vmatmul.mubr.bf16.gmra.mxu1 %v1487_v63 }
  0xe2   :  { %v1314_v0 = vpop.f32.mrf.mxu0 }
  0xe3   :  { %v1346_v1 = vpop.f32.mrf.mxu1  ;;  %v267_v30 = vadd.f32 %v1314_v0, %v1751_v26 }
  0xe4   :  { %v196_v2 = vpop.f32.mrf.mxu0 }
  0xe5   :  { %v443_v3 = vpop.f32.mrf.mxu1  ;;  %v265_v33 = vadd.f32 %v1751_v26, %v196_v2  ;;  %v508_v37 = vadd.f32 %v1346_v1, %v267_v30 }
  0xe6   :  { %v1315_v4 = vpop.f32.mrf.mxu0 }
  0xe7   :  { %v1347_v5 = vpop.f32.mrf.mxu1  ;;  %v268_v34 = vadd.f32 %v1315_v4, %v1751_v26  ;;  %v506_v41 = vadd.f32 %v443_v3, %v265_v33 }
  0xe8   :  { %v199_v6 = vpop.f32.mrf.mxu0 }
  0xe9   :  { %v446_v7 = vpop.f32.mrf.mxu1  ;;  %v266_v38 = vadd.f32 %v1751_v26, %v199_v6  ;;  %v509_v42 = vadd.f32 %v1347_v5, %v268_v34 }
  0xea   :  { %v1318_v8 = vpop.f32.mrf.mxu0 }
  0xeb   :  { %v1350_v9 = vpop.f32.mrf.mxu1  ;;  %v271_v45 = vadd.f32 %v1318_v8, %v1751_v26  ;;  %v507_v47 = vadd.f32 %v446_v7, %v266_v38 }
  0xec   :  { %v212_v10 = vpop.f32.mrf.mxu0 }
  0xed   :  { %v459_v11 = vpop.f32.mrf.mxu1  ;;  %v269_v51 = vadd.f32 %v1751_v26, %v212_v10  ;;  %v512_v58 = vadd.f32 %v1350_v9, %v271_v45 }
  0xee   :  { %v1319_v12 = vpop.f32.mrf.mxu0 }
  0xef   :  { %v1351_v13 = vpop.f32.mrf.mxu1  ;;  %v272_v53 = vadd.f32 %v1319_v12, %v1751_v26  ;;  %v510_v2 = vadd.f32 %v459_v11, %v269_v51 }
  0xf0   :  { %v215_v14 = vpop.f32.mrf.mxu0 }
  0xf1   :  { %v462_v15 = vpop.f32.mrf.mxu1  ;;  %v270_v60 = vadd.f32 %v1751_v26, %v215_v14  ;;  %v513_v3 = vadd.f32 %v1351_v13, %v272_v53 }
  0xf2   :  { %v1322_v16 = vpop.f32.mrf.mxu0 }
  0xf3   :  { %v1730_v17 = vpop.f32.mrf.mxu1  ;;  %v275_v7 = vadd.f32 %v1322_v16, %v1751_v26  ;;  %v511_v9 = vadd.f32 %v462_v15, %v270_v60 }
  0xf4   :  { %v1732_v18 = vpop.f32.mrf.mxu0 }
  0xf5   :  { %v1734_v19 = vpop.f32.mrf.mxu1  ;;  %v273_v11 = vadd.f32 %v1751_v26, %v1732_v18  ;;  %v516_v15 = vadd.f32 %v1730_v17, %v275_v7 }
  0xf6   :  { %v1736_v20 = vpop.f32.mrf.mxu0 }
  0xf7   :  { %v1738_v21 = vpop.f32.mrf.mxu1  ;;  %v276_v30 = vadd.f32 %v1736_v20, %v1751_v26  ;;  %v514_v18 = vadd.f32 %v1734_v19, %v273_v11 }
  0xf8   :  { %v1740_v22 = vpop.f32.mrf.mxu0 }
  0xf9   :  { %v1742_v23 = vpop.f32.mrf.mxu1  ;;  %v274_v38 = vadd.f32 %v1751_v26, %v1740_v22 }
  0xfa   :  { %v1744_v24 = vpop.f32.mrf.mxu0 }
  0xfb   :  { %v1746_v25 = vpop.f32.mrf.mxu1 }
  0xfc   :  { %v1753_v27 = vpop.f32.mrf.mxu0 }
  0xfd   :  { %v1755_v28 = vpop.f32.mrf.mxu1 }
  0xfe   :  { %v1757_v29 = vpop.f32.mrf.mxu0 }
  0xff   :  { %v1760_v31 = vpop.f32.mrf.mxu1  ;;  %v280_v51 = vadd.f32 %v1757_v29, %v1751_v26 }
 0x100   :  { %v1762_v32 = vpop.f32.mrf.mxu0 }
 0x101   :  { %v1766_v35 = vpop.f32.mrf.mxu1 }
 0x102   :  { %v1378_v36 = vpop.f32.mrf.mxu0 }
 0x103   :  { %v1410_v39 = vpop.f32.mrf.mxu1  ;;  %v749_v43 = vadd.f32 %v1378_v36, %v508_v37 }
 0x104   :  { %v684_v40 = vpop.f32.mrf.mxu0 }
 0x105   :  { %v925_v44 = vpop.f32.mrf.mxu1  ;;  %v747_v48 = vadd.f32 %v684_v40, %v506_v41  ;;  %v990_v54 = vadd.f32 %v1410_v39, %v749_v43 }
 0x106   :  { %v1379_v46 = vpop.f32.mrf.mxu0 }
 0x107   :  { %v750_v49 = vadd.f32 %v1379_v46, %v509_v42  ;;  %v1411_v50 = vpop.f32.mrf.mxu1  ;;  %v988_v61 = vadd.f32 %v925_v44, %v747_v48  ;;  %v517_v44 = vadd.f32 %v1738_v21, %v276_v30  ;;  %v279_v46 = vadd.f32 %v1744_v24, %v1751_v26 }
 0x108   :  { %v687_v52 = vpop.f32.mrf.mxu0 }
 0x109   :  { %v991_v55 = vadd.f32 %v1411_v50, %v750_v49  ;;  %v748_v56 = vadd.f32 %v687_v52, %v507_v47  ;;  %v928_v57 = vpop.f32.mrf.mxu1  ;;  %v515_v47 = vadd.f32 %v1742_v23, %v274_v38  ;;  %v277_v49 = vadd.f32 %v1751_v26, %v1753_v27 }
 0x10a   :  { %v1382_v59 = vpop.f32.mrf.mxu0  ;;  %v520_v23 = vadd.f32 %v1746_v25, %v279_v46 }
 0x10b   :  { %v1193_v62 = vpack.c.bf16 %v991_v55, %v990_v54  ;;  %v989_v63 = vadd.f32 %v928_v57, %v748_v56  ;;  %v1414_v0 = vpop.f32.mrf.mxu1  ;;  %v753_v5 = vadd.f32 %v1382_v59, %v512_v58  ;;  %v278_v56 = vadd.f32 %v1751_v26, %v1762_v32 }
 0x10c   :  { %v700_v1 = vpop.f32.mrf.mxu0  ;;  %v518_v27 = vadd.f32 %v1755_v28, %v277_v49 }
 0x10d   :  { %1225 = vst [vmem:[%s1829_s9 + $0x8] sm:$0xff] %v1193_v62   ;;  %v1188_v4 = vpack.c.bf16 %v989_v63, %v988_v61  ;;  %v941_v6 = vpop.f32.mrf.mxu1  ;;  %v751_v10 = vadd.f32 %v700_v1, %v510_v2  ;;  %v994_v33 = vadd.f32 %v1414_v0, %v753_v5  ;;  %v521_v62 = vadd.f32 %v1760_v31, %v280_v51 }
 0x10e   :  { %v1383_v8 = vpop.f32.mrf.mxu0  ;;  %v519_v1 = vadd.f32 %v1766_v35, %v278_v56 }
 0x10f   :  { %1189 = vst [vmem:[%s1829_s9] sm:$0xff] %v1188_v4   ;;  %v754_v12 = vadd.f32 %v1383_v8, %v513_v3  ;;  %v1415_v14 = vpop.f32.mrf.mxu1  ;;  %v992_v39 = vadd.f32 %v941_v6, %v751_v10 }
 0x110   :  { %v703_v13 = vpop.f32.mrf.mxu0 }
 0x111   :  { %v995_v34 = vadd.f32 %v1415_v14, %v754_v12  ;;  %v752_v36 = vadd.f32 %v703_v13, %v511_v9  ;;  %v944_v16 = vpop.f32.mrf.mxu1 }
 0x112   :  { %v1386_v37 = vpop.f32.mrf.mxu0 }
 0x113   :  { %v1203_v40 = vpack.c.bf16 %v995_v34, %v994_v33  ;;  %v993_v41 = vadd.f32 %v944_v16, %v752_v36  ;;  %v1418_v42 = vpop.f32.mrf.mxu1  ;;  %v757_v45 = vadd.f32 %v1386_v37, %v516_v15 }
 0x114   :  { %v716_v43 = vpop.f32.mrf.mxu0 }
 0x115   :  { %1227 = vst [vmem:[%s1829_s9 + $0x18] sm:$0xff] %v1203_v40   ;;  %v1198_v20 = vpack.c.bf16 %v993_v41, %v992_v39  ;;  %v957_v17 = vpop.f32.mrf.mxu1  ;;  %v755_v19 = vadd.f32 %v716_v43, %v514_v18  ;;  %v998_v52 = vadd.f32 %v1418_v42, %v757_v45 }
 0x116   :  { %v1387_v22 = vpop.f32.mrf.mxu0 }
 0x117   :  { %1226 = vst [vmem:[%s1829_s9 + $0x10] sm:$0xff] %v1198_v20   ;;  %v758_v48 = vadd.f32 %v1387_v22, %v517_v44  ;;  %v1419_v21 = vpop.f32.mrf.mxu1  ;;  %v996_v57 = vadd.f32 %v957_v17, %v755_v19 }
 0x118   :  { %v719_v50 = vpop.f32.mrf.mxu0 }
 0x119   :  { %v999_v53 = vadd.f32 %v1419_v21, %v758_v48  ;;  %v756_v24 = vadd.f32 %v719_v50, %v515_v47  ;;  %v960_v54 = vpop.f32.mrf.mxu1 }
 0x11a   :  { %v1390_v55 = vpop.f32.mrf.mxu0 }
 0x11b   :  { %v1213_v58 = vpack.c.bf16 %v999_v53, %v998_v52  ;;  %v997_v59 = vadd.f32 %v960_v54, %v756_v24  ;;  %v1422_v60 = vpop.f32.mrf.mxu1  ;;  %v761_v63 = vadd.f32 %v1390_v55, %v520_v23 }
 0x11c   :  { %v732_v61 = vpop.f32.mrf.mxu0 }
 0x11d   :  { %1229 = vst [vmem:[%s1829_s9 + $0x28] sm:$0xff] %v1213_v58   ;;  %v1208_v29 = vpack.c.bf16 %v997_v59, %v996_v57  ;;  %v973_v25 = vpop.f32.mrf.mxu1  ;;  %v759_v26 = vadd.f32 %v732_v61, %v518_v27  ;;  %v1002_v3 = vadd.f32 %v1422_v60, %v761_v63 }
 0x11e   :  { %v1391_v0 = vpop.f32.mrf.mxu0 }
 0x11f   :  { %1228 = vst [vmem:[%s1829_s9 + $0x20] sm:$0xff] %v1208_v29   ;;  %v762_v32 = vadd.f32 %v1391_v0, %v521_v62  ;;  %v1423_v2 = vpop.f32.mrf.mxu1  ;;  %v1000_v6 = vadd.f32 %v973_v25, %v759_v26 }
 0x120   :  { %v735_v28 = vpop.f32.mrf.mxu0 }
 0x121   :  { %v1003_v31 = vadd.f32 %v1423_v2, %v762_v32  ;;  %v760_v4 = vadd.f32 %v735_v28, %v519_v1  ;;  %v976_v5 = vpop.f32.mrf.mxu1 }
 0x123   :  { %v1223_v7 = vpack.c.bf16 %v1003_v31, %v1002_v3  ;;  %v1001_v8 = vadd.f32 %v976_v5, %v760_v4 }
 0x125   :  { %1231 = vst [vmem:[%s1829_s9 + $0x38] sm:$0xff] %v1223_v7   ;;  %v1218_v35 = vpack.c.bf16 %v1001_v8, %v1000_v6 }
 0x127   :  { %1230 = vst [vmem:[%s1829_s9 + $0x30] sm:$0xff] %v1218_v35  }

// kernel: global_generator_forward.49
= control target key start
LH: loop header
LB: loop body
LE: loop exit
PB: predicated region body
PF: predicated region fallthrough
CT: control target
= control target key end

     0   :  { %v4168_v0 = vmov 0   ;;  %s5912_s1 = inlined_call_operand.vmem [shape: bf16[896,128], index: 1, kind: input, shape index: {}]   ;;  %s5913_s0 = inlined_call_operand.vmem [shape: bf16[512,896], index: 0, kind: input, shape index: {}]   ;;  %s5914_s2 = inlined_call_operand.vmem [shape: f32[1,128], index: 2, kind: input, shape index: {}]   ;;  %s5915_s3 = inlined_call_operand.vmem [shape: f32[512,128], index: 3, kind: output, shape index: {}]  }
   0x1   :  { %1872 = vmatprep.subr.bf16.mxu0 %v4168_v0  ;;  %3631 = vmatprep.subr.bf16.mxu1 %v4168_v0  ;;  %v3664_v1 = vld [vmem:[%s5912_s1 + $0x38] sm:$0xff]   ;;  %v3665_v2 = vld [vmem:[%s5912_s1 + $0x30] sm:$0xff]   ;;  %v3666_v3 = vld [vmem:[%s5912_s1 + $0x28] sm:$0xff]  }
   0x2   :  { %1873 = vmatpush1.bf16.msra.mxu0 %v3664_v1  ;;  %3647 = vmatpush1.bf16.msra.mxu1 %v3664_v1  ;;  %v3667_v4 = vld [vmem:[%s5912_s1 + $0x20] sm:$0xff]   ;;  %v3668_v5 = vld [vmem:[%s5912_s1 + $0x18] sm:$0xff]   ;;  %v3669_v7 = vld [vmem:[%s5912_s1 + $0x10] sm:$0xff]  }
   0x3   :  { %1874 = vmatprep.subr.bf16.mxu0 %v4168_v0  ;;  %3632 = vmatprep.subr.bf16.mxu1 %v4168_v0  ;;  %v3682_v6 = vld [vmem:[%s5913_s0 + $0x4] ss:$28 sps:$4 sm:$0xff]   ;;  %v3670_v9 = vld [vmem:[%s5912_s1 + $0x8] sm:$0xff]   ;;  %v3672_v11 = vld [vmem:[%s5912_s1 + $0x78] sm:$0xff]  }
   0x4   :  { %v3685_v8 = vld [vmem:[%s5913_s0 + $0x544] ss:$28 sps:$4 sm:$0xff]   ;;  %1904 = vmatprep.mubr.bf16.mxu0 %v3682_v6  ;;  %v3673_v12 = vld [vmem:[%s5912_s1 + $0x70] sm:$0xff]   ;;  %v3674_v13 = vld [vmem:[%s5912_s1 + $0x68] sm:$0xff]  }
   0x5   :  { %2096 = vmatprep.mubr.bf16.mxu1 %v3685_v8  ;;  %v3671_v10 = vld [vmem:[%s5912_s1] sm:$0xff]   ;;  %v3676_v15 = vld [vmem:[%s5912_s1 + $0x58] sm:$0xff]   ;;  %v3677_v16 = vld [vmem:[%s5912_s1 + $0x50] sm:$0xff]  }
   0x6   :  { %1875 = vmatpush1.bf16.msra.mxu0 %v3665_v2  ;;  %3648 = vmatpush1.bf16.msra.mxu1 %v3665_v2  ;;  %v3675_v14 = vld [vmem:[%s5912_s1 + $0x60] sm:$0xff]   ;;  %v3678_v17 = vld [vmem:[%s5912_s1 + $0x48] sm:$0xff]   ;;  %v3686_v21 = vld [vmem:[%s5912_s1 + $0xb8] sm:$0xff]  }
   0x7   :  { %1876 = vmatprep.subr.bf16.mxu0 %v4168_v0  ;;  %3633 = vmatprep.subr.bf16.mxu1 %v4168_v0  ;;  %v3679_v18 = vld [vmem:[%s5912_s1 + $0x40] sm:$0xff]   ;;  %v3687_v22 = vld [vmem:[%s5912_s1 + $0x138] sm:$0xff]   ;;  %v3688_v25 = vld [vmem:[%s5912_s1 + $0xb0] sm:$0xff]  }
   0x8   :  { %v3680_v19 = vld [vmem:[%s5913_s0] ss:$28 sps:$4 sm:$0xff]   ;;  %v3697_v26 = vld [vmem:[%s5912_s1 + $0x130] sm:$0xff]   ;;  %v3695_v29 = vld [vmem:[%s5912_s1 + $0xa8] sm:$0xff]  }
   0x9   :  { %v3683_v20 = vld [vmem:[%s5913_s0 + $0x540] ss:$28 sps:$4 sm:$0xff]   ;;  %v3693_v27 = vld [vmem:[%s5913_s0 + $0x38] ss:$28 sps:$4 sm:$0xff]   ;;  %v3713_v32 = vld [vmem:[%s5912_s1 + $0x128] sm:$0xff]  }
   0xa   :  { %1877 = vmatpush1.bf16.msra.mxu0 %v3666_v3  ;;  %3649 = vmatpush1.bf16.msra.mxu1 %v3666_v3  ;;  %v3689_v23 = vld [vmem:[%s5913_s0 + $0x3c] ss:$28 sps:$4 sm:$0xff]   ;;  %v3698_v30 = vld [vmem:[%s5913_s0 + $0x74] ss:$28 sps:$4 sm:$0xff]   ;;  %v3696_v33 = vld [vmem:[%s5912_s1 + $0xa0] sm:$0xff]  }
   0xb   :  { %1878 = vmatprep.subr.bf16.mxu0 %v4168_v0  ;;  %3634 = vmatprep.subr.bf16.mxu1 %v4168_v0  ;;  %v3691_v24 = vld [vmem:[%s5913_s0 + $0x57c] ss:$28 sps:$4 sm:$0xff]   ;;  %v3700_v31 = vld [vmem:[%s5913_s0 + $0x5b4] ss:$28 sps:$4 sm:$0xff]   ;;  %v3723_v36 = vld [vmem:[%s5912_s1 + $0x120] sm:$0xff]  }
   0xc   :  { %v3694_v28 = vld [vmem:[%s5913_s0 + $0x578] ss:$28 sps:$4 sm:$0xff]   ;;  %v3702_v34 = vld [vmem:[%s5913_s0 + $0x70] ss:$28 sps:$4 sm:$0xff]   ;;  %v3710_v42 = vld [vmem:[%s5913_s0 + $0xa8] ss:$28 sps:$4 sm:$0xff]  }
   0xd   :  { %v3703_v35 = vld [vmem:[%s5913_s0 + $0x5b0] ss:$28 sps:$4 sm:$0xff]   ;;  %v3704_v37 = vld [vmem:[%s5912_s1 + $0x98] sm:$0xff]   ;;  %v3711_v43 = vld [vmem:[%s5913_s0 + $0x5e8] ss:$28 sps:$4 sm:$0xff]  }
   0xe   :  { %1879 = vmatpush1.bf16.msra.mxu0 %v3667_v4  ;;  %3650 = vmatpush1.bf16.msra.mxu1 %v3667_v4  ;;  %v3706_v38 = vld [vmem:[%s5913_s0 + $0xac] ss:$28 sps:$4 sm:$0xff]   ;;  %v3739_v40 = vld [vmem:[%s5912_s1 + $0x118] sm:$0xff]   ;;  %v3705_v41 = vld [vmem:[%s5912_s1 + $0x90] sm:$0xff]  }
   0xf   :  { %1880 = vmatprep.subr.bf16.mxu0 %v4168_v0  ;;  %3635 = vmatprep.subr.bf16.mxu1 %v4168_v0  ;;  %v3708_v39 = vld [vmem:[%s5913_s0 + $0x5ec] ss:$28 sps:$4 sm:$0xff]   ;;  %v3715_v45 = vld [vmem:[%s5913_s0 + $0xe4] ss:$28 sps:$4 sm:$0xff]   ;;  %v3749_v47 = vld [vmem:[%s5912_s1 + $0x110] sm:$0xff]  }
  0x10   :  { %v3712_v44 = vld [vmem:[%s5912_s1 + $0x88] sm:$0xff]   ;;  %v3717_v46 = vld [vmem:[%s5913_s0 + $0x624] ss:$28 sps:$4 sm:$0xff]   ;;  %v3721_v52 = vld [vmem:[%s5912_s1 + $0xf8] sm:$0xff]  }
  0x11   :  { %v3714_v48 = vld [vmem:[%s5912_s1 + $0x80] sm:$0xff]   ;;  %v3763_v50 = vld [vmem:[%s5912_s1 + $0x108] sm:$0xff]   ;;  %v3724_v53 = vld [vmem:[%s5913_s0 + $0x11c] ss:$28 sps:$4 sm:$0xff]  }
  0x12   :  { %1881 = vmatpush1.bf16.msra.mxu0 %v3668_v5  ;;  %3651 = vmatpush1.bf16.msra.mxu1 %v3668_v5  ;;  %v3719_v49 = vld [vmem:[%s5913_s0 + $0xe0] ss:$28 sps:$4 sm:$0xff]   ;;  %v3722_v56 = vld [vmem:[%s5912_s1 + $0xf0] sm:$0xff]   ;;  %v3730_v59 = vld [vmem:[%s5912_s1 + $0xe8] sm:$0xff]  }
  0x13   :  { %1882 = vmatprep.subr.bf16.mxu0 %v4168_v0  ;;  %3636 = vmatprep.subr.bf16.mxu1 %v4168_v0  ;;  %v3720_v51 = vld [vmem:[%s5913_s0 + $0x620] ss:$28 sps:$4 sm:$0xff]   ;;  %v3728_v57 = vld [vmem:[%s5913_s0 + $0x118] ss:$28 sps:$4 sm:$0xff]   ;;  %v3736_v1 = vld [vmem:[%s5913_s0 + $0x150] ss:$28 sps:$4 sm:$0xff]  }
  0x14   :  { %v3726_v54 = vld [vmem:[%s5913_s0 + $0x65c] ss:$28 sps:$4 sm:$0xff]   ;;  %v3770_v55 = vld [vmem:[%s5912_s1 + $0x100] sm:$0xff]   ;;  %v3732_v60 = vld [vmem:[%s5913_s0 + $0x154] ss:$28 sps:$4 sm:$0xff]  }
  0x15   :  { %v3729_v58 = vld [vmem:[%s5913_s0 + $0x658] ss:$28 sps:$4 sm:$0xff]   ;;  %v3731_v63 = vld [vmem:[%s5912_s1 + $0xe0] sm:$0xff]   ;;  %v3737_v2 = vld [vmem:[%s5913_s0 + $0x690] ss:$28 sps:$4 sm:$0xff]  }
  0x16   :  { %1883 = vmatpush1.bf16.msra.mxu0 %v3669_v7  ;;  %3652 = vmatpush1.bf16.msra.mxu1 %v3669_v7  ;;  %v3734_v61 = vld [vmem:[%s5913_s0 + $0x694] ss:$28 sps:$4 sm:$0xff]   ;;  %v3784_v62 = vld [vmem:[%s5912_s1 + $0x178] sm:$0xff]   ;;  %v3741_v5 = vld [vmem:[%s5913_s0 + $0x18c] ss:$28 sps:$4 sm:$0xff]  }
  0x17   :  { %1884 = vmatprep.subr.bf16.mxu0 %v4168_v0  ;;  %3637 = vmatprep.subr.bf16.mxu1 %v4168_v0  ;;  %v3791_v3 = vld [vmem:[%s5912_s1 + $0x170] sm:$0xff]   ;;  %v3738_v4 = vld [vmem:[%s5912_s1 + $0xd8] sm:$0xff]   ;;  %v3743_v6 = vld [vmem:[%s5913_s0 + $0x6cc] ss:$28 sps:$4 sm:$0xff]  }
  0x18   :  { %v3804_v7 = vld [vmem:[%s5912_s1 + $0x168] sm:$0xff]   ;;  %v3740_v8 = vld [vmem:[%s5912_s1 + $0xd0] sm:$0xff]  }
  0x1a   :  { %1885 = vmatpush1.bf16.msra.mxu0 %v3670_v9  ;;  %3653 = vmatpush1.bf16.msra.mxu1 %v3670_v9  ;;  %v3745_v9 = vld [vmem:[%s5913_s0 + $0x188] ss:$28 sps:$4 sm:$0xff]  }
  0x1b   :  { %1886 = vmatprep.subr.bf16.mxu0 %v4168_v0  ;;  %3638 = vmatprep.subr.bf16.mxu1 %v4168_v0 }
  0x1e   :  { %1887 = vmatpush1.bf16.msra.mxu0 %v3671_v10  ;;  %3654 = vmatpush1.bf16.msra.mxu1 %v3671_v10  ;;  %v3746_v10 = vld [vmem:[%s5913_s0 + $0x6c8] ss:$28 sps:$4 sm:$0xff]  }
  0x1f   :  { %1888 = vmatprep.subr.bf16.mxu0 %v4168_v0  ;;  %3639 = vmatprep.subr.bf16.mxu1 %v4168_v0 }
  0x22   :  { %1889 = vmatpush2.bf16.msra.mxu0 %v3672_v11  ;;  %3655 = vmatpush2.bf16.msra.mxu1 %v3672_v11  ;;  %v3747_v11 = vld [vmem:[%s5912_s1 + $0xc8] sm:$0xff]  }
  0x23   :  { %1890 = vmatprep.subr.bf16.mxu0 %v4168_v0  ;;  %3640 = vmatprep.subr.bf16.mxu1 %v4168_v0 }
  0x26   :  { %1891 = vmatpush2.bf16.msra.mxu0 %v3673_v12  ;;  %3656 = vmatpush2.bf16.msra.mxu1 %v3673_v12  ;;  %v3750_v12 = vld [vmem:[%s5913_s0 + $0x1c4] ss:$28 sps:$4 sm:$0xff]  }
  0x27   :  { %1892 = vmatprep.subr.bf16.mxu0 %v4168_v0  ;;  %3641 = vmatprep.subr.bf16.mxu1 %v4168_v0 }
  0x2a   :  { %1893 = vmatpush2.bf16.msra.mxu0 %v3674_v13  ;;  %3657 = vmatpush2.bf16.msra.mxu1 %v3674_v13  ;;  %v3754_v13 = vld [vmem:[%s5913_s0 + $0xc] ss:$28 sps:$4 sm:$0xff]  }
  0x2b   :  { %1894 = vmatprep.subr.bf16.mxu0 %v4168_v0  ;;  %3642 = vmatprep.subr.bf16.mxu1 %v4168_v0 }
  0x2e   :  { %1895 = vmatpush2.bf16.msra.mxu0 %v3675_v14  ;;  %3658 = vmatpush2.bf16.msra.mxu1 %v3675_v14  ;;  %v3812_v14 = vld [vmem:[%s5912_s1 + $0x160] sm:$0xff]  }
  0x2f   :  { %1896 = vmatprep.subr.bf16.mxu0 %v4168_v0  ;;  %3643 = vmatprep.subr.bf16.mxu1 %v4168_v0 }
  0x32   :  { %1897 = vmatpush2.bf16.msra.mxu0 %v3676_v15  ;;  %3659 = vmatpush2.bf16.msra.mxu1 %v3676_v15  ;;  %v3748_v15 = vld [vmem:[%s5912_s1 + $0xc0] sm:$0xff]  }
  0x33   :  { %1898 = vmatprep.subr.bf16.mxu0 %v4168_v0  ;;  %3644 = vmatprep.subr.bf16.mxu1 %v4168_v0 }
  0x36   :  { %1899 = vmatpush2.bf16.msra.mxu0 %v3677_v16  ;;  %3660 = vmatpush2.bf16.msra.mxu1 %v3677_v16  ;;  %v3756_v16 = vld [vmem:[%s5912_s1 + $0x1b8] sm:$0xff]  }
  0x37   :  { %1900 = vmatprep.subr.bf16.mxu0 %v4168_v0  ;;  %3645 = vmatprep.subr.bf16.mxu1 %v4168_v0 }
  0x3a   :  { %1901 = vmatpush2.bf16.msra.mxu0 %v3678_v17  ;;  %3661 = vmatpush2.bf16.msra.mxu1 %v3678_v17  ;;  %v3825_v17 = vld [vmem:[%s5912_s1 + $0x158] sm:$0xff]  }
  0x3b   :  { %1902 = vmatprep.subr.bf16.mxu0 %v4168_v0  ;;  %3646 = vmatprep.subr.bf16.mxu1 %v4168_v0 }
  0x3e   :  { %1903 = vmatpush2.bf16.msra.mxu0 %v3679_v18  ;;  %3662 = vmatpush2.bf16.msra.mxu1 %v3679_v18  ;;  %v3752_v18 = vld [vmem:[%s5913_s0 + $0x8] ss:$28 sps:$4 sm:$0xff]  }
  0x3f   :  { %2161 = vmatprep.subr.bf16.mxu1 %v4168_v0  ;;  %2450 = vmatprep.subr.bf16.mxu0 %v4168_v0 }
  0x41   :  { %1905 = vmatmul.mubr.bf16.vlgmr.msra.gmra.mxu0 %v3680_v19  ;;  %2097 = vmatmul.mubr.bf16.vlgmr.msra.gmra.mxu1 %v3683_v20  ;;  %v3755_v19 = vld [vmem:[%s5913_s0 + $0x1c0] ss:$28 sps:$4 sm:$0xff]  }
  0x42   :  { %2162 = vmatpush1.bf16.msra.mxu1 %v3686_v21  ;;  %2451 = vmatpush1.bf16.msra.mxu0 %v3687_v22  ;;  %v3757_v20 = vld [vmem:[%s5913_s0 + $0x1fc] ss:$28 sps:$4 sm:$0xff]   ;;  %v3759_v21 = vld [vmem:[%s5913_s0 + $0x44] ss:$28 sps:$4 sm:$0xff]   ;;  %v3783_v22 = vld [vmem:[%s5912_s1 + $0x1b0] sm:$0xff]  }
  0x43   :  { %2163 = vmatprep.subr.bf16.mxu1 %v4168_v0  ;;  %1912 = vmatprep.mubr.bf16.mxu0 %v3689_v23  ;;  %v3811_v23 = vld [vmem:[%s5912_s1 + $0x1a8] sm:$0xff]  }
  0x44   :  { %2104 = vmatprep.mubr.bf16.mxu1 %v3691_v24  ;;  %2452 = vmatprep.subr.bf16.mxu0 %v4168_v0  ;;  %v3832_v24 = vld [vmem:[%s5912_s1 + $0x150] sm:$0xff]  }
  0x46   :  { %2164 = vmatpush1.bf16.msra.mxu1 %v3688_v25  ;;  %2453 = vmatpush1.bf16.msra.mxu0 %v3697_v26  ;;  %v3761_v25 = vld [vmem:[%s5913_s0 + $0x1f8] ss:$28 sps:$4 sm:$0xff]   ;;  %v3762_v26 = vld [vmem:[%s5913_s0 + $0x40] ss:$28 sps:$4 sm:$0xff]  }
  0x47   :  { %2165 = vmatprep.subr.bf16.mxu1 %v4168_v0  ;;  %2454 = vmatprep.subr.bf16.mxu0 %v4168_v0 }
  0x49   :  { %1913 = vmatmul.mubr.bf16.gmra.mxu0 %v3693_v27  ;;  %2105 = vmatmul.mubr.bf16.gmra.mxu1 %v3694_v28  ;;  %v3764_v27 = vld [vmem:[%s5913_s0 + $0x234] ss:$28 sps:$4 sm:$0xff]   ;;  %v3766_v28 = vld [vmem:[%s5913_s0 + $0x7c] ss:$28 sps:$4 sm:$0xff]  }
  0x4a   :  { %2166 = vmatpush1.bf16.msra.mxu1 %v3695_v29  ;;  %1920 = vmatprep.mubr.bf16.mxu0 %v3698_v30  ;;  %v3839_v29 = vld [vmem:[%s5912_s1 + $0x1a0] sm:$0xff]   ;;  %v3846_v30 = vld [vmem:[%s5912_s1 + $0x148] sm:$0xff]  }
  0x4b   :  { %2167 = vmatprep.subr.bf16.mxu1 %v4168_v0  ;;  %2112 = vmatprep.mubr.bf16.mxu1 %v3700_v31  ;;  %v3853_v31 = vld [vmem:[%s5912_s1 + $0x140] sm:$0xff]  }
  0x4c   :  { %2455 = vmatpush1.bf16.msra.mxu0 %v3713_v32  ;;  %v3866_v32 = vld [vmem:[%s5912_s1 + $0x198] sm:$0xff]  }
  0x4d   :  { %2456 = vmatprep.subr.bf16.mxu0 %v4168_v0 }
  0x4e   :  { %2168 = vmatpush1.bf16.msra.mxu1 %v3696_v33  ;;  %v3768_v33 = vld [vmem:[%s5913_s0 + $0x230] ss:$28 sps:$4 sm:$0xff]  }
  0x4f   :  { %2169 = vmatprep.subr.bf16.mxu1 %v4168_v0 }
  0x50   :  { %2457 = vmatpush1.bf16.msra.mxu0 %v3723_v36  ;;  %v3773_v36 = vld [vmem:[%s5913_s0 + $0xb4] ss:$28 sps:$4 sm:$0xff]  }
  0x51   :  { %1921 = vmatmul.mubr.bf16.gmra.mxu0 %v3702_v34  ;;  %2113 = vmatmul.mubr.bf16.gmra.mxu1 %v3703_v35  ;;  %v3769_v34 = vld [vmem:[%s5913_s0 + $0x78] ss:$28 sps:$4 sm:$0xff]   ;;  %v3771_v35 = vld [vmem:[%s5913_s0 + $0x26c] ss:$28 sps:$4 sm:$0xff]  }
  0x52   :  { %2170 = vmatpush1.bf16.msra.mxu1 %v3704_v37  ;;  %1928 = vmatprep.mubr.bf16.mxu0 %v3706_v38  ;;  %v3775_v37 = vld [vmem:[%s5913_s0 + $0x268] ss:$28 sps:$4 sm:$0xff]  }
  0x53   :  { %2171 = vmatprep.subr.bf16.mxu1 %v4168_v0  ;;  %2120 = vmatprep.mubr.bf16.mxu1 %v3708_v39  ;;  %v3777_v38 = vld [vmem:[%s5913_s0 + $0x2a4] ss:$28 sps:$4 sm:$0xff]   ;;  %v3779_v39 = vld [vmem:[%s5913_s0 + $0xec] ss:$28 sps:$4 sm:$0xff]  }
  0x54   :  { %2458 = vmatprep.subr.bf16.mxu0 %v4168_v0 }
  0x55   :  { %2459 = vmatpush1.bf16.msra.mxu0 %v3739_v40  ;;  %v3781_v40 = vld [vmem:[%s5913_s0 + $0x2a0] ss:$28 sps:$4 sm:$0xff]  }
  0x56   :  { %2172 = vmatpush1.bf16.msra.mxu1 %v3705_v41  ;;  %2460 = vmatprep.subr.bf16.mxu0 %v4168_v0  ;;  %v3782_v41 = vld [vmem:[%s5913_s0 + $0xe8] ss:$28 sps:$4 sm:$0xff]  }
  0x57   :  { %2173 = vmatprep.subr.bf16.mxu1 %v4168_v0 }
  0x59   :  { %1929 = vmatmul.mubr.bf16.gmra.mxu0 %v3710_v42  ;;  %2121 = vmatmul.mubr.bf16.gmra.mxu1 %v3711_v43  ;;  %v3785_v42 = vld [vmem:[%s5913_s0 + $0x2dc] ss:$28 sps:$4 sm:$0xff]   ;;  %v3787_v43 = vld [vmem:[%s5913_s0 + $0x124] ss:$28 sps:$4 sm:$0xff]  }
  0x5a   :  { %2174 = vmatpush1.bf16.msra.mxu1 %v3712_v44  ;;  %1936 = vmatprep.mubr.bf16.mxu0 %v3715_v45  ;;  %v3891_v44 = vld [vmem:[%s5912_s1 + $0x190] sm:$0xff]  }
  0x5b   :  { %2175 = vmatprep.subr.bf16.mxu1 %v4168_v0  ;;  %2128 = vmatprep.mubr.bf16.mxu1 %v3717_v46  ;;  %v3789_v45 = vld [vmem:[%s5913_s0 + $0x2d8] ss:$28 sps:$4 sm:$0xff]   ;;  %v3790_v46 = vld [vmem:[%s5913_s0 + $0x120] ss:$28 sps:$4 sm:$0xff]  }
  0x5c   :  { %2461 = vmatpush1.bf16.msra.mxu0 %v3749_v47  ;;  %v3792_v47 = vld [vmem:[%s5913_s0 + $0x314] ss:$28 sps:$4 sm:$0xff]  }
  0x5d   :  { %2462 = vmatprep.subr.bf16.mxu0 %v4168_v0 }
  0x5e   :  { %2176 = vmatpush1.bf16.msra.mxu1 %v3714_v48  ;;  %v3794_v48 = vld [vmem:[%s5913_s0 + $0x15c] ss:$28 sps:$4 sm:$0xff]  }
  0x5f   :  { %2177 = vmatprep.subr.bf16.mxu1 %v4168_v0 }
  0x60   :  { %2463 = vmatpush1.bf16.msra.mxu0 %v3763_v50  ;;  %v3797_v50 = vld [vmem:[%s5913_s0 + $0x158] ss:$28 sps:$4 sm:$0xff]  }
  0x61   :  { %1937 = vmatmul.mubr.bf16.gmra.mxu0 %v3719_v49  ;;  %2129 = vmatmul.mubr.bf16.gmra.mxu1 %v3720_v51  ;;  %v3796_v49 = vld [vmem:[%s5913_s0 + $0x310] ss:$28 sps:$4 sm:$0xff]  }
  0x62   :  { %2178 = vmatpush2.bf16.msra.mxu1 %v3721_v52  ;;  %1944 = vmatprep.mubr.bf16.mxu0 %v3724_v53  ;;  %v3798_v51 = vld [vmem:[%s5913_s0 + $0x34c] ss:$28 sps:$4 sm:$0xff]   ;;  %v3800_v52 = vld [vmem:[%s5913_s0 + $0x194] ss:$28 sps:$4 sm:$0xff]  }
  0x63   :  { %2179 = vmatprep.subr.bf16.mxu1 %v4168_v0  ;;  %2136 = vmatprep.mubr.bf16.mxu1 %v3726_v54  ;;  %v3802_v53 = vld [vmem:[%s5913_s0 + $0x348] ss:$28 sps:$4 sm:$0xff]   ;;  %v3803_v54 = vld [vmem:[%s5913_s0 + $0x190] ss:$28 sps:$4 sm:$0xff]  }
  0x64   :  { %2464 = vmatprep.subr.bf16.mxu0 %v4168_v0 }
  0x65   :  { %2465 = vmatpush1.bf16.msra.mxu0 %v3770_v55  ;;  %v3805_v55 = vld [vmem:[%s5913_s0 + $0x384] ss:$28 sps:$4 sm:$0xff]  }
  0x66   :  { %2180 = vmatpush2.bf16.msra.mxu1 %v3722_v56  ;;  %2466 = vmatprep.subr.bf16.mxu0 %v4168_v0  ;;  %v3807_v56 = vld [vmem:[%s5913_s0 + $0x1cc] ss:$28 sps:$4 sm:$0xff]  }
  0x67   :  { %2181 = vmatprep.subr.bf16.mxu1 %v4168_v0 }
  0x69   :  { %1945 = vmatmul.mubr.bf16.gmra.mxu0 %v3728_v57  ;;  %2137 = vmatmul.mubr.bf16.gmra.mxu1 %v3729_v58  ;;  %v3809_v57 = vld [vmem:[%s5913_s0 + $0x380] ss:$28 sps:$4 sm:$0xff]   ;;  %v3810_v58 = vld [vmem:[%s5913_s0 + $0x1c8] ss:$28 sps:$4 sm:$0xff]  }
  0x6a   :  { %2182 = vmatpush2.bf16.msra.mxu1 %v3730_v59  ;;  %1952 = vmatprep.mubr.bf16.mxu0 %v3732_v60  ;;  %v3813_v59 = vld [vmem:[%s5913_s0 + $0x3bc] ss:$28 sps:$4 sm:$0xff]   ;;  %v3815_v60 = vld [vmem:[%s5913_s0 + $0x204] ss:$28 sps:$4 sm:$0xff]  }
  0x6b   :  { %2183 = vmatprep.subr.bf16.mxu1 %v4168_v0  ;;  %2144 = vmatprep.mubr.bf16.mxu1 %v3734_v61  ;;  %v3916_v61 = vld [vmem:[%s5912_s1 + $0x188] sm:$0xff]  }
  0x6c   :  { %2467 = vmatpush2.bf16.msra.mxu0 %v3784_v62  ;;  %v3817_v62 = vld [vmem:[%s5913_s0 + $0x3b8] ss:$28 sps:$4 sm:$0xff]  }
  0x6d   :  { %2468 = vmatprep.subr.bf16.mxu0 %v4168_v0 }
  0x6e   :  { %2184 = vmatpush2.bf16.msra.mxu1 %v3731_v63  ;;  %v3818_v63 = vld [vmem:[%s5913_s0 + $0x200] ss:$28 sps:$4 sm:$0xff]  }
  0x6f   :  { %2185 = vmatprep.subr.bf16.mxu1 %v4168_v0 }
  0x70   :  { %2469 = vmatpush2.bf16.msra.mxu0 %v3791_v3  ;;  %v3823_v3 = vld [vmem:[%s5913_s0 + $0x3f0] ss:$28 sps:$4 sm:$0xff]  }
  0x71   :  { %1953 = vmatmul.mubr.bf16.gmra.mxu0 %v3736_v1  ;;  %2145 = vmatmul.mubr.bf16.gmra.mxu1 %v3737_v2  ;;  %v3819_v1 = vld [vmem:[%s5913_s0 + $0x3f4] ss:$28 sps:$4 sm:$0xff]   ;;  %v3821_v2 = vld [vmem:[%s5913_s0 + $0x23c] ss:$28 sps:$4 sm:$0xff]  }
  0x72   :  { %2186 = vmatpush2.bf16.msra.mxu1 %v3738_v4  ;;  %1960 = vmatprep.mubr.bf16.mxu0 %v3741_v5  ;;  %v3824_v4 = vld [vmem:[%s5913_s0 + $0x238] ss:$28 sps:$4 sm:$0xff]   ;;  %v3826_v5 = vld [vmem:[%s5913_s0 + $0x42c] ss:$28 sps:$4 sm:$0xff]  }
  0x73   :  { %2187 = vmatprep.subr.bf16.mxu1 %v4168_v0  ;;  %2152 = vmatprep.mubr.bf16.mxu1 %v3743_v6  ;;  %v3828_v6 = vld [vmem:[%s5913_s0 + $0x274] ss:$28 sps:$4 sm:$0xff]  }
  0x74   :  { %2470 = vmatprep.subr.bf16.mxu0 %v4168_v0 }
  0x75   :  { %2471 = vmatpush2.bf16.msra.mxu0 %v3804_v7  ;;  %v3830_v7 = vld [vmem:[%s5913_s0 + $0x428] ss:$28 sps:$4 sm:$0xff]  }
  0x76   :  { %2188 = vmatpush2.bf16.msra.mxu1 %v3740_v8  ;;  %2472 = vmatprep.subr.bf16.mxu0 %v4168_v0  ;;  %v3831_v8 = vld [vmem:[%s5913_s0 + $0x270] ss:$28 sps:$4 sm:$0xff]  }
  0x77   :  { %2189 = vmatprep.subr.bf16.mxu1 %v4168_v0 }
  0x79   :  { %1961 = vmatmul.mubr.bf16.gmra.mxu0 %v3745_v9  ;;  %2153 = vmatmul.mubr.bf16.gmra.mxu1 %v3746_v10  ;;  %v3833_v9 = vld [vmem:[%s5913_s0 + $0x464] ss:$28 sps:$4 sm:$0xff]   ;;  %v3835_v10 = vld [vmem:[%s5913_s0 + $0x2ac] ss:$28 sps:$4 sm:$0xff]  }
  0x7a   :  { %2190 = vmatpush2.bf16.msra.mxu1 %v3747_v11  ;;  %1968 = vmatprep.mubr.bf16.mxu0 %v3750_v12  ;;  %v3837_v11 = vld [vmem:[%s5913_s0 + $0x460] ss:$28 sps:$4 sm:$0xff]   ;;  %v3838_v12 = vld [vmem:[%s5913_s0 + $0x2a8] ss:$28 sps:$4 sm:$0xff]  }
  0x7b   :  { %2191 = vmatprep.subr.bf16.mxu1 %v4168_v0  ;;  %2193 = vmatprep.mubr.bf16.mxu1 %v3754_v13  ;;  %v3840_v13 = vld [vmem:[%s5913_s0 + $0x49c] ss:$28 sps:$4 sm:$0xff]  }
  0x7c   :  { %2473 = vmatpush2.bf16.msra.mxu0 %v3812_v14  ;;  %v3842_v14 = vld [vmem:[%s5913_s0 + $0x2e4] ss:$28 sps:$4 sm:$0xff]  }
  0x7d   :  { %2474 = vmatprep.subr.bf16.mxu0 %v4168_v0 }
  0x7e   :  { %2192 = vmatpush2.bf16.msra.mxu1 %v3748_v15  ;;  %v3941_v15 = vld [vmem:[%s5912_s1 + $0x180] sm:$0xff]  }
  0x7f   :  { %3551 = vmatprep.subr.bf16.mxu1 %v3756_v16 }
  0x80   :  { %2475 = vmatpush2.bf16.msra.mxu0 %v3825_v17  ;;  %v3845_v17 = vld [vmem:[%s5913_s0 + $0x2e0] ss:$28 sps:$4 sm:$0xff]  }
  0x81   :  { %1969 = vmatmul.mubr.bf16.gmra.mxu0 %v3755_v19  ;;  %2194 = vmatmul.mubr.bf16.vlgmr.msra.gmra.mxu1 %v3752_v18  ;;  %v3847_v18 = vld [vmem:[%s5913_s0 + $0x4d4] ss:$28 sps:$4 sm:$0xff]   ;;  %v3849_v19 = vld [vmem:[%s5913_s0 + $0x31c] ss:$28 sps:$4 sm:$0xff]  }
  0x82   :  { %3552 = vmatpush3.bf16.msra.mxu1 %v3756_v16  ;;  %1976 = vmatprep.mubr.bf16.mxu0 %v3757_v20  ;;  %v3844_v16 = vld [vmem:[%s5913_s0 + $0x498] ss:$28 sps:$4 sm:$0xff]   ;;  %v3851_v20 = vld [vmem:[%s5913_s0 + $0x4d0] ss:$28 sps:$4 sm:$0xff]  }
  0x83   :  { %2201 = vmatprep.mubr.bf16.mxu1 %v3759_v21  ;;  %3553 = vmatprep.subr.bf16.mxu1 %v3783_v22  ;;  %v3852_v21 = vld [vmem:[%s5913_s0 + $0x318] ss:$28 sps:$4 sm:$0xff]  }
  0x84   :  { %2476 = vmatprep.subr.bf16.mxu0 %v4168_v0 }
  0x85   :  { %2477 = vmatpush2.bf16.msra.mxu0 %v3832_v24  ;;  %v3858_v24 = vld [vmem:[%s5913_s0 + $0x508] ss:$28 sps:$4 sm:$0xff]  }
  0x86   :  { %3554 = vmatpush3.bf16.msra.mxu1 %v3783_v22  ;;  %2478 = vmatprep.subr.bf16.mxu0 %v4168_v0  ;;  %v3854_v22 = vld [vmem:[%s5913_s0 + $0x50c] ss:$28 sps:$4 sm:$0xff]  }
  0x87   :  { %3555 = vmatprep.subr.bf16.mxu1 %v3811_v23 }
  0x89   :  { %1977 = vmatmul.mubr.bf16.gmra.mxu0 %v3761_v25  ;;  %2202 = vmatmul.mubr.bf16.gmra.mxu1 %v3762_v26  ;;  %v3859_v25 = vld [vmem:[%s5913_s0 + $0x350] ss:$28 sps:$4 sm:$0xff]  }
  0x8a   :  { %1984 = vmatprep.mubr.bf16.mxu0 %v3764_v27  ;;  %2209 = vmatprep.mubr.bf16.mxu1 %v3766_v28  ;;  %v3860_v26 = vld [vmem:[%s5913_s0 + $0x38c] ss:$28 sps:$4 sm:$0xff]   ;;  %v3864_v27 = vld [vmem:[%s5913_s0 + $0x14] ss:$28 sps:$4 sm:$0xff]  }
  0x8b   :  { %3556 = vmatpush3.bf16.msra.mxu1 %v3811_v23  ;;  %2479 = vmatpush2.bf16.msra.mxu0 %v3846_v30  ;;  %v3856_v23 = vld [vmem:[%s5913_s0 + $0x354] ss:$28 sps:$4 sm:$0xff]   ;;  %v3867_v30 = vld [vmem:[%s5913_s0 + $0x3c4] ss:$28 sps:$4 sm:$0xff]  }
  0x8c   :  { %3557 = vmatprep.subr.bf16.mxu1 %v3839_v29  ;;  %2480 = vmatprep.subr.bf16.mxu0 %v4168_v0  ;;  %v3776_v0 = vld [vmem:[%s5913_s0 + $0xb0] ss:$28 sps:$4 sm:$0xff]  }
  0x8d   :  { %v3862_v28 = vld [vmem:[%s5913_s0 + $0x10] ss:$28 sps:$4 sm:$0xff]  }
  0x8f   :  { %3558 = vmatpush3.bf16.msra.mxu1 %v3839_v29  ;;  %2481 = vmatpush2.bf16.msra.mxu0 %v3853_v31  ;;  %v3865_v29 = vld [vmem:[%s5913_s0 + $0x388] ss:$28 sps:$4 sm:$0xff]  }
  0x90   :  { %3559 = vmatprep.subr.bf16.mxu1 %v3866_v32  ;;  %v3869_v31 = vld [vmem:[%s5913_s0 + $0x4c] ss:$28 sps:$4 sm:$0xff]  }
  0x91   :  { %1985 = vmatmul.mubr.bf16.gmra.mxu0 %v3768_v33  ;;  %2210 = vmatmul.mubr.bf16.gmra.mxu1 %v3769_v34 }
  0x92   :  { %1992 = vmatprep.mubr.bf16.mxu0 %v3771_v35  ;;  %2217 = vmatprep.mubr.bf16.mxu1 %v3773_v36 }
  0x93   :  { %3560 = vmatpush3.bf16.msra.mxu1 %v3866_v32 }
  0x94   :  { %3561 = vmatprep.subr.bf16.mxu1 %v3891_v44 }
  0x97   :  { %3562 = vmatpush3.bf16.msra.mxu1 %v3891_v44 }
  0x98   :  { %3563 = vmatprep.subr.bf16.mxu1 %v3916_v61 }
  0x99   :  { %1993 = vmatmul.mubr.bf16.gmra.mxu0 %v3775_v37  ;;  %2218 = vmatmul.mubr.bf16.gmra.mxu1 %v3776_v0  ;;  %v3871_v0 = vld [vmem:[%s5913_s0 + $0x3c0] ss:$28 sps:$4 sm:$0xff]  }
  0x9a   :  { %2000 = vmatprep.mubr.bf16.mxu0 %v3777_v38  ;;  %2225 = vmatprep.mubr.bf16.mxu1 %v3779_v39  ;;  %v3872_v38 = vld [vmem:[%s5913_s0 + $0x48] ss:$28 sps:$4 sm:$0xff]   ;;  %v3873_v39 = vld [vmem:[%s5913_s0 + $0x3fc] ss:$28 sps:$4 sm:$0xff]  }
  0x9b   :  { %3564 = vmatpush3.bf16.msra.mxu1 %v3916_v61  ;;  %v3883_v61 = vld [vmem:[%s5913_s0 + $0x430] ss:$28 sps:$4 sm:$0xff]  }
  0x9c   :  { %3565 = vmatprep.subr.bf16.mxu1 %v3941_v15 }
  0x9f   :  { %3566 = vmatpush3.bf16.msra.mxu1 %v3941_v15 }
  0xa1   :  { %2001 = vmatmul.mubr.bf16.gmra.mxu0 %v3781_v40  ;;  %2226 = vmatmul.mubr.bf16.gmra.mxu1 %v3782_v41  ;;  %v3875_v40 = vld [vmem:[%s5913_s0 + $0x84] ss:$28 sps:$4 sm:$0xff]  }
  0xa2   :  { %2008 = vmatprep.mubr.bf16.mxu0 %v3785_v42  ;;  %2233 = vmatprep.mubr.bf16.mxu1 %v3787_v43 }
  0xa9   :  { %2009 = vmatmul.mubr.bf16.gmra.mxu0 %v3789_v45  ;;  %2234 = vmatmul.mubr.bf16.gmra.mxu1 %v3790_v46 }
  0xaa   :  { %2016 = vmatprep.mubr.bf16.mxu0 %v3792_v47  ;;  %2241 = vmatprep.mubr.bf16.mxu1 %v3794_v48 }
  0xb1   :  { %2017 = vmatmul.mubr.bf16.gmra.mxu0 %v3796_v49  ;;  %2242 = vmatmul.mubr.bf16.gmra.mxu1 %v3797_v50  ;;  %v3877_v49 = vld [vmem:[%s5913_s0 + $0x3f8] ss:$28 sps:$4 sm:$0xff]   ;;  %v3878_v50 = vld [vmem:[%s5913_s0 + $0x80] ss:$28 sps:$4 sm:$0xff]  }
  0xb2   :  { %2024 = vmatprep.mubr.bf16.mxu0 %v3798_v51  ;;  %2249 = vmatprep.mubr.bf16.mxu1 %v3800_v52  ;;  %v3879_v51 = vld [vmem:[%s5913_s0 + $0x434] ss:$28 sps:$4 sm:$0xff]   ;;  %v3881_v52 = vld [vmem:[%s5913_s0 + $0xbc] ss:$28 sps:$4 sm:$0xff]  }
  0xb9   :  { %2025 = vmatmul.mubr.bf16.gmra.mxu0 %v3802_v53  ;;  %2250 = vmatmul.mubr.bf16.gmra.mxu1 %v3803_v54 }
  0xba   :  { %2032 = vmatprep.mubr.bf16.mxu0 %v3805_v55  ;;  %2257 = vmatprep.mubr.bf16.mxu1 %v3807_v56 }
  0xc1   :  { %2033 = vmatmul.mubr.bf16.gmra.mxu0 %v3809_v57  ;;  %2258 = vmatmul.mubr.bf16.gmra.mxu1 %v3810_v58 }
  0xc2   :  { %2040 = vmatprep.mubr.bf16.mxu0 %v3813_v59  ;;  %2265 = vmatprep.mubr.bf16.mxu1 %v3815_v60 }
  0xc9   :  { %2041 = vmatmul.mubr.bf16.gmra.mxu0 %v3817_v62  ;;  %2266 = vmatmul.mubr.bf16.gmra.mxu1 %v3818_v63  ;;  %v3884_v62 = vld [vmem:[%s5913_s0 + $0xb8] ss:$28 sps:$4 sm:$0xff]   ;;  %v3887_v63 = vld [vmem:[%s5913_s0 + $0x46c] ss:$28 sps:$4 sm:$0xff]  }
  0xca   :  { %2048 = vmatprep.mubr.bf16.mxu0 %v3819_v1  ;;  %2273 = vmatprep.mubr.bf16.mxu1 %v3821_v2  ;;  %v3890_v1 = vld [vmem:[%s5913_s0 + $0xf4] ss:$28 sps:$4 sm:$0xff]  }
  0xd1   :  { %2049 = vmatmul.mubr.bf16.gmra.mxu0 %v3823_v3  ;;  %2274 = vmatmul.mubr.bf16.gmra.mxu1 %v3824_v4 }
  0xd2   :  { %2056 = vmatprep.mubr.bf16.mxu0 %v3826_v5  ;;  %2281 = vmatprep.mubr.bf16.mxu1 %v3828_v6 }
  0xd9   :  { %2057 = vmatmul.mubr.bf16.gmra.mxu0 %v3830_v7  ;;  %2282 = vmatmul.mubr.bf16.gmra.mxu1 %v3831_v8 }
  0xda   :  { %2064 = vmatprep.mubr.bf16.mxu0 %v3833_v9  ;;  %2289 = vmatprep.mubr.bf16.mxu1 %v3835_v10  ;;  %v3885_v10 = vld [vmem:[%s5913_s0 + $0x468] ss:$28 sps:$4 sm:$0xff]  }
  0xe1   :  { %2065 = vmatmul.mubr.bf16.gmra.mxu0 %v3837_v11  ;;  %2290 = vmatmul.mubr.bf16.gmra.mxu1 %v3838_v12  ;;  %v3888_v11 = vld [vmem:[%s5913_s0 + $0xf0] ss:$28 sps:$4 sm:$0xff]   ;;  %v3894_v12 = vld [vmem:[%s5913_s0 + $0x4a4] ss:$28 sps:$4 sm:$0xff]  }
  0xe2   :  { %2072 = vmatprep.mubr.bf16.mxu0 %v3840_v13  ;;  %2297 = vmatprep.mubr.bf16.mxu1 %v3842_v14  ;;  %v3897_v13 = vld [vmem:[%s5913_s0 + $0x12c] ss:$28 sps:$4 sm:$0xff]  }
  0xe9   :  { %2073 = vmatmul.mubr.bf16.gmra.mxu0 %v3844_v16  ;;  %2298 = vmatmul.mubr.bf16.gmra.mxu1 %v3845_v17 }
  0xea   :  { %2080 = vmatprep.mubr.bf16.mxu0 %v3847_v18  ;;  %2305 = vmatprep.mubr.bf16.mxu1 %v3849_v19 }
  0xf1   :  { %2081 = vmatmul.mubr.bf16.gmra.mxu0 %v3851_v20  ;;  %2306 = vmatmul.mubr.bf16.gmra.mxu1 %v3852_v21 }
  0xf2   :  { %2088 = vmatprep.mubr.bf16.mxu0 %v3854_v22  ;;  %2313 = vmatprep.mubr.bf16.mxu1 %v3856_v23  ;;  %v3892_v22 = vld [vmem:[%s5913_s0 + $0x4a0] ss:$28 sps:$4 sm:$0xff]   ;;  %v3895_v23 = vld [vmem:[%s5913_s0 + $0x128] ss:$28 sps:$4 sm:$0xff]  }
  0xf9   :  { %2089 = vmatmul.mubr.bf16.gmra.mxu0 %v3858_v24  ;;  %2314 = vmatmul.mubr.bf16.gmra.mxu1 %v3859_v25  ;;  %v3900_v24 = vld [vmem:[%s5913_s0 + $0x4dc] ss:$28 sps:$4 sm:$0xff]   ;;  %v3903_v25 = vld [vmem:[%s5913_s0 + $0x164] ss:$28 sps:$4 sm:$0xff]  }
  0xfa   :  { %2321 = vmatprep.mubr.bf16.mxu1 %v3860_v26  ;;  %2482 = vmatprep.mubr.bf16.mxu0 %v3864_v27 }
 0x101   :  { %v4727_v32 = vpop.f32.mrf.mxu0  ;;  %v4729_v33 = vpop.f32.mrf.mxu1  ;;  %2322 = vmatmul.mubr.bf16.gmra.mxu1 %v3865_v29  ;;  %2483 = vmatmul.mubr.bf16.vlgmr.msra.gmra.mxu0 %v3862_v28 }
 0x102   :  { %5916 = vst [vmem:[#allocation2_spill] sm:$0xff] %v4729_v33  ;;  %2329 = vmatprep.mubr.bf16.mxu1 %v3867_v30  ;;  %2490 = vmatprep.mubr.bf16.mxu0 %v3869_v31 }
 0x103   :  { %v1908_v34 = vpop.f32.mrf.mxu0  ;;  %v2100_v35 = vpop.f32.mrf.mxu1 }
 0x105   :  { %v4731_v36 = vpop.f32.mrf.mxu0  ;;  %v4733_v37 = vpop.f32.mrf.mxu1 }
 0x106   :  { %5917 = vst [vmem:[#allocation3_spill] sm:$0xff] %v4733_v37 }
 0x107   :  { %v1911_v41 = vpop.f32.mrf.mxu0  ;;  %v2103_v42 = vpop.f32.mrf.mxu1 }
 0x109   :  { %v4747_v43 = vpop.f32.mrf.mxu0  ;;  %v4749_v44 = vpop.f32.mrf.mxu1  ;;  %2330 = vmatmul.mubr.bf16.gmra.mxu1 %v3871_v0  ;;  %2491 = vmatmul.mubr.bf16.gmra.mxu0 %v3872_v38  ;;  %v3898_v0 = vld [vmem:[%s5913_s0 + $0x4d8] ss:$28 sps:$4 sm:$0xff]   ;;  %v3901_v38 = vld [vmem:[%s5913_s0 + $0x160] ss:$28 sps:$4 sm:$0xff]  }
 0x10a   :  { %2337 = vmatprep.mubr.bf16.mxu1 %v3873_v39  ;;  %2498 = vmatprep.mubr.bf16.mxu0 %v3875_v40  ;;  %v3906_v39 = vld [vmem:[%s5913_s0 + $0x514] ss:$28 sps:$4 sm:$0xff]   ;;  %v3909_v40 = vld [vmem:[%s5913_s0 + $0x19c] ss:$28 sps:$4 sm:$0xff]  }
 0x10b   :  { %v1916_v45 = vpop.f32.mrf.mxu0  ;;  %v2108_v46 = vpop.f32.mrf.mxu1 }
 0x10d   :  { %v4751_v47 = vpop.f32.mrf.mxu0  ;;  %v4753_v48 = vpop.f32.mrf.mxu1 }
 0x10e   :  { %5918 = vst [vmem:[#allocation4_spill] sm:$0xff] %v4753_v48 }
 0x10f   :  { %v1919_v53 = vpop.f32.mrf.mxu0  ;;  %v2111_v54 = vpop.f32.mrf.mxu1 }
 0x110   :  { %v3904_v53 = vld [vmem:[%s5913_s0 + $0x510] ss:$28 sps:$4 sm:$0xff]   ;;  %v3907_v54 = vld [vmem:[%s5913_s0 + $0x198] ss:$28 sps:$4 sm:$0xff]  }
 0x111   :  { %v4767_v55 = vpop.f32.mrf.mxu0  ;;  %v4769_v56 = vpop.f32.mrf.mxu1  ;;  %2338 = vmatmul.mubr.bf16.gmra.mxu1 %v3877_v49  ;;  %2499 = vmatmul.mubr.bf16.gmra.mxu0 %v3878_v50 }
 0x112   :  { %5919 = vst [vmem:[#allocation5_spill] sm:$0xff] %v4769_v56  ;;  %2345 = vmatprep.mubr.bf16.mxu1 %v3879_v51  ;;  %2506 = vmatprep.mubr.bf16.mxu0 %v3881_v52 }
 0x113   :  { %v1924_v57 = vpop.f32.mrf.mxu0  ;;  %v2116_v58 = vpop.f32.mrf.mxu1 }
 0x114   :  { %v3912_v57 = vld [vmem:[%s5913_s0 + $0x54c] ss:$28 sps:$4 sm:$0xff]   ;;  %v3915_v58 = vld [vmem:[%s5913_s0 + $0x1d4] ss:$28 sps:$4 sm:$0xff]  }
 0x115   :  { %v4771_v59 = vpop.f32.mrf.mxu0  ;;  %v4773_v60 = vpop.f32.mrf.mxu1 }
 0x116   :  { %5920 = vst [vmem:[#allocation6_spill] sm:$0xff] %v4773_v60 }
 0x117   :  { %v1927_v2 = vpop.f32.mrf.mxu0  ;;  %v2119_v3 = vpop.f32.mrf.mxu1 }
 0x119   :  { %v4787_v4 = vpop.f32.mrf.mxu0  ;;  %v4789_v5 = vpop.f32.mrf.mxu1  ;;  %2346 = vmatmul.mubr.bf16.gmra.mxu1 %v3883_v61  ;;  %2507 = vmatmul.mubr.bf16.gmra.mxu0 %v3884_v62 }
 0x11a   :  { %5921 = vst [vmem:[#allocation7_spill] sm:$0xff] %v4789_v5  ;;  %2353 = vmatprep.mubr.bf16.mxu1 %v3887_v63  ;;  %2514 = vmatprep.mubr.bf16.mxu0 %v3890_v1 }
 0x11b   :  { %v1932_v6 = vpop.f32.mrf.mxu0  ;;  %v2124_v7 = vpop.f32.mrf.mxu1 }
 0x11d   :  { %v4791_v8 = vpop.f32.mrf.mxu0  ;;  %v4793_v9 = vpop.f32.mrf.mxu1 }
 0x11e   :  { %5922 = vst [vmem:[#allocation8_spill] sm:$0xff] %v4793_v9 }
 0x11f   :  { %v1935_v14 = vpop.f32.mrf.mxu0  ;;  %v2127_v15 = vpop.f32.mrf.mxu1 }
 0x121   :  { %v4807_v16 = vpop.f32.mrf.mxu0  ;;  %v4809_v17 = vpop.f32.mrf.mxu1  ;;  %2354 = vmatmul.mubr.bf16.gmra.mxu1 %v3885_v10  ;;  %2515 = vmatmul.mubr.bf16.gmra.mxu0 %v3888_v11  ;;  %v3910_v10 = vld [vmem:[%s5913_s0 + $0x548] ss:$28 sps:$4 sm:$0xff]   ;;  %v3913_v11 = vld [vmem:[%s5913_s0 + $0x1d0] ss:$28 sps:$4 sm:$0xff]  }
 0x122   :  { %5923 = vst [vmem:[#allocation9_spill] sm:$0xff] %v4809_v17  ;;  %2361 = vmatprep.mubr.bf16.mxu1 %v3894_v12  ;;  %2522 = vmatprep.mubr.bf16.mxu0 %v3897_v13  ;;  %v3919_v12 = vld [vmem:[%s5913_s0 + $0x584] ss:$28 sps:$4 sm:$0xff]   ;;  %v3922_v13 = vld [vmem:[%s5913_s0 + $0x20c] ss:$28 sps:$4 sm:$0xff]  }
 0x123   :  { %v1940_v18 = vpop.f32.mrf.mxu0  ;;  %v2132_v19 = vpop.f32.mrf.mxu1 }
 0x125   :  { %v4811_v20 = vpop.f32.mrf.mxu0  ;;  %v4813_v21 = vpop.f32.mrf.mxu1 }
 0x126   :  { %5924 = vst [vmem:[#allocation10_spill] sm:$0xff] %v4813_v21 }
 0x127   :  { %v1943_v26 = vpop.f32.mrf.mxu0  ;;  %v2135_v27 = vpop.f32.mrf.mxu1 }
 0x128   :  { %v3917_v27 = vld [vmem:[%s5913_s0 + $0x580] ss:$28 sps:$4 sm:$0xff]  }
 0x129   :  { %v4827_v28 = vpop.f32.mrf.mxu0  ;;  %v4829_v29 = vpop.f32.mrf.mxu1  ;;  %2362 = vmatmul.mubr.bf16.gmra.mxu1 %v3892_v22  ;;  %2523 = vmatmul.mubr.bf16.gmra.mxu0 %v3895_v23 }
 0x12a   :  { %5925 = vst [vmem:[#allocation11_spill] sm:$0xff] %v4829_v29  ;;  %2369 = vmatprep.mubr.bf16.mxu1 %v3900_v24  ;;  %2530 = vmatprep.mubr.bf16.mxu0 %v3903_v25 }
 0x12b   :  { %v1948_v30 = vpop.f32.mrf.mxu0  ;;  %v2140_v31 = vpop.f32.mrf.mxu1 }
 0x12c   :  { %v3920_v30 = vld [vmem:[%s5913_s0 + $0x208] ss:$28 sps:$4 sm:$0xff]  }
 0x12d   :  { %v4831_v34 = vpop.f32.mrf.mxu0  ;;  %v4833_v35 = vpop.f32.mrf.mxu1 }
 0x12e   :  { %5926 = vst [vmem:[#allocation12_spill] sm:$0xff] %v4833_v35 }
 0x12f   :  { %v1951_v41 = vpop.f32.mrf.mxu0  ;;  %v2143_v42 = vpop.f32.mrf.mxu1 }
 0x131   :  { %v4847_v45 = vpop.f32.mrf.mxu0  ;;  %v4849_v46 = vpop.f32.mrf.mxu1  ;;  %2370 = vmatmul.mubr.bf16.gmra.mxu1 %v3898_v0  ;;  %2531 = vmatmul.mubr.bf16.gmra.mxu0 %v3901_v38  ;;  %v3928_v0 = vld [vmem:[%s5913_s0 + $0x244] ss:$28 sps:$4 sm:$0xff]  }
 0x132   :  { %5927 = vst [vmem:[#allocation13_spill] sm:$0xff] %v4849_v46  ;;  %2377 = vmatprep.mubr.bf16.mxu1 %v3906_v39  ;;  %2538 = vmatprep.mubr.bf16.mxu0 %v3909_v40 }
 0x133   :  { %v1956_v49 = vpop.f32.mrf.mxu0  ;;  %v2148_v50 = vpop.f32.mrf.mxu1 }
 0x135   :  { %v4851_v51 = vpop.f32.mrf.mxu0  ;;  %v4853_v52 = vpop.f32.mrf.mxu1 }
 0x136   :  { %5928 = vst [vmem:[#allocation14_spill] sm:$0xff] %v4853_v52 }
 0x137   :  { %v1959_v61 = vpop.f32.mrf.mxu0  ;;  %v2151_v62 = vpop.f32.mrf.mxu1 }
 0x138   :  { %v3934_v61 = vld [vmem:[%s5913_s0 + $0x27c] ss:$28 sps:$4 sm:$0xff]  }
 0x139   :  { %v4867_v63 = vpop.f32.mrf.mxu0  ;;  %v4869_v1 = vpop.f32.mrf.mxu1  ;;  %2378 = vmatmul.mubr.bf16.gmra.mxu1 %v3904_v53  ;;  %2539 = vmatmul.mubr.bf16.gmra.mxu0 %v3907_v54  ;;  %v3923_v54 = vld [vmem:[%s5913_s0 + $0x5b8] ss:$28 sps:$4 sm:$0xff]  }
 0x13a   :  { %5929 = vst [vmem:[#allocation15_spill] sm:$0xff] %v4869_v1  ;;  %2385 = vmatprep.mubr.bf16.mxu1 %v3912_v57  ;;  %2546 = vmatprep.mubr.bf16.mxu0 %v3915_v58  ;;  %v3926_v57 = vld [vmem:[%s5913_s0 + $0x240] ss:$28 sps:$4 sm:$0xff]  }
 0x13b   :  { %v1964_v2 = vpop.f32.mrf.mxu0  ;;  %v2156_v3 = vpop.f32.mrf.mxu1 }
 0x13d   :  { %v4871_v6 = vpop.f32.mrf.mxu0  ;;  %v4873_v7 = vpop.f32.mrf.mxu1 }
 0x13e   :  { %5930 = vst [vmem:[#allocation16_spill] sm:$0xff] %v4873_v7 }
 0x13f   :  { %v1967_v14 = vpop.f32.mrf.mxu0  ;;  %v2159_v15 = vpop.f32.mrf.mxu1 }
 0x140   :  { %v3929_v15 = vld [vmem:[%s5913_s0 + $0x5f0] ss:$28 sps:$4 sm:$0xff]  }
 0x141   :  { %v4887_v18 = vpop.f32.mrf.mxu0  ;;  %v2195_v19 = vpop.f32.mrf.mxu1  ;;  %2386 = vmatmul.mubr.bf16.gmra.mxu1 %v3910_v10  ;;  %2547 = vmatmul.mubr.bf16.gmra.mxu0 %v3913_v11 }
 0x142   :  { %v4890_v22 = vadd.f32 %v2195_v19, %v4727_v32  ;;  %2393 = vmatprep.mubr.bf16.mxu1 %v3919_v12  ;;  %2554 = vmatprep.mubr.bf16.mxu0 %v3922_v13  ;;  %v3925_v32 = vld [vmem:[%s5913_s0 + $0x5bc] ss:$28 sps:$4 sm:$0xff]  }
 0x143   :  { %v1972_v23 = vpop.f32.mrf.mxu0  ;;  %v2197_v24 = vpop.f32.mrf.mxu1  ;;  %v3932_v19 = vld [vmem:[%s5913_s0 + $0x278] ss:$28 sps:$4 sm:$0xff]  }
 0x144   :  { %v3940_v24 = vld [vmem:[%s5913_s0 + $0x2b4] ss:$28 sps:$4 sm:$0xff]  }
 0x145   :  { %v4892_v25 = vpop.f32.mrf.mxu0  ;;  %v2198_v26 = vpop.f32.mrf.mxu1 }
 0x146   :  { %v4901_v31 = vadd.f32 %v2198_v26, %v4731_v36 }
 0x147   :  { %v1975_v38 = vpop.f32.mrf.mxu0  ;;  %v2200_v39 = vpop.f32.mrf.mxu1 }
 0x149   :  { %v4909_v40 = vpop.f32.mrf.mxu0  ;;  %v2203_v41 = vpop.f32.mrf.mxu1  ;;  %2394 = vmatmul.mubr.bf16.gmra.mxu1 %v3917_v27  ;;  %2555 = vmatmul.mubr.bf16.gmra.mxu0 %v3920_v30 }
 0x14a   :  { %v4912_v42 = vadd.f32 %v2203_v41, %v4747_v43  ;;  %2401 = vmatprep.mubr.bf16.mxu1 %v3925_v32  ;;  %2562 = vmatprep.mubr.bf16.mxu0 %v3928_v0  ;;  %v3931_v43 = vld [vmem:[%s5913_s0 + $0x5f4] ss:$28 sps:$4 sm:$0xff]  }
 0x14b   :  { %v1980_v36 = vpop.f32.mrf.mxu0  ;;  %v2205_v49 = vpop.f32.mrf.mxu1 }
 0x14c   :  { %v3935_v36 = vld [vmem:[%s5913_s0 + $0x628] ss:$28 sps:$4 sm:$0xff]   ;;  %v3938_v49 = vld [vmem:[%s5913_s0 + $0x2b0] ss:$28 sps:$4 sm:$0xff]  }
 0x14d   :  { %v4914_v50 = vpop.f32.mrf.mxu0  ;;  %v2206_v53 = vpop.f32.mrf.mxu1 }
 0x14e   :  { %v4923_v58 = vadd.f32 %v2206_v53, %v4751_v47 }
 0x14f   :  { %v1983_v62 = vpop.f32.mrf.mxu0  ;;  %v2208_v2 = vpop.f32.mrf.mxu1 }
 0x151   :  { %v4931_v3 = vpop.f32.mrf.mxu0  ;;  %v2211_v10 = vpop.f32.mrf.mxu1  ;;  %2402 = vmatmul.mubr.bf16.gmra.mxu1 %v3923_v54  ;;  %2563 = vmatmul.mubr.bf16.gmra.mxu0 %v3926_v57  ;;  %v3947_v54 = vld [vmem:[%s5913_s0 + $0x2ec] ss:$28 sps:$4 sm:$0xff]  }
 0x152   :  { %v4934_v11 = vadd.f32 %v2211_v10, %v4767_v55  ;;  %2409 = vmatprep.mubr.bf16.mxu1 %v3931_v43  ;;  %2570 = vmatprep.mubr.bf16.mxu0 %v3934_v61  ;;  %v3937_v55 = vld [vmem:[%s5913_s0 + $0x62c] ss:$28 sps:$4 sm:$0xff]  }
 0x153   :  { %v1988_v47 = vpop.f32.mrf.mxu0  ;;  %v2213_v12 = vpop.f32.mrf.mxu1 }
 0x155   :  { %v4936_v13 = vpop.f32.mrf.mxu0  ;;  %v2214_v14 = vpop.f32.mrf.mxu1 }
 0x156   :  { %v4945_v23 = vadd.f32 %v2214_v14, %v4771_v59  ;;  %v3942_v14 = vld [vmem:[%s5913_s0 + $0x660] ss:$28 sps:$4 sm:$0xff]  }
 0x157   :  { %v1991_v26 = vpop.f32.mrf.mxu0  ;;  %v2216_v27 = vpop.f32.mrf.mxu1 }
 0x159   :  { %v4953_v30 = vpop.f32.mrf.mxu0  ;;  %v2219_v32 = vpop.f32.mrf.mxu1  ;;  %2410 = vmatmul.mubr.bf16.gmra.mxu1 %v3929_v15  ;;  %2571 = vmatmul.mubr.bf16.gmra.mxu0 %v3932_v19  ;;  %v3945_v15 = vld [vmem:[%s5913_s0 + $0x2e8] ss:$28 sps:$4 sm:$0xff]  }
 0x15a   :  { %v4956_v0 = vadd.f32 %v2219_v32, %v4787_v4  ;;  %2417 = vmatprep.mubr.bf16.mxu1 %v3937_v55  ;;  %2578 = vmatprep.mubr.bf16.mxu0 %v3940_v24  ;;  %v3944_v4 = vld [vmem:[%s5913_s0 + $0x664] ss:$28 sps:$4 sm:$0xff]  }
 0x15b   :  { %v1996_v59 = vpop.f32.mrf.mxu0  ;;  %v2221_v38 = vpop.f32.mrf.mxu1  ;;  %v3953_v55 = vld [vmem:[%s5913_s0 + $0x324] ss:$28 sps:$4 sm:$0xff]  }
 0x15d   :  { %v4958_v39 = vpop.f32.mrf.mxu0  ;;  %v2222_v41 = vpop.f32.mrf.mxu1 }
 0x15e   :  { %v4967_v53 = vadd.f32 %v2222_v41, %v4791_v8 }
 0x15f   :  { %v1999_v57 = vpop.f32.mrf.mxu0  ;;  %v2224_v43 = vpop.f32.mrf.mxu1 }
 0x160   :  { %v3959_v57 = vld [vmem:[%s5913_s0 + $0x35c] ss:$28 sps:$4 sm:$0xff]  }
 0x161   :  { %v4975_v61 = vpop.f32.mrf.mxu0  ;;  %v2227_v62 = vpop.f32.mrf.mxu1  ;;  %2418 = vmatmul.mubr.bf16.gmra.mxu1 %v3935_v36  ;;  %2579 = vmatmul.mubr.bf16.gmra.mxu0 %v3938_v49  ;;  %v3948_v49 = vld [vmem:[%s5913_s0 + $0x698] ss:$28 sps:$4 sm:$0xff]  }
 0x162   :  { %v4978_v2 = vadd.f32 %v2227_v62, %v4807_v16  ;;  %2425 = vmatprep.mubr.bf16.mxu1 %v3944_v4  ;;  %2586 = vmatprep.mubr.bf16.mxu0 %v3947_v54  ;;  %v3950_v16 = vld [vmem:[%s5913_s0 + $0x69c] ss:$28 sps:$4 sm:$0xff]  }
 0x163   :  { %v2004_v8 = vpop.f32.mrf.mxu0  ;;  %v2229_v10 = vpop.f32.mrf.mxu1  ;;  %v3951_v4 = vld [vmem:[%s5913_s0 + $0x320] ss:$28 sps:$4 sm:$0xff]  }
 0x165   :  { %v4980_v47 = vpop.f32.mrf.mxu0  ;;  %v2230_v12 = vpop.f32.mrf.mxu1 }
 0x166   :  { %v4989_v19 = vadd.f32 %v2230_v12, %v4811_v20 }
 0x167   :  { %v2007_v24 = vpop.f32.mrf.mxu0  ;;  %v2232_v26 = vpop.f32.mrf.mxu1 }
 0x168   :  { %v3957_v24 = vld [vmem:[%s5913_s0 + $0x358] ss:$28 sps:$4 sm:$0xff]  }
 0x169   :  { %v4997_v27 = vpop.f32.mrf.mxu0  ;;  %v2235_v32 = vpop.f32.mrf.mxu1  ;;  %2426 = vmatmul.mubr.bf16.gmra.mxu1 %v3942_v14  ;;  %2587 = vmatmul.mubr.bf16.gmra.mxu0 %v3945_v15 }
 0x16a   :  { %v5000_v59 = vadd.f32 %v2235_v32, %v4827_v28  ;;  %2433 = vmatprep.mubr.bf16.mxu1 %v3950_v16  ;;  %2594 = vmatprep.mubr.bf16.mxu0 %v3953_v55  ;;  %v3956_v28 = vld [vmem:[%s5913_s0 + $0x6d4] ss:$28 sps:$4 sm:$0xff]  }
 0x16b   :  { %v2012_v20 = vpop.f32.mrf.mxu0  ;;  %v2237_v38 = vpop.f32.mrf.mxu1  ;;  %v3954_v55 = vld [vmem:[%s5913_s0 + $0x6d0] ss:$28 sps:$4 sm:$0xff]   ;;  %v3963_v32 = vld [vmem:[%s5913_s0 + $0x18] ss:$28 sps:$4 sm:$0xff]  }
 0x16d   :  { %v5002_v41 = vpop.f32.mrf.mxu0  ;;  %v2238_v36 = vpop.f32.mrf.mxu1 }
 0x16e   :  { %v5011_v54 = vadd.f32 %v2238_v36, %v4831_v34 }
 0x16f   :  { %v2015_v43 = vpop.f32.mrf.mxu0  ;;  %v2240_v62 = vpop.f32.mrf.mxu1 }
 0x170   :  { %v3960_v62 = vld [vmem:[%s5913_s0 + $0x390] ss:$28 sps:$4 sm:$0xff]  }
 0x171   :  { %v5019_v8 = vpop.f32.mrf.mxu0  ;;  %v2243_v10 = vpop.f32.mrf.mxu1  ;;  %2434 = vmatmul.mubr.bf16.gmra.mxu1 %v3948_v49  ;;  %2595 = vmatmul.mubr.bf16.gmra.mxu0 %v3951_v4 }
 0x172   :  { %v5022_v12 = vadd.f32 %v2243_v10, %v4847_v45  ;;  %2441 = vmatprep.mubr.bf16.mxu1 %v3956_v28  ;;  %2602 = vmatprep.mubr.bf16.mxu0 %v3959_v57  ;;  %v3962_v45 = vld [vmem:[%s5913_s0 + $0x394] ss:$28 sps:$4 sm:$0xff]  }
 0x173   :  { %v2020_v34 = vpop.f32.mrf.mxu0  ;;  %v2245_v14 = vpop.f32.mrf.mxu1  ;;  %v3964_v10 = vld [vmem:[%s5913_s0 + $0x50] ss:$28 sps:$4 sm:$0xff]  }
 0x174   :  { %v3968_v14 = vld [vmem:[%s5913_s0 + $0x88] ss:$28 sps:$4 sm:$0xff]  }
 0x175   :  { %v5024_v15 = vpop.f32.mrf.mxu0  ;;  %v2246_v16 = vpop.f32.mrf.mxu1 }
 0x176   :  { %v5033_v26 = vadd.f32 %v2246_v16, %v4851_v51 }
 0x177   :  { %v2023_v20 = vpop.f32.mrf.mxu0  ;;  %v2248_v38 = vpop.f32.mrf.mxu1 }
 0x179   :  { %v5041_v36 = vpop.f32.mrf.mxu0  ;;  %v2251_v49 = vpop.f32.mrf.mxu1  ;;  %2442 = vmatmul.mubr.bf16.gmra.mxu1 %v3954_v55  ;;  %2603 = vmatmul.mubr.bf16.gmra.mxu0 %v3957_v24 }
 0x17a   :  { %v5044_v4 = vadd.f32 %v2251_v49, %v4867_v63  ;;  %2610 = vmatprep.mubr.bf16.mxu0 %v3962_v45  ;;  %3567 = vmatprep.mubr.bf16.mxu1 %v3963_v32  ;;  %v3967_v63 = vld [vmem:[%s5913_s0 + $0x3cc] ss:$28 sps:$4 sm:$0xff]  }
 0x17b   :  { %v2028_v51 = vpop.f32.mrf.mxu0  ;;  %v2253_v28 = vpop.f32.mrf.mxu1 }
 0x17c   :  { %v3965_v51 = vld [vmem:[%s5913_s0 + $0x3c8] ss:$28 sps:$4 sm:$0xff]   ;;  %v3969_v28 = vld [vmem:[%s5913_s0 + $0xc0] ss:$28 sps:$4 sm:$0xff]  }
 0x17d   :  { %v5046_v57 = vpop.f32.mrf.mxu0  ;;  %v2254_v43 = vpop.f32.mrf.mxu1 }
 0x17e   :  { %v5055_v34 = vadd.f32 %v2254_v43, %v4871_v6 }
 0x17f   :  { %v2031_v16 = vpop.f32.mrf.mxu0  ;;  %v2256_v55 = vpop.f32.mrf.mxu1 }
 0x181   :  { %v5063_v24 = vpop.f32.mrf.mxu0  ;;  %v2259_v45 = vpop.f32.mrf.mxu1  ;;  %2611 = vmatmul.mubr.bf16.gmra.mxu0 %v3960_v62  ;;  %3568 = vmatmul.mubr.bf16.vlgmr.msra.gmra.mxu1 %v3964_v10  ;;  %v3973_v62 = vld [vmem:[%s5913_s0 + $0xf8] ss:$28 sps:$4 sm:$0xff]  }
 0x182   :  { %v5066_v32 = vadd.f32 %v2259_v45, %v4887_v18  ;;  %2618 = vmatprep.mubr.bf16.mxu0 %v3967_v63  ;;  %3571 = vmatprep.mubr.bf16.mxu1 %v3968_v14  ;;  %v3972_v18 = vld [vmem:[%s5913_s0 + $0x404] ss:$28 sps:$4 sm:$0xff]  }
 0x183   :  { %v2036_v6 = vpop.f32.mrf.mxu0  ;;  %v2261_v20 = vpop.f32.mrf.mxu1 }
 0x185   :  { %v5068_v38 = vpop.f32.mrf.mxu0  ;;  %v2262_v49 = vpop.f32.mrf.mxu1 }
 0x186   :  { %v5077_v43 = vadd.f32 %v2262_v49, %v4892_v25  ;;  %v3970_v49 = vld [vmem:[%s5913_s0 + $0x400] ss:$28 sps:$4 sm:$0xff]  }
 0x187   :  { %v2039_v10 = vpop.f32.mrf.mxu0  ;;  %v2264_v63 = vpop.f32.mrf.mxu1 }
 0x188   :  { %v3974_v10 = vld [vmem:[%s5913_s0 + $0x130] ss:$28 sps:$4 sm:$0xff]  }
 0x189   :  { %v5085_v14 = vpop.f32.mrf.mxu0  ;;  %v2267_v16 = vpop.f32.mrf.mxu1  ;;  %2619 = vmatmul.mubr.bf16.gmra.mxu0 %v3965_v51  ;;  %3572 = vmatmul.mubr.bf16.gmra.mxu1 %v3969_v28  ;;  %v3978_v28 = vld [vmem:[%s5913_s0 + $0x168] ss:$28 sps:$4 sm:$0xff]  }
 0x18a   :  { %v5088_v55 = vadd.f32 %v2267_v16, %v4909_v40  ;;  %2626 = vmatprep.mubr.bf16.mxu0 %v3972_v18  ;;  %3575 = vmatprep.mubr.bf16.mxu1 %v3973_v62  ;;  %v3977_v40 = vld [vmem:[%s5913_s0 + $0x43c] ss:$28 sps:$4 sm:$0xff]  }
 0x18b   :  { %v2044_v25 = vpop.f32.mrf.mxu0  ;;  %v2269_v45 = vpop.f32.mrf.mxu1 }
 0x18d   :  { %v5090_v6 = vpop.f32.mrf.mxu0  ;;  %v2270_v20 = vpop.f32.mrf.mxu1 }
 0x18e   :  { %v5099_v51 = vadd.f32 %v2270_v20, %v4914_v50 }
 0x18f   :  { %v2047_v18 = vpop.f32.mrf.mxu0  ;;  %v2272_v62 = vpop.f32.mrf.mxu1 }
 0x190   :  { %v3975_v18 = vld [vmem:[%s5913_s0 + $0x438] ss:$28 sps:$4 sm:$0xff]   ;;  %v3979_v62 = vld [vmem:[%s5913_s0 + $0x1a0] ss:$28 sps:$4 sm:$0xff]  }
 0x191   :  { %v5107_v63 = vpop.f32.mrf.mxu0  ;;  %v2275_v16 = vpop.f32.mrf.mxu1  ;;  %2627 = vmatmul.mubr.bf16.gmra.mxu0 %v3970_v49  ;;  %3576 = vmatmul.mubr.bf16.gmra.mxu1 %v3974_v10  ;;  %v3983_v10 = vld [vmem:[%s5913_s0 + $0x1d8] ss:$28 sps:$4 sm:$0xff]  }
 0x192   :  { %v5110_v25 = vadd.f32 %v2275_v16, %v4931_v3  ;;  %2634 = vmatprep.mubr.bf16.mxu0 %v3977_v40  ;;  %3579 = vmatprep.mubr.bf16.mxu1 %v3978_v28  ;;  %v3982_v3 = vld [vmem:[%s5913_s0 + $0x474] ss:$28 sps:$4 sm:$0xff]  }
 0x193   :  { %v2052_v50 = vpop.f32.mrf.mxu0  ;;  %v2277_v45 = vpop.f32.mrf.mxu1 }
 0x195   :  { %v5112_v20 = vpop.f32.mrf.mxu0  ;;  %v2278_v7 = vpop.f32.mrf.mxu1 }
 0x196   :  { %v5121_v49 = vadd.f32 %v2278_v7, %v4936_v13 }
 0x197   :  { %v2055_v40 = vpop.f32.mrf.mxu0  ;;  %v2280_v28 = vpop.f32.mrf.mxu1 }
 0x198   :  { %v3980_v40 = vld [vmem:[%s5913_s0 + $0x470] ss:$28 sps:$4 sm:$0xff]  }
 0x199   :  { %v5129_v16 = vpop.f32.mrf.mxu0  ;;  %v2283_v50 = vpop.f32.mrf.mxu1  ;;  %2635 = vmatmul.mubr.bf16.gmra.mxu0 %v3975_v18  ;;  %3580 = vmatmul.mubr.bf16.gmra.mxu1 %v3979_v62  ;;  %v3984_v28 = vld [vmem:[%s5913_s0 + $0x210] ss:$28 sps:$4 sm:$0xff]   ;;  %v3988_v62 = vld [vmem:[%s5913_s0 + $0x248] ss:$28 sps:$4 sm:$0xff]  }
 0x19a   :  { %v5132_v45 = vadd.f32 %v2283_v50, %v4953_v30  ;;  %2642 = vmatprep.mubr.bf16.mxu0 %v3982_v3  ;;  %3583 = vmatprep.mubr.bf16.mxu1 %v3983_v10  ;;  %v3987_v30 = vld [vmem:[%s5913_s0 + $0x4ac] ss:$28 sps:$4 sm:$0xff]  }
 0x19b   :  { %v2060_v7 = vpop.f32.mrf.mxu0  ;;  %v2285_v13 = vpop.f32.mrf.mxu1 }
 0x19d   :  { %v5134_v52 = vpop.f32.mrf.mxu0  ;;  %v2286_v1 = vpop.f32.mrf.mxu1 }
 0x19e   :  { %v5143_v18 = vadd.f32 %v2286_v1, %v4958_v39 }
 0x19f   :  { %v2063_v3 = vpop.f32.mrf.mxu0  ;;  %v2288_v10 = vpop.f32.mrf.mxu1 }
 0x1a0   :  { %v3985_v3 = vld [vmem:[%s5913_s0 + $0x4a8] ss:$28 sps:$4 sm:$0xff]   ;;  %v3989_v10 = vld [vmem:[%s5913_s0 + $0x280] ss:$28 sps:$4 sm:$0xff]  }
 0x1a1   :  { %v5151_v50 = vpop.f32.mrf.mxu0  ;;  %v2291_v7 = vpop.f32.mrf.mxu1  ;;  %2643 = vmatmul.mubr.bf16.gmra.mxu0 %v3980_v40  ;;  %3584 = vmatmul.mubr.bf16.gmra.mxu1 %v3984_v28  ;;  %v3993_v28 = vld [vmem:[%s5913_s0 + $0x2b8] ss:$28 sps:$4 sm:$0xff]  }
 0x1a2   :  { %v5154_v13 = vadd.f32 %v2291_v7, %v4975_v61  ;;  %2650 = vmatprep.mubr.bf16.mxu0 %v3987_v30  ;;  %3587 = vmatprep.mubr.bf16.mxu1 %v3988_v62  ;;  %v3992_v61 = vld [vmem:[%s5913_s0 + $0x4e4] ss:$28 sps:$4 sm:$0xff]  }
 0x1a3   :  { %v2068_v1 = vpop.f32.mrf.mxu0  ;;  %v2293_v39 = vpop.f32.mrf.mxu1 }
 0x1a5   :  { %v5156_v46 = vpop.f32.mrf.mxu0  ;;  %v2294_v21 = vpop.f32.mrf.mxu1 }
 0x1a6   :  { %v5165_v40 = vadd.f32 %v2294_v21, %v4980_v47 }
 0x1a7   :  { %v2071_v30 = vpop.f32.mrf.mxu0  ;;  %v2296_v62 = vpop.f32.mrf.mxu1 }
 0x1a8   :  { %v3990_v30 = vld [vmem:[%s5913_s0 + $0x4e0] ss:$28 sps:$4 sm:$0xff]   ;;  %v3994_v62 = vld [vmem:[%s5913_s0 + $0x2f0] ss:$28 sps:$4 sm:$0xff]  }
 0x1a9   :  { %v5173_v7 = vpop.f32.mrf.mxu0  ;;  %v2299_v1 = vpop.f32.mrf.mxu1  ;;  %2651 = vmatmul.mubr.bf16.gmra.mxu0 %v3985_v3  ;;  %3588 = vmatmul.mubr.bf16.gmra.mxu1 %v3989_v10  ;;  %v3998_v10 = vld [vmem:[%s5913_s0 + $0x328] ss:$28 sps:$4 sm:$0xff]  }
 0x1aa   :  { %v5176_v39 = vadd.f32 %v2299_v1, %v4997_v27  ;;  %2658 = vmatprep.mubr.bf16.mxu0 %v3992_v61  ;;  %3591 = vmatprep.mubr.bf16.mxu1 %v3993_v28  ;;  %v3997_v27 = vld [vmem:[%s5913_s0 + $0x51c] ss:$28 sps:$4 sm:$0xff]  }
 0x1ab   :  { %v2076_v21 = vpop.f32.mrf.mxu0  ;;  %v2301_v47 = vpop.f32.mrf.mxu1 }
 0x1ad   :  { %v5178_v35 = vpop.f32.mrf.mxu0  ;;  %v2302_v17 = vpop.f32.mrf.mxu1 }
 0x1ae   :  { %v5187_v3 = vadd.f32 %v2302_v17, %v5002_v41 }
 0x1af   :  { %v2079_v61 = vpop.f32.mrf.mxu0  ;;  %v2304_v28 = vpop.f32.mrf.mxu1 }
 0x1b0   :  { %v3995_v61 = vld [vmem:[%s5913_s0 + $0x518] ss:$28 sps:$4 sm:$0xff]   ;;  %v3999_v28 = vld [vmem:[%s5913_s0 + $0x360] ss:$28 sps:$4 sm:$0xff]  }
 0x1b1   :  { %v5195_v1 = vpop.f32.mrf.mxu0  ;;  %v2307_v21 = vpop.f32.mrf.mxu1  ;;  %2659 = vmatmul.mubr.bf16.gmra.mxu0 %v3990_v30  ;;  %3592 = vmatmul.mubr.bf16.gmra.mxu1 %v3994_v62  ;;  %v4003_v62 = vld [vmem:[%s5913_s0 + $0x398] ss:$28 sps:$4 sm:$0xff]  }
 0x1b2   :  { %v5198_v47 = vadd.f32 %v2307_v21, %v5019_v8  ;;  %2666 = vmatprep.mubr.bf16.mxu0 %v3997_v27  ;;  %3595 = vmatprep.mubr.bf16.mxu1 %v3998_v10  ;;  %v4002_v8 = vld [vmem:[%s5913_s0 + $0x554] ss:$28 sps:$4 sm:$0xff]  }
 0x1b3   :  { %v2084_v17 = vpop.f32.mrf.mxu0  ;;  %v2309_v41 = vpop.f32.mrf.mxu1 }
 0x1b5   :  { %v5200_v29 = vpop.f32.mrf.mxu0  ;;  %v2310_v60 = vpop.f32.mrf.mxu1 }
 0x1b6   :  { %v5209_v30 = vadd.f32 %v2310_v60, %v5024_v15 }
 0x1b7   :  { %v2087_v27 = vpop.f32.mrf.mxu0  ;;  %v2312_v10 = vpop.f32.mrf.mxu1 }
 0x1b8   :  { %v4000_v27 = vld [vmem:[%s5913_s0 + $0x550] ss:$28 sps:$4 sm:$0xff]  }
 0x1b9   :  { %v5217_v21 = vpop.f32.mrf.mxu0  ;;  %v2315_v17 = vpop.f32.mrf.mxu1  ;;  %2667 = vmatmul.mubr.bf16.gmra.mxu0 %v3995_v61  ;;  %3596 = vmatmul.mubr.bf16.gmra.mxu1 %v3999_v28  ;;  %v4004_v10 = vld [vmem:[%s5913_s0 + $0x3d0] ss:$28 sps:$4 sm:$0xff]   ;;  %v4008_v28 = vld [vmem:[%s5913_s0 + $0x408] ss:$28 sps:$4 sm:$0xff]  }
 0x1ba   :  { %v5220_v41 = vadd.f32 %v2315_v17, %v5041_v36  ;;  %2674 = vmatprep.mubr.bf16.mxu0 %v4002_v8  ;;  %3599 = vmatprep.mubr.bf16.mxu1 %v4003_v62  ;;  %v4007_v36 = vld [vmem:[%s5913_s0 + $0x58c] ss:$28 sps:$4 sm:$0xff]  }
 0x1bb   :  { %v2092_v60 = vpop.f32.mrf.mxu0  ;;  %v2317_v15 = vpop.f32.mrf.mxu1 }
 0x1bd   :  { %v5222_v9 = vpop.f32.mrf.mxu0  ;;  %v2318_v56 = vpop.f32.mrf.mxu1 }
 0x1be   :  { %v5231_v61 = vadd.f32 %v2318_v56, %v5046_v57 }
 0x1bf   :  { %v2095_v8 = vpop.f32.mrf.mxu0  ;;  %v2320_v62 = vpop.f32.mrf.mxu1 }
 0x1c0   :  { %v4005_v8 = vld [vmem:[%s5913_s0 + $0x588] ss:$28 sps:$4 sm:$0xff]  }
 0x1c1   :  { %v2323_v17 = vpop.f32.mrf.mxu1  ;;  %v2484_v60 = vpop.f32.mrf.mxu0  ;;  %2675 = vmatmul.mubr.bf16.gmra.mxu0 %v4000_v27  ;;  %3600 = vmatmul.mubr.bf16.gmra.mxu1 %v4004_v10  ;;  %v4009_v27 = vld [vmem:[%s5913_s0 + $0x440] ss:$28 sps:$4 sm:$0xff]   ;;  %v4013_v10 = vld [vmem:[%s5913_s0 + $0x478] ss:$28 sps:$4 sm:$0xff]  }
 0x1c2   :  { %v5240_v15 = vadd.f32 %v2323_v17, %v5063_v24  ;;  %v5243_v56 = vadd.f32 %v2484_v60, %v4890_v22  ;;  %2682 = vmatprep.mubr.bf16.mxu0 %v4007_v36  ;;  %3603 = vmatprep.mubr.bf16.mxu1 %v4008_v28 }
 0x1c3   :  { %v2325_v57 = vpop.f32.mrf.mxu1  ;;  %v2486_v5 = vpop.f32.mrf.mxu0 }
 0x1c4   :  { %v4012_v5 = vld [vmem:[%s5913_s0 + $0x5c4] ss:$28 sps:$4 sm:$0xff]  }
 0x1c5   :  { %v2326_v37 = vpop.f32.mrf.mxu1  ;;  %v2487_v48 = vpop.f32.mrf.mxu0 }
 0x1c6   :  { %v5252_v24 = vadd.f32 %v2326_v37, %v5068_v38  ;;  %v5255_v22 = vadd.f32 %v2487_v48, %v4901_v31 }
 0x1c7   :  { %v2328_v36 = vpop.f32.mrf.mxu1  ;;  %v2489_v28 = vpop.f32.mrf.mxu0 }
 0x1c8   :  { %v4010_v36 = vld [vmem:[%s5913_s0 + $0x5c0] ss:$28 sps:$4 sm:$0xff]  }
 0x1c9   :  { %v2331_v62 = vpop.f32.mrf.mxu1  ;;  %v2492_v17 = vpop.f32.mrf.mxu0  ;;  %2683 = vmatmul.mubr.bf16.gmra.mxu0 %v4005_v8  ;;  %3604 = vmatmul.mubr.bf16.gmra.mxu1 %v4009_v27  ;;  %v4014_v8 = vld [vmem:[%s5913_s0 + $0x4b0] ss:$28 sps:$4 sm:$0xff]   ;;  %v4017_v27 = vld [vmem:[%s5913_s0 + $0x5fc] ss:$28 sps:$4 sm:$0xff]  }
 0x1ca   :  { %v5264_v37 = vadd.f32 %v2331_v62, %v5085_v14  ;;  %v5267_v48 = vadd.f32 %v2492_v17, %v4912_v42  ;;  %2690 = vmatprep.mubr.bf16.mxu0 %v4012_v5  ;;  %3607 = vmatprep.mubr.bf16.mxu1 %v4013_v10  ;;  %v4018_v5 = vld [vmem:[%s5913_s0 + $0x4e8] ss:$28 sps:$4 sm:$0xff]  }
 0x1cb   :  { %v2333_v31 = vpop.f32.mrf.mxu1  ;;  %v2494_v38 = vpop.f32.mrf.mxu0 }
 0x1cd   :  { %v2334_v60 = vpop.f32.mrf.mxu1  ;;  %v2495_v57 = vpop.f32.mrf.mxu0 }
 0x1ce   :  { %v5276_v14 = vadd.f32 %v2334_v60, %v5090_v6  ;;  %v5279_v42 = vadd.f32 %v2495_v57, %v4923_v58 }
 0x1cf   :  { %v2336_v10 = vpop.f32.mrf.mxu1  ;;  %v2497_v28 = vpop.f32.mrf.mxu0 }
 0x1d0   :  { %v4015_v10 = vld [vmem:[%s5913_s0 + $0x5f8] ss:$28 sps:$4 sm:$0xff]  }
 0x1d1   :  { %v2339_v62 = vpop.f32.mrf.mxu1  ;;  %v2500_v17 = vpop.f32.mrf.mxu0  ;;  %2691 = vmatmul.mubr.bf16.gmra.mxu0 %v4010_v36  ;;  %3608 = vmatmul.mubr.bf16.gmra.mxu1 %v4014_v8  ;;  %v4019_v36 = vld [vmem:[%s5913_s0 + $0x520] ss:$28 sps:$4 sm:$0xff]   ;;  %v4022_v8 = vld [vmem:[%s5913_s0 + $0x634] ss:$28 sps:$4 sm:$0xff]  }
 0x1d2   :  { %v5288_v6 = vadd.f32 %v2339_v62, %v5107_v63  ;;  %v5291_v58 = vadd.f32 %v2500_v17, %v4934_v11  ;;  %2698 = vmatprep.mubr.bf16.mxu0 %v4017_v27  ;;  %3611 = vmatprep.mubr.bf16.mxu1 %v4018_v5  ;;  %v4023_v27 = vld [vmem:[%s5913_s0 + $0x558] ss:$28 sps:$4 sm:$0xff]  }
 0x1d3   :  { %v2341_v31 = vpop.f32.mrf.mxu1  ;;  %v2502_v38 = vpop.f32.mrf.mxu0 }
 0x1d5   :  { %v2342_v60 = vpop.f32.mrf.mxu1  ;;  %v2503_v57 = vpop.f32.mrf.mxu0 }
 0x1d6   :  { %v5300_v63 = vadd.f32 %v2342_v60, %v5112_v20  ;;  %v5303_v11 = vadd.f32 %v2503_v57, %v4945_v23 }
 0x1d7   :  { %v2344_v5 = vpop.f32.mrf.mxu1  ;;  %v2505_v28 = vpop.f32.mrf.mxu0 }
 0x1d8   :  { %v4020_v5 = vld [vmem:[%s5913_s0 + $0x630] ss:$28 sps:$4 sm:$0xff]  }
 0x1d9   :  { %v2347_v62 = vpop.f32.mrf.mxu1  ;;  %v2508_v17 = vpop.f32.mrf.mxu0  ;;  %2699 = vmatmul.mubr.bf16.gmra.mxu0 %v4015_v10  ;;  %3612 = vmatmul.mubr.bf16.gmra.mxu1 %v4019_v36  ;;  %v4024_v10 = vld [vmem:[%s5913_s0 + $0x590] ss:$28 sps:$4 sm:$0xff]  }
 0x1da   :  { %v5312_v20 = vadd.f32 %v2347_v62, %v5129_v16  ;;  %v5315_v23 = vadd.f32 %v2508_v17, %v4956_v0  ;;  %2706 = vmatprep.mubr.bf16.mxu0 %v4022_v8  ;;  %3615 = vmatprep.mubr.bf16.mxu1 %v4023_v27  ;;  %v4027_v36 = vld [vmem:[%s5913_s0 + $0x66c] ss:$28 sps:$4 sm:$0xff]  }
 0x1db   :  { %v2349_v31 = vpop.f32.mrf.mxu1  ;;  %v2510_v38 = vpop.f32.mrf.mxu0  ;;  %v4028_v8 = vld [vmem:[%s5913_s0 + $0x5c8] ss:$28 sps:$4 sm:$0xff]  }
 0x1dd   :  { %v2350_v60 = vpop.f32.mrf.mxu1  ;;  %v2511_v57 = vpop.f32.mrf.mxu0 }
 0x1de   :  { %v5324_v16 = vadd.f32 %v2350_v60, %v5134_v52  ;;  %v5327_v0 = vadd.f32 %v2511_v57, %v4967_v53 }
 0x1df   :  { %v2352_v27 = vpop.f32.mrf.mxu1  ;;  %v2513_v28 = vpop.f32.mrf.mxu0 }
 0x1e0   :  { %v4025_v27 = vld [vmem:[%s5913_s0 + $0x668] ss:$28 sps:$4 sm:$0xff]  }
 0x1e1   :  { %v2355_v62 = vpop.f32.mrf.mxu1  ;;  %v2516_v17 = vpop.f32.mrf.mxu0  ;;  %2707 = vmatmul.mubr.bf16.gmra.mxu0 %v4020_v5  ;;  %3616 = vmatmul.mubr.bf16.gmra.mxu1 %v4024_v10  ;;  %v4029_v5 = vld [vmem:[%s5913_s0 + $0x600] ss:$28 sps:$4 sm:$0xff]  }
 0x1e2   :  { %v5336_v52 = vadd.f32 %v2355_v62, %v5151_v50  ;;  %v5339_v53 = vadd.f32 %v2516_v17, %v4978_v2  ;;  %2714 = vmatprep.mubr.bf16.mxu0 %v4027_v36  ;;  %3619 = vmatprep.mubr.bf16.mxu1 %v4028_v8  ;;  %v4032_v10 = vld [vmem:[%s5913_s0 + $0x6a4] ss:$28 sps:$4 sm:$0xff]   ;;  %v4033_v36 = vld [vmem:[%s5913_s0 + $0x638] ss:$28 sps:$4 sm:$0xff]  }
 0x1e3   :  { %v2357_v31 = vpop.f32.mrf.mxu1  ;;  %v2518_v38 = vpop.f32.mrf.mxu0 }
 0x1e5   :  { %v2358_v60 = vpop.f32.mrf.mxu1  ;;  %v2519_v57 = vpop.f32.mrf.mxu0 }
 0x1e6   :  { %v5348_v50 = vadd.f32 %v2358_v60, %v5156_v46  ;;  %v5351_v2 = vadd.f32 %v2519_v57, %v4989_v19 }
 0x1e7   :  { %v2360_v8 = vpop.f32.mrf.mxu1  ;;  %v2521_v28 = vpop.f32.mrf.mxu0 }
 0x1e8   :  { %v4030_v8 = vld [vmem:[%s5913_s0 + $0x6a0] ss:$28 sps:$4 sm:$0xff]  }
 0x1e9   :  { %v2363_v62 = vpop.f32.mrf.mxu1  ;;  %v2524_v17 = vpop.f32.mrf.mxu0  ;;  %2715 = vmatmul.mubr.bf16.gmra.mxu0 %v4025_v27  ;;  %3620 = vmatmul.mubr.bf16.gmra.mxu1 %v4029_v5  ;;  %v4034_v27 = vld [vmem:[%s5913_s0 + $0x670] ss:$28 sps:$4 sm:$0xff]   ;;  %v4037_v5 = vld [vmem:[%s5913_s0 + $0x6dc] ss:$28 sps:$4 sm:$0xff]  }
 0x1ea   :  { %v5360_v46 = vadd.f32 %v2363_v62, %v5173_v7  ;;  %v5363_v19 = vadd.f32 %v2524_v17, %v5000_v59  ;;  %2722 = vmatprep.mubr.bf16.mxu0 %v4032_v10  ;;  %3623 = vmatprep.mubr.bf16.mxu1 %v4033_v36  ;;  %v4038_v10 = vld [vmem:[%s5913_s0 + $0x6a8] ss:$28 sps:$4 sm:$0xff]  }
 0x1eb   :  { %v2365_v31 = vpop.f32.mrf.mxu1  ;;  %v2526_v38 = vpop.f32.mrf.mxu0 }
 0x1ed   :  { %v2366_v60 = vpop.f32.mrf.mxu1  ;;  %v2527_v57 = vpop.f32.mrf.mxu0 }
 0x1ee   :  { %v5372_v7 = vadd.f32 %v2366_v60, %v5178_v35  ;;  %v5375_v59 = vadd.f32 %v2527_v57, %v5011_v54 }
 0x1ef   :  { %v2368_v36 = vpop.f32.mrf.mxu1  ;;  %v2529_v28 = vpop.f32.mrf.mxu0 }
 0x1f0   :  { %v4035_v36 = vld [vmem:[%s5913_s0 + $0x6d8] ss:$28 sps:$4 sm:$0xff]  }
 0x1f1   :  { %v2371_v62 = vpop.f32.mrf.mxu1  ;;  %v2532_v17 = vpop.f32.mrf.mxu0  ;;  %2723 = vmatmul.mubr.bf16.gmra.mxu0 %v4030_v8  ;;  %3624 = vmatmul.mubr.bf16.gmra.mxu1 %v4034_v27  ;;  %v4039_v8 = vld [vmem:[%s5913_s0 + $0x6e0] ss:$28 sps:$4 sm:$0xff]  }
 0x1f2   :  { %v5384_v35 = vadd.f32 %v2371_v62, %v5195_v1  ;;  %v5387_v54 = vadd.f32 %v2532_v17, %v5022_v12  ;;  %2730 = vmatprep.mubr.bf16.mxu0 %v4037_v5  ;;  %3627 = vmatprep.mubr.bf16.mxu1 %v4038_v10 }
 0x1f3   :  { %v2373_v31 = vpop.f32.mrf.mxu1  ;;  %v2534_v38 = vpop.f32.mrf.mxu0 }
 0x1f5   :  { %v2374_v60 = vpop.f32.mrf.mxu1  ;;  %v2535_v57 = vpop.f32.mrf.mxu0 }
 0x1f6   :  { %v5396_v1 = vadd.f32 %v2374_v60, %v5200_v29  ;;  %v5399_v12 = vadd.f32 %v2535_v57, %v5033_v26 }
 0x1f7   :  { %v2376_v27 = vpop.f32.mrf.mxu1  ;;  %v2537_v5 = vpop.f32.mrf.mxu0 }
 0x1f8   :  { %5931 = vst [vmem:[#allocation17_spill] sm:$0xff] %v5396_v1 }
 0x1f9   :  { %v2379_v10 = vpop.f32.mrf.mxu1  ;;  %v2540_v28 = vpop.f32.mrf.mxu0  ;;  %2731 = vmatmul.mubr.bf16.gmra.mxu0 %v4035_v36  ;;  %3628 = vmatmul.mubr.bf16.gmra.mxu1 %v4039_v8 }
 0x1fa   :  { %v5402_v62 = vadd.f32 %v2379_v10, %v5217_v21  ;;  %v5405_v17 = vadd.f32 %v2540_v28, %v5044_v4 }
 0x1fb   :  { %v2381_v31 = vpop.f32.mrf.mxu1  ;;  %v2542_v38 = vpop.f32.mrf.mxu0 }
 0x1fd   :  { %v2382_v33 = vpop.f32.mrf.mxu1  ;;  %v2543_v29 = vpop.f32.mrf.mxu0 }
 0x1fe   :  { %v5408_v60 = vadd.f32 %v2382_v33, %v5222_v9  ;;  %v5411_v26 = vadd.f32 %v2543_v29, %v5055_v34 }
 0x1ff   :  { %v2384_v57 = vpop.f32.mrf.mxu1  ;;  %v2545_v27 = vpop.f32.mrf.mxu0 }
 0x201   :  { %v5413_v36 = vpop.f32.mrf.mxu1  ;;  %v2548_v8 = vpop.f32.mrf.mxu0 }
 0x202   :  { %5932 = vst [vmem:[#allocation18_spill] sm:$0xff] %v5413_v36  ;;  %v5416_v21 = vadd.f32 %v2548_v8, %v5066_v32 }
 0x203   :  { %v2389_v4 = vpop.f32.mrf.mxu1  ;;  %v2550_v5 = vpop.f32.mrf.mxu0 }
 0x205   :  { %v5418_v10 = vpop.f32.mrf.mxu1  ;;  %v2551_v28 = vpop.f32.mrf.mxu0 }
 0x206   :  { %5933 = vst [vmem:[#allocation19_spill] sm:$0xff] %v5418_v10  ;;  %v5421_v31 = vadd.f32 %v2551_v28, %v5077_v43 }
 0x207   :  { %v2392_v33 = vpop.f32.mrf.mxu1  ;;  %v2553_v9 = vpop.f32.mrf.mxu0 }
 0x209   :  { %v5423_v34 = vpop.f32.mrf.mxu1  ;;  %v2556_v38 = vpop.f32.mrf.mxu0 }
 0x20a   :  { %5934 = vst [vmem:[#allocation20_spill] sm:$0xff] %v5423_v34  ;;  %v5426_v29 = vadd.f32 %v2556_v38, %v5088_v55 }
 0x20b   :  { %v2397_v57 = vpop.f32.mrf.mxu1  ;;  %v2558_v27 = vpop.f32.mrf.mxu0 }
 0x20d   :  { %v5428_v32 = vpop.f32.mrf.mxu1  ;;  %v2559_v8 = vpop.f32.mrf.mxu0 }
 0x20e   :  { %5935 = vst [vmem:[#allocation21_spill] sm:$0xff] %v5428_v32  ;;  %v5431_v4 = vadd.f32 %v2559_v8, %v5099_v51 }
 0x20f   :  { %v2400_v5 = vpop.f32.mrf.mxu1  ;;  %v2561_v10 = vpop.f32.mrf.mxu0 }
 0x211   :  { %v5433_v43 = vpop.f32.mrf.mxu1  ;;  %v2564_v28 = vpop.f32.mrf.mxu0 }
 0x212   :  { %5936 = vst [vmem:[#allocation22_spill] sm:$0xff] %v5433_v43  ;;  %v5436_v33 = vadd.f32 %v2564_v28, %v5110_v25 }
 0x213   :  { %v2405_v9 = vpop.f32.mrf.mxu1  ;;  %v2566_v36 = vpop.f32.mrf.mxu0 }
 0x215   :  { %v5438_v55 = vpop.f32.mrf.mxu1  ;;  %v2567_v38 = vpop.f32.mrf.mxu0 }
 0x216   :  { %5937 = vst [vmem:[#allocation23_spill] sm:$0xff] %v5438_v55  ;;  %v5441_v57 = vadd.f32 %v2567_v38, %v5121_v49 }
 0x217   :  { %v2408_v27 = vpop.f32.mrf.mxu1  ;;  %v2569_v32 = vpop.f32.mrf.mxu0 }
 0x219   :  { %v5443_v51 = vpop.f32.mrf.mxu1  ;;  %v2572_v8 = vpop.f32.mrf.mxu0 }
 0x21a   :  { %5938 = vst [vmem:[#allocation24_spill] sm:$0xff] %v5443_v51  ;;  %v5446_v10 = vadd.f32 %v2572_v8, %v5132_v45 }
 0x21b   :  { %v2413_v5 = vpop.f32.mrf.mxu1  ;;  %v2574_v43 = vpop.f32.mrf.mxu0 }
 0x21d   :  { %v5448_v25 = vpop.f32.mrf.mxu1  ;;  %v2575_v28 = vpop.f32.mrf.mxu0 }
 0x21e   :  { %5939 = vst [vmem:[#allocation25_spill] sm:$0xff] %v5448_v25  ;;  %v5451_v36 = vadd.f32 %v2575_v28, %v5143_v18 }
 0x21f   :  { %v2416_v9 = vpop.f32.mrf.mxu1  ;;  %v2577_v55 = vpop.f32.mrf.mxu0 }
 0x221   :  { %v5453_v49 = vpop.f32.mrf.mxu1  ;;  %v2580_v38 = vpop.f32.mrf.mxu0 }
 0x222   :  { %5940 = vst [vmem:[#allocation26_spill] sm:$0xff] %v5453_v49  ;;  %v5456_v32 = vadd.f32 %v2580_v38, %v5154_v13 }
 0x223   :  { %v2421_v27 = vpop.f32.mrf.mxu1  ;;  %v2582_v51 = vpop.f32.mrf.mxu0 }
 0x225   :  { %v5458_v45 = vpop.f32.mrf.mxu1  ;;  %v2583_v8 = vpop.f32.mrf.mxu0 }
 0x226   :  { %5941 = vst [vmem:[#allocation27_spill] sm:$0xff] %v5458_v45  ;;  %v5461_v43 = vadd.f32 %v2583_v8, %v5165_v40 }
 0x227   :  { %v2424_v5 = vpop.f32.mrf.mxu1  ;;  %v2585_v25 = vpop.f32.mrf.mxu0 }
 0x229   :  { %v5463_v18 = vpop.f32.mrf.mxu1  ;;  %v2588_v28 = vpop.f32.mrf.mxu0 }
 0x22a   :  { %5942 = vst [vmem:[#allocation28_spill] sm:$0xff] %v5463_v18  ;;  %v5466_v55 = vadd.f32 %v2588_v28, %v5176_v39 }
 0x22b   :  { %v2429_v9 = vpop.f32.mrf.mxu1  ;;  %v2590_v49 = vpop.f32.mrf.mxu0 }
 0x22d   :  { %v5468_v13 = vpop.f32.mrf.mxu1  ;;  %v2591_v38 = vpop.f32.mrf.mxu0 }
 0x22e   :  { %5943 = vst [vmem:[#allocation29_spill] sm:$0xff] %v5468_v13  ;;  %v5471_v51 = vadd.f32 %v2591_v38, %v5187_v3 }
 0x22f   :  { %v2432_v27 = vpop.f32.mrf.mxu1  ;;  %v2593_v45 = vpop.f32.mrf.mxu0 }
 0x231   :  { %v5473_v40 = vpop.f32.mrf.mxu1  ;;  %v2596_v8 = vpop.f32.mrf.mxu0 }
 0x232   :  { %5944 = vst [vmem:[#allocation30_spill] sm:$0xff] %v5473_v40  ;;  %v5476_v25 = vadd.f32 %v2596_v8, %v5198_v47 }
 0x233   :  { %v2437_v5 = vpop.f32.mrf.mxu1  ;;  %v2598_v18 = vpop.f32.mrf.mxu0 }
 0x235   :  { %v5478_v39 = vpop.f32.mrf.mxu1  ;;  %v2599_v28 = vpop.f32.mrf.mxu0 }
 0x236   :  { %5945 = vst [vmem:[#allocation31_spill] sm:$0xff] %v5478_v39  ;;  %v5481_v49 = vadd.f32 %v2599_v28, %v5209_v30  ;;  %v5494_v30 = vld [vmem:[%s5914_s2] ss:$0 sm:$0xff] }
 0x237   :  { %v2440_v9 = vpop.f32.mrf.mxu1  ;;  %v2601_v13 = vpop.f32.mrf.mxu0 }
 0x239   :  { %v5483_v3 = vpop.f32.mrf.mxu1  ;;  %v5485_v38 = vpop.f32.mrf.mxu0 }
 0x23a   :  { %5946 = vst [vmem:[#allocation32_spill] sm:$0xff] %v5483_v3 }
 0x23b   :  { %v2445_v45 = vpop.f32.mrf.mxu1  ;;  %v2606_v27 = vpop.f32.mrf.mxu0 }
 0x23d   :  { %v5487_v40 = vpop.f32.mrf.mxu1  ;;  %v5489_v47 = vpop.f32.mrf.mxu0 }
 0x23e   :  { %5947 = vst [vmem:[#allocation33_spill] sm:$0xff] %v5487_v40 }
 0x23f   :  { %v2448_v8 = vpop.f32.mrf.mxu1  ;;  %v2609_v18 = vpop.f32.mrf.mxu0 }
 0x241   :  { %v2612_v5 = vpop.f32.mrf.mxu0  ;;  %v3569_v28 = vpop.f32.mrf.mxu1 }
 0x242   :  { %v5497_v13 = vadd.f32 %v2612_v5, %v5240_v15  ;;  %v2782_v9 = vadd.f32 %v3569_v28, %v5267_v48 }
 0x243   :  { %v2614_v45 = vpop.f32.mrf.mxu0  ;;  %v2773_v27 = vpop.f32.mrf.mxu1 }
 0x244   :  { %v3036_v40 = vadd.f32 %v5494_v30, %v2782_v9  ;;  %v2774_v39 = vadd.f32 %v2773_v27, %v5243_v56 }
 0x245   :  { %v2615_v8 = vpop.f32.mrf.mxu0  ;;  %v3570_v18 = vpop.f32.mrf.mxu1 }
 0x246   :  { %4040 = vtanh.f32 %v3036_v40  ;;  %v3034_v3 = vadd.f32 %v5494_v30, %v2774_v39  ;;  %v5504_v1 = vadd.f32 %v2615_v8, %v5252_v24  ;;  %v2785_v34 = vadd.f32 %v3570_v18, %v5279_v42 }
 0x247   :  { %v2617_v15 = vpop.f32.mrf.mxu0  ;;  %v2776_v5 = vpop.f32.mrf.mxu1 }
 0x248   :  { %4042 = vtanh.f32 %v3034_v3  ;;  %v3037_v48 = vadd.f32 %v5494_v30, %v2785_v34  ;;  %v2777_v28 = vadd.f32 %v2776_v5, %v5255_v22 }
 0x249   :  { %v5509_v9 = vpop.f32.mrf.mxu0  ;;  %v3573_v56 = vpop.f32.mrf.mxu1 }
 0x24a   :  { %4044 = vtanh.f32 %v3037_v48  ;;  %v3035_v40 = vadd.f32 %v5494_v30, %v2777_v28  ;;  %v2798_v39 = vadd.f32 %v3573_v56, %v5315_v23 }
 0x24b   :  { %v2622_v45 = vpop.f32.mrf.mxu0  ;;  %v2789_v24 = vpop.f32.mrf.mxu1 }
 0x24c   :  { %4046 = vtanh.f32 %v3035_v40  ;;  %v3040_v42 = vadd.f32 %v5494_v30, %v2798_v39  ;;  %v2790_v27 = vadd.f32 %v2789_v24, %v5291_v58 }
 0x24d   :  { %v5515_v3 = vpop.f32.mrf.mxu0  ;;  %v3574_v34 = vpop.f32.mrf.mxu1 }
 0x24e   :  { %4048 = vtanh.f32 %v3040_v42  ;;  %v3038_v22 = vadd.f32 %v5494_v30, %v2790_v27  ;;  %v2801_v8 = vadd.f32 %v3574_v34, %v5327_v0 }
 0x24f   :  { %v2625_v18 = vpop.f32.mrf.mxu0  ;;  %v2792_v15 = vpop.f32.mrf.mxu1 }
 0x250   :  { %4050 = vtanh.f32 %v3038_v22  ;;  %v3041_v23 = vadd.f32 %v5494_v30, %v2801_v8  ;;  %v2793_v5 = vadd.f32 %v2792_v15, %v5303_v11 }
 0x251   :  { %v5521_v48 = vpop.f32.mrf.mxu0  ;;  %v3577_v28 = vpop.f32.mrf.mxu1 }
 0x252   :  { %4052 = vtanh.f32 %v3041_v23  ;;  %v3039_v58 = vadd.f32 %v5494_v30, %v2793_v5  ;;  %v2814_v56 = vadd.f32 %v3577_v28, %v5363_v19 }
 0x253   :  { %v4041_v40 = vpop.eup %4040  ;;  %v2630_v39 = vpop.f32.mrf.mxu0 }
 0x254   :  { %v2805_v45 = vpop.f32.mrf.mxu1  ;;  %3164 = vst [vmem:[%s5915_s3 + $0x10] sm:$0xff] %v4041_v40  ;;  %4054 = vtanh.f32 %v3039_v58  ;;  %v3044_v0 = vadd.f32 %v5494_v30, %v2814_v56 }
 0x255   :  { %v2806_v11 = vadd.f32 %v2805_v45, %v5339_v53  ;;  %v4043_v24 = vpop.eup %4042  ;;  %v5530_v42 = vpop.f32.mrf.mxu0 }
 0x256   :  { %v3578_v27 = vpop.f32.mrf.mxu1  ;;  %3162 = vst [vmem:[%s5915_s3] sm:$0xff] %v4043_v24  ;;  %4056 = vtanh.f32 %v3044_v0 }
 0x257   :  { %v3042_v19 = vadd.f32 %v5494_v30, %v2806_v11  ;;  %v2817_v34 = vadd.f32 %v3578_v27, %v5375_v59  ;;  %v4045_v22 = vpop.eup %4044  ;;  %v2633_v8 = vpop.f32.mrf.mxu0 }
 0x258   :  { %v2808_v18 = vpop.f32.mrf.mxu1  ;;  %3165 = vst [vmem:[%s5915_s3 + $0x18] sm:$0xff] %v4045_v22 }
 0x259   :  { %4058 = vtanh.f32 %v3042_v19  ;;  %v3045_v53 = vadd.f32 %v5494_v30, %v2817_v34  ;;  %v2809_v15 = vadd.f32 %v2808_v18, %v5351_v2  ;;  %v4047_v23 = vpop.eup %4046  ;;  %v5542_v5 = vpop.f32.mrf.mxu0 }
 0x25a   :  { %v3581_v28 = vpop.f32.mrf.mxu1  ;;  %3163 = vst [vmem:[%s5915_s3 + $0x8] sm:$0xff] %v4047_v23 }
 0x25b   :  { %4060 = vtanh.f32 %v3045_v53  ;;  %v3043_v59 = vadd.f32 %v5494_v30, %v2809_v15  ;;  %v2830_v58 = vadd.f32 %v3581_v28, %v5405_v17  ;;  %v4049_v56 = vpop.eup %4048  ;;  %v2638_v40 = vpop.f32.mrf.mxu0 }
 0x25c   :  { %v2821_v39 = vpop.f32.mrf.mxu1  ;;  %3168 = vst [vmem:[%s5915_s3 + $0x30] sm:$0xff] %v4049_v56 }
 0x25d   :  { %4062 = vtanh.f32 %v3043_v59  ;;  %v3048_v2 = vadd.f32 %v5494_v30, %v2830_v58  ;;  %v2822_v45 = vadd.f32 %v2821_v39, %v5387_v54  ;;  %v4051_v0 = vpop.eup %4050  ;;  %v5554_v11 = vpop.f32.mrf.mxu0 }
 0x25e   :  { %v3582_v24 = vpop.f32.mrf.mxu1  ;;  %3166 = vst [vmem:[%s5915_s3 + $0x20] sm:$0xff] %v4051_v0 }
 0x25f   :  { %4064 = vtanh.f32 %v3048_v2  ;;  %v3046_v17 = vadd.f32 %v5494_v30, %v2822_v45  ;;  %v2833_v27 = vadd.f32 %v3582_v24, %v5411_v26  ;;  %v4053_v19 = vpop.eup %4052  ;;  %v2641_v34 = vpop.f32.mrf.mxu0 }
 0x260   :  { %v2824_v22 = vpop.f32.mrf.mxu1  ;;  %3169 = vst [vmem:[%s5915_s3 + $0x38] sm:$0xff] %v4053_v19 }
 0x261   :  { %4066 = vtanh.f32 %v3046_v17  ;;  %v3049_v54 = vadd.f32 %v5494_v30, %v2833_v27  ;;  %v2825_v8 = vadd.f32 %v2824_v22, %v5399_v12  ;;  %v4055_v18 = vpop.eup %4054  ;;  %v5566_v53 = vpop.f32.mrf.mxu0 }
 0x262   :  { %v3585_v15 = vpop.f32.mrf.mxu1  ;;  %3167 = vst [vmem:[%s5915_s3 + $0x28] sm:$0xff] %v4055_v18 }
 0x263   :  { %4068 = vtanh.f32 %v3049_v54  ;;  %v3047_v26 = vadd.f32 %v5494_v30, %v2825_v8  ;;  %v2846_v23 = vadd.f32 %v3585_v15, %v5426_v29  ;;  %v4057_v28 = vpop.eup %4056  ;;  %v2646_v59 = vpop.f32.mrf.mxu0 }
 0x264   :  { %v2837_v58 = vpop.f32.mrf.mxu1  ;;  %3172 = vst [vmem:[%s5915_s3 + $0x50] sm:$0xff] %v4057_v28 }
 0x265   :  { %4070 = vtanh.f32 %v3047_v26  ;;  %v3052_v12 = vadd.f32 %v5494_v30, %v2846_v23  ;;  %v2838_v56 = vadd.f32 %v2837_v58, %v5416_v21  ;;  %v5578_v39 = vpop.f32.mrf.mxu0 }
 0x266   :  { %v4059_v40 = vpop.eup %4058  ;;  %v3586_v2 = vpop.f32.mrf.mxu1 }
 0x267   :  { %3170 = vst [vmem:[%s5915_s3 + $0x40] sm:$0xff] %v4059_v40  ;;  %4072 = vtanh.f32 %v3052_v12  ;;  %v3050_v29 = vadd.f32 %v5494_v30, %v2838_v56  ;;  %v2849_v45 = vadd.f32 %v3586_v2, %v5431_v4  ;;  %v2649_v24 = vpop.f32.mrf.mxu0 }
 0x268   :  { %v4061_v0 = vpop.eup %4060  ;;  %v2840_v17 = vpop.f32.mrf.mxu1 }
 0x269   :  { %3173 = vst [vmem:[%s5915_s3 + $0x58] sm:$0xff] %v4061_v0  ;;  %4074 = vtanh.f32 %v3050_v29  ;;  %v3053_v21 = vadd.f32 %v5494_v30, %v2849_v45  ;;  %v2841_v27 = vadd.f32 %v2840_v17, %v5421_v31  ;;  %v5590_v34 = vpop.f32.mrf.mxu0 }
 0x26a   :  { %v4063_v19 = vpop.eup %4062  ;;  %v3589_v22 = vpop.f32.mrf.mxu1 }
 0x26b   :  { %3171 = vst [vmem:[%s5915_s3 + $0x48] sm:$0xff] %v4063_v19  ;;  %4076 = vtanh.f32 %v3053_v21  ;;  %v3051_v4 = vadd.f32 %v5494_v30, %v2841_v27  ;;  %v2862_v54 = vadd.f32 %v3589_v22, %v5446_v10  ;;  %v2654_v18 = vpop.f32.mrf.mxu0 }
 0x26c   :  { %v4065_v8 = vpop.eup %4064  ;;  %v2853_v15 = vpop.f32.mrf.mxu1 }
 0x26d   :  { %3176 = vst [vmem:[%s5915_s3 + $0x70] sm:$0xff] %v4065_v8  ;;  %4078 = vtanh.f32 %v3051_v4  ;;  %v3056_v31 = vadd.f32 %v5494_v30, %v2862_v54  ;;  %v2854_v26 = vadd.f32 %v2853_v15, %v5436_v33  ;;  %v5602_v28 = vpop.f32.mrf.mxu0 }
 0x26e   :  { %v4067_v23 = vpop.eup %4066  ;;  %v3590_v59 = vpop.f32.mrf.mxu1 }
 0x26f   :  { %3174 = vst [vmem:[%s5915_s3 + $0x60] sm:$0xff] %v4067_v23  ;;  %4080 = vtanh.f32 %v3056_v31  ;;  %v3054_v10 = vadd.f32 %v5494_v30, %v2854_v26  ;;  %v2865_v58 = vadd.f32 %v3590_v59, %v5451_v36  ;;  %v2657_v56 = vpop.f32.mrf.mxu0  ;;  %v2605_v26 = vadd.f32 %v5485_v38, %v5220_v41 }
 0x270   :  { %v4069_v12 = vpop.eup %4068  ;;  %v2856_v40 = vpop.f32.mrf.mxu1 }
 0x271   :  { %3177 = vst [vmem:[%s5915_s3 + $0x78] sm:$0xff] %v4069_v12  ;;  %4082 = vtanh.f32 %v3054_v10  ;;  %v3057_v33 = vadd.f32 %v5494_v30, %v2865_v58  ;;  %v2857_v2 = vadd.f32 %v2856_v40, %v5441_v57  ;;  %v5614_v45 = vpop.f32.mrf.mxu0  ;;  %v2608_v40 = vadd.f32 %v5489_v47, %v5231_v61 }
 0x272   :  { %v4071_v29 = vpop.eup %4070  ;;  %v3593_v0 = vpop.f32.mrf.mxu1 }
 0x273   :  { %3175 = vst [vmem:[%s5915_s3 + $0x68] sm:$0xff] %v4071_v29  ;;  %4084 = vtanh.f32 %v3057_v33  ;;  %v3055_v36 = vadd.f32 %v5494_v30, %v2857_v2  ;;  %v2878_v24 = vadd.f32 %v3593_v0, %v5466_v55  ;;  %v2662_v21 = vpop.f32.mrf.mxu0 }
 0x274   :  { %v4073_v17 = vpop.eup %4072  ;;  %v2869_v27 = vpop.f32.mrf.mxu1  ;;  %v2621_v21 = vadd.f32 %v5509_v9, %v5264_v37 }
 0x275   :  { %3180 = vst [vmem:[%s5915_s3 + $0x90] sm:$0xff] %v4073_v17  ;;  %4086 = vtanh.f32 %v3055_v36  ;;  %v3060_v57 = vadd.f32 %v5494_v30, %v2878_v24  ;;  %v2870_v19 = vadd.f32 %v2869_v27, %v5456_v32  ;;  %v5626_v4 = vpop.f32.mrf.mxu0 }
 0x276   :  { %v4075_v22 = vpop.eup %4074  ;;  %v3594_v54 = vpop.f32.mrf.mxu1 }
 0x277   :  { %3178 = vst [vmem:[%s5915_s3 + $0x80] sm:$0xff] %v4075_v22  ;;  %4088 = vtanh.f32 %v3060_v57  ;;  %v3058_v55 = vadd.f32 %v5494_v30, %v2870_v19  ;;  %v2881_v8 = vadd.f32 %v3594_v54, %v5471_v51  ;;  %v2665_v15 = vpop.f32.mrf.mxu0 }
 0x278   :  { %v4077_v18 = vpop.eup %4076  ;;  %v2872_v31 = vpop.f32.mrf.mxu1 }
 0x279   :  { %3181 = vst [vmem:[%s5915_s3 + $0x98] sm:$0xff] %v4077_v18  ;;  %4090 = vtanh.f32 %v3058_v55  ;;  %v3061_v32 = vadd.f32 %v5494_v30, %v2881_v8  ;;  %v2873_v23 = vadd.f32 %v2872_v31, %v5461_v43  ;;  %v5640_v10 = vpop.f32.mrf.mxu0  ;;  %v2624_v18 = vadd.f32 %v5515_v3, %v5276_v14 }
 0x27a   :  { %v4079_v59 = vpop.eup %4078  ;;  %v3597_v58 = vpop.f32.mrf.mxu1 }
 0x27b   :  { %3179 = vst [vmem:[%s5915_s3 + $0x88] sm:$0xff] %v4079_v59  ;;  %4092 = vtanh.f32 %v3061_v32  ;;  %v3059_v41 = vadd.f32 %v5494_v30, %v2873_v23  ;;  %v2894_v51 = vadd.f32 %v3597_v58, %v2605_v26  ;;  %v2670_v12 = vpop.f32.mrf.mxu0 }
 0x27c   :  { %v4081_v38 = vpop.eup %4080  ;;  %v2885_v56 = vpop.f32.mrf.mxu1 }
 0x27d   :  { %3184 = vst [vmem:[%s5915_s3 + $0xb0] sm:$0xff] %v4081_v38  ;;  %4094 = vtanh.f32 %v3059_v41  ;;  %v3064_v43 = vadd.f32 %v5494_v30, %v2894_v51  ;;  %v2886_v33 = vadd.f32 %v2885_v56, %v5476_v25  ;;  %v5653_v29 = vpop.f32.mrf.mxu0  ;;  %v2637_v41 = vadd.f32 %v5542_v5, %v5312_v20 }
 0x27e   :  { %v4083_v2 = vpop.eup %4082  ;;  %v3598_v0 = vpop.f32.mrf.mxu1 }
 0x27f   :  { %3182 = vst [vmem:[%s5915_s3 + $0xa0] sm:$0xff] %v4083_v2  ;;  %4096 = vtanh.f32 %v3064_v43  ;;  %v3062_v61 = vadd.f32 %v5494_v30, %v2886_v33  ;;  %v2897_v47 = vadd.f32 %v3598_v0, %v2608_v40  ;;  %v2673_v24 = vpop.f32.mrf.mxu0  ;;  %v2629_v40 = vadd.f32 %v5521_v48, %v5288_v6 }
 0x280   :  { %v4085_v36 = vpop.eup %4084  ;;  %v2888_v17 = vpop.f32.mrf.mxu1 }
 0x281   :  { %3185 = vst [vmem:[%s5915_s3 + $0xb8] sm:$0xff] %v4085_v36  ;;  %4098 = vtanh.f32 %v3062_v61  ;;  %v3065_v25 = vadd.f32 %v5494_v30, %v2897_v47  ;;  %v2889_v27 = vadd.f32 %v2888_v17, %v5481_v49  ;;  %v5666_v19 = vpop.f32.mrf.mxu0  ;;  %v2632_v36 = vadd.f32 %v5530_v42, %v5300_v63 }
 0x282   :  { %v4087_v57 = vpop.eup %4086  ;;  %v3601_v22 = vpop.f32.mrf.mxu1 }
 0x283   :  { %3183 = vst [vmem:[%s5915_s3 + $0xa8] sm:$0xff] %v4087_v57  ;;  %4100 = vtanh.f32 %v3065_v25  ;;  %v3063_v37 = vadd.f32 %v5494_v30, %v2889_v27  ;;  %v2910_v9 = vadd.f32 %v3601_v22, %v2621_v21  ;;  %v2678_v55 = vpop.f32.mrf.mxu0  ;;  %v2653_v25 = vadd.f32 %v5590_v34, %v5360_v46 }
 0x284   :  { %v4089_v54 = vpop.eup %4088  ;;  %v2901_v8 = vpop.f32.mrf.mxu1 }
 0x285   :  { %3188 = vst [vmem:[%s5915_s3 + $0xd0] sm:$0xff] %v4089_v54  ;;  %4102 = vtanh.f32 %v3063_v37  ;;  %v3068_v49 = vadd.f32 %v5494_v30, %v2910_v9  ;;  %v2902_v15 = vadd.f32 %v2901_v8, %v5497_v13  ;;  %v5679_v26 = vpop.f32.mrf.mxu0  ;;  %v2645_v37 = vadd.f32 %v5566_v53, %v5336_v52 }
 0x286   :  { %v4091_v31 = vpop.eup %4090  ;;  %v3602_v32 = vpop.f32.mrf.mxu1  ;;  %v2656_v8 = vadd.f32 %v5602_v28, %v5372_v7 }
 0x287   :  { %3186 = vst [vmem:[%s5915_s3 + $0xc0] sm:$0xff] %v4091_v31  ;;  %4104 = vtanh.f32 %v3068_v49  ;;  %v3066_v14 = vadd.f32 %v5494_v30, %v2902_v15  ;;  %v2913_v3 = vadd.f32 %v3602_v32, %v2624_v18  ;;  %v2681_v59 = vpop.f32.mrf.mxu0  ;;  %v2648_v31 = vadd.f32 %v5578_v39, %v5348_v50 }
 0x288   :  { %v4093_v23 = vpop.eup %4092  ;;  %v2904_v58 = vpop.f32.mrf.mxu1 }
 0x289   :  { %3189 = vst [vmem:[%s5915_s3 + $0xd8] sm:$0xff] %v4093_v23  ;;  %4106 = vtanh.f32 %v3066_v14  ;;  %v3069_v13 = vadd.f32 %v5494_v30, %v2913_v3  ;;  %v2905_v51 = vadd.f32 %v2904_v58, %v5504_v1  ;;  %v5692_v12 = vpop.f32.mrf.mxu0  ;;  %v2640_v1 = vadd.f32 %v5554_v11, %v5324_v16 }
 0x28a   :  { %v4095_v38 = vpop.eup %4094  ;;  %v3605_v56 = vpop.f32.mrf.mxu1  ;;  %v2669_v23 = vadd.f32 %v5640_v10, %v5402_v62 }
 0x28b   :  { %3187 = vst [vmem:[%s5915_s3 + $0xc8] sm:$0xff] %v4095_v38  ;;  %4108 = vtanh.f32 %v3069_v13  ;;  %v3067_v20 = vadd.f32 %v5494_v30, %v2905_v51  ;;  %v2926_v5 = vadd.f32 %v3605_v56, %v2637_v41  ;;  %v2686_v33 = vpop.f32.mrf.mxu0  ;;  %v2661_v13 = vadd.f32 %v5614_v45, %v5384_v35 }
 0x28c   :  { %v4097_v43 = vpop.eup %4096  ;;  %v2917_v2 = vpop.f32.mrf.mxu1 }
 0x28d   :  { %3192 = vst [vmem:[%s5915_s3 + $0xf0] sm:$0xff] %v4097_v43  ;;  %4110 = vtanh.f32 %v3067_v20  ;;  %v3072_v6 = vadd.f32 %v5494_v30, %v2926_v5  ;;  %v2918_v48 = vadd.f32 %v2917_v2, %v2629_v40  ;;  %v5706_v61 = vpop.f32.mrf.mxu0  ;;  %v2672_v40 = vadd.f32 %v5653_v29, %v5408_v60  ;;  %v5948_v5 = vld [vmem:[#allocation20_spill] sm:$0xff] }
 0x28e   :  { %v4099_v0 = vpop.eup %4098  ;;  %v3606_v47 = vpop.f32.mrf.mxu1  ;;  %v2396_v43 = vadd.f32 %v5948_v5, %v4749_v44 }
 0x28f   :  { %3190 = vst [vmem:[%s5915_s3 + $0xe0] sm:$0xff] %v4099_v0  ;;  %4112 = vtanh.f32 %v3072_v6  ;;  %v3070_v16 = vadd.f32 %v5494_v30, %v2918_v48  ;;  %v2929_v11 = vadd.f32 %v3606_v47, %v2640_v1  ;;  %v2689_v17 = vpop.f32.mrf.mxu0  ;;  %v5949_v1 = vld [vmem:[#allocation17_spill] sm:$0xff]  ;;  %v5950_v0 = vld [vmem:[#allocation2_spill] sm:$0xff] }
 0x290   :  { %v4101_v24 = vpop.eup %4100  ;;  %v2920_v21 = vpop.f32.mrf.mxu1  ;;  %v2664_v6 = vadd.f32 %v5626_v4, %v5949_v1  ;;  %v5951_v47 = vld [vmem:[#allocation18_spill] sm:$0xff]  ;;  %v5963_v1 = vld [vmem:[#allocation23_spill] sm:$0xff] }
 0x291   :  { %3193 = vst [vmem:[%s5915_s3 + $0xf8] sm:$0xff] %v4101_v24  ;;  %4114 = vtanh.f32 %v3070_v16  ;;  %v3073_v63 = vadd.f32 %v5494_v30, %v2929_v11  ;;  %v2921_v42 = vadd.f32 %v2920_v21, %v2632_v36  ;;  %v5720_v57 = vpop.f32.mrf.mxu0  ;;  %v2388_v36 = vadd.f32 %v5951_v47, %v5950_v0  ;;  %v5952_v21 = vld [vmem:[#allocation4_spill] sm:$0xff] }
 0x292   :  { %v4103_v27 = vpop.eup %4102  ;;  %v3609_v22 = vpop.f32.mrf.mxu1  ;;  %v2685_v11 = vadd.f32 %v5692_v12, %v2396_v43 }
 0x293   :  { %3191 = vst [vmem:[%s5915_s3 + $0xe8] sm:$0xff] %v4103_v27  ;;  %4116 = vtanh.f32 %v3073_v63  ;;  %v3071_v46 = vadd.f32 %v5494_v30, %v2921_v42  ;;  %v2942_v34 = vadd.f32 %v3609_v22, %v2653_v25  ;;  %v2694_v54 = vpop.f32.mrf.mxu0  ;;  %v5953_v25 = vld [vmem:[#allocation21_spill] sm:$0xff]  ;;  %v2677_v22 = vadd.f32 %v5666_v19, %v2388_v36  ;;  %v5964_v36 = vld [vmem:[#allocation11_spill] sm:$0xff] }
 0x294   :  { %v4105_v9 = vpop.eup %4104  ;;  %v2933_v55 = vpop.f32.mrf.mxu1  ;;  %v2399_v63 = vadd.f32 %v5953_v25, %v5952_v21  ;;  %v5966_v25 = vld [vmem:[#allocation9_spill] sm:$0xff] }
 0x295   :  { %3196 = vst [vmem:[%s5915_s3 + $0x110] sm:$0xff] %v4105_v9  ;;  %4118 = vtanh.f32 %v3071_v46  ;;  %v3076_v52 = vadd.f32 %v5494_v30, %v2942_v34  ;;  %v2934_v53 = vadd.f32 %v2933_v55, %v2645_v37  ;;  %v5734_v49 = vpop.f32.mrf.mxu0  ;;  %v5954_v34 = vld [vmem:[#allocation3_spill] sm:$0xff] }
 0x296   :  { %v4107_v18 = vpop.eup %4106  ;;  %v3610_v15 = vpop.f32.mrf.mxu1  ;;  %v5955_v9 = vld [vmem:[#allocation19_spill] sm:$0xff] }
 0x297   :  { %3194 = vst [vmem:[%s5915_s3 + $0x100] sm:$0xff] %v4107_v18  ;;  %4120 = vtanh.f32 %v3076_v52  ;;  %v3074_v7 = vadd.f32 %v5494_v30, %v2934_v53  ;;  %v2945_v28 = vadd.f32 %v3610_v15, %v2656_v8  ;;  %v2697_v14 = vpop.f32.mrf.mxu0  ;;  %v2391_v54 = vadd.f32 %v5955_v9, %v5954_v34  ;;  %v5956_v15 = vld [vmem:[#allocation7_spill] sm:$0xff]  ;;  %v5968_v9 = vld [vmem:[#allocation12_spill] sm:$0xff] }
 0x298   :  { %v4109_v32 = vpop.eup %4108  ;;  %v2936_v3 = vpop.f32.mrf.mxu1  ;;  %v2688_v52 = vadd.f32 %v5706_v61, %v2399_v63  ;;  %v5967_v63 = vld [vmem:[#allocation26_spill] sm:$0xff] }
 0x299   :  { %3197 = vst [vmem:[%s5915_s3 + $0x118] sm:$0xff] %v4109_v32  ;;  %4122 = vtanh.f32 %v3074_v7  ;;  %v3077_v50 = vadd.f32 %v5494_v30, %v2945_v28  ;;  %v2937_v39 = vadd.f32 %v2936_v3, %v2648_v31  ;;  %v5748_v58 = vpop.f32.mrf.mxu0  ;;  %v5957_v31 = vld [vmem:[#allocation24_spill] sm:$0xff]  ;;  %v2680_v14 = vadd.f32 %v5679_v26, %v2391_v54  ;;  %v5969_v54 = vld [vmem:[#allocation29_spill] sm:$0xff] }
 0x29a   :  { %v4111_v59 = vpop.eup %4110  ;;  %v3613_v41 = vpop.f32.mrf.mxu1  ;;  %v2412_v7 = vadd.f32 %v5957_v31, %v5956_v15  ;;  %v5970_v31 = vld [vmem:[#allocation10_spill] sm:$0xff] }
 0x29b   :  { %3195 = vst [vmem:[%s5915_s3 + $0x108] sm:$0xff] %v4111_v59  ;;  %4124 = vtanh.f32 %v3077_v50  ;;  %v3075_v62 = vadd.f32 %v5494_v30, %v2937_v39  ;;  %v2958_v10 = vadd.f32 %v3613_v41, %v2669_v23  ;;  %v2702_v38 = vpop.f32.mrf.mxu0  ;;  %v5958_v50 = vld [vmem:[#allocation5_spill] sm:$0xff]  ;;  %v5959_v39 = vld [vmem:[#allocation22_spill] sm:$0xff] }
 0x29c   :  { %v4113_v51 = vpop.eup %4112  ;;  %v2949_v56 = vpop.f32.mrf.mxu1  ;;  %v2404_v59 = vadd.f32 %v5959_v39, %v5958_v50  ;;  %v2701_v26 = vadd.f32 %v5748_v58, %v2412_v7  ;;  %v5960_v38 = vld [vmem:[#allocation8_spill] sm:$0xff]  ;;  %v5971_v7 = vld [vmem:[#allocation27_spill] sm:$0xff] }
 0x29d   :  { %3200 = vst [vmem:[%s5915_s3 + $0x130] sm:$0xff] %v4113_v51  ;;  %4126 = vtanh.f32 %v3075_v62  ;;  %v3080_v35 = vadd.f32 %v5494_v30, %v2958_v10  ;;  %v2950_v45 = vadd.f32 %v2949_v56, %v2661_v13  ;;  %v5764_v33 = vpop.f32.mrf.mxu0  ;;  %v5961_v56 = vld [vmem:[#allocation25_spill] sm:$0xff] }
 0x29e   :  { %v4115_v20 = vpop.eup %4114  ;;  %v3614_v2 = vpop.f32.mrf.mxu1 }
 0x29f   :  { %3198 = vst [vmem:[%s5915_s3 + $0x120] sm:$0xff] %v4115_v20  ;;  %4128 = vtanh.f32 %v3080_v35  ;;  %v3078_v60 = vadd.f32 %v5494_v30, %v2950_v45  ;;  %v2961_v29 = vadd.f32 %v3614_v2, %v2672_v40  ;;  %v2705_v16 = vpop.f32.mrf.mxu0  ;;  %v2415_v40 = vadd.f32 %v5961_v56, %v5960_v38  ;;  %v5962_v2 = vld [vmem:[#allocation6_spill] sm:$0xff] }
 0x2a0   :  { %v4117_v48 = vpop.eup %4116  ;;  %v2952_v44 = vpop.f32.mrf.mxu1  ;;  %v2693_v20 = vadd.f32 %v5720_v57, %v2404_v59  ;;  %v5965_v16 = vld [vmem:[#allocation28_spill] sm:$0xff] }
 0x2a1   :  { %3201 = vst [vmem:[%s5915_s3 + $0x138] sm:$0xff] %v4117_v48  ;;  %4130 = vtanh.f32 %v3078_v60  ;;  %v3081_v4 = vadd.f32 %v5494_v30, %v2961_v29  ;;  %v2953_v24 = vadd.f32 %v2952_v44, %v2664_v6  ;;  %v5781_v42 = vpop.f32.mrf.mxu0  ;;  %v2407_v6 = vadd.f32 %v5963_v1, %v5962_v2 }
 0x2a2   :  { %v4119_v17 = vpop.eup %4118  ;;  %v3617_v27 = vpop.f32.mrf.mxu1  ;;  %v2704_v57 = vadd.f32 %v5764_v33, %v2415_v40  ;;  %v2428_v44 = vadd.f32 %v5965_v16, %v5964_v36  ;;  %v5978_v16 = vld [vmem:[#allocation16_spill] sm:$0xff] }
 0x2a3   :  { %3199 = vst [vmem:[%s5915_s3 + $0x128] sm:$0xff] %v4119_v17  ;;  %4132 = vtanh.f32 %v3081_v4  ;;  %v3079_v12 = vadd.f32 %v5494_v30, %v2953_v24  ;;  %v2974_v37 = vadd.f32 %v3617_v27, %v2685_v11  ;;  %v2710_v55 = vpop.f32.mrf.mxu0  ;;  %v2696_v24 = vadd.f32 %v5734_v49, %v2407_v6 }
 0x2a4   :  { %v4121_v46 = vpop.eup %4120  ;;  %v2965_v8 = vpop.f32.mrf.mxu1  ;;  %v2420_v27 = vadd.f32 %v5967_v63, %v5966_v25  ;;  %v2431_v55 = vadd.f32 %v5969_v54, %v5968_v9 }
 0x2a5   :  { %3204 = vst [vmem:[%s5915_s3 + $0x150] sm:$0xff] %v4121_v46  ;;  %4134 = vtanh.f32 %v3079_v12  ;;  %v3084_v19 = vadd.f32 %v5494_v30, %v2974_v37  ;;  %v2966_v53 = vadd.f32 %v2965_v8, %v2677_v22  ;;  %v5797_v28 = vpop.f32.mrf.mxu0 }
 0x2a6   :  { %v4123_v18 = vpop.eup %4122  ;;  %v3618_v32 = vpop.f32.mrf.mxu1 }
 0x2a7   :  { %3202 = vst [vmem:[%s5915_s3 + $0x140] sm:$0xff] %v4123_v18  ;;  %4136 = vtanh.f32 %v3084_v19  ;;  %v3082_v61 = vadd.f32 %v5494_v30, %v2966_v53  ;;  %v2977_v3 = vadd.f32 %v3618_v32, %v2688_v52  ;;  %v2713_v41 = vpop.f32.mrf.mxu0  ;;  %v2709_v19 = vadd.f32 %v5781_v42, %v2420_v27 }
 0x2a8   :  { %v4125_v23 = vpop.eup %4124  ;;  %v2968_v13 = vpop.f32.mrf.mxu1  ;;  %v2423_v32 = vadd.f32 %v5971_v7, %v5970_v31 }
 0x2a9   :  { %3205 = vst [vmem:[%s5915_s3 + $0x158] sm:$0xff] %v4125_v23  ;;  %4138 = vtanh.f32 %v3082_v61  ;;  %v3085_v62 = vadd.f32 %v5494_v30, %v2977_v3  ;;  %v2969_v10 = vadd.f32 %v2968_v13, %v2680_v14  ;;  %v2716_v35 = vpop.f32.mrf.mxu0 }
 0x2aa   :  { %v4127_v51 = vpop.eup %4126  ;;  %v3621_v45 = vpop.f32.mrf.mxu1  ;;  %v2717_v37 = vadd.f32 %v2716_v35, %v2428_v44  ;;  %v2712_v41 = vadd.f32 %v5797_v28, %v2423_v32  ;;  %v5974_v35 = vld [vmem:[#allocation15_spill] sm:$0xff]  ;;  %v5979_v44 = vld [vmem:[#allocation33_spill] sm:$0xff] }
 0x2ab   :  { %3203 = vst [vmem:[%s5915_s3 + $0x148] sm:$0xff] %v4127_v51  ;;  %4140 = vtanh.f32 %v3085_v62  ;;  %v3083_v5 = vadd.f32 %v5494_v30, %v2969_v10  ;;  %v2990_v58 = vadd.f32 %v3621_v45, %v2701_v26  ;;  %v2718_v60 = vpop.f32.mrf.mxu0  ;;  %v5972_v10 = vld [vmem:[#allocation13_spill] sm:$0xff]  ;;  %v5973_v51 = vld [vmem:[#allocation30_spill] sm:$0xff]  ;;  %v5975_v45 = vld [vmem:[#allocation32_spill] sm:$0xff] }
 0x2ac   :  { %v4129_v43 = vpop.eup %4128  ;;  %v2981_v29 = vpop.f32.mrf.mxu1  ;;  %v2436_v38 = vadd.f32 %v5973_v51, %v5972_v10 }
 0x2ad   :  { %3208 = vst [vmem:[%s5915_s3 + $0x170] sm:$0xff] %v4129_v43  ;;  %4142 = vtanh.f32 %v3083_v5  ;;  %v3088_v48 = vadd.f32 %v5494_v30, %v2990_v58  ;;  %v2982_v0 = vadd.f32 %v2981_v29, %v2693_v20  ;;  %v2719_v11 = vpop.f32.mrf.mxu0  ;;  %v2444_v20 = vadd.f32 %v5975_v45, %v5974_v35 }
 0x2ae   :  { %v4131_v47 = vpop.eup %4130  ;;  %v3622_v4 = vpop.f32.mrf.mxu1  ;;  %v2720_v3 = vadd.f32 %v2719_v11, %v2431_v55  ;;  %v2447_v11 = vadd.f32 %v5979_v44, %v5978_v16 }
 0x2af   :  { %3206 = vst [vmem:[%s5915_s3 + $0x160] sm:$0xff] %v4131_v47  ;;  %4144 = vtanh.f32 %v3088_v48  ;;  %v3086_v17 = vadd.f32 %v5494_v30, %v2982_v0  ;;  %v2993_v33 = vadd.f32 %v3622_v4, %v2704_v57  ;;  %v2721_v22 = vpop.f32.mrf.mxu0  ;;  %v5976_v57 = vld [vmem:[#allocation14_spill] sm:$0xff]  ;;  %v5977_v48 = vld [vmem:[#allocation31_spill] sm:$0xff] }
 0x2b0   :  { %v4133_v21 = vpop.eup %4132  ;;  %v2984_v12 = vpop.f32.mrf.mxu1  ;;  %v2439_v0 = vadd.f32 %v5977_v48, %v5976_v57 }
 0x2b1   :  { %3209 = vst [vmem:[%s5915_s3 + $0x178] sm:$0xff] %v4133_v21  ;;  %4146 = vtanh.f32 %v3086_v17  ;;  %v3089_v49 = vadd.f32 %v5494_v30, %v2993_v33  ;;  %v2985_v46 = vadd.f32 %v2984_v12, %v2696_v24  ;;  %v2724_v8 = vpop.f32.mrf.mxu0 }
 0x2b2   :  { %v4135_v34 = vpop.eup %4134  ;;  %v3625_v52 = vpop.f32.mrf.mxu1  ;;  %v2725_v1 = vadd.f32 %v2724_v8, %v2436_v38 }
 0x2b3   :  { %3207 = vst [vmem:[%s5915_s3 + $0x168] sm:$0xff] %v4135_v34  ;;  %4148 = vtanh.f32 %v3089_v49  ;;  %v3087_v53 = vadd.f32 %v5494_v30, %v2985_v46  ;;  %v3006_v18 = vadd.f32 %v3625_v52, %v2717_v37  ;;  %v2726_v14 = vpop.f32.mrf.mxu0 }
 0x2b4   :  { %v4137_v15 = vpop.eup %4136  ;;  %v2997_v61 = vpop.f32.mrf.mxu1 }
 0x2b5   :  { %3212 = vst [vmem:[%s5915_s3 + $0x190] sm:$0xff] %v4137_v15  ;;  %4150 = vtanh.f32 %v3087_v53  ;;  %v3092_v23 = vadd.f32 %v5494_v30, %v3006_v18  ;;  %v2998_v50 = vadd.f32 %v2997_v61, %v2709_v19  ;;  %v2727_v39 = vpop.f32.mrf.mxu0 }
 0x2b6   :  { %v4139_v42 = vpop.eup %4138  ;;  %v3626_v59 = vpop.f32.mrf.mxu1  ;;  %v2728_v25 = vadd.f32 %v2727_v39, %v2439_v0 }
 0x2b7   :  { %3210 = vst [vmem:[%s5915_s3 + $0x180] sm:$0xff] %v4139_v42  ;;  %4152 = vtanh.f32 %v3092_v23  ;;  %v3090_v13 = vadd.f32 %v5494_v30, %v2998_v50  ;;  %v3009_v26 = vadd.f32 %v3626_v59, %v2720_v3  ;;  %v2729_v56 = vpop.f32.mrf.mxu0 }
 0x2b8   :  { %v4141_v62 = vpop.eup %4140  ;;  %v3000_v40 = vpop.f32.mrf.mxu1 }
 0x2b9   :  { %3213 = vst [vmem:[%s5915_s3 + $0x198] sm:$0xff] %v4141_v62  ;;  %4154 = vtanh.f32 %v3090_v13  ;;  %v3093_v28 = vadd.f32 %v5494_v30, %v3009_v26  ;;  %v3001_v5 = vadd.f32 %v3000_v40, %v2712_v41  ;;  %v2732_v43 = vpop.f32.mrf.mxu0 }
 0x2ba   :  { %v4143_v58 = vpop.eup %4142  ;;  %v3629_v2 = vpop.f32.mrf.mxu1  ;;  %v2733_v60 = vadd.f32 %v2732_v43, %v2444_v20 }
 0x2bb   :  { %3211 = vst [vmem:[%s5915_s3 + $0x188] sm:$0xff] %v4143_v58  ;;  %4156 = vtanh.f32 %v3093_v28  ;;  %v3091_v6 = vadd.f32 %v5494_v30, %v3001_v5  ;;  %v2734_v47 = vpop.f32.mrf.mxu0 }
 0x2bc   :  { %v4145_v29 = vpop.eup %4144  ;;  %v3013_v36 = vpop.f32.mrf.mxu1  ;;  %v3022_v4 = vadd.f32 %v3629_v2, %v2733_v60 }
 0x2bd   :  { %3216 = vst [vmem:[%s5915_s3 + $0x1b0] sm:$0xff] %v4145_v29  ;;  %4158 = vtanh.f32 %v3091_v6  ;;  %v3014_v24 = vadd.f32 %v3013_v36, %v2725_v1  ;;  %v2735_v33 = vpop.f32.mrf.mxu0 }
 0x2be   :  { %v4147_v17 = vpop.eup %4146  ;;  %v3630_v21 = vpop.f32.mrf.mxu1  ;;  %v3096_v63 = vadd.f32 %v5494_v30, %v3022_v4  ;;  %v2736_v22 = vadd.f32 %v2735_v33, %v2447_v11 }
 0x2bf   :  { %3214 = vst [vmem:[%s5915_s3 + $0x1a0] sm:$0xff] %v4147_v17  ;;  %v3094_v27 = vadd.f32 %v5494_v30, %v3014_v24  ;;  %v2737_v37 = vpop.f32.mrf.mxu0 }
 0x2c0   :  { %v4149_v12 = vpop.eup %4148  ;;  %v3016_v49 = vpop.f32.mrf.mxu1  ;;  %4160 = vtanh.f32 %v3096_v63  ;;  %v3025_v46 = vadd.f32 %v3630_v21, %v2736_v22 }
 0x2c1   :  { %3217 = vst [vmem:[%s5915_s3 + $0x1b8] sm:$0xff] %v4149_v12  ;;  %v3017_v34 = vadd.f32 %v3016_v49, %v2728_v25  ;;  %4162 = vtanh.f32 %v3094_v27 }
 0x2c2   :  { %v4151_v9 = vpop.eup %4150  ;;  %v3097_v54 = vadd.f32 %v5494_v30, %v3025_v46 }
 0x2c3   :  { %3215 = vst [vmem:[%s5915_s3 + $0x1a8] sm:$0xff] %v4151_v9  ;;  %v3095_v55 = vadd.f32 %v5494_v30, %v3017_v34 }
 0x2c4   :  { %v4153_v8 = vpop.eup %4152  ;;  %4164 = vtanh.f32 %v3097_v54 }
 0x2c5   :  { %3220 = vst [vmem:[%s5915_s3 + $0x1d0] sm:$0xff] %v4153_v8  ;;  %4166 = vtanh.f32 %v3095_v55 }
 0x2c6   :  { %v4155_v52 = vpop.eup %4154 }
 0x2c7   :  { %3218 = vst [vmem:[%s5915_s3 + $0x1c0] sm:$0xff] %v4155_v52 }
 0x2c8   :  { %v4157_v19 = vpop.eup %4156 }
 0x2c9   :  { %3221 = vst [vmem:[%s5915_s3 + $0x1d8] sm:$0xff] %v4157_v19 }
 0x2ca   :  { %v4159_v53 = vpop.eup %4158 }
 0x2cb   :  { %3219 = vst [vmem:[%s5915_s3 + $0x1c8] sm:$0xff] %v4159_v53 }
 0x2cd   :  { %v4161_v30 = vpop.eup %4160 }
 0x2ce   :  { %v4163_v18 = vpop.eup %4162  ;;  %3224 = vst [vmem:[%s5915_s3 + $0x1f0] sm:$0xff] %v4161_v30 }
 0x2cf   :  { %3222 = vst [vmem:[%s5915_s3 + $0x1e0] sm:$0xff] %v4163_v18 }
 0x2d1   :  { %v4165_v15 = vpop.eup %4164 }
 0x2d2   :  { %v4167_v31 = vpop.eup %4166  ;;  %3225 = vst [vmem:[%s5915_s3 + $0x1f8] sm:$0xff] %v4165_v15 }
 0x2d3   :  { %3223 = vst [vmem:[%s5915_s3 + $0x1e8] sm:$0xff] %v4167_v31 }

</bundles_post_ra>
